<compile_context>
chip_gen: v7x
topology: tpu7x:2x2x1
jax: 0.10.0
libtpu: 0.0.40
codegen_flags: <defaults>
</compile_context>

<pallas_src>
import functools

import jax
import jax.numpy as jnp
from jax.experimental import pallas as pl
from jax.experimental.pallas import tpu as pltpu

# Logical dims and padded (lane/MXU-aligned) dims.
D_IN, D_H1, D_H2, D_H3, D_OUT = 3000, 1024, 256, 64, 3
D_IN_P, D_H3_P, D_OUT_P = 3072, 128, 128


def mlp_kernel(x_ref,
               w1_ref, b1_ref,
               w2_ref, b2_ref,
               w3_ref, b3_ref,
               w4_ref, b4_ref,
               o_ref):
    # Layer 1: Linear(3072, 1024) + ReLU  (bf16 MXU, f32 accumulation)
    h = jnp.dot(x_ref[...], w1_ref[...], preferred_element_type=jnp.float32)
    h = jnp.maximum(h + b1_ref[...], 0.0)
    # Layer 2: Linear(1024, 256) + ReLU
    h = jnp.dot(h.astype(jnp.bfloat16), w2_ref[...],
                preferred_element_type=jnp.float32)
    h = jnp.maximum(h + b2_ref[...], 0.0)
    # Layer 3: Linear(256, 128) + ReLU  (cols 64..127 are zero padding)
    h = jnp.dot(h.astype(jnp.bfloat16), w3_ref[...],
                preferred_element_type=jnp.float32)
    h = jnp.maximum(h + b3_ref[...], 0.0)
    # Layer 4: Linear(128, 128)  (real output lives in cols 0..2)
    out = jnp.dot(h.astype(jnp.bfloat16), w4_ref[...],
                  preferred_element_type=jnp.float32)
    o_ref[...] = out + b4_ref[...]


def _pad_to(a, shape):
    return jnp.pad(a, [(0, t - s) for s, t in zip(a.shape, shape)])


def _round_up(n, m):
    return ((n + m - 1) // m) * m


@functools.partial(jax.jit, static_argnames=("block_m",))
def simple_nn_forward(x, params, *, block_m=256):
    """x: [batch, 3000] f32; params: ((W,b),)*4 with W [in,out], b [1,out]."""
    (w1, b1), (w2, b2), (w3, b3), (w4, b4) = params
    batch = x.shape[0]

    # Batch tile: up to block_m rows per grid step, multiple of 8 sublanes.
    tm = min(block_m, _round_up(max(batch, 8), 8))
    batch_p = _round_up(batch, tm)

    # Pad + cast (bf16 weights/activations into the MXU; biases stay f32).
    x_p = _pad_to(x, (batch_p, D_IN_P)).astype(jnp.bfloat16)
    w1_p = _pad_to(w1, (D_IN_P, D_H1)).astype(jnp.bfloat16)
    w2_p = w2.astype(jnp.bfloat16)
    w3_p = _pad_to(w3, (D_H2, D_H3_P)).astype(jnp.bfloat16)
    w4_p = _pad_to(w4, (D_H3_P, D_OUT_P)).astype(jnp.bfloat16)
    b3_p = _pad_to(b3, (1, D_H3_P))
    b4_p = _pad_to(b4, (1, D_OUT_P))

    resident = lambda i: (0, 0)  # weights/biases pinned in VMEM across tiles

    weight_bytes = 2 * (w1_p.size + w2_p.size + w3_p.size + w4_p.size)
    cost = pl.CostEstimate(
        flops=2 * batch_p * (D_IN_P * D_H1 + D_H1 * D_H2
                             + D_H2 * D_H3_P + D_H3_P * D_OUT_P),
        transcendentals=0,
        bytes_accessed=weight_bytes + 2 * x_p.size + 4 * batch_p * D_OUT_P,
    )

    out = pl.pallas_call(
        mlp_kernel,
        out_shape=jax.ShapeDtypeStruct((batch_p, D_OUT_P), jnp.float32),
        grid=(batch_p // tm,),
        in_specs=[
            pl.BlockSpec((tm, D_IN_P), lambda i: (i, 0)),   # x tile streams
            pl.BlockSpec((D_IN_P, D_H1), resident),
            pl.BlockSpec((1, D_H1), resident),
            pl.BlockSpec((D_H1, D_H2), resident),
            pl.BlockSpec((1, D_H2), resident),
            pl.BlockSpec((D_H2, D_H3_P), resident),
            pl.BlockSpec((1, D_H3_P), resident),
            pl.BlockSpec((D_H3_P, D_OUT_P), resident),
            pl.BlockSpec((1, D_OUT_P), resident),
        ],
        out_specs=pl.BlockSpec((tm, D_OUT_P), lambda i: (i, 0)),
        compiler_params=pltpu.CompilerParams(
            dimension_semantics=("parallel",),
            vmem_limit_bytes=48 << 20,  # safe on v7x (64 MiB VMEM/TC)
        ),
        cost_estimate=cost,
    )(x_p, w1_p, b1, w2_p, b2, w3_p, b3_p, w4_p, b4_p)

    return out[:batch, :D_OUT]


def init_params(key):
    """Deterministic init mimicking nn.Linear's U(-1/sqrt(fan_in), 1/sqrt(fan_in))."""
    dims = [D_IN, D_H1, D_H2, D_H3, D_OUT]
    params = []
    for i in range(len(dims) - 1):
        fan_in, fan_out = dims[i], dims[i + 1]
        key, kw, kb = jax.random.split(key, 3)
        bound = 1.0 / jnp.sqrt(float(fan_in))
        w = jax.random.uniform(kw, (fan_in, fan_out), jnp.float32, -bound, bound)
        b = jax.random.uniform(kb, (1, fan_out), jnp.float32, -bound, bound)
        params.append((w, b))
    return tuple(params)


if __name__ == "__main__":
    key = jax.random.PRNGKey(0)
    key, kx = jax.random.split(key)

    batch = 8
    x = jax.random.normal(kx, (batch, D_IN), dtype=jnp.float32)
    params = init_params(key)

    y = simple_nn_forward(x, params)
    y = jax.block_until_ready(y)

    # Reference in full f32 (same math as the PyTorch forward).
    ref = x
    for i, (w, b) in enumerate(params):
        ref = ref @ w + b
        if i < 3:
            ref = jnp.maximum(ref, 0.0)

    assert y.shape == (batch, D_OUT)
    # bf16 weights -> slightly looser tolerance (f32 accumulation keeps it tight).
    assert jnp.allclose(y, ref, atol=3e-2, rtol=3e-2), \
        float(jnp.max(jnp.abs(y - ref)))

    print("KERNEL_OK")
</pallas_src>

<mosaic_0001>
module attributes {stable_mosaic.version = 11 : i64} {
  func.func @mlp_kernel(%arg0: i32, %arg1: memref<8x3072xbf16, #tpu.memory_space<vmem>>, %arg2: memref<3072x1024xbf16, #tpu.memory_space<vmem>>, %arg3: memref<1x1024xf32, #tpu.memory_space<vmem>>, %arg4: memref<1024x256xbf16, #tpu.memory_space<vmem>>, %arg5: memref<1x256xf32, #tpu.memory_space<vmem>>, %arg6: memref<256x128xbf16, #tpu.memory_space<vmem>>, %arg7: memref<1x128xf32, #tpu.memory_space<vmem>>, %arg8: memref<128x128xbf16, #tpu.memory_space<vmem>>, %arg9: memref<1x128xf32, #tpu.memory_space<vmem>>, %arg10: memref<8x128xf32, #tpu.memory_space<vmem>>) attributes {dimension_semantics = [#tpu.dimension_semantics<parallel>], iteration_bounds = array<i64: 1>, scalar_prefetch = 0 : i64, scratch_operands = 0 : i64, tpu.core_type = #tpu.core_type<tc>, window_params = [{transform_indices = @transform_0, window_bounds = array<i64: 8, 3072>}, {pipeline_mode = #tpu.pipeline_mode<synchronous>, transform_indices = @transform_1, window_bounds = array<i64: 3072, 1024>}, {pipeline_mode = #tpu.pipeline_mode<synchronous>, transform_indices = @transform_2, window_bounds = array<i64: 1, 1024>}, {pipeline_mode = #tpu.pipeline_mode<synchronous>, transform_indices = @transform_3, window_bounds = array<i64: 1024, 256>}, {pipeline_mode = #tpu.pipeline_mode<synchronous>, transform_indices = @transform_4, window_bounds = array<i64: 1, 256>}, {pipeline_mode = #tpu.pipeline_mode<synchronous>, transform_indices = @transform_5, window_bounds = array<i64: 256, 128>}, {pipeline_mode = #tpu.pipeline_mode<synchronous>, transform_indices = @transform_6, window_bounds = array<i64: 1, 128>}, {pipeline_mode = #tpu.pipeline_mode<synchronous>, transform_indices = @transform_7, window_bounds = array<i64: 128, 128>}, {pipeline_mode = #tpu.pipeline_mode<synchronous>, transform_indices = @transform_8, window_bounds = array<i64: 1, 128>}, {transform_indices = @transform_9, window_bounds = array<i64: 8, 128>}]} {
    %c0 = arith.constant 0 : index
    %c0_0 = arith.constant 0 : index
    %0 = vector.load %arg1[%c0, %c0_0] : memref<8x3072xbf16, #tpu.memory_space<vmem>>, vector<8x3072xbf16>
    %c0_1 = arith.constant 0 : index
    %c0_2 = arith.constant 0 : index
    %1 = vector.load %arg2[%c0_1, %c0_2] : memref<3072x1024xbf16, #tpu.memory_space<vmem>>, vector<3072x1024xbf16>
    %cst = arith.constant dense<0.000000e+00> : vector<8x1024xf32>
    %2 = tpu.matmul %0, %1, %cst {dimension_numbers = #tpu.dot_dimension_numbers<[1], [0], [0], [1], [0, 0, 1, 1], [], []>} : vector<8x3072xbf16>, vector<3072x1024xbf16>, vector<8x1024xf32> -> vector<8x1024xf32>
    %c0_3 = arith.constant 0 : index
    %c0_4 = arith.constant 0 : index
    %3 = vector.load %arg3[%c0_3, %c0_4] : memref<1x1024xf32, #tpu.memory_space<vmem>>, vector<1x1024xf32>
    %4 = vector.broadcast %3 : vector<1x1024xf32> to vector<8x1024xf32>
    %5 = arith.addf %2, %4 : vector<8x1024xf32>
    %cst_5 = arith.constant 0.000000e+00 : f32
    %6 = vector.broadcast %cst_5 : f32 to vector<8x1024xf32>
    %7 = arith.maximumf %5, %6 : vector<8x1024xf32>
    %8 = arith.truncf %7 : vector<8x1024xf32> to vector<8x1024xbf16>
    %c0_6 = arith.constant 0 : index
    %c0_7 = arith.constant 0 : index
    %9 = vector.load %arg4[%c0_6, %c0_7] : memref<1024x256xbf16, #tpu.memory_space<vmem>>, vector<1024x256xbf16>
    %cst_8 = arith.constant dense<0.000000e+00> : vector<8x256xf32>
    %10 = tpu.matmul %8, %9, %cst_8 {dimension_numbers = #tpu.dot_dimension_numbers<[1], [0], [0], [1], [0, 0, 1, 1], [], []>} : vector<8x1024xbf16>, vector<1024x256xbf16>, vector<8x256xf32> -> vector<8x256xf32>
    %c0_9 = arith.constant 0 : index
    %c0_10 = arith.constant 0 : index
    %11 = vector.load %arg5[%c0_9, %c0_10] : memref<1x256xf32, #tpu.memory_space<vmem>>, vector<1x256xf32>
    %12 = vector.broadcast %11 : vector<1x256xf32> to vector<8x256xf32>
    %13 = arith.addf %10, %12 : vector<8x256xf32>
    %cst_11 = arith.constant 0.000000e+00 : f32
    %14 = vector.broadcast %cst_11 : f32 to vector<8x256xf32>
    %15 = arith.maximumf %13, %14 : vector<8x256xf32>
    %16 = arith.truncf %15 : vector<8x256xf32> to vector<8x256xbf16>
    %c0_12 = arith.constant 0 : index
    %c0_13 = arith.constant 0 : index
    %17 = vector.load %arg6[%c0_12, %c0_13] : memref<256x128xbf16, #tpu.memory_space<vmem>>, vector<256x128xbf16>
    %cst_14 = arith.constant dense<0.000000e+00> : vector<8x128xf32>
    %18 = tpu.matmul %16, %17, %cst_14 {dimension_numbers = #tpu.dot_dimension_numbers<[1], [0], [0], [1], [0, 0, 1, 1], [], []>} : vector<8x256xbf16>, vector<256x128xbf16>, vector<8x128xf32> -> vector<8x128xf32>
    %c0_15 = arith.constant 0 : index
    %c0_16 = arith.constant 0 : index
    %19 = vector.load %arg7[%c0_15, %c0_16] : memref<1x128xf32, #tpu.memory_space<vmem>>, vector<1x128xf32>
    %20 = vector.broadcast %19 : vector<1x128xf32> to vector<8x128xf32>
    %21 = arith.addf %18, %20 : vector<8x128xf32>
    %cst_17 = arith.constant 0.000000e+00 : f32
    %22 = vector.broadcast %cst_17 : f32 to vector<8x128xf32>
    %23 = arith.maximumf %21, %22 : vector<8x128xf32>
    %24 = arith.truncf %23 : vector<8x128xf32> to vector<8x128xbf16>
    %c0_18 = arith.constant 0 : index
    %c0_19 = arith.constant 0 : index
    %25 = vector.load %arg8[%c0_18, %c0_19] : memref<128x128xbf16, #tpu.memory_space<vmem>>, vector<128x128xbf16>
    %cst_20 = arith.constant dense<0.000000e+00> : vector<8x128xf32>
    %26 = tpu.matmul %24, %25, %cst_20 {dimension_numbers = #tpu.dot_dimension_numbers<[1], [0], [0], [1], [0, 0, 1, 1], [], []>} : vector<8x128xbf16>, vector<128x128xbf16>, vector<8x128xf32> -> vector<8x128xf32>
    %c0_21 = arith.constant 0 : index
    %c0_22 = arith.constant 0 : index
    %27 = vector.load %arg9[%c0_21, %c0_22] : memref<1x128xf32, #tpu.memory_space<vmem>>, vector<1x128xf32>
    %28 = vector.broadcast %27 : vector<1x128xf32> to vector<8x128xf32>
    %29 = arith.addf %26, %28 : vector<8x128xf32>
    %c0_23 = arith.constant 0 : index
    %c0_24 = arith.constant 0 : index
    %30 = vector.load %arg10[%c0_23, %c0_24] : memref<8x128xf32, #tpu.memory_space<vmem>>, vector<8x128xf32>
    tpu.vector_store %arg10[%c0_23, %c0_24], %29 {strides = array<i32>} : memref<8x128xf32, #tpu.memory_space<vmem>>, vector<8x128xf32>,
    return
  }
  func.func @transform_0(%arg0: i32) -> (i32, i32) {
    %c0_i32 = arith.constant 0 : i32
    %c0_i32_0 = arith.constant 0 : i32
    return %arg0, %c0_i32 : i32, i32
  }
  func.func @transform_1(%arg0: i32) -> (i32, i32) {
    %c0_i32 = arith.constant 0 : i32
    %c0_i32_0 = arith.constant 0 : i32
    %c0_i32_1 = arith.constant 0 : i32
    return %c0_i32, %c0_i32_0 : i32, i32
  }
  func.func @transform_2(%arg0: i32) -> (i32, i32) {
    %c0_i32 = arith.constant 0 : i32
    %c0_i32_0 = arith.constant 0 : i32
    %c0_i32_1 = arith.constant 0 : i32
    return %c0_i32, %c0_i32_0 : i32, i32
  }
  func.func @transform_3(%arg0: i32) -> (i32, i32) {
    %c0_i32 = arith.constant 0 : i32
    %c0_i32_0 = arith.constant 0 : i32
    %c0_i32_1 = arith.constant 0 : i32
    return %c0_i32, %c0_i32_0 : i32, i32
  }
  func.func @transform_4(%arg0: i32) -> (i32, i32) {
    %c0_i32 = arith.constant 0 : i32
    %c0_i32_0 = arith.constant 0 : i32
    %c0_i32_1 = arith.constant 0 : i32
    return %c0_i32, %c0_i32_0 : i32, i32
  }
  func.func @transform_5(%arg0: i32) -> (i32, i32) {
    %c0_i32 = arith.constant 0 : i32
    %c0_i32_0 = arith.constant 0 : i32
    %c0_i32_1 = arith.constant 0 : i32
    return %c0_i32, %c0_i32_0 : i32, i32
  }
  func.func @transform_6(%arg0: i32) -> (i32, i32) {
    %c0_i32 = arith.constant 0 : i32
    %c0_i32_0 = arith.constant 0 : i32
    %c0_i32_1 = arith.constant 0 : i32
    return %c0_i32, %c0_i32_0 : i32, i32
  }
  func.func @transform_7(%arg0: i32) -> (i32, i32) {
    %c0_i32 = arith.constant 0 : i32
    %c0_i32_0 = arith.constant 0 : i32
    %c0_i32_1 = arith.constant 0 : i32
    return %c0_i32, %c0_i32_0 : i32, i32
  }
  func.func @transform_8(%arg0: i32) -> (i32, i32) {
    %c0_i32 = arith.constant 0 : i32
    %c0_i32_0 = arith.constant 0 : i32
    %c0_i32_1 = arith.constant 0 : i32
    return %c0_i32, %c0_i32_0 : i32, i32
  }
  func.func @transform_9(%arg0: i32) -> (i32, i32) {
    %c0_i32 = arith.constant 0 : i32
    %c0_i32_0 = arith.constant 0 : i32
    return %arg0, %c0_i32 : i32, i32
  }
}

</mosaic_0001>

<bundles_post_ra>
// kernel: simple_nn_forward.1
= control target key start
LH: loop header
LB: loop body
LE: loop exit
PB: predicated region body
PF: predicated region fallthrough
CT: control target
= control target key end

     0   :  { %vm14817_vm0 = vmmov 0   ;;  %s20246_s1 = inlined_call_operand.vmem [shape: bf16[3072,1024], index: 1, kind: input, shape index: {}]   ;;  %s20247_s0 = inlined_call_operand.vmem [shape: bf16[8,3072], index: 0, kind: input, shape index: {}]   ;;  %s20248_s2 = inlined_call_operand.vmem [shape: f32[1,1024], index: 2, kind: input, shape index: {}]   ;;  %s20249_s3 = inlined_call_operand.vmem [shape: bf16[1024,256], index: 3, kind: input, shape index: {}]   ;;  %s20250_s5 = inlined_call_operand.vmem [shape: bf16[256,128], index: 5, kind: input, shape index: {}]   ;;  %s20251_s7 = inlined_call_operand.vmem [shape: bf16[128,128], index: 7, kind: input, shape index: {}]   ;;  %s20252_s4 = inlined_call_operand.vmem [shape: f32[1,256], index: 4, kind: input, shape index: {}]   ;;  %s20253_s6 = inlined_call_operand.vmem [shape: f32[1,128], index: 6, kind: input, shape index: {}]   ;;  %s20254_s8 = inlined_call_operand.vmem [shape: f32[1,128], index: 8, kind: input, shape index: {}]   ;;  %s20255_s9 = inlined_call_operand.vmem [shape: f32[8,128], index: 9, kind: output, shape index: {}]  }
   0x1   :  { %v45_v0 = vld [vmem:[%s20246_s1] sm:$0xff]  ;;  %v14960_v54 = vld [vmem:[%s20247_s0 + $0x8] sm:$0xff] }
   0x2   :  { %v49_v1 = vld [vmem:[%s20246_s1 + $0x20] sm:$0xff]  ;;  %v14980_v61 = vcombine.high %v14960_v54, %v14960_v54 }
   0x3   :  { %v173_v2 = vld [vmem:[%s20246_s1 + $0x400] sm:$0xff]  ;;  %v12637_v3 = vcombine.high %v45_v0, %v49_v1  ;;  %v12636_v5 = vcombine.low %v45_v0, %v49_v1 }
   0x4   :  { %v177_v4 = vld [vmem:[%s20246_s1 + $0x420] sm:$0xff]  ;;  %9460 = vmatprep.mubr.bf16.mxu0 %v14980_v61 }
   0x5   :  { %v53_v6 = vld [vmem:[%s20246_s1 + $0x40] sm:$0xff]  ;;  %v12765_v8 = vcombine.high %v173_v2, %v177_v4  ;;  %v12764_v9 = vcombine.low %v173_v2, %v177_v4  ;;  %9387 = vmatprep.subr.bf16.mxu1 %v12637_v3 }
   0x6   :  { %v57_v7 = vld [vmem:[%s20246_s1 + $0x60] sm:$0xff]  ;;  %9388 = vmatpush1.bf16.msra.mxu1 %v12636_v5 }
   0x7   :  { %v12645_v10 = vcombine.high %v53_v6, %v57_v7  ;;  %v181_v11 = vld [vmem:[%s20246_s1 + $0x440] sm:$0xff]  ;;  %9428 = vmatprep.subr.bf16.mxu0 %v12765_v8  ;;  %v12644_v18 = vcombine.low %v53_v6, %v57_v7 }
   0x8   :  { %v185_v12 = vld [vmem:[%s20246_s1 + $0x460] sm:$0xff]  ;;  %9429 = vmatpush1.bf16.msra.mxu0 %v12764_v9 }
   0x9   :  { %v61_v13 = vld [vmem:[%s20246_s1 + $0x80] sm:$0xff]  ;;  %v12773_v14 = vcombine.high %v181_v11, %v185_v12  ;;  %9389 = vmatprep.subr.bf16.mxu1 %v12645_v10  ;;  %v12772_v19 = vcombine.low %v181_v11, %v185_v12 }
   0xa   :  { %v65_v15 = vld [vmem:[%s20246_s1 + $0xa0] sm:$0xff]  ;;  %9390 = vmatpush1.bf16.msra.mxu1 %v12644_v18 }
   0xb   :  { %v189_v16 = vld [vmem:[%s20246_s1 + $0x480] sm:$0xff]  ;;  %v12653_v20 = vcombine.high %v61_v13, %v65_v15  ;;  %9430 = vmatprep.subr.bf16.mxu0 %v12773_v14  ;;  %v12652_v26 = vcombine.low %v61_v13, %v65_v15 }
   0xc   :  { %v193_v17 = vld [vmem:[%s20246_s1 + $0x4a0] sm:$0xff]  ;;  %9431 = vmatpush1.bf16.msra.mxu0 %v12772_v19 }
   0xd   :  { %v12781_v21 = vcombine.high %v189_v16, %v193_v17  ;;  %v69_v22 = vld [vmem:[%s20246_s1 + $0xc0] sm:$0xff]  ;;  %9391 = vmatprep.subr.bf16.mxu1 %v12653_v20  ;;  %v12780_v27 = vcombine.low %v189_v16, %v193_v17 }
   0xe   :  { %v73_v23 = vld [vmem:[%s20246_s1 + $0xe0] sm:$0xff]  ;;  %9392 = vmatpush1.bf16.msra.mxu1 %v12652_v26 }
   0xf   :  { %v197_v24 = vld [vmem:[%s20246_s1 + $0x4c0] sm:$0xff]  ;;  %v12661_v28 = vcombine.high %v69_v22, %v73_v23  ;;  %9432 = vmatprep.subr.bf16.mxu0 %v12781_v21  ;;  %v12660_v34 = vcombine.low %v69_v22, %v73_v23 }
  0x10   :  { %v201_v25 = vld [vmem:[%s20246_s1 + $0x4e0] sm:$0xff]  ;;  %9433 = vmatpush1.bf16.msra.mxu0 %v12780_v27 }
  0x11   :  { %v12789_v29 = vcombine.high %v197_v24, %v201_v25  ;;  %v77_v30 = vld [vmem:[%s20246_s1 + $0x100] sm:$0xff]  ;;  %9393 = vmatprep.subr.bf16.mxu1 %v12661_v28  ;;  %v12788_v35 = vcombine.low %v197_v24, %v201_v25 }
  0x12   :  { %v81_v31 = vld [vmem:[%s20246_s1 + $0x120] sm:$0xff]  ;;  %9394 = vmatpush1.bf16.msra.mxu1 %v12660_v34 }
  0x13   :  { %v205_v32 = vld [vmem:[%s20246_s1 + $0x500] sm:$0xff]  ;;  %v12669_v36 = vcombine.high %v77_v30, %v81_v31  ;;  %9434 = vmatprep.subr.bf16.mxu0 %v12789_v29  ;;  %v12668_v42 = vcombine.low %v77_v30, %v81_v31 }
  0x14   :  { %v209_v33 = vld [vmem:[%s20246_s1 + $0x520] sm:$0xff]  ;;  %9435 = vmatpush1.bf16.msra.mxu0 %v12788_v35 }
  0x15   :  { %v12797_v37 = vcombine.high %v205_v32, %v209_v33  ;;  %v85_v38 = vld [vmem:[%s20246_s1 + $0x140] sm:$0xff]  ;;  %9395 = vmatprep.subr.bf16.mxu1 %v12669_v36  ;;  %v12796_v43 = vcombine.low %v205_v32, %v209_v33 }
  0x16   :  { %v89_v39 = vld [vmem:[%s20246_s1 + $0x160] sm:$0xff]  ;;  %9396 = vmatpush1.bf16.msra.mxu1 %v12668_v42 }
  0x17   :  { %v213_v40 = vld [vmem:[%s20246_s1 + $0x540] sm:$0xff]  ;;  %v12677_v44 = vcombine.high %v85_v38, %v89_v39  ;;  %9436 = vmatprep.subr.bf16.mxu0 %v12797_v37  ;;  %v12676_v50 = vcombine.low %v85_v38, %v89_v39 }
  0x18   :  { %v217_v41 = vld [vmem:[%s20246_s1 + $0x560] sm:$0xff]  ;;  %9437 = vmatpush1.bf16.msra.mxu0 %v12796_v43 }
  0x19   :  { %v12805_v45 = vcombine.high %v213_v40, %v217_v41  ;;  %v93_v46 = vld [vmem:[%s20246_s1 + $0x180] sm:$0xff]  ;;  %9397 = vmatprep.subr.bf16.mxu1 %v12677_v44  ;;  %v12804_v51 = vcombine.low %v213_v40, %v217_v41 }
  0x1a   :  { %v97_v47 = vld [vmem:[%s20246_s1 + $0x1a0] sm:$0xff]  ;;  %9398 = vmatpush1.bf16.msra.mxu1 %v12676_v50 }
  0x1b   :  { %v221_v48 = vld [vmem:[%s20246_s1 + $0x580] sm:$0xff]  ;;  %v12685_v52 = vcombine.high %v93_v46, %v97_v47  ;;  %9438 = vmatprep.subr.bf16.mxu0 %v12805_v45  ;;  %v12684_v62 = vcombine.low %v93_v46, %v97_v47 }
  0x1c   :  { %v225_v49 = vld [vmem:[%s20246_s1 + $0x5a0] sm:$0xff]  ;;  %9439 = vmatpush1.bf16.msra.mxu0 %v12804_v51 }
  0x1d   :  { %v14955_v53 = vld [vmem:[%s20247_s0] sm:$0xff]  ;;  %v12813_v55 = vcombine.high %v221_v48, %v225_v49  ;;  %9399 = vmatprep.subr.bf16.mxu1 %v12685_v52  ;;  %v12812_v63 = vcombine.low %v221_v48, %v225_v49 }
  0x1e   :  { %v101_v56 = vld [vmem:[%s20246_s1 + $0x1c0] sm:$0xff]  ;;  %v14970_v58 = vcombine.high %v14955_v53, %v14955_v53  ;;  %9400 = vmatpush1.bf16.msra.mxu1 %v12684_v62 }
  0x1f   :  { %v105_v57 = vld [vmem:[%s20246_s1 + $0x1e0] sm:$0xff]  ;;  %9440 = vmatprep.subr.bf16.mxu0 %v12813_v55 }
  0x20   :  { %v229_v59 = vld [vmem:[%s20246_s1 + $0x5c0] sm:$0xff]  ;;  %9419 = vmatprep.mubr.bf16.mxu1 %v14970_v58  ;;  %v12693_v0 = vcombine.high %v101_v56, %v105_v57  ;;  %v12692_v6 = vcombine.low %v101_v56, %v105_v57  ;;  %9441 = vmatpush1.bf16.msra.mxu0 %v12812_v63 }
  0x21   :  { %v233_v60 = vld [vmem:[%s20246_s1 + $0x5e0] sm:$0xff] }
  0x22   :  { %v12821_v1 = vcombine.high %v229_v59, %v233_v60  ;;  %v109_v2 = vld [vmem:[%s20246_s1 + $0x200] sm:$0xff]  ;;  %9401 = vmatprep.subr.bf16.mxu1 %v12693_v0  ;;  %v12820_v7 = vcombine.low %v229_v59, %v233_v60 }
  0x23   :  { %v113_v3 = vld [vmem:[%s20246_s1 + $0x220] sm:$0xff]  ;;  %9402 = vmatpush1.bf16.msra.mxu1 %v12692_v6  ;;  %v46_v6 = vld [vmem:[%s20246_s1 + $0x8] sm:$0xff] }
  0x24   :  { %v237_v4 = vld [vmem:[%s20246_s1 + $0x600] sm:$0xff]  ;;  %v12701_v8 = vcombine.high %v109_v2, %v113_v3  ;;  %9442 = vmatprep.subr.bf16.mxu0 %v12821_v1  ;;  %v12700_v14 = vcombine.low %v109_v2, %v113_v3 }
  0x25   :  { %v241_v5 = vld [vmem:[%s20246_s1 + $0x620] sm:$0xff]  ;;  %9443 = vmatpush1.bf16.msra.mxu0 %v12820_v7  ;;  %v50_v7 = vld [vmem:[%s20246_s1 + $0x28] sm:$0xff] }
  0x26   :  { %v12829_v9 = vcombine.high %v237_v4, %v241_v5  ;;  %v117_v10 = vld [vmem:[%s20246_s1 + $0x240] sm:$0xff]  ;;  %9403 = vmatprep.subr.bf16.mxu1 %v12701_v8  ;;  %v12828_v15 = vcombine.low %v237_v4, %v241_v5 }
  0x27   :  { %v121_v11 = vld [vmem:[%s20246_s1 + $0x260] sm:$0xff]  ;;  %9404 = vmatpush1.bf16.msra.mxu1 %v12700_v14  ;;  %v54_v14 = vld [vmem:[%s20246_s1 + $0x48] sm:$0xff] }
  0x28   :  { %v245_v12 = vld [vmem:[%s20246_s1 + $0x640] sm:$0xff]  ;;  %v12709_v16 = vcombine.high %v117_v10, %v121_v11  ;;  %9444 = vmatprep.subr.bf16.mxu0 %v12829_v9  ;;  %v12708_v22 = vcombine.low %v117_v10, %v121_v11 }
  0x29   :  { %v249_v13 = vld [vmem:[%s20246_s1 + $0x660] sm:$0xff]  ;;  %9445 = vmatpush1.bf16.msra.mxu0 %v12828_v15  ;;  %v58_v15 = vld [vmem:[%s20246_s1 + $0x68] sm:$0xff] }
  0x2a   :  { %v12837_v17 = vcombine.high %v245_v12, %v249_v13  ;;  %v125_v18 = vld [vmem:[%s20246_s1 + $0x280] sm:$0xff]  ;;  %9405 = vmatprep.subr.bf16.mxu1 %v12709_v16  ;;  %v12836_v23 = vcombine.low %v245_v12, %v249_v13  ;;  %v12639_v12 = vcombine.high %v46_v6, %v50_v7  ;;  %v15100_v16 = vcombine.low %v14955_v53, %v14955_v53 }
  0x2b   :  { %v129_v19 = vld [vmem:[%s20246_s1 + $0x2a0] sm:$0xff]  ;;  %9406 = vmatpush1.bf16.msra.mxu1 %v12708_v22  ;;  %v12647_v22 = vcombine.high %v54_v14, %v58_v15 }
  0x2c   :  { %v253_v20 = vld [vmem:[%s20246_s1 + $0x680] sm:$0xff]  ;;  %v12717_v24 = vcombine.high %v125_v18, %v129_v19  ;;  %9446 = vmatprep.subr.bf16.mxu0 %v12837_v17  ;;  %v12716_v30 = vcombine.low %v125_v18, %v129_v19  ;;  %v15111_v19 = vld [vmem:[%s20247_s0 + $0x10] sm:$0xff] }
  0x2d   :  { %v257_v21 = vld [vmem:[%s20246_s1 + $0x6a0] sm:$0xff]  ;;  %9447 = vmatpush1.bf16.msra.mxu0 %v12836_v23 }
  0x2e   :  { %v12845_v25 = vcombine.high %v253_v20, %v257_v21  ;;  %v133_v26 = vld [vmem:[%s20246_s1 + $0x2c0] sm:$0xff]  ;;  %9407 = vmatprep.subr.bf16.mxu1 %v12717_v24  ;;  %v12844_v31 = vcombine.low %v253_v20, %v257_v21  ;;  %v12638_v20 = vcombine.low %v46_v6, %v50_v7  ;;  %v15115_v21 = vcombine.low %v14960_v54, %v14960_v54  ;;  %v62_v24 = vld [vmem:[%s20246_s1 + $0x88] sm:$0xff] }
  0x2f   :  { %v137_v27 = vld [vmem:[%s20246_s1 + $0x2e0] sm:$0xff]  ;;  %9408 = vmatpush1.bf16.msra.mxu1 %v12716_v30 }
  0x30   :  { %v261_v28 = vld [vmem:[%s20246_s1 + $0x6c0] sm:$0xff]  ;;  %v12725_v32 = vcombine.high %v133_v26, %v137_v27  ;;  %9448 = vmatprep.subr.bf16.mxu0 %v12845_v25  ;;  %v12724_v38 = vcombine.low %v133_v26, %v137_v27  ;;  %v66_v25 = vld [vmem:[%s20246_s1 + $0xa8] sm:$0xff]  ;;  %v15125_v26 = vcombine.high %v15111_v19, %v15111_v19 }
  0x31   :  { %v265_v29 = vld [vmem:[%s20246_s1 + $0x6e0] sm:$0xff]  ;;  %9449 = vmatpush1.bf16.msra.mxu0 %v12844_v31  ;;  %v12655_v30 = vcombine.high %v62_v24, %v66_v25 }
  0x32   :  { %v12853_v33 = vcombine.high %v261_v28, %v265_v29  ;;  %v141_v34 = vld [vmem:[%s20246_s1 + $0x300] sm:$0xff]  ;;  %9409 = vmatprep.subr.bf16.mxu1 %v12725_v32  ;;  %v12852_v39 = vcombine.low %v261_v28, %v265_v29  ;;  %v12646_v28 = vcombine.low %v54_v14, %v58_v15  ;;  %v70_v32 = vld [vmem:[%s20246_s1 + $0xc8] sm:$0xff] }
  0x33   :  { %v145_v35 = vld [vmem:[%s20246_s1 + $0x320] sm:$0xff]  ;;  %9410 = vmatpush1.bf16.msra.mxu1 %v12724_v38 }
  0x34   :  { %v269_v36 = vld [vmem:[%s20246_s1 + $0x700] sm:$0xff]  ;;  %v12733_v40 = vcombine.high %v141_v34, %v145_v35  ;;  %9450 = vmatprep.subr.bf16.mxu0 %v12853_v33  ;;  %v12732_v46 = vcombine.low %v141_v34, %v145_v35  ;;  %v74_v33 = vld [vmem:[%s20246_s1 + $0xe8] sm:$0xff] }
  0x35   :  { %v273_v37 = vld [vmem:[%s20246_s1 + $0x720] sm:$0xff]  ;;  %9451 = vmatpush1.bf16.msra.mxu0 %v12852_v39  ;;  %v12663_v38 = vcombine.high %v70_v32, %v74_v33 }
  0x36   :  { %v12861_v41 = vcombine.high %v269_v36, %v273_v37  ;;  %v149_v42 = vld [vmem:[%s20246_s1 + $0x340] sm:$0xff]  ;;  %9411 = vmatprep.subr.bf16.mxu1 %v12733_v40  ;;  %v12860_v47 = vcombine.low %v269_v36, %v273_v37  ;;  %v12654_v36 = vcombine.low %v62_v24, %v66_v25  ;;  %v78_v40 = vld [vmem:[%s20246_s1 + $0x108] sm:$0xff] }
  0x37   :  { %v153_v43 = vld [vmem:[%s20246_s1 + $0x360] sm:$0xff]  ;;  %9412 = vmatpush1.bf16.msra.mxu1 %v12732_v46 }
  0x38   :  { %v277_v44 = vld [vmem:[%s20246_s1 + $0x740] sm:$0xff]  ;;  %v12741_v48 = vcombine.high %v149_v42, %v153_v43  ;;  %9452 = vmatprep.subr.bf16.mxu0 %v12861_v41  ;;  %v12740_v56 = vcombine.low %v149_v42, %v153_v43  ;;  %v82_v41 = vld [vmem:[%s20246_s1 + $0x128] sm:$0xff] }
  0x39   :  { %v281_v45 = vld [vmem:[%s20246_s1 + $0x760] sm:$0xff]  ;;  %9453 = vmatpush1.bf16.msra.mxu0 %v12860_v47  ;;  %v12671_v46 = vcombine.high %v78_v40, %v82_v41 }
  0x3a   :  { %v12869_v49 = vcombine.high %v277_v44, %v281_v45  ;;  %v157_v50 = vld [vmem:[%s20246_s1 + $0x380] sm:$0xff]  ;;  %9413 = vmatprep.subr.bf16.mxu1 %v12741_v48  ;;  %v12868_v57 = vcombine.low %v277_v44, %v281_v45  ;;  %v12662_v44 = vcombine.low %v70_v32, %v74_v33  ;;  %v86_v48 = vld [vmem:[%s20246_s1 + $0x148] sm:$0xff] }
  0x3b   :  { %v161_v51 = vld [vmem:[%s20246_s1 + $0x3a0] sm:$0xff]  ;;  %9414 = vmatpush1.bf16.msra.mxu1 %v12740_v56 }
  0x3c   :  { %v285_v52 = vld [vmem:[%s20246_s1 + $0x780] sm:$0xff]  ;;  %v12749_v59 = vcombine.high %v157_v50, %v161_v51  ;;  %9454 = vmatprep.subr.bf16.mxu0 %v12869_v49  ;;  %v12748_v2 = vcombine.low %v157_v50, %v161_v51  ;;  %v90_v49 = vld [vmem:[%s20246_s1 + $0x168] sm:$0xff] }
  0x3d   :  { %v289_v55 = vld [vmem:[%s20246_s1 + $0x7a0] sm:$0xff]  ;;  %9455 = vmatpush1.bf16.msra.mxu0 %v12868_v57  ;;  %v12679_v56 = vcombine.high %v86_v48, %v90_v49 }
  0x3e   :  { %v12877_v60 = vcombine.high %v285_v52, %v289_v55  ;;  %v165_v62 = vld [vmem:[%s20246_s1 + $0x3c0] sm:$0xff]  ;;  %9415 = vmatprep.subr.bf16.mxu1 %v12749_v59  ;;  %v12876_v3 = vcombine.low %v285_v52, %v289_v55  ;;  %v12670_v52 = vcombine.low %v78_v40, %v82_v41  ;;  %v94_v59 = vld [vmem:[%s20246_s1 + $0x188] sm:$0xff] }
  0x3f   :  { %v169_v63 = vld [vmem:[%s20246_s1 + $0x3e0] sm:$0xff]  ;;  %9416 = vmatpush1.bf16.msra.mxu1 %v12748_v2 }
  0x40   :  { %v293_v0 = vld [vmem:[%s20246_s1 + $0x7c0] sm:$0xff]  ;;  %v12757_v4 = vcombine.high %v165_v62, %v169_v63  ;;  %9456 = vmatprep.subr.bf16.mxu0 %v12877_v60  ;;  %v12756_v10 = vcombine.low %v165_v62, %v169_v63  ;;  %v98_v60 = vld [vmem:[%s20246_s1 + $0x1a8] sm:$0xff] }
  0x41   :  { %v297_v1 = vld [vmem:[%s20246_s1 + $0x7e0] sm:$0xff]  ;;  %9457 = vmatpush1.bf16.msra.mxu0 %v12876_v3  ;;  %v12687_v2 = vcombine.high %v94_v59, %v98_v60 }
  0x42   :  { %v12885_v5 = vcombine.high %v293_v0, %v297_v1  ;;  %v301_v8 = vld [vmem:[%s20246_s1 + $0x800] sm:$0xff]  ;;  %9417 = vmatprep.subr.bf16.mxu1 %v12757_v4  ;;  %v12884_v11 = vcombine.low %v293_v0, %v297_v1  ;;  %v12678_v0 = vcombine.low %v86_v48, %v90_v49  ;;  %v102_v4 = vld [vmem:[%s20246_s1 + $0x1c8] sm:$0xff] }
  0x43   :  { %v305_v9 = vld [vmem:[%s20246_s1 + $0x820] sm:$0xff]  ;;  %9418 = vmatpush1.bf16.msra.mxu1 %v12756_v10 }
  0x44   :  { %9458 = vmatprep.subr.bf16.mxu0 %v12885_v5  ;;  %v12893_v13 = vcombine.high %v301_v8, %v305_v9  ;;  %v309_v17 = vld [vmem:[%s20246_s1 + $0x840] sm:$0xff]  ;;  %v12892_v53 = vcombine.low %v301_v8, %v305_v9  ;;  %9879 = vmatprep.subr.bf16.mxu1 %v12639_v12  ;;  %v106_v5 = vld [vmem:[%s20246_s1 + $0x1e8] sm:$0xff]  ;;  %v12686_v8 = vcombine.low %v94_v59, %v98_v60 }
  0x45   :  { %v313_v18 = vld [vmem:[%s20246_s1 + $0x860] sm:$0xff]  ;;  %9459 = vmatpush1.bf16.msra.mxu0 %v12884_v11  ;;  %v12695_v10 = vcombine.high %v102_v4, %v106_v5  ;;  %v110_v12 = vld [vmem:[%s20246_s1 + $0x208] sm:$0xff] }
  0x46   :  { %9469 = vmatprep.subr.bf16.mxu0 %v12893_v13  ;;  %v12901_v23 = vcombine.high %v309_v17, %v313_v18  ;;  %9420 = vmatmul.mubr.bf16.vlgmr.msra.gmra.mrb[0].mxu1 %v15100_v16  ;;  %v317_v54 = vld [vmem:[%s20246_s1 + $0x880] sm:$0xff]  ;;  %v12900_v29 = vcombine.low %v309_v17, %v313_v18  ;;  %v114_v13 = vld [vmem:[%s20246_s1 + $0x228] sm:$0xff]  ;;  %v12694_v17 = vcombine.low %v102_v4, %v106_v5 }
  0x47   :  { %v321_v27 = vld [vmem:[%s20246_s1 + $0x8a0] sm:$0xff]  ;;  %9880 = vmatpush1.bf16.msra.mxu1 %v12638_v20  ;;  %9911 = vmatprep.mubr.bf16.mxu1 %v14970_v58  ;;  %v12703_v20 = vcombine.high %v110_v12, %v114_v13 }
  0x48   :  { %9461 = vmatmul.mubr.bf16.vlgmr.msra.gmra.mrb[0].mxu0 %v15115_v21  ;;  %9881 = vmatprep.subr.bf16.mxu1 %v12647_v22  ;;  %v12909_v31 = vcombine.high %v317_v54, %v321_v27  ;;  %v325_v34 = vld [vmem:[%s20246_s1 + $0x8c0] sm:$0xff]  ;;  %v12908_v37 = vcombine.low %v317_v54, %v321_v27  ;;  %v118_v22 = vld [vmem:[%s20246_s1 + $0x248] sm:$0xff]  ;;  %v12702_v54 = vcombine.low %v110_v12, %v114_v13 }
  0x49   :  { %9470 = vmatpush1.bf16.msra.mxu0 %v12892_v53  ;;  %9501 = vmatprep.mubr.bf16.mxu0 %v15125_v26  ;;  %v329_v35 = vld [vmem:[%s20246_s1 + $0x8e0] sm:$0xff] }
  0x4a   :  { %9471 = vmatprep.subr.bf16.mxu0 %v12901_v23  ;;  %v12917_v39 = vcombine.high %v325_v34, %v329_v35  ;;  %v333_v42 = vld [vmem:[%s20246_s1 + $0x900] sm:$0xff]  ;;  %v12916_v45 = vcombine.low %v325_v34, %v329_v35  ;;  %v122_v23 = vld [vmem:[%s20246_s1 + $0x268] sm:$0xff] }
  0x4b   :  { %9882 = vmatpush1.bf16.msra.mxu1 %v12646_v28  ;;  %v337_v43 = vld [vmem:[%s20246_s1 + $0x920] sm:$0xff]  ;;  %v12711_v28 = vcombine.high %v118_v22, %v122_v23  ;;  %v12710_v34 = vcombine.low %v118_v22, %v122_v23 }
  0x4c   :  { %9883 = vmatprep.subr.bf16.mxu1 %v12655_v30  ;;  %v12925_v47 = vcombine.high %v333_v42, %v337_v43  ;;  %v341_v50 = vld [vmem:[%s20246_s1 + $0x940] sm:$0xff]  ;;  %v12924_v55 = vcombine.low %v333_v42, %v337_v43  ;;  %v126_v30 = vld [vmem:[%s20246_s1 + $0x288] sm:$0xff] }
  0x4d   :  { %9472 = vmatpush1.bf16.msra.mxu0 %v12900_v29  ;;  %v345_v51 = vld [vmem:[%s20246_s1 + $0x960] sm:$0xff] }
  0x4e   :  { %9473 = vmatprep.subr.bf16.mxu0 %v12909_v31  ;;  %v12933_v57 = vcombine.high %v341_v50, %v345_v51  ;;  %v349_v62 = vld [vmem:[%s20246_s1 + $0x980] sm:$0xff]  ;;  %v12932_v1 = vcombine.low %v341_v50, %v345_v51  ;;  %v130_v31 = vld [vmem:[%s20246_s1 + $0x2a8] sm:$0xff] }
  0x4f   :  { %9884 = vmatpush1.bf16.msra.mxu1 %v12654_v36  ;;  %v353_v63 = vld [vmem:[%s20246_s1 + $0x9a0] sm:$0xff]  ;;  %v12719_v36 = vcombine.high %v126_v30, %v130_v31  ;;  %v12718_v42 = vcombine.low %v126_v30, %v130_v31 }
  0x50   :  { %9885 = vmatprep.subr.bf16.mxu1 %v12663_v38  ;;  %v12941_v3 = vcombine.high %v349_v62, %v353_v63  ;;  %v357_v6 = vld [vmem:[%s20246_s1 + $0x9c0] sm:$0xff]  ;;  %v12940_v9 = vcombine.low %v349_v62, %v353_v63  ;;  %v134_v38 = vld [vmem:[%s20246_s1 + $0x2c8] sm:$0xff] }
  0x51   :  { %9474 = vmatpush1.bf16.msra.mxu0 %v12908_v37  ;;  %v361_v7 = vld [vmem:[%s20246_s1 + $0x9e0] sm:$0xff] }
  0x52   :  { %9475 = vmatprep.subr.bf16.mxu0 %v12917_v39  ;;  %v12949_v11 = vcombine.high %v357_v6, %v361_v7  ;;  %v365_v14 = vld [vmem:[%s20246_s1 + $0xa00] sm:$0xff]  ;;  %v12948_v18 = vcombine.low %v357_v6, %v361_v7  ;;  %v138_v39 = vld [vmem:[%s20246_s1 + $0x2e8] sm:$0xff] }
  0x53   :  { %9886 = vmatpush1.bf16.msra.mxu1 %v12662_v44  ;;  %v369_v15 = vld [vmem:[%s20246_s1 + $0xa20] sm:$0xff]  ;;  %v12727_v44 = vcombine.high %v134_v38, %v138_v39  ;;  %v12726_v50 = vcombine.low %v134_v38, %v138_v39  ;;  %v190_v38 = vld [vmem:[%s20246_s1 + $0x488] sm:$0xff] }
  0x54   :  { %9887 = vmatprep.subr.bf16.mxu1 %v12671_v46  ;;  %v12957_v53 = vcombine.high %v365_v14, %v369_v15  ;;  %v373_v24 = vld [vmem:[%s20246_s1 + $0xa40] sm:$0xff]  ;;  %v12956_v27 = vcombine.low %v365_v14, %v369_v15  ;;  %v142_v46 = vld [vmem:[%s20246_s1 + $0x308] sm:$0xff] }
  0x55   :  { %9476 = vmatpush1.bf16.msra.mxu0 %v12916_v45  ;;  %v377_v25 = vld [vmem:[%s20246_s1 + $0xa60] sm:$0xff]  ;;  %v194_v39 = vld [vmem:[%s20246_s1 + $0x4a8] sm:$0xff] }
  0x56   :  { %9477 = vmatprep.subr.bf16.mxu0 %v12925_v47  ;;  %v12965_v29 = vcombine.high %v373_v24, %v377_v25  ;;  %v381_v32 = vld [vmem:[%s20246_s1 + $0xa80] sm:$0xff]  ;;  %v12964_v35 = vcombine.low %v373_v24, %v377_v25  ;;  %v146_v47 = vld [vmem:[%s20246_s1 + $0x328] sm:$0xff] }
  0x57   :  { %9888 = vmatpush1.bf16.msra.mxu1 %v12670_v52  ;;  %v385_v33 = vld [vmem:[%s20246_s1 + $0xaa0] sm:$0xff]  ;;  %v12735_v52 = vcombine.high %v142_v46, %v146_v47  ;;  %v12734_v62 = vcombine.low %v142_v46, %v146_v47  ;;  %v198_v46 = vld [vmem:[%s20246_s1 + $0x4c8] sm:$0xff] }
  0x58   :  { %9889 = vmatprep.subr.bf16.mxu1 %v12679_v56  ;;  %v12973_v37 = vcombine.high %v381_v32, %v385_v33  ;;  %v389_v40 = vld [vmem:[%s20246_s1 + $0xac0] sm:$0xff]  ;;  %v12972_v43 = vcombine.low %v381_v32, %v385_v33  ;;  %v150_v56 = vld [vmem:[%s20246_s1 + $0x348] sm:$0xff]  ;;  %v15320_v32 = vld [vmem:[%s20247_s0 + $0x18] sm:$0xff] }
  0x59   :  { %9478 = vmatpush1.bf16.msra.mxu0 %v12924_v55  ;;  %v393_v41 = vld [vmem:[%s20246_s1 + $0xae0] sm:$0xff]  ;;  %v202_v47 = vld [vmem:[%s20246_s1 + $0x4e8] sm:$0xff] }
  0x5a   :  { %9479 = vmatprep.subr.bf16.mxu0 %v12933_v57  ;;  %v12981_v45 = vcombine.high %v389_v40, %v393_v41  ;;  %v397_v48 = vld [vmem:[%s20246_s1 + $0xb00] sm:$0xff]  ;;  %v12980_v51 = vcombine.low %v389_v40, %v393_v41  ;;  %v154_v57 = vld [vmem:[%s20246_s1 + $0x368] sm:$0xff]  ;;  %v15334_v40 = vcombine.high %v15320_v32, %v15320_v32 }
  0x5b   :  { %9890 = vmatpush1.bf16.msra.mxu1 %v12678_v0  ;;  %v401_v49 = vld [vmem:[%s20246_s1 + $0xb20] sm:$0xff]  ;;  %v12743_v0 = vcombine.high %v150_v56, %v154_v57  ;;  %v12742_v6 = vcombine.low %v150_v56, %v154_v57  ;;  %v206_v56 = vld [vmem:[%s20246_s1 + $0x508] sm:$0xff] }
  0x5c   :  { %9891 = vmatprep.subr.bf16.mxu1 %v12687_v2  ;;  %v12989_v55 = vcombine.high %v397_v48, %v401_v49  ;;  %v405_v59 = vld [vmem:[%s20246_s1 + $0xb40] sm:$0xff]  ;;  %v12988_v63 = vcombine.low %v397_v48, %v401_v49  ;;  %v158_v2 = vld [vmem:[%s20246_s1 + $0x388] sm:$0xff] }
  0x5d   :  { %9480 = vmatpush1.bf16.msra.mxu0 %v12932_v1  ;;  %v409_v60 = vld [vmem:[%s20246_s1 + $0xb60] sm:$0xff]  ;;  %v210_v57 = vld [vmem:[%s20246_s1 + $0x528] sm:$0xff] }
  0x5e   :  { %9481 = vmatprep.subr.bf16.mxu0 %v12941_v3  ;;  %v12997_v1 = vcombine.high %v405_v59, %v409_v60  ;;  %v162_v3 = vld [vmem:[%s20246_s1 + $0x3a8] sm:$0xff]  ;;  %v413_v4 = vld [vmem:[%s20246_s1 + $0xb80] sm:$0xff]  ;;  %v12996_v7 = vcombine.low %v405_v59, %v409_v60 }
  0x5f   :  { %9892 = vmatpush1.bf16.msra.mxu1 %v12686_v8  ;;  %v417_v5 = vld [vmem:[%s20246_s1 + $0xba0] sm:$0xff]  ;;  %v12751_v8 = vcombine.high %v158_v2, %v162_v3  ;;  %v12750_v14 = vcombine.low %v158_v2, %v162_v3  ;;  %v214_v2 = vld [vmem:[%s20246_s1 + $0x548] sm:$0xff] }
  0x60   :  { %9893 = vmatprep.subr.bf16.mxu1 %v12695_v10  ;;  %v166_v10 = vld [vmem:[%s20246_s1 + $0x3c8] sm:$0xff]  ;;  %v421_v12 = vld [vmem:[%s20246_s1 + $0xbc0] sm:$0xff]  ;;  %v13004_v15 = vcombine.low %v413_v4, %v417_v5 }
  0x61   :  { %9482 = vmatpush1.bf16.msra.mxu0 %v12940_v9  ;;  %v13005_v9 = vcombine.high %v413_v4, %v417_v5  ;;  %v425_v13 = vld [vmem:[%s20246_s1 + $0xbe0] sm:$0xff]  ;;  %v218_v3 = vld [vmem:[%s20246_s1 + $0x568] sm:$0xff] }
  0x62   :  { %9483 = vmatprep.subr.bf16.mxu0 %v12949_v11  ;;  %v170_v11 = vld [vmem:[%s20246_s1 + $0x3e8] sm:$0xff]  ;;  %v429_v22 = vld [vmem:[%s20246_s1 + $0xc00] sm:$0xff]  ;;  %v13012_v25 = vcombine.low %v421_v12, %v425_v13 }
  0x63   :  { %9894 = vmatpush1.bf16.msra.mxu1 %v12694_v17  ;;  %v12759_v17 = vcombine.high %v166_v10, %v170_v11  ;;  %v433_v23 = vld [vmem:[%s20246_s1 + $0xc20] sm:$0xff]  ;;  %v12758_v24 = vcombine.low %v166_v10, %v170_v11  ;;  %v222_v10 = vld [vmem:[%s20246_s1 + $0x588] sm:$0xff] }
  0x64   :  { %9895 = vmatprep.subr.bf16.mxu1 %v12703_v20  ;;  %v174_v20 = vld [vmem:[%s20246_s1 + $0x408] sm:$0xff]  ;;  %v437_v30 = vld [vmem:[%s20246_s1 + $0xc40] sm:$0xff] }
  0x65   :  { %9484 = vmatpush1.bf16.msra.mxu0 %v12948_v18  ;;  %v13013_v18 = vcombine.high %v421_v12, %v425_v13  ;;  %v441_v31 = vld [vmem:[%s20246_s1 + $0xc60] sm:$0xff]  ;;  %v226_v11 = vld [vmem:[%s20246_s1 + $0x5a8] sm:$0xff] }
  0x66   :  { %9485 = vmatprep.subr.bf16.mxu0 %v12957_v53  ;;  %v178_v53 = vld [vmem:[%s20246_s1 + $0x428] sm:$0xff]  ;;  %v449_v41 = vld [vmem:[%s20246_s1 + $0xca0] sm:$0xff] }
  0x67   :  { %9896 = vmatpush1.bf16.msra.mxu1 %v12702_v54  ;;  %v12767_v54 = vcombine.high %v174_v20, %v178_v53  ;;  %v12766_v33 = vcombine.low %v174_v20, %v178_v53  ;;  %v453_v48 = vld [vmem:[%s20246_s1 + $0xcc0] sm:$0xff]  ;;  %v230_v20 = vld [vmem:[%s20246_s1 + $0x5c8] sm:$0xff] }
  0x68   :  { %9897 = vmatprep.subr.bf16.mxu1 %v12711_v28  ;;  %v182_v28 = vld [vmem:[%s20246_s1 + $0x448] sm:$0xff]  ;;  %v457_v49 = vld [vmem:[%s20246_s1 + $0xce0] sm:$0xff] }
  0x69   :  { %9486 = vmatpush1.bf16.msra.mxu0 %v12956_v27  ;;  %v13021_v27 = vcombine.high %v429_v22, %v433_v23  ;;  %v461_v59 = vld [vmem:[%s20246_s1 + $0xd00] sm:$0xff]  ;;  %v234_v53 = vld [vmem:[%s20246_s1 + $0x5e8] sm:$0xff] }
  0x6a   :  { %9487 = vmatprep.subr.bf16.mxu0 %v12965_v29  ;;  %v186_v29 = vld [vmem:[%s20246_s1 + $0x468] sm:$0xff]  ;;  %v465_v60 = vld [vmem:[%s20246_s1 + $0xd20] sm:$0xff] }
  0x6b   :  { %9898 = vmatpush1.bf16.msra.mxu1 %v12710_v34  ;;  %v15324_v34 = vcombine.low %v15111_v19, %v15111_v19  ;;  %v445_v19 = vld [vmem:[%s20246_s1 + $0xc80] sm:$0xff] }
  0x6c   :  { %9899 = vmatprep.subr.bf16.mxu1 %v12719_v36  ;;  %v12775_v36 = vcombine.high %v182_v28, %v186_v29  ;;  %v469_v4 = vld [vmem:[%s20246_s1 + $0xd40] sm:$0xff] }
  0x6d   :  { %9488 = vmatpush1.bf16.msra.mxu0 %v12964_v35  ;;  %v13020_v35 = vcombine.low %v429_v22, %v433_v23  ;;  %v473_v5 = vld [vmem:[%s20246_s1 + $0xd60] sm:$0xff] }
  0x6e   :  { %9489 = vmatprep.subr.bf16.mxu0 %v12973_v37  ;;  %v13029_v37 = vcombine.high %v437_v30, %v441_v31  ;;  %v477_v12 = vld [vmem:[%s20246_s1 + $0xd80] sm:$0xff] }
  0x6f   :  { %9900 = vmatpush1.bf16.msra.mxu1 %v12718_v42  ;;  %v12774_v42 = vcombine.low %v182_v28, %v186_v29  ;;  %v481_v13 = vld [vmem:[%s20246_s1 + $0xda0] sm:$0xff]  ;;  %v238_v28 = vld [vmem:[%s20246_s1 + $0x608] sm:$0xff] }
  0x70   :  { %9901 = vmatprep.subr.bf16.mxu1 %v12727_v44  ;;  %v12783_v44 = vcombine.high %v190_v38, %v194_v39  ;;  %v485_v22 = vld [vmem:[%s20246_s1 + $0xdc0] sm:$0xff]  ;;  %v242_v29 = vld [vmem:[%s20246_s1 + $0x628] sm:$0xff] }
  0x71   :  { %9490 = vmatpush1.bf16.msra.mxu0 %v12972_v43  ;;  %v13028_v43 = vcombine.low %v437_v30, %v441_v31  ;;  %v489_v23 = vld [vmem:[%s20246_s1 + $0xde0] sm:$0xff] }
  0x72   :  { %9491 = vmatprep.subr.bf16.mxu0 %v12981_v45  ;;  %v13037_v45 = vcombine.high %v445_v19, %v449_v41  ;;  %v493_v30 = vld [vmem:[%s20246_s1 + $0xe00] sm:$0xff] }
  0x73   :  { %9902 = vmatpush1.bf16.msra.mxu1 %v12726_v50  ;;  %v12782_v50 = vcombine.low %v190_v38, %v194_v39  ;;  %v497_v31 = vld [vmem:[%s20246_s1 + $0xe20] sm:$0xff]  ;;  %v246_v38 = vld [vmem:[%s20246_s1 + $0x648] sm:$0xff] }
  0x74   :  { %9903 = vmatprep.subr.bf16.mxu1 %v12735_v52  ;;  %v12791_v52 = vcombine.high %v198_v46, %v202_v47  ;;  %v250_v39 = vld [vmem:[%s20246_s1 + $0x668] sm:$0xff] }
  0x75   :  { %9492 = vmatpush1.bf16.msra.mxu0 %v12980_v51  ;;  %v13036_v51 = vcombine.low %v445_v19, %v449_v41  ;;  %v501_v19 = vld [vmem:[%s20246_s1 + $0xe40] sm:$0xff] }
  0x76   :  { %9493 = vmatprep.subr.bf16.mxu0 %v12989_v55  ;;  %v13045_v55 = vcombine.high %v453_v48, %v457_v49  ;;  %v505_v41 = vld [vmem:[%s20246_s1 + $0xe60] sm:$0xff] }
  0x77   :  { %9904 = vmatpush1.bf16.msra.mxu1 %v12734_v62  ;;  %v12790_v62 = vcombine.low %v198_v46, %v202_v47  ;;  %v254_v46 = vld [vmem:[%s20246_s1 + $0x688] sm:$0xff] }
  0x78   :  { %9905 = vmatprep.subr.bf16.mxu1 %v12743_v0  ;;  %v12799_v0 = vcombine.high %v206_v56, %v210_v57  ;;  %v258_v47 = vld [vmem:[%s20246_s1 + $0x6a8] sm:$0xff] }
  0x79   :  { %9494 = vmatpush1.bf16.msra.mxu0 %v12988_v63  ;;  %v13044_v63 = vcombine.low %v453_v48, %v457_v49  ;;  %v509_v48 = vld [vmem:[%s20246_s1 + $0xe80] sm:$0xff] }
  0x7a   :  { %9495 = vmatprep.subr.bf16.mxu0 %v12997_v1  ;;  %v13053_v1 = vcombine.high %v461_v59, %v465_v60  ;;  %v513_v49 = vld [vmem:[%s20246_s1 + $0xea0] sm:$0xff] }
  0x7b   :  { %9906 = vmatpush1.bf16.msra.mxu1 %v12742_v6  ;;  %v12798_v6 = vcombine.low %v206_v56, %v210_v57  ;;  %v262_v56 = vld [vmem:[%s20246_s1 + $0x6c8] sm:$0xff] }
  0x7c   :  { %9907 = vmatprep.subr.bf16.mxu1 %v12751_v8  ;;  %v12807_v8 = vcombine.high %v214_v2, %v218_v3  ;;  %v266_v57 = vld [vmem:[%s20246_s1 + $0x6e8] sm:$0xff] }
  0x7d   :  { %9496 = vmatpush1.bf16.msra.mxu0 %v12996_v7  ;;  %v13052_v7 = vcombine.low %v461_v59, %v465_v60  ;;  %v517_v59 = vld [vmem:[%s20246_s1 + $0xec0] sm:$0xff] }
  0x7e   :  { %9497 = vmatprep.subr.bf16.mxu0 %v13005_v9  ;;  %v13061_v9 = vcombine.high %v469_v4, %v473_v5  ;;  %v521_v60 = vld [vmem:[%s20246_s1 + $0xee0] sm:$0xff] }
  0x7f   :  { %9908 = vmatpush1.bf16.msra.mxu1 %v12750_v14  ;;  %v12806_v14 = vcombine.low %v214_v2, %v218_v3  ;;  %v270_v2 = vld [vmem:[%s20246_s1 + $0x708] sm:$0xff] }
  0x80   :  { %9909 = vmatprep.subr.bf16.mxu1 %v12759_v17  ;;  %v12815_v17 = vcombine.high %v222_v10, %v226_v11  ;;  %v274_v3 = vld [vmem:[%s20246_s1 + $0x728] sm:$0xff] }
  0x81   :  { %9498 = vmatpush1.bf16.msra.mxu0 %v13004_v15  ;;  %v13060_v15 = vcombine.low %v469_v4, %v473_v5  ;;  %v525_v4 = vld [vmem:[%s20246_s1 + $0xf00] sm:$0xff] }
  0x82   :  { %9499 = vmatprep.subr.bf16.mxu0 %v13013_v18  ;;  %v13069_v18 = vcombine.high %v477_v12, %v481_v13  ;;  %v529_v5 = vld [vmem:[%s20246_s1 + $0xf20] sm:$0xff] }
  0x83   :  { %9910 = vmatpush1.bf16.msra.mxu1 %v12758_v24  ;;  %v12814_v24 = vcombine.low %v222_v10, %v226_v11  ;;  %v278_v10 = vld [vmem:[%s20246_s1 + $0x748] sm:$0xff] }
  0x84   :  { %9920 = vmatprep.subr.bf16.mxu1 %v12767_v54  ;;  %v12823_v54 = vcombine.high %v230_v20, %v234_v53  ;;  %v282_v11 = vld [vmem:[%s20246_s1 + $0x768] sm:$0xff] }
  0x85   :  { %9500 = vmatpush1.bf16.msra.mxu0 %v13012_v25  ;;  %v13068_v25 = vcombine.low %v477_v12, %v481_v13  ;;  %v533_v12 = vld [vmem:[%s20246_s1 + $0xf40] sm:$0xff] }
  0x86   :  { %9510 = vmatprep.subr.bf16.mxu0 %v13021_v27  ;;  %9912 = vmatmul.mubr.bf16.vlgmr.msra.gmra.mrb[4].mxu1 %v15100_v16  ;;  %v13077_v27 = vcombine.high %v485_v22, %v489_v23  ;;  %v537_v13 = vld [vmem:[%s20246_s1 + $0xf60] sm:$0xff] }
  0x87   :  { %9921 = vmatpush1.bf16.msra.mxu1 %v12766_v33  ;;  %9952 = vmatprep.mubr.bf16.mxu1 %v14980_v61  ;;  %v12822_v33 = vcombine.low %v230_v20, %v234_v53  ;;  %v286_v20 = vld [vmem:[%s20246_s1 + $0x788] sm:$0xff] }
  0x88   :  { %9502 = vmatmul.mubr.bf16.vlgmr.msra.gmra.mrb[0].mxu0 %v15324_v34  ;;  %9922 = vmatprep.subr.bf16.mxu1 %v12775_v36  ;;  %v12831_v36 = vcombine.high %v238_v28, %v242_v29  ;;  %v290_v53 = vld [vmem:[%s20246_s1 + $0x7a8] sm:$0xff] }
  0x89   :  { %9511 = vmatpush1.bf16.msra.mxu0 %v13020_v35  ;;  %9542 = vmatprep.mubr.bf16.mxu0 %v15334_v40  ;;  %v13076_v35 = vcombine.low %v485_v22, %v489_v23  ;;  %v541_v22 = vld [vmem:[%s20246_s1 + $0xf80] sm:$0xff] }
  0x8a   :  { %9512 = vmatprep.subr.bf16.mxu0 %v13029_v37  ;;  %v13085_v37 = vcombine.high %v493_v30, %v497_v31  ;;  %v545_v23 = vld [vmem:[%s20246_s1 + $0xfa0] sm:$0xff] }
  0x8b   :  { %9923 = vmatpush1.bf16.msra.mxu1 %v12774_v42  ;;  %v12830_v42 = vcombine.low %v238_v28, %v242_v29  ;;  %v294_v28 = vld [vmem:[%s20246_s1 + $0x7c8] sm:$0xff] }
  0x8c   :  { %9924 = vmatprep.subr.bf16.mxu1 %v12783_v44  ;;  %v12839_v44 = vcombine.high %v246_v38, %v250_v39  ;;  %v298_v29 = vld [vmem:[%s20246_s1 + $0x7e8] sm:$0xff] }
  0x8d   :  { %9513 = vmatpush1.bf16.msra.mxu0 %v13028_v43  ;;  %v13084_v43 = vcombine.low %v493_v30, %v497_v31  ;;  %v549_v30 = vld [vmem:[%s20246_s1 + $0xfc0] sm:$0xff] }
  0x8e   :  { %9514 = vmatprep.subr.bf16.mxu0 %v13037_v45  ;;  %v13093_v45 = vcombine.high %v501_v19, %v505_v41  ;;  %v553_v31 = vld [vmem:[%s20246_s1 + $0xfe0] sm:$0xff] }
  0x8f   :  { %9925 = vmatpush1.bf16.msra.mxu1 %v12782_v50  ;;  %v12838_v50 = vcombine.low %v246_v38, %v250_v39  ;;  %v302_v38 = vld [vmem:[%s20246_s1 + $0x808] sm:$0xff] }
  0x90   :  { %9926 = vmatprep.subr.bf16.mxu1 %v12791_v52  ;;  %v12847_v52 = vcombine.high %v254_v46, %v258_v47  ;;  %v306_v39 = vld [vmem:[%s20246_s1 + $0x828] sm:$0xff] }
  0x91   :  { %9515 = vmatpush1.bf16.msra.mxu0 %v13036_v51  ;;  %v13092_v51 = vcombine.low %v501_v19, %v505_v41  ;;  %v557_v19 = vld [vmem:[%s20246_s1 + $0x1000] sm:$0xff] }
  0x92   :  { %9516 = vmatprep.subr.bf16.mxu0 %v13045_v55  ;;  %v13101_v55 = vcombine.high %v509_v48, %v513_v49  ;;  %v561_v41 = vld [vmem:[%s20246_s1 + $0x1020] sm:$0xff] }
  0x93   :  { %9927 = vmatpush1.bf16.msra.mxu1 %v12790_v62  ;;  %v12846_v62 = vcombine.low %v254_v46, %v258_v47  ;;  %v310_v46 = vld [vmem:[%s20246_s1 + $0x848] sm:$0xff] }
  0x94   :  { %9928 = vmatprep.subr.bf16.mxu1 %v12799_v0  ;;  %v12855_v0 = vcombine.high %v262_v56, %v266_v57  ;;  %v314_v47 = vld [vmem:[%s20246_s1 + $0x868] sm:$0xff] }
  0x95   :  { %9517 = vmatpush1.bf16.msra.mxu0 %v13044_v63  ;;  %v13100_v63 = vcombine.low %v509_v48, %v513_v49  ;;  %v565_v48 = vld [vmem:[%s20246_s1 + $0x1040] sm:$0xff] }
  0x96   :  { %9518 = vmatprep.subr.bf16.mxu0 %v13053_v1  ;;  %v13109_v1 = vcombine.high %v517_v59, %v521_v60  ;;  %v569_v49 = vld [vmem:[%s20246_s1 + $0x1060] sm:$0xff] }
  0x97   :  { %9929 = vmatpush1.bf16.msra.mxu1 %v12798_v6  ;;  %v12854_v6 = vcombine.low %v262_v56, %v266_v57  ;;  %v12903_v56 = vcombine.high %v310_v46, %v314_v47  ;;  %v13157_v57 = vcombine.high %v565_v48, %v569_v49 }
  0x98   :  { %9930 = vmatprep.subr.bf16.mxu1 %v12807_v8  ;;  %v12863_v8 = vcombine.high %v270_v2, %v274_v3 }
  0x99   :  { %9519 = vmatpush1.bf16.msra.mxu0 %v13052_v7  ;;  %v13108_v7 = vcombine.low %v517_v59, %v521_v60  ;;  %v318_v59 = vld [vmem:[%s20246_s1 + $0x888] sm:$0xff] }
  0x9a   :  { %9520 = vmatprep.subr.bf16.mxu0 %v13061_v9  ;;  %v13117_v9 = vcombine.high %v525_v4, %v529_v5  ;;  %v322_v60 = vld [vmem:[%s20246_s1 + $0x8a8] sm:$0xff] }
  0x9b   :  { %9931 = vmatpush1.bf16.msra.mxu1 %v12806_v14  ;;  %v12862_v14 = vcombine.low %v270_v2, %v274_v3  ;;  %v12911_v2 = vcombine.high %v318_v59, %v322_v60 }
  0x9c   :  { %9932 = vmatprep.subr.bf16.mxu1 %v12815_v17  ;;  %v12871_v17 = vcombine.high %v278_v10, %v282_v11 }
  0x9d   :  { %9521 = vmatpush1.bf16.msra.mxu0 %v13060_v15  ;;  %v13116_v15 = vcombine.low %v525_v4, %v529_v5  ;;  %v326_v4 = vld [vmem:[%s20246_s1 + $0x8c8] sm:$0xff] }
  0x9e   :  { %9522 = vmatprep.subr.bf16.mxu0 %v13069_v18  ;;  %v13125_v18 = vcombine.high %v533_v12, %v537_v13  ;;  %v330_v5 = vld [vmem:[%s20246_s1 + $0x8e8] sm:$0xff] }
  0x9f   :  { %9933 = vmatpush1.bf16.msra.mxu1 %v12814_v24  ;;  %v12870_v24 = vcombine.low %v278_v10, %v282_v11  ;;  %v12919_v10 = vcombine.high %v326_v4, %v330_v5 }
  0xa0   :  { %9934 = vmatprep.subr.bf16.mxu1 %v12823_v54  ;;  %v12879_v54 = vcombine.high %v286_v20, %v290_v53 }
  0xa1   :  { %9523 = vmatpush1.bf16.msra.mxu0 %v13068_v25  ;;  %v13124_v25 = vcombine.low %v533_v12, %v537_v13  ;;  %v334_v12 = vld [vmem:[%s20246_s1 + $0x908] sm:$0xff] }
  0xa2   :  { %9524 = vmatprep.subr.bf16.mxu0 %v13077_v27  ;;  %v13133_v27 = vcombine.high %v541_v22, %v545_v23  ;;  %v338_v13 = vld [vmem:[%s20246_s1 + $0x928] sm:$0xff] }
  0xa3   :  { %9935 = vmatpush1.bf16.msra.mxu1 %v12822_v33  ;;  %v12878_v33 = vcombine.low %v286_v20, %v290_v53  ;;  %v12927_v20 = vcombine.high %v334_v12, %v338_v13 }
  0xa4   :  { %9936 = vmatprep.subr.bf16.mxu1 %v12831_v36  ;;  %v12887_v36 = vcombine.high %v294_v28, %v298_v29 }
  0xa5   :  { %9525 = vmatpush1.bf16.msra.mxu0 %v13076_v35  ;;  %v13132_v35 = vcombine.low %v541_v22, %v545_v23  ;;  %v342_v22 = vld [vmem:[%s20246_s1 + $0x948] sm:$0xff] }
  0xa6   :  { %9526 = vmatprep.subr.bf16.mxu0 %v13085_v37  ;;  %v13141_v37 = vcombine.high %v549_v30, %v553_v31  ;;  %v346_v23 = vld [vmem:[%s20246_s1 + $0x968] sm:$0xff] }
  0xa7   :  { %9937 = vmatpush1.bf16.msra.mxu1 %v12830_v42  ;;  %v12886_v42 = vcombine.low %v294_v28, %v298_v29  ;;  %v12935_v28 = vcombine.high %v342_v22, %v346_v23 }
  0xa8   :  { %9938 = vmatprep.subr.bf16.mxu1 %v12839_v44  ;;  %v12895_v44 = vcombine.high %v302_v38, %v306_v39 }
  0xa9   :  { %9527 = vmatpush1.bf16.msra.mxu0 %v13084_v43  ;;  %v13140_v43 = vcombine.low %v549_v30, %v553_v31  ;;  %v350_v30 = vld [vmem:[%s20246_s1 + $0x988] sm:$0xff] }
  0xaa   :  { %9528 = vmatprep.subr.bf16.mxu0 %v13093_v45  ;;  %v13149_v45 = vcombine.high %v557_v19, %v561_v41  ;;  %v354_v31 = vld [vmem:[%s20246_s1 + $0x9a8] sm:$0xff] }
  0xab   :  { %9939 = vmatpush1.bf16.msra.mxu1 %v12838_v50  ;;  %v15529_v50 = vld [vmem:[%s20247_s0 + $0x20] sm:$0xff] }
  0xac   :  { %9940 = vmatprep.subr.bf16.mxu1 %v12847_v52  ;;  %v15533_v52 = vcombine.low %v15320_v32, %v15320_v32  ;;  %v573_v32 = vld [vmem:[%s20246_s1 + $0x1080] sm:$0xff] }
  0xad   :  { %9529 = vmatpush1.bf16.msra.mxu0 %v13092_v51  ;;  %v12894_v51 = vcombine.low %v302_v38, %v306_v39  ;;  %v12943_v38 = vcombine.high %v350_v30, %v354_v31 }
  0xae   :  { %9530 = vmatprep.subr.bf16.mxu0 %v13101_v55  ;;  %v13148_v55 = vcombine.low %v557_v19, %v561_v41  ;;  %v358_v19 = vld [vmem:[%s20246_s1 + $0x9c8] sm:$0xff] }
  0xaf   :  { %9941 = vmatpush1.bf16.msra.mxu1 %v12846_v62  ;;  %v15543_v62 = vcombine.high %v15529_v50, %v15529_v50  ;;  %v362_v41 = vld [vmem:[%s20246_s1 + $0x9e8] sm:$0xff] }
  0xb0   :  { %9942 = vmatprep.subr.bf16.mxu1 %v12855_v0  ;;  %v12902_v0 = vcombine.low %v310_v46, %v314_v47  ;;  %v12951_v46 = vcombine.high %v358_v19, %v362_v41 }
  0xb1   :  { %9531 = vmatpush1.bf16.msra.mxu0 %v13100_v63  ;;  %v577_v63 = vld [vmem:[%s20246_s1 + $0x10a0] sm:$0xff] }
  0xb2   :  { %9532 = vmatprep.subr.bf16.mxu0 %v13109_v1  ;;  %v13156_v1 = vcombine.low %v565_v48, %v569_v49  ;;  %v13165_v3 = vcombine.high %v573_v32, %v577_v63  ;;  %v366_v48 = vld [vmem:[%s20246_s1 + $0xa08] sm:$0xff] }
  0xb3   :  { %9943 = vmatpush1.bf16.msra.mxu1 %v12854_v6  ;;  %v581_v6 = vld [vmem:[%s20246_s1 + $0x10c0] sm:$0xff]  ;;  %v370_v49 = vld [vmem:[%s20246_s1 + $0xa28] sm:$0xff] }
  0xb4   :  { %9944 = vmatprep.subr.bf16.mxu1 %v12863_v8  ;;  %v12910_v8 = vcombine.low %v318_v59, %v322_v60  ;;  %v12959_v59 = vcombine.high %v366_v48, %v370_v49 }
  0xb5   :  { %9533 = vmatpush1.bf16.msra.mxu0 %v13108_v7  ;;  %v585_v7 = vld [vmem:[%s20246_s1 + $0x10e0] sm:$0xff] }
  0xb6   :  { %9534 = vmatprep.subr.bf16.mxu0 %v13117_v9  ;;  %v13164_v9 = vcombine.low %v573_v32, %v577_v63  ;;  %v13173_v11 = vcombine.high %v581_v6, %v585_v7  ;;  %v374_v32 = vld [vmem:[%s20246_s1 + $0xa48] sm:$0xff] }
  0xb7   :  { %9945 = vmatpush1.bf16.msra.mxu1 %v12862_v14  ;;  %v589_v14 = vld [vmem:[%s20246_s1 + $0x1100] sm:$0xff]  ;;  %v378_v63 = vld [vmem:[%s20246_s1 + $0xa68] sm:$0xff] }
  0xb8   :  { %9946 = vmatprep.subr.bf16.mxu1 %v12871_v17  ;;  %v12918_v17 = vcombine.low %v326_v4, %v330_v5  ;;  %v12967_v4 = vcombine.high %v374_v32, %v378_v63 }
  0xb9   :  { %9535 = vmatpush1.bf16.msra.mxu0 %v13116_v15  ;;  %v593_v15 = vld [vmem:[%s20246_s1 + $0x1120] sm:$0xff] }
  0xba   :  { %9536 = vmatprep.subr.bf16.mxu0 %v13125_v18  ;;  %v13172_v18 = vcombine.low %v581_v6, %v585_v7  ;;  %v13181_v53 = vcombine.high %v589_v14, %v593_v15  ;;  %v382_v6 = vld [vmem:[%s20246_s1 + $0xa88] sm:$0xff] }
  0xbb   :  { %9947 = vmatpush1.bf16.msra.mxu1 %v12870_v24  ;;  %v597_v24 = vld [vmem:[%s20246_s1 + $0x1140] sm:$0xff]  ;;  %v386_v7 = vld [vmem:[%s20246_s1 + $0xaa8] sm:$0xff] }
  0xbc   :  { %9948 = vmatprep.subr.bf16.mxu1 %v12879_v54  ;;  %v12926_v54 = vcombine.low %v334_v12, %v338_v13  ;;  %v12975_v12 = vcombine.high %v382_v6, %v386_v7 }
  0xbd   :  { %9537 = vmatpush1.bf16.msra.mxu0 %v13124_v25  ;;  %v601_v25 = vld [vmem:[%s20246_s1 + $0x1160] sm:$0xff] }
  0xbe   :  { %9538 = vmatprep.subr.bf16.mxu0 %v13133_v27  ;;  %v13180_v27 = vcombine.low %v589_v14, %v593_v15  ;;  %v13189_v29 = vcombine.high %v597_v24, %v601_v25  ;;  %v390_v14 = vld [vmem:[%s20246_s1 + $0xac8] sm:$0xff] }
  0xbf   :  { %9949 = vmatpush1.bf16.msra.mxu1 %v12878_v33  ;;  %v605_v33 = vld [vmem:[%s20246_s1 + $0x1180] sm:$0xff]  ;;  %v394_v15 = vld [vmem:[%s20246_s1 + $0xae8] sm:$0xff] }
  0xc0   :  { %9950 = vmatprep.subr.bf16.mxu1 %v12887_v36  ;;  %v12934_v36 = vcombine.low %v342_v22, %v346_v23  ;;  %v12983_v22 = vcombine.high %v390_v14, %v394_v15 }
  0xc1   :  { %9539 = vmatpush1.bf16.msra.mxu0 %v13132_v35  ;;  %v609_v35 = vld [vmem:[%s20246_s1 + $0x11a0] sm:$0xff] }
  0xc2   :  { %9540 = vmatprep.subr.bf16.mxu0 %v13141_v37  ;;  %v13188_v37 = vcombine.low %v597_v24, %v601_v25  ;;  %v13197_v39 = vcombine.high %v605_v33, %v609_v35  ;;  %v398_v24 = vld [vmem:[%s20246_s1 + $0xb08] sm:$0xff] }
  0xc3   :  { %9951 = vmatpush1.bf16.msra.mxu1 %v12886_v42  ;;  %v613_v42 = vld [vmem:[%s20246_s1 + $0x11c0] sm:$0xff]  ;;  %v402_v25 = vld [vmem:[%s20246_s1 + $0xb28] sm:$0xff] }
  0xc4   :  { %9961 = vmatprep.subr.bf16.mxu1 %v12895_v44  ;;  %v12942_v44 = vcombine.low %v350_v30, %v354_v31  ;;  %v12991_v30 = vcombine.high %v398_v24, %v402_v25 }
  0xc5   :  { %9541 = vmatpush1.bf16.msra.mxu0 %v13140_v43  ;;  %v617_v43 = vld [vmem:[%s20246_s1 + $0x11e0] sm:$0xff] }
  0xc6   :  { %9551 = vmatprep.subr.bf16.mxu0 %v13149_v45  ;;  %9953 = vmatmul.mubr.bf16.vlgmr.msra.gmra.mrb[4].mxu1 %v15115_v21  ;;  %v13196_v45 = vcombine.low %v605_v33, %v609_v35  ;;  %v13205_v47 = vcombine.high %v613_v42, %v617_v43  ;;  %v406_v33 = vld [vmem:[%s20246_s1 + $0xb48] sm:$0xff] }
  0xc7   :  { %9962 = vmatpush1.bf16.msra.mxu1 %v12894_v51  ;;  %9993 = vmatprep.mubr.bf16.mxu1 %v15125_v26  ;;  %v621_v51 = vld [vmem:[%s20246_s1 + $0x1200] sm:$0xff]  ;;  %v410_v35 = vld [vmem:[%s20246_s1 + $0xb68] sm:$0xff] }
  0xc8   :  { %9543 = vmatmul.mubr.bf16.vlgmr.msra.gmra.mrb[0].mxu0 %v15533_v52  ;;  %9963 = vmatprep.subr.bf16.mxu1 %v12903_v56  ;;  %v12950_v56 = vcombine.low %v358_v19, %v362_v41  ;;  %v12999_v19 = vcombine.high %v406_v33, %v410_v35 }
  0xc9   :  { %9552 = vmatpush1.bf16.msra.mxu0 %v13148_v55  ;;  %9583 = vmatprep.mubr.bf16.mxu0 %v15543_v62  ;;  %v625_v55 = vld [vmem:[%s20246_s1 + $0x1220] sm:$0xff] }
  0xca   :  { %9553 = vmatprep.subr.bf16.mxu0 %v13157_v57  ;;  %v13204_v57 = vcombine.low %v613_v42, %v617_v43  ;;  %v13213_v60 = vcombine.high %v621_v51, %v625_v55  ;;  %v414_v42 = vld [vmem:[%s20246_s1 + $0xb88] sm:$0xff] }
  0xcb   :  { %9964 = vmatpush1.bf16.msra.mxu1 %v12902_v0  ;;  %v629_v0 = vld [vmem:[%s20246_s1 + $0x1240] sm:$0xff]  ;;  %v418_v43 = vld [vmem:[%s20246_s1 + $0xba8] sm:$0xff] }
  0xcc   :  { %9965 = vmatprep.subr.bf16.mxu1 %v12911_v2  ;;  %v12958_v2 = vcombine.low %v366_v48, %v370_v49  ;;  %v13007_v48 = vcombine.high %v414_v42, %v418_v43 }
  0xcd   :  { %9554 = vmatpush1.bf16.msra.mxu0 %v13156_v1  ;;  %v633_v1 = vld [vmem:[%s20246_s1 + $0x1260] sm:$0xff] }
  0xce   :  { %9555 = vmatprep.subr.bf16.mxu0 %v13165_v3  ;;  %v13212_v3 = vcombine.low %v621_v51, %v625_v55  ;;  %v13221_v5 = vcombine.high %v629_v0, %v633_v1  ;;  %v422_v51 = vld [vmem:[%s20246_s1 + $0xbc8] sm:$0xff] }
  0xcf   :  { %9966 = vmatpush1.bf16.msra.mxu1 %v12910_v8  ;;  %v637_v8 = vld [vmem:[%s20246_s1 + $0x1280] sm:$0xff]  ;;  %v426_v55 = vld [vmem:[%s20246_s1 + $0xbe8] sm:$0xff] }
  0xd0   :  { %9967 = vmatprep.subr.bf16.mxu1 %v12919_v10  ;;  %v12966_v10 = vcombine.low %v374_v32, %v378_v63  ;;  %v13015_v32 = vcombine.high %v422_v51, %v426_v55 }
  0xd1   :  { %9556 = vmatpush1.bf16.msra.mxu0 %v13164_v9  ;;  %v641_v9 = vld [vmem:[%s20246_s1 + $0x12a0] sm:$0xff] }
  0xd2   :  { %9557 = vmatprep.subr.bf16.mxu0 %v13173_v11  ;;  %v13220_v11 = vcombine.low %v629_v0, %v633_v1  ;;  %v13229_v13 = vcombine.high %v637_v8, %v641_v9  ;;  %v430_v0 = vld [vmem:[%s20246_s1 + $0xc08] sm:$0xff] }
  0xd3   :  { %9968 = vmatpush1.bf16.msra.mxu1 %v12918_v17  ;;  %v645_v17 = vld [vmem:[%s20246_s1 + $0x12c0] sm:$0xff]  ;;  %v434_v1 = vld [vmem:[%s20246_s1 + $0xc28] sm:$0xff] }
  0xd4   :  { %9969 = vmatprep.subr.bf16.mxu1 %v12927_v20  ;;  %v12974_v20 = vcombine.low %v382_v6, %v386_v7  ;;  %v13023_v6 = vcombine.high %v430_v0, %v434_v1 }
  0xd5   :  { %9558 = vmatpush1.bf16.msra.mxu0 %v13172_v18  ;;  %v649_v18 = vld [vmem:[%s20246_s1 + $0x12e0] sm:$0xff] }
  0xd6   :  { %9559 = vmatprep.subr.bf16.mxu0 %v13181_v53  ;;  %v13228_v53 = vcombine.low %v637_v8, %v641_v9  ;;  %v13237_v23 = vcombine.high %v645_v17, %v649_v18  ;;  %v438_v8 = vld [vmem:[%s20246_s1 + $0xc48] sm:$0xff] }
  0xd7   :  { %9970 = vmatpush1.bf16.msra.mxu1 %v12926_v54  ;;  %v653_v54 = vld [vmem:[%s20246_s1 + $0x1300] sm:$0xff]  ;;  %v442_v9 = vld [vmem:[%s20246_s1 + $0xc68] sm:$0xff] }
  0xd8   :  { %9971 = vmatprep.subr.bf16.mxu1 %v12935_v28  ;;  %v12982_v28 = vcombine.low %v390_v14, %v394_v15  ;;  %v15742_v14 = vcombine.low %v15529_v50, %v15529_v50  ;;  %v701_v50 = vld [vmem:[%s20246_s1 + $0x1480] sm:$0xff] }
  0xd9   :  { %9560 = vmatpush1.bf16.msra.mxu0 %v13180_v27  ;;  %v657_v27 = vld [vmem:[%s20246_s1 + $0x1320] sm:$0xff] }
  0xda   :  { %9561 = vmatprep.subr.bf16.mxu0 %v13189_v29  ;;  %v13236_v29 = vcombine.low %v645_v17, %v649_v18  ;;  %v13245_v31 = vcombine.high %v653_v54, %v657_v27  ;;  %v13031_v17 = vcombine.high %v438_v8, %v442_v9 }
  0xdb   :  { %9972 = vmatpush1.bf16.msra.mxu1 %v12934_v36  ;;  %v661_v36 = vld [vmem:[%s20246_s1 + $0x1340] sm:$0xff] }
  0xdc   :  { %9973 = vmatprep.subr.bf16.mxu1 %v12943_v38  ;;  %v12990_v38 = vcombine.low %v398_v24, %v402_v25  ;;  %v13030_v24 = vcombine.low %v438_v8, %v442_v9  ;;  %v741_v8 = vld [vmem:[%s20246_s1 + $0x15c0] sm:$0xff] }
  0xdd   :  { %9562 = vmatpush1.bf16.msra.mxu0 %v13188_v37  ;;  %v665_v37 = vld [vmem:[%s20246_s1 + $0x1360] sm:$0xff] }
  0xde   :  { %9563 = vmatprep.subr.bf16.mxu0 %v13197_v39  ;;  %v13244_v39 = vcombine.low %v653_v54, %v657_v27  ;;  %v13253_v41 = vcombine.high %v661_v36, %v665_v37  ;;  %v745_v9 = vld [vmem:[%s20246_s1 + $0x15e0] sm:$0xff] }
  0xdf   :  { %9974 = vmatpush1.bf16.msra.mxu1 %v12942_v44  ;;  %v669_v44 = vld [vmem:[%s20246_s1 + $0x1380] sm:$0xff] }
  0xe0   :  { %9975 = vmatprep.subr.bf16.mxu1 %v12951_v46  ;;  %v12998_v46 = vcombine.low %v406_v33, %v410_v35 }
  0xe1   :  { %9564 = vmatpush1.bf16.msra.mxu0 %v13196_v45  ;;  %v673_v45 = vld [vmem:[%s20246_s1 + $0x13a0] sm:$0xff] }
  0xe2   :  { %9565 = vmatprep.subr.bf16.mxu0 %v13205_v47  ;;  %v13252_v47 = vcombine.low %v661_v36, %v665_v37  ;;  %v13261_v49 = vcombine.high %v669_v44, %v673_v45 }
  0xe3   :  { %9976 = vmatpush1.bf16.msra.mxu1 %v12950_v56  ;;  %v677_v56 = vld [vmem:[%s20246_s1 + $0x13c0] sm:$0xff] }
  0xe4   :  { %9977 = vmatprep.subr.bf16.mxu1 %v12959_v59  ;;  %v13006_v59 = vcombine.low %v414_v42, %v418_v43 }
  0xe5   :  { %9566 = vmatpush1.bf16.msra.mxu0 %v13204_v57  ;;  %v681_v57 = vld [vmem:[%s20246_s1 + $0x13e0] sm:$0xff] }
  0xe6   :  { %9567 = vmatprep.subr.bf16.mxu0 %v13213_v60  ;;  %v13260_v60 = vcombine.low %v669_v44, %v673_v45  ;;  %v13269_v63 = vcombine.high %v677_v56, %v681_v57 }
  0xe7   :  { %9978 = vmatpush1.bf16.msra.mxu1 %v12958_v2  ;;  %v685_v2 = vld [vmem:[%s20246_s1 + $0x1400] sm:$0xff] }
  0xe8   :  { %9979 = vmatprep.subr.bf16.mxu1 %v12967_v4  ;;  %v13014_v4 = vcombine.low %v422_v51, %v426_v55 }
  0xe9   :  { %9568 = vmatpush1.bf16.msra.mxu0 %v13212_v3  ;;  %v689_v3 = vld [vmem:[%s20246_s1 + $0x1420] sm:$0xff] }
  0xea   :  { %9569 = vmatprep.subr.bf16.mxu0 %v13221_v5  ;;  %v13268_v5 = vcombine.low %v677_v56, %v681_v57  ;;  %v13277_v7 = vcombine.high %v685_v2, %v689_v3  ;;  %v13276_v15 = vcombine.low %v685_v2, %v689_v3 }
  0xeb   :  { %9980 = vmatpush1.bf16.msra.mxu1 %v12966_v10  ;;  %v693_v10 = vld [vmem:[%s20246_s1 + $0x1440] sm:$0xff] }
  0xec   :  { %9981 = vmatprep.subr.bf16.mxu1 %v12975_v12  ;;  %v15738_v12 = vld [vmem:[%s20247_s0 + $0x28] sm:$0xff] }
  0xed   :  { %9570 = vmatpush1.bf16.msra.mxu0 %v13220_v11  ;;  %v697_v11 = vld [vmem:[%s20246_s1 + $0x1460] sm:$0xff] }
  0xee   :  { %9571 = vmatprep.subr.bf16.mxu0 %v13229_v13  ;;  %v13022_v13 = vcombine.low %v430_v0, %v434_v1  ;;  %v13285_v18 = vcombine.high %v693_v10, %v697_v11  ;;  %v13284_v25 = vcombine.low %v693_v10, %v697_v11 }
  0xef   :  { %9982 = vmatpush1.bf16.msra.mxu1 %v12974_v20  ;;  %v446_v20 = vld [vmem:[%s20246_s1 + $0xc88] sm:$0xff] }
  0xf0   :  { %9983 = vmatprep.subr.bf16.mxu1 %v12983_v22  ;;  %v15752_v22 = vcombine.high %v15738_v12, %v15738_v12 }
  0xf1   :  { %9572 = vmatpush1.bf16.msra.mxu0 %v13228_v53  ;;  %v450_v53 = vld [vmem:[%s20246_s1 + $0xca8] sm:$0xff] }
  0xf2   :  { %9573 = vmatprep.subr.bf16.mxu0 %v13237_v23  ;;  %v705_v23 = vld [vmem:[%s20246_s1 + $0x14a0] sm:$0xff]  ;;  %v13039_v54 = vcombine.high %v446_v20, %v450_v53  ;;  %v13038_v33 = vcombine.low %v446_v20, %v450_v53  ;;  %v494_v20 = vld [vmem:[%s20246_s1 + $0xe08] sm:$0xff] }
  0xf3   :  { %9984 = vmatpush1.bf16.msra.mxu1 %v12982_v28  ;;  %v13293_v27 = vcombine.high %v701_v50, %v705_v23  ;;  %v454_v28 = vld [vmem:[%s20246_s1 + $0xcc8] sm:$0xff]  ;;  %v13292_v35 = vcombine.low %v701_v50, %v705_v23  ;;  %v749_v50 = vld [vmem:[%s20246_s1 + $0x1600] sm:$0xff] }
  0xf4   :  { %9985 = vmatprep.subr.bf16.mxu1 %v12991_v30  ;;  %v709_v30 = vld [vmem:[%s20246_s1 + $0x14c0] sm:$0xff]  ;;  %v498_v53 = vld [vmem:[%s20246_s1 + $0xe28] sm:$0xff] }
  0xf5   :  { %9574 = vmatpush1.bf16.msra.mxu0 %v13236_v29  ;;  %v458_v29 = vld [vmem:[%s20246_s1 + $0xce8] sm:$0xff]  ;;  %v753_v23 = vld [vmem:[%s20246_s1 + $0x1620] sm:$0xff] }
  0xf6   :  { %9575 = vmatprep.subr.bf16.mxu0 %v13245_v31  ;;  %v713_v31 = vld [vmem:[%s20246_s1 + $0x14e0] sm:$0xff]  ;;  %v13047_v36 = vcombine.high %v454_v28, %v458_v29  ;;  %v13046_v42 = vcombine.low %v454_v28, %v458_v29  ;;  %v502_v28 = vld [vmem:[%s20246_s1 + $0xe48] sm:$0xff] }
  0xf7   :  { %9986 = vmatpush1.bf16.msra.mxu1 %v12990_v38  ;;  %v13301_v37 = vcombine.high %v709_v30, %v713_v31  ;;  %v462_v38 = vld [vmem:[%s20246_s1 + $0xd08] sm:$0xff]  ;;  %v13300_v43 = vcombine.low %v709_v30, %v713_v31  ;;  %v757_v30 = vld [vmem:[%s20246_s1 + $0x1640] sm:$0xff] }
  0xf8   :  { %9987 = vmatprep.subr.bf16.mxu1 %v12999_v19  ;;  %v717_v19 = vld [vmem:[%s20246_s1 + $0x1500] sm:$0xff]  ;;  %v506_v29 = vld [vmem:[%s20246_s1 + $0xe68] sm:$0xff] }
  0xf9   :  { %9576 = vmatpush1.bf16.msra.mxu0 %v13244_v39  ;;  %v466_v39 = vld [vmem:[%s20246_s1 + $0xd28] sm:$0xff]  ;;  %v761_v31 = vld [vmem:[%s20246_s1 + $0x1660] sm:$0xff] }
  0xfa   :  { %9577 = vmatprep.subr.bf16.mxu0 %v13253_v41  ;;  %v721_v41 = vld [vmem:[%s20246_s1 + $0x1520] sm:$0xff]  ;;  %v13055_v44 = vcombine.high %v462_v38, %v466_v39  ;;  %v13054_v51 = vcombine.low %v462_v38, %v466_v39  ;;  %v510_v38 = vld [vmem:[%s20246_s1 + $0xe88] sm:$0xff] }
  0xfb   :  { %9988 = vmatpush1.bf16.msra.mxu1 %v12998_v46  ;;  %v13309_v45 = vcombine.high %v717_v19, %v721_v41  ;;  %v470_v46 = vld [vmem:[%s20246_s1 + $0xd48] sm:$0xff]  ;;  %v13308_v55 = vcombine.low %v717_v19, %v721_v41  ;;  %v765_v19 = vld [vmem:[%s20246_s1 + $0x1680] sm:$0xff] }
  0xfc   :  { %9989 = vmatprep.subr.bf16.mxu1 %v13007_v48  ;;  %v725_v48 = vld [vmem:[%s20246_s1 + $0x1540] sm:$0xff]  ;;  %v514_v39 = vld [vmem:[%s20246_s1 + $0xea8] sm:$0xff] }
  0xfd   :  { %9578 = vmatpush1.bf16.msra.mxu0 %v13252_v47  ;;  %v474_v47 = vld [vmem:[%s20246_s1 + $0xd68] sm:$0xff]  ;;  %v769_v41 = vld [vmem:[%s20246_s1 + $0x16a0] sm:$0xff] }
  0xfe   :  { %9579 = vmatprep.subr.bf16.mxu0 %v13261_v49  ;;  %v729_v49 = vld [vmem:[%s20246_s1 + $0x1560] sm:$0xff]  ;;  %v13063_v56 = vcombine.high %v470_v46, %v474_v47  ;;  %v13062_v0 = vcombine.low %v470_v46, %v474_v47  ;;  %v518_v46 = vld [vmem:[%s20246_s1 + $0xec8] sm:$0xff] }
  0xff   :  { %9990 = vmatpush1.bf16.msra.mxu1 %v13006_v59  ;;  %v13317_v57 = vcombine.high %v725_v48, %v729_v49  ;;  %v478_v59 = vld [vmem:[%s20246_s1 + $0xd88] sm:$0xff]  ;;  %v13316_v1 = vcombine.low %v725_v48, %v729_v49  ;;  %v773_v48 = vld [vmem:[%s20246_s1 + $0x16c0] sm:$0xff] }
 0x100   :  { %9991 = vmatprep.subr.bf16.mxu1 %v13015_v32  ;;  %v733_v32 = vld [vmem:[%s20246_s1 + $0x1580] sm:$0xff]  ;;  %v522_v47 = vld [vmem:[%s20246_s1 + $0xee8] sm:$0xff] }
 0x101   :  { %9580 = vmatpush1.bf16.msra.mxu0 %v13260_v60  ;;  %v482_v60 = vld [vmem:[%s20246_s1 + $0xda8] sm:$0xff]  ;;  %v777_v49 = vld [vmem:[%s20246_s1 + $0x16e0] sm:$0xff] }
 0x102   :  { %9581 = vmatprep.subr.bf16.mxu0 %v13269_v63  ;;  %v737_v63 = vld [vmem:[%s20246_s1 + $0x15a0] sm:$0xff]  ;;  %v13071_v2 = vcombine.high %v478_v59, %v482_v60  ;;  %v13070_v11 = vcombine.low %v478_v59, %v482_v60  ;;  %v526_v59 = vld [vmem:[%s20246_s1 + $0xf08] sm:$0xff] }
 0x103   :  { %9992 = vmatpush1.bf16.msra.mxu1 %v13014_v4  ;;  %v13325_v4 = vcombine.high %v733_v32, %v737_v63  ;;  %v530_v60 = vld [vmem:[%s20246_s1 + $0xf28] sm:$0xff] }
 0x104   :  { %10002 = vmatprep.subr.bf16.mxu1 %v13023_v6  ;;  %v490_v6 = vld [vmem:[%s20246_s1 + $0xde8] sm:$0xff] }
 0x105   :  { %9582 = vmatpush1.bf16.msra.mxu0 %v13268_v5  ;;  %v486_v5 = vld [vmem:[%s20246_s1 + $0xdc8] sm:$0xff] }
 0x106   :  { %9592 = vmatprep.subr.bf16.mxu0 %v13277_v7  ;;  %9994 = vmatmul.mubr.bf16.vlgmr.msra.gmra.mrb[4].mxu1 %v15324_v34 }
 0x107   :  { %10003 = vmatpush1.bf16.msra.mxu1 %v13022_v13  ;;  %10034 = vmatprep.mubr.bf16.mxu1 %v15334_v40 }
 0x108   :  { %9584 = vmatmul.mubr.bf16.vlgmr.msra.gmra.mrb[0].mxu0 %v15742_v14  ;;  %10004 = vmatprep.subr.bf16.mxu1 %v13031_v17  ;;  %v13079_v17 = vcombine.high %v486_v5, %v490_v6 }
 0x109   :  { %9593 = vmatpush1.bf16.msra.mxu0 %v13276_v15  ;;  %9624 = vmatprep.mubr.bf16.mxu0 %v15752_v22  ;;  %v13324_v15 = vcombine.low %v733_v32, %v737_v63  ;;  %v781_v32 = vld [vmem:[%s20246_s1 + $0x1700] sm:$0xff] }
 0x10a   :  { %9594 = vmatprep.subr.bf16.mxu0 %v13285_v18  ;;  %v13333_v18 = vcombine.high %v741_v8, %v745_v9  ;;  %v785_v63 = vld [vmem:[%s20246_s1 + $0x1720] sm:$0xff] }
 0x10b   :  { %10005 = vmatpush1.bf16.msra.mxu1 %v13030_v24  ;;  %v13078_v24 = vcombine.low %v486_v5, %v490_v6  ;;  %v534_v5 = vld [vmem:[%s20246_s1 + $0xf48] sm:$0xff] }
 0x10c   :  { %10006 = vmatprep.subr.bf16.mxu1 %v13039_v54  ;;  %v13087_v54 = vcombine.high %v494_v20, %v498_v53  ;;  %v538_v6 = vld [vmem:[%s20246_s1 + $0xf68] sm:$0xff] }
 0x10d   :  { %9595 = vmatpush1.bf16.msra.mxu0 %v13284_v25  ;;  %v13332_v25 = vcombine.low %v741_v8, %v745_v9  ;;  %v789_v8 = vld [vmem:[%s20246_s1 + $0x1740] sm:$0xff] }
 0x10e   :  { %9596 = vmatprep.subr.bf16.mxu0 %v13293_v27  ;;  %v13341_v27 = vcombine.high %v749_v50, %v753_v23  ;;  %v793_v9 = vld [vmem:[%s20246_s1 + $0x1760] sm:$0xff] }
 0x10f   :  { %10007 = vmatpush1.bf16.msra.mxu1 %v13038_v33  ;;  %v13086_v33 = vcombine.low %v494_v20, %v498_v53  ;;  %v797_v20 = vld [vmem:[%s20246_s1 + $0x1780] sm:$0xff] }
 0x110   :  { %10008 = vmatprep.subr.bf16.mxu1 %v13047_v36  ;;  %v13095_v36 = vcombine.high %v502_v28, %v506_v29  ;;  %v801_v53 = vld [vmem:[%s20246_s1 + $0x17a0] sm:$0xff] }
 0x111   :  { %9597 = vmatpush1.bf16.msra.mxu0 %v13292_v35  ;;  %v13340_v35 = vcombine.low %v749_v50, %v753_v23  ;;  %v13126_v50 = vcombine.low %v534_v5, %v538_v6  ;;  %v13380_v23 = vcombine.low %v789_v8, %v793_v9 }
 0x112   :  { %9598 = vmatprep.subr.bf16.mxu0 %v13301_v37  ;;  %v13349_v37 = vcombine.high %v757_v30, %v761_v31 }
 0x113   :  { %10009 = vmatpush1.bf16.msra.mxu1 %v13046_v42  ;;  %v13094_v42 = vcombine.low %v502_v28, %v506_v29  ;;  %v805_v28 = vld [vmem:[%s20246_s1 + $0x17c0] sm:$0xff] }
 0x114   :  { %10010 = vmatprep.subr.bf16.mxu1 %v13055_v44  ;;  %v13103_v44 = vcombine.high %v510_v38, %v514_v39  ;;  %v809_v29 = vld [vmem:[%s20246_s1 + $0x17e0] sm:$0xff] }
 0x115   :  { %9599 = vmatpush1.bf16.msra.mxu0 %v13300_v43  ;;  %v13348_v43 = vcombine.low %v757_v30, %v761_v31  ;;  %v13388_v31 = vcombine.low %v797_v20, %v801_v53 }
 0x116   :  { %9600 = vmatprep.subr.bf16.mxu0 %v13309_v45  ;;  %v13357_v45 = vcombine.high %v765_v19, %v769_v41 }
 0x117   :  { %10011 = vmatpush1.bf16.msra.mxu1 %v13054_v51  ;;  %v13102_v51 = vcombine.low %v510_v38, %v514_v39  ;;  %v813_v38 = vld [vmem:[%s20246_s1 + $0x1800] sm:$0xff] }
 0x118   :  { %10012 = vmatprep.subr.bf16.mxu1 %v13063_v56  ;;  %v13111_v56 = vcombine.high %v518_v46, %v522_v47  ;;  %v817_v39 = vld [vmem:[%s20246_s1 + $0x1820] sm:$0xff] }
 0x119   :  { %9601 = vmatpush1.bf16.msra.mxu0 %v13308_v55  ;;  %v15812_v3 = vpop.f32.mrb[0].mxu1  ;;  %v13356_v55 = vcombine.low %v765_v19, %v769_v41  ;;  %v13396_v41 = vcombine.low %v805_v28, %v809_v29 }
 0x11a   :  { %9602 = vmatprep.subr.bf16.mxu0 %v13317_v57  ;;  %v15820_v7 = vpop.f32.mrb[1].mxu1  ;;  %v13365_v57 = vcombine.high %v773_v48, %v777_v49 }
 0x11b   :  { %v9425_v10 = vpop.f32.mrb[2].mxu1  ;;  %10013 = vmatpush1.bf16.msra.mxu1 %v13062_v0  ;;  %v13110_v0 = vcombine.low %v518_v46, %v522_v47  ;;  %v821_v46 = vld [vmem:[%s20246_s1 + $0x1840] sm:$0xff] }
 0x11c   :  { %v9426_v13 = vpop.f32.mrb[3].mxu1  ;;  %10014 = vmatprep.subr.bf16.mxu1 %v13071_v2  ;;  %v13119_v2 = vcombine.high %v526_v59, %v530_v60  ;;  %v13118_v10 = vcombine.low %v526_v59, %v530_v60  ;;  %v825_v47 = vld [vmem:[%s20246_s1 + $0x1860] sm:$0xff]  ;;  %v574_v59 = vld [vmem:[%s20246_s1 + $0x1088] sm:$0xff] }
 0x11d   :  { %9603 = vmatpush1.bf16.msra.mxu0 %v13316_v1  ;;  %v13364_v1 = vcombine.low %v773_v48, %v777_v49  ;;  %v13127_v13 = vcombine.high %v534_v5, %v538_v6  ;;  %v15951_v48 = vld [vmem:[%s20247_s0 + $0x30] sm:$0xff]  ;;  %v578_v60 = vld [vmem:[%s20246_s1 + $0x10a8] sm:$0xff] }
 0x11e   :  { %9604 = vmatprep.subr.bf16.mxu0 %v13325_v4  ;;  %v13373_v4 = vcombine.high %v781_v32, %v785_v63  ;;  %v582_v5 = vld [vmem:[%s20246_s1 + $0x10c8] sm:$0xff] }
 0x11f   :  { %10015 = vmatpush1.bf16.msra.mxu1 %v13070_v11  ;;  %v13372_v11 = vcombine.low %v781_v32, %v785_v63  ;;  %v15965_v32 = vcombine.high %v15951_v48, %v15951_v48  ;;  %v833_v63 = vld [vmem:[%s20246_s1 + $0x18a0] sm:$0xff]  ;;  %v586_v6 = vld [vmem:[%s20246_s1 + $0x10e8] sm:$0xff] }
 0x120   :  { %10016 = vmatprep.subr.bf16.mxu1 %v13079_v17  ;;  %v542_v17 = vld [vmem:[%s20246_s1 + $0xf88] sm:$0xff] }
 0x121   :  { %9605 = vmatpush1.bf16.msra.mxu0 %v13324_v15  ;;  %v13381_v15 = vcombine.high %v789_v8, %v793_v9  ;;  %v837_v8 = vld [vmem:[%s20246_s1 + $0x18c0] sm:$0xff] }
 0x122   :  { %9606 = vmatprep.subr.bf16.mxu0 %v13333_v18  ;;  %v546_v18 = vld [vmem:[%s20246_s1 + $0xfa8] sm:$0xff]  ;;  %v841_v9 = vld [vmem:[%s20246_s1 + $0x18e0] sm:$0xff] }
 0x123   :  { %10017 = vmatpush1.bf16.msra.mxu1 %v13078_v24  ;;  %v13135_v24 = vcombine.high %v542_v17, %v546_v18  ;;  %v13134_v30 = vcombine.low %v542_v17, %v546_v18  ;;  %v590_v17 = vld [vmem:[%s20246_s1 + $0x1108] sm:$0xff] }
 0x124   :  { %10018 = vmatprep.subr.bf16.mxu1 %v13087_v54  ;;  %v550_v54 = vld [vmem:[%s20246_s1 + $0xfc8] sm:$0xff] }
 0x125   :  { %9607 = vmatpush1.bf16.msra.mxu0 %v13332_v25  ;;  %v13389_v25 = vcombine.high %v797_v20, %v801_v53  ;;  %v594_v18 = vld [vmem:[%s20246_s1 + $0x1128] sm:$0xff]  ;;  %v845_v20 = vld [vmem:[%s20246_s1 + $0x1900] sm:$0xff] }
 0x126   :  { %9608 = vmatprep.subr.bf16.mxu0 %v13341_v27  ;;  %v554_v27 = vld [vmem:[%s20246_s1 + $0xfe8] sm:$0xff]  ;;  %v849_v53 = vld [vmem:[%s20246_s1 + $0x1920] sm:$0xff] }
 0x127   :  { %10019 = vmatpush1.bf16.msra.mxu1 %v13086_v33  ;;  %v13143_v33 = vcombine.high %v550_v54, %v554_v27  ;;  %v13142_v19 = vcombine.low %v550_v54, %v554_v27  ;;  %v598_v54 = vld [vmem:[%s20246_s1 + $0x1148] sm:$0xff] }
 0x128   :  { %10020 = vmatprep.subr.bf16.mxu1 %v13095_v36  ;;  %v558_v36 = vld [vmem:[%s20246_s1 + $0x1008] sm:$0xff] }
 0x129   :  { %9609 = vmatpush1.bf16.msra.mxu0 %v13340_v35  ;;  %v13397_v35 = vcombine.high %v805_v28, %v809_v29  ;;  %v602_v27 = vld [vmem:[%s20246_s1 + $0x1168] sm:$0xff]  ;;  %v853_v28 = vld [vmem:[%s20246_s1 + $0x1940] sm:$0xff] }
 0x12a   :  { %9610 = vmatprep.subr.bf16.mxu0 %v13349_v37  ;;  %v562_v37 = vld [vmem:[%s20246_s1 + $0x1028] sm:$0xff]  ;;  %v857_v29 = vld [vmem:[%s20246_s1 + $0x1960] sm:$0xff] }
 0x12b   :  { %10021 = vmatpush1.bf16.msra.mxu1 %v13094_v42  ;;  %v13151_v42 = vcombine.high %v558_v36, %v562_v37  ;;  %v13150_v49 = vcombine.low %v558_v36, %v562_v37  ;;  %v606_v36 = vld [vmem:[%s20246_s1 + $0x1188] sm:$0xff] }
 0x12c   :  { %10022 = vmatprep.subr.bf16.mxu1 %v13103_v44  ;;  %v566_v44 = vld [vmem:[%s20246_s1 + $0x1048] sm:$0xff] }
 0x12d   :  { %9611 = vmatpush1.bf16.msra.mxu0 %v13348_v43  ;;  %v13405_v43 = vcombine.high %v813_v38, %v817_v39  ;;  %v610_v37 = vld [vmem:[%s20246_s1 + $0x11a8] sm:$0xff] }
 0x12e   :  { %9612 = vmatprep.subr.bf16.mxu0 %v13357_v45  ;;  %v570_v45 = vld [vmem:[%s20246_s1 + $0x1068] sm:$0xff] }
 0x12f   :  { %10023 = vmatpush1.bf16.msra.mxu1 %v13102_v51  ;;  %v15955_v51 = vcombine.low %v15738_v12, %v15738_v12  ;;  %v829_v12 = vld [vmem:[%s20246_s1 + $0x1880] sm:$0xff] }
 0x130   :  { %10024 = vmatprep.subr.bf16.mxu1 %v13111_v56  ;;  %v13159_v56 = vcombine.high %v566_v44, %v570_v45 }
 0x131   :  { %9613 = vmatpush1.bf16.msra.mxu0 %v13356_v55  ;;  %v13404_v55 = vcombine.low %v813_v38, %v817_v39  ;;  %v861_v38 = vld [vmem:[%s20246_s1 + $0x1980] sm:$0xff] }
 0x132   :  { %9614 = vmatprep.subr.bf16.mxu0 %v13365_v57  ;;  %v13413_v57 = vcombine.high %v821_v46, %v825_v47  ;;  %v865_v39 = vld [vmem:[%s20246_s1 + $0x19a0] sm:$0xff] }
 0x133   :  { %10025 = vmatpush1.bf16.msra.mxu1 %v13110_v0  ;;  %v13158_v0 = vcombine.low %v566_v44, %v570_v45  ;;  %v614_v44 = vld [vmem:[%s20246_s1 + $0x11c8] sm:$0xff] }
 0x134   :  { %10026 = vmatprep.subr.bf16.mxu1 %v13119_v2  ;;  %v13167_v2 = vcombine.high %v574_v59, %v578_v60  ;;  %v618_v45 = vld [vmem:[%s20246_s1 + $0x11e8] sm:$0xff] }
 0x135   :  { %9615 = vmatpush1.bf16.msra.mxu0 %v13364_v1  ;;  %v13412_v1 = vcombine.low %v821_v46, %v825_v47  ;;  %v869_v46 = vld [vmem:[%s20246_s1 + $0x19c0] sm:$0xff] }
 0x136   :  { %9616 = vmatprep.subr.bf16.mxu0 %v13373_v4  ;;  %v13421_v4 = vcombine.high %v829_v12, %v833_v63  ;;  %v873_v47 = vld [vmem:[%s20246_s1 + $0x19e0] sm:$0xff] }
 0x137   :  { %10027 = vmatpush1.bf16.msra.mxu1 %v13118_v10  ;;  %v13166_v10 = vcombine.low %v574_v59, %v578_v60  ;;  %v622_v59 = vld [vmem:[%s20246_s1 + $0x1208] sm:$0xff] }
 0x138   :  { %10028 = vmatprep.subr.bf16.mxu1 %v13127_v13  ;;  %v13175_v13 = vcombine.high %v582_v5, %v586_v6  ;;  %v626_v60 = vld [vmem:[%s20246_s1 + $0x1228] sm:$0xff] }
 0x139   :  { %9617 = vmatpush1.bf16.msra.mxu0 %v13372_v11  ;;  %v13420_v11 = vcombine.low %v829_v12, %v833_v63  ;;  %v877_v12 = vld [vmem:[%s20246_s1 + $0x1a00] sm:$0xff] }
 0x13a   :  { %9618 = vmatprep.subr.bf16.mxu0 %v13381_v15  ;;  %v13429_v15 = vcombine.high %v837_v8, %v841_v9  ;;  %v881_v63 = vld [vmem:[%s20246_s1 + $0x1a20] sm:$0xff] }
 0x13b   :  { %10029 = vmatpush1.bf16.msra.mxu1 %v13126_v50  ;;  %v13174_v50 = vcombine.low %v582_v5, %v586_v6  ;;  %v630_v5 = vld [vmem:[%s20246_s1 + $0x1248] sm:$0xff] }
 0x13c   :  { %10030 = vmatprep.subr.bf16.mxu1 %v13135_v24  ;;  %v13183_v24 = vcombine.high %v590_v17, %v594_v18  ;;  %v634_v6 = vld [vmem:[%s20246_s1 + $0x1268] sm:$0xff] }
 0x13d   :  { %9619 = vmatpush1.bf16.msra.mxu0 %v13380_v23  ;;  %v13428_v23 = vcombine.low %v837_v8, %v841_v9  ;;  %v885_v8 = vld [vmem:[%s20246_s1 + $0x1a40] sm:$0xff] }
 0x13e   :  { %9620 = vmatprep.subr.bf16.mxu0 %v13389_v25  ;;  %v13437_v25 = vcombine.high %v845_v20, %v849_v53  ;;  %v889_v9 = vld [vmem:[%s20246_s1 + $0x1a60] sm:$0xff] }
 0x13f   :  { %10031 = vmatpush1.bf16.msra.mxu1 %v13134_v30  ;;  %v13182_v30 = vcombine.low %v590_v17, %v594_v18  ;;  %v638_v17 = vld [vmem:[%s20246_s1 + $0x1288] sm:$0xff] }
 0x140   :  { %10032 = vmatprep.subr.bf16.mxu1 %v13143_v33  ;;  %v13191_v33 = vcombine.high %v598_v54, %v602_v27  ;;  %v642_v18 = vld [vmem:[%s20246_s1 + $0x12a8] sm:$0xff] }
 0x141   :  { %9621 = vmatpush1.bf16.msra.mxu0 %v13388_v31  ;;  %v13436_v31 = vcombine.low %v845_v20, %v849_v53  ;;  %v893_v20 = vld [vmem:[%s20246_s1 + $0x1a80] sm:$0xff] }
 0x142   :  { %9622 = vmatprep.subr.bf16.mxu0 %v13397_v35  ;;  %v13445_v35 = vcombine.high %v853_v28, %v857_v29  ;;  %v897_v53 = vld [vmem:[%s20246_s1 + $0x1aa0] sm:$0xff] }
 0x143   :  { %10033 = vmatpush1.bf16.msra.mxu1 %v13142_v19  ;;  %v13190_v19 = vcombine.low %v598_v54, %v602_v27  ;;  %v646_v54 = vld [vmem:[%s20246_s1 + $0x12c8] sm:$0xff] }
 0x144   :  { %10043 = vmatprep.subr.bf16.mxu1 %v13151_v42  ;;  %v13199_v42 = vcombine.high %v606_v36, %v610_v37  ;;  %v650_v27 = vld [vmem:[%s20246_s1 + $0x12e8] sm:$0xff] }
 0x145   :  { %9623 = vmatpush1.bf16.msra.mxu0 %v13396_v41  ;;  %v13444_v41 = vcombine.low %v853_v28, %v857_v29  ;;  %v901_v28 = vld [vmem:[%s20246_s1 + $0x1ac0] sm:$0xff] }
 0x146   :  { %9633 = vmatprep.subr.bf16.mxu0 %v13405_v43  ;;  %10035 = vmatmul.mubr.bf16.vlgmr.msra.gmra.mrb[4].mxu1 %v15533_v52  ;;  %v13453_v43 = vcombine.high %v861_v38, %v865_v39  ;;  %v905_v29 = vld [vmem:[%s20246_s1 + $0x1ae0] sm:$0xff] }
 0x147   :  { %10044 = vmatpush1.bf16.msra.mxu1 %v13150_v49  ;;  %10075 = vmatprep.mubr.bf16.mxu1 %v15543_v62  ;;  %v13198_v49 = vcombine.low %v606_v36, %v610_v37  ;;  %v654_v36 = vld [vmem:[%s20246_s1 + $0x1308] sm:$0xff] }
 0x148   :  { %9625 = vmatmul.mubr.bf16.vlgmr.msra.gmra.mrb[0].mxu0 %v15955_v51  ;;  %10045 = vmatprep.subr.bf16.mxu1 %v13159_v56  ;;  %v13207_v56 = vcombine.high %v614_v44, %v618_v45  ;;  %v658_v37 = vld [vmem:[%s20246_s1 + $0x1328] sm:$0xff] }
 0x149   :  { %9634 = vmatpush1.bf16.msra.mxu0 %v13404_v55  ;;  %9665 = vmatprep.mubr.bf16.mxu0 %v15965_v32  ;;  %v13452_v55 = vcombine.low %v861_v38, %v865_v39  ;;  %v909_v38 = vld [vmem:[%s20246_s1 + $0x1b00] sm:$0xff] }
 0x14a   :  { %9635 = vmatprep.subr.bf16.mxu0 %v13413_v57  ;;  %v13461_v57 = vcombine.high %v869_v46, %v873_v47  ;;  %v913_v39 = vld [vmem:[%s20246_s1 + $0x1b20] sm:$0xff] }
 0x14b   :  { %10046 = vmatpush1.bf16.msra.mxu1 %v13158_v0  ;;  %v13206_v0 = vcombine.low %v614_v44, %v618_v45  ;;  %v662_v44 = vld [vmem:[%s20246_s1 + $0x1348] sm:$0xff] }
 0x14c   :  { %10047 = vmatprep.subr.bf16.mxu1 %v13167_v2  ;;  %v13215_v2 = vcombine.high %v622_v59, %v626_v60  ;;  %v666_v45 = vld [vmem:[%s20246_s1 + $0x1368] sm:$0xff] }
 0x14d   :  { %9636 = vmatpush1.bf16.msra.mxu0 %v13412_v1  ;;  %v13460_v1 = vcombine.low %v869_v46, %v873_v47  ;;  %v917_v46 = vld [vmem:[%s20246_s1 + $0x1b40] sm:$0xff] }
 0x14e   :  { %9637 = vmatprep.subr.bf16.mxu0 %v13421_v4  ;;  %v13469_v4 = vcombine.high %v877_v12, %v881_v63  ;;  %v921_v47 = vld [vmem:[%s20246_s1 + $0x1b60] sm:$0xff] }
 0x14f   :  { %10048 = vmatpush1.bf16.msra.mxu1 %v13166_v10  ;;  %v13214_v10 = vcombine.low %v622_v59, %v626_v60  ;;  %v670_v59 = vld [vmem:[%s20246_s1 + $0x1388] sm:$0xff] }
 0x150   :  { %10049 = vmatprep.subr.bf16.mxu1 %v13175_v13  ;;  %v13223_v13 = vcombine.high %v630_v5, %v634_v6  ;;  %v674_v60 = vld [vmem:[%s20246_s1 + $0x13a8] sm:$0xff] }
 0x151   :  { %9638 = vmatpush1.bf16.msra.mxu0 %v13420_v11  ;;  %v13468_v11 = vcombine.low %v877_v12, %v881_v63  ;;  %v925_v12 = vld [vmem:[%s20246_s1 + $0x1b80] sm:$0xff] }
 0x152   :  { %9639 = vmatprep.subr.bf16.mxu0 %v13429_v15  ;;  %v13477_v15 = vcombine.high %v885_v8, %v889_v9  ;;  %v929_v63 = vld [vmem:[%s20246_s1 + $0x1ba0] sm:$0xff] }
 0x153   :  { %10050 = vmatpush1.bf16.msra.mxu1 %v13174_v50  ;;  %v13222_v50 = vcombine.low %v630_v5, %v634_v6  ;;  %v678_v5 = vld [vmem:[%s20246_s1 + $0x13c8] sm:$0xff] }
 0x154   :  { %10051 = vmatprep.subr.bf16.mxu1 %v13183_v24  ;;  %v13231_v24 = vcombine.high %v638_v17, %v642_v18  ;;  %v682_v6 = vld [vmem:[%s20246_s1 + $0x13e8] sm:$0xff] }
 0x155   :  { %9640 = vmatpush1.bf16.msra.mxu0 %v13428_v23  ;;  %v13476_v23 = vcombine.low %v885_v8, %v889_v9  ;;  %v933_v8 = vld [vmem:[%s20246_s1 + $0x1bc0] sm:$0xff] }
 0x156   :  { %9641 = vmatprep.subr.bf16.mxu0 %v13437_v25  ;;  %v13485_v25 = vcombine.high %v893_v20, %v897_v53  ;;  %v937_v9 = vld [vmem:[%s20246_s1 + $0x1be0] sm:$0xff] }
 0x157   :  { %10052 = vmatpush1.bf16.msra.mxu1 %v13182_v30  ;;  %v13230_v30 = vcombine.low %v638_v17, %v642_v18  ;;  %v686_v17 = vld [vmem:[%s20246_s1 + $0x1408] sm:$0xff] }
 0x158   :  { %10053 = vmatprep.subr.bf16.mxu1 %v13191_v33  ;;  %v13239_v33 = vcombine.high %v646_v54, %v650_v27  ;;  %v690_v18 = vld [vmem:[%s20246_s1 + $0x1428] sm:$0xff] }
 0x159   :  { %9642 = vmatpush1.bf16.msra.mxu0 %v13436_v31  ;;  %v13484_v31 = vcombine.low %v893_v20, %v897_v53  ;;  %v941_v20 = vld [vmem:[%s20246_s1 + $0x1c00] sm:$0xff] }
 0x15a   :  { %9643 = vmatprep.subr.bf16.mxu0 %v13445_v35  ;;  %v13493_v35 = vcombine.high %v901_v28, %v905_v29  ;;  %v945_v53 = vld [vmem:[%s20246_s1 + $0x1c20] sm:$0xff] }
 0x15b   :  { %10054 = vmatpush1.bf16.msra.mxu1 %v13190_v19  ;;  %v13238_v19 = vcombine.low %v646_v54, %v650_v27  ;;  %v694_v54 = vld [vmem:[%s20246_s1 + $0x1448] sm:$0xff] }
 0x15c   :  { %10055 = vmatprep.subr.bf16.mxu1 %v13199_v42  ;;  %v13247_v42 = vcombine.high %v654_v36, %v658_v37  ;;  %v698_v27 = vld [vmem:[%s20246_s1 + $0x1468] sm:$0xff] }
 0x15d   :  { %9644 = vmatpush1.bf16.msra.mxu0 %v13444_v41  ;;  %v13492_v41 = vcombine.low %v901_v28, %v905_v29  ;;  %v949_v28 = vld [vmem:[%s20246_s1 + $0x1c40] sm:$0xff] }
 0x15e   :  { %9645 = vmatprep.subr.bf16.mxu0 %v13453_v43  ;;  %v13501_v43 = vcombine.high %v909_v38, %v913_v39  ;;  %v953_v29 = vld [vmem:[%s20246_s1 + $0x1c60] sm:$0xff] }
 0x15f   :  { %10056 = vmatpush1.bf16.msra.mxu1 %v13198_v49  ;;  %v13246_v49 = vcombine.low %v654_v36, %v658_v37  ;;  %v13287_v36 = vcombine.high %v694_v54, %v698_v27  ;;  %v13541_v37 = vcombine.high %v949_v28, %v953_v29 }
 0x160   :  { %10057 = vmatprep.subr.bf16.mxu1 %v13207_v56  ;;  %v13255_v56 = vcombine.high %v662_v44, %v666_v45 }
 0x161   :  { %9646 = vmatpush1.bf16.msra.mxu0 %v13452_v55  ;;  %v13500_v55 = vcombine.low %v909_v38, %v913_v39  ;;  %v702_v38 = vld [vmem:[%s20246_s1 + $0x1488] sm:$0xff] }
 0x162   :  { %9647 = vmatprep.subr.bf16.mxu0 %v13461_v57  ;;  %v13509_v57 = vcombine.high %v917_v46, %v921_v47  ;;  %v706_v39 = vld [vmem:[%s20246_s1 + $0x14a8] sm:$0xff] }
 0x163   :  { %10058 = vmatpush1.bf16.msra.mxu1 %v13206_v0  ;;  %v13254_v0 = vcombine.low %v662_v44, %v666_v45  ;;  %v13295_v44 = vcombine.high %v702_v38, %v706_v39 }
 0x164   :  { %10059 = vmatprep.subr.bf16.mxu1 %v13215_v2  ;;  %v13263_v2 = vcombine.high %v670_v59, %v674_v60 }
 0x165   :  { %9648 = vmatpush1.bf16.msra.mxu0 %v13460_v1  ;;  %v13508_v1 = vcombine.low %v917_v46, %v921_v47  ;;  %v710_v46 = vld [vmem:[%s20246_s1 + $0x14c8] sm:$0xff] }
 0x166   :  { %9649 = vmatprep.subr.bf16.mxu0 %v13469_v4  ;;  %v13517_v4 = vcombine.high %v925_v12, %v929_v63  ;;  %v714_v47 = vld [vmem:[%s20246_s1 + $0x14e8] sm:$0xff] }
 0x167   :  { %10060 = vmatpush1.bf16.msra.mxu1 %v13214_v10  ;;  %v13262_v10 = vcombine.low %v670_v59, %v674_v60  ;;  %v13303_v59 = vcombine.high %v710_v46, %v714_v47 }
 0x168   :  { %10061 = vmatprep.subr.bf16.mxu1 %v13223_v13  ;;  %v13271_v13 = vcombine.high %v678_v5, %v682_v6 }
 0x169   :  { %9650 = vmatpush1.bf16.msra.mxu0 %v13468_v11  ;;  %v13516_v11 = vcombine.low %v925_v12, %v929_v63  ;;  %v718_v12 = vld [vmem:[%s20246_s1 + $0x1508] sm:$0xff] }
 0x16a   :  { %9651 = vmatprep.subr.bf16.mxu0 %v13477_v15  ;;  %v13525_v15 = vcombine.high %v933_v8, %v937_v9  ;;  %v722_v63 = vld [vmem:[%s20246_s1 + $0x1528] sm:$0xff] }
 0x16b   :  { %10062 = vmatpush1.bf16.msra.mxu1 %v13222_v50  ;;  %v13270_v50 = vcombine.low %v678_v5, %v682_v6  ;;  %v13311_v5 = vcombine.high %v718_v12, %v722_v63 }
 0x16c   :  { %10063 = vmatprep.subr.bf16.mxu1 %v13231_v24  ;;  %v13279_v24 = vcombine.high %v686_v17, %v690_v18 }
 0x16d   :  { %9652 = vmatpush1.bf16.msra.mxu0 %v13476_v23  ;;  %v13524_v23 = vcombine.low %v933_v8, %v937_v9  ;;  %v726_v8 = vld [vmem:[%s20246_s1 + $0x1548] sm:$0xff] }
 0x16e   :  { %9653 = vmatprep.subr.bf16.mxu0 %v13485_v25  ;;  %v13533_v25 = vcombine.high %v941_v20, %v945_v53  ;;  %v730_v9 = vld [vmem:[%s20246_s1 + $0x1568] sm:$0xff] }
 0x16f   :  { %10064 = vmatpush1.bf16.msra.mxu1 %v13230_v30  ;;  %v16160_v30 = vld [vmem:[%s20247_s0 + $0x38] sm:$0xff] }
 0x170   :  { %10065 = vmatprep.subr.bf16.mxu1 %v13239_v33  ;;  %v16164_v33 = vcombine.low %v15951_v48, %v15951_v48  ;;  %v957_v48 = vld [vmem:[%s20246_s1 + $0x1c80] sm:$0xff] }
 0x171   :  { %9654 = vmatpush1.bf16.msra.mxu0 %v13484_v31  ;;  %v13278_v31 = vcombine.low %v686_v17, %v690_v18  ;;  %v13319_v17 = vcombine.high %v726_v8, %v730_v9 }
 0x172   :  { %9655 = vmatprep.subr.bf16.mxu0 %v13493_v35  ;;  %v13532_v35 = vcombine.low %v941_v20, %v945_v53  ;;  %v734_v20 = vld [vmem:[%s20246_s1 + $0x1588] sm:$0xff] }
 0x173   :  { %10066 = vmatpush1.bf16.msra.mxu1 %v13238_v19  ;;  %v16174_v19 = vcombine.high %v16160_v30, %v16160_v30  ;;  %v738_v53 = vld [vmem:[%s20246_s1 + $0x15a8] sm:$0xff] }
 0x174   :  { %10067 = vmatprep.subr.bf16.mxu1 %v13247_v42  ;;  %v13286_v42 = vcombine.low %v694_v54, %v698_v27  ;;  %v13327_v54 = vcombine.high %v734_v20, %v738_v53 }
 0x175   :  { %9656 = vmatpush1.bf16.msra.mxu0 %v13492_v41  ;;  %v961_v41 = vld [vmem:[%s20246_s1 + $0x1ca0] sm:$0xff] }
 0x176   :  { %9657 = vmatprep.subr.bf16.mxu0 %v13501_v43  ;;  %v13540_v43 = vcombine.low %v949_v28, %v953_v29  ;;  %v13549_v45 = vcombine.high %v957_v48, %v961_v41  ;;  %v742_v28 = vld [vmem:[%s20246_s1 + $0x15c8] sm:$0xff] }
 0x177   :  { %10068 = vmatpush1.bf16.msra.mxu1 %v13246_v49  ;;  %v965_v49 = vld [vmem:[%s20246_s1 + $0x1cc0] sm:$0xff]  ;;  %v746_v29 = vld [vmem:[%s20246_s1 + $0x15e8] sm:$0xff] }
 0x178   :  { %10069 = vmatprep.subr.bf16.mxu1 %v13255_v56  ;;  %v13294_v56 = vcombine.low %v702_v38, %v706_v39  ;;  %v13335_v38 = vcombine.high %v742_v28, %v746_v29 }
 0x179   :  { %9658 = vmatpush1.bf16.msra.mxu0 %v13500_v55  ;;  %v969_v55 = vld [vmem:[%s20246_s1 + $0x1ce0] sm:$0xff] }
 0x17a   :  { %9659 = vmatprep.subr.bf16.mxu0 %v13509_v57  ;;  %v13548_v57 = vcombine.low %v957_v48, %v961_v41  ;;  %v13557_v60 = vcombine.high %v965_v49, %v969_v55  ;;  %v750_v48 = vld [vmem:[%s20246_s1 + $0x1608] sm:$0xff] }
 0x17b   :  { %10070 = vmatpush1.bf16.msra.mxu1 %v13254_v0  ;;  %v973_v0 = vld [vmem:[%s20246_s1 + $0x1d00] sm:$0xff]  ;;  %v754_v41 = vld [vmem:[%s20246_s1 + $0x1628] sm:$0xff] }
 0x17c   :  { %10071 = vmatprep.subr.bf16.mxu1 %v13263_v2  ;;  %v13302_v2 = vcombine.low %v710_v46, %v714_v47  ;;  %v13343_v46 = vcombine.high %v750_v48, %v754_v41 }
 0x17d   :  { %9660 = vmatpush1.bf16.msra.mxu0 %v13508_v1  ;;  %v977_v1 = vld [vmem:[%s20246_s1 + $0x1d20] sm:$0xff] }
 0x17e   :  { %9661 = vmatprep.subr.bf16.mxu0 %v13517_v4  ;;  %v13556_v4 = vcombine.low %v965_v49, %v969_v55  ;;  %v13565_v6 = vcombine.high %v973_v0, %v977_v1  ;;  %v758_v49 = vld [vmem:[%s20246_s1 + $0x1648] sm:$0xff] }
 0x17f   :  { %10072 = vmatpush1.bf16.msra.mxu1 %v13262_v10  ;;  %v981_v10 = vld [vmem:[%s20246_s1 + $0x1d40] sm:$0xff]  ;;  %v762_v55 = vld [vmem:[%s20246_s1 + $0x1668] sm:$0xff] }
 0x180   :  { %10073 = vmatprep.subr.bf16.mxu1 %v13271_v13  ;;  %v13310_v13 = vcombine.low %v718_v12, %v722_v63  ;;  %v13351_v12 = vcombine.high %v758_v49, %v762_v55 }
 0x181   :  { %9662 = vmatpush1.bf16.msra.mxu0 %v13516_v11  ;;  %v985_v11 = vld [vmem:[%s20246_s1 + $0x1d60] sm:$0xff] }
 0x182   :  { %9663 = vmatprep.subr.bf16.mxu0 %v13525_v15  ;;  %v13564_v15 = vcombine.low %v973_v0, %v977_v1  ;;  %v13573_v18 = vcombine.high %v981_v10, %v985_v11  ;;  %v766_v0 = vld [vmem:[%s20246_s1 + $0x1688] sm:$0xff] }
 0x183   :  { %10074 = vmatpush1.bf16.msra.mxu1 %v13270_v50  ;;  %v989_v50 = vld [vmem:[%s20246_s1 + $0x1d80] sm:$0xff]  ;;  %v770_v1 = vld [vmem:[%s20246_s1 + $0x16a8] sm:$0xff] }
 0x184   :  { %10084 = vmatprep.subr.bf16.mxu1 %v13279_v24  ;;  %v13318_v24 = vcombine.low %v726_v8, %v730_v9  ;;  %v13359_v8 = vcombine.high %v766_v0, %v770_v1 }
 0x185   :  { %9664 = vmatpush1.bf16.msra.mxu0 %v13524_v23  ;;  %v993_v23 = vld [vmem:[%s20246_s1 + $0x1da0] sm:$0xff] }
 0x186   :  { %9674 = vmatprep.subr.bf16.mxu0 %v13533_v25  ;;  %10076 = vmatmul.mubr.bf16.vlgmr.msra.gmra.mrb[4].mxu1 %v15742_v14  ;;  %v13572_v25 = vcombine.low %v981_v10, %v985_v11  ;;  %v13581_v27 = vcombine.high %v989_v50, %v993_v23  ;;  %v774_v10 = vld [vmem:[%s20246_s1 + $0x16c8] sm:$0xff] }
 0x187   :  { %10085 = vmatpush1.bf16.msra.mxu1 %v13278_v31  ;;  %10116 = vmatprep.mubr.bf16.mxu1 %v15752_v22  ;;  %v997_v31 = vld [vmem:[%s20246_s1 + $0x1dc0] sm:$0xff]  ;;  %v778_v11 = vld [vmem:[%s20246_s1 + $0x16e8] sm:$0xff] }
 0x188   :  { %9666 = vmatmul.mubr.bf16.vlgmr.msra.gmra.mrb[0].mxu0 %v16164_v33  ;;  %10086 = vmatprep.subr.bf16.mxu1 %v13287_v36  ;;  %v13326_v36 = vcombine.low %v734_v20, %v738_v53  ;;  %v13367_v20 = vcombine.high %v774_v10, %v778_v11 }
 0x189   :  { %9675 = vmatpush1.bf16.msra.mxu0 %v13532_v35  ;;  %9706 = vmatprep.mubr.bf16.mxu0 %v16174_v19  ;;  %v1001_v35 = vld [vmem:[%s20246_s1 + $0x1de0] sm:$0xff] }
 0x18a   :  { %9676 = vmatprep.subr.bf16.mxu0 %v13541_v37  ;;  %v13580_v37 = vcombine.low %v989_v50, %v993_v23  ;;  %v13589_v39 = vcombine.high %v997_v31, %v1001_v35  ;;  %v782_v50 = vld [vmem:[%s20246_s1 + $0x1708] sm:$0xff] }
 0x18b   :  { %10087 = vmatpush1.bf16.msra.mxu1 %v13286_v42  ;;  %v1005_v42 = vld [vmem:[%s20246_s1 + $0x1e00] sm:$0xff]  ;;  %v786_v23 = vld [vmem:[%s20246_s1 + $0x1728] sm:$0xff] }
 0x18c   :  { %10088 = vmatprep.subr.bf16.mxu1 %v13295_v44  ;;  %v13334_v44 = vcombine.low %v742_v28, %v746_v29  ;;  %v13375_v28 = vcombine.high %v782_v50, %v786_v23 }
 0x18d   :  { %9677 = vmatpush1.bf16.msra.mxu0 %v13540_v43  ;;  %v1009_v43 = vld [vmem:[%s20246_s1 + $0x1e20] sm:$0xff] }
 0x18e   :  { %9678 = vmatprep.subr.bf16.mxu0 %v13549_v45  ;;  %v13588_v45 = vcombine.low %v997_v31, %v1001_v35  ;;  %v13597_v47 = vcombine.high %v1005_v42, %v1009_v43  ;;  %v790_v31 = vld [vmem:[%s20246_s1 + $0x1748] sm:$0xff] }
 0x18f   :  { %10089 = vmatpush1.bf16.msra.mxu1 %v13294_v56  ;;  %v1013_v56 = vld [vmem:[%s20246_s1 + $0x1e40] sm:$0xff]  ;;  %v794_v35 = vld [vmem:[%s20246_s1 + $0x1768] sm:$0xff] }
 0x190   :  { %10090 = vmatprep.subr.bf16.mxu1 %v13303_v59  ;;  %v13342_v59 = vcombine.low %v750_v48, %v754_v41  ;;  %v13383_v48 = vcombine.high %v790_v31, %v794_v35 }
 0x191   :  { %9679 = vmatpush1.bf16.msra.mxu0 %v13548_v57  ;;  %v1017_v57 = vld [vmem:[%s20246_s1 + $0x1e60] sm:$0xff] }
 0x192   :  { %9680 = vmatprep.subr.bf16.mxu0 %v13557_v60  ;;  %v13596_v60 = vcombine.low %v1005_v42, %v1009_v43  ;;  %v13605_v63 = vcombine.high %v1013_v56, %v1017_v57  ;;  %v798_v42 = vld [vmem:[%s20246_s1 + $0x1788] sm:$0xff] }
 0x193   :  { %10091 = vmatpush1.bf16.msra.mxu1 %v13302_v2  ;;  %v1021_v2 = vld [vmem:[%s20246_s1 + $0x1e80] sm:$0xff]  ;;  %v802_v43 = vld [vmem:[%s20246_s1 + $0x17a8] sm:$0xff] }
 0x194   :  { %10092 = vmatprep.subr.bf16.mxu1 %v13311_v5  ;;  %v13350_v5 = vcombine.low %v758_v49, %v762_v55  ;;  %v13391_v49 = vcombine.high %v798_v42, %v802_v43 }
 0x195   :  { %9681 = vmatpush1.bf16.msra.mxu0 %v13556_v4  ;;  %v1025_v4 = vld [vmem:[%s20246_s1 + $0x1ea0] sm:$0xff] }
 0x196   :  { %9682 = vmatprep.subr.bf16.mxu0 %v13565_v6  ;;  %v13604_v6 = vcombine.low %v1013_v56, %v1017_v57  ;;  %v13613_v9 = vcombine.high %v1021_v2, %v1025_v4  ;;  %v806_v56 = vld [vmem:[%s20246_s1 + $0x17c8] sm:$0xff] }
 0x197   :  { %10093 = vmatpush1.bf16.msra.mxu1 %v13310_v13  ;;  %v1029_v13 = vld [vmem:[%s20246_s1 + $0x1ec0] sm:$0xff]  ;;  %v810_v57 = vld [vmem:[%s20246_s1 + $0x17e8] sm:$0xff] }
 0x198   :  { %10094 = vmatprep.subr.bf16.mxu1 %v13319_v17  ;;  %v13358_v17 = vcombine.low %v766_v0, %v770_v1  ;;  %v13399_v0 = vcombine.high %v806_v56, %v810_v57 }
 0x199   :  { %9683 = vmatpush1.bf16.msra.mxu0 %v13564_v15  ;;  %v1033_v15 = vld [vmem:[%s20246_s1 + $0x1ee0] sm:$0xff] }
 0x19a   :  { %9684 = vmatprep.subr.bf16.mxu0 %v13573_v18  ;;  %v13612_v18 = vcombine.low %v1021_v2, %v1025_v4  ;;  %v13621_v53 = vcombine.high %v1029_v13, %v1033_v15  ;;  %v814_v2 = vld [vmem:[%s20246_s1 + $0x1808] sm:$0xff] }
 0x19b   :  { %10095 = vmatpush1.bf16.msra.mxu1 %v13318_v24  ;;  %v1037_v24 = vld [vmem:[%s20246_s1 + $0x1f00] sm:$0xff]  ;;  %v818_v4 = vld [vmem:[%s20246_s1 + $0x1828] sm:$0xff] }
 0x19c   :  { %10096 = vmatprep.subr.bf16.mxu1 %v13327_v54  ;;  %v13366_v54 = vcombine.low %v774_v10, %v778_v11  ;;  %v13407_v10 = vcombine.high %v814_v2, %v818_v4 }
 0x19d   :  { %9685 = vmatpush1.bf16.msra.mxu0 %v13572_v25  ;;  %v1041_v25 = vld [vmem:[%s20246_s1 + $0x1f20] sm:$0xff] }
 0x19e   :  { %9686 = vmatprep.subr.bf16.mxu0 %v13581_v27  ;;  %v13620_v27 = vcombine.low %v1029_v13, %v1033_v15  ;;  %v13629_v29 = vcombine.high %v1037_v24, %v1041_v25  ;;  %v822_v13 = vld [vmem:[%s20246_s1 + $0x1848] sm:$0xff] }
 0x19f   :  { %10097 = vmatpush1.bf16.msra.mxu1 %v13326_v36  ;;  %v1045_v36 = vld [vmem:[%s20246_s1 + $0x1f40] sm:$0xff]  ;;  %v826_v15 = vld [vmem:[%s20246_s1 + $0x1868] sm:$0xff] }
 0x1a0   :  { %10098 = vmatprep.subr.bf16.mxu1 %v13335_v38  ;;  %v13374_v38 = vcombine.low %v782_v50, %v786_v23  ;;  %v16373_v50 = vcombine.low %v16160_v30, %v16160_v30  ;;  %v1085_v30 = vld [vmem:[%s20246_s1 + $0x2080] sm:$0xff] }
 0x1a1   :  { %9687 = vmatpush1.bf16.msra.mxu0 %v13580_v37  ;;  %v1049_v37 = vld [vmem:[%s20246_s1 + $0x1f60] sm:$0xff] }
 0x1a2   :  { %9688 = vmatprep.subr.bf16.mxu0 %v13589_v39  ;;  %v13628_v39 = vcombine.low %v1037_v24, %v1041_v25  ;;  %v13637_v41 = vcombine.high %v1045_v36, %v1049_v37  ;;  %v13415_v24 = vcombine.high %v822_v13, %v826_v15 }
 0x1a3   :  { %10099 = vmatpush1.bf16.msra.mxu1 %v13334_v44  ;;  %v1053_v44 = vld [vmem:[%s20246_s1 + $0x1f80] sm:$0xff] }
 0x1a4   :  { %10100 = vmatprep.subr.bf16.mxu1 %v13343_v46  ;;  %v13382_v46 = vcombine.low %v790_v31, %v794_v35  ;;  %v13414_v31 = vcombine.low %v822_v13, %v826_v15 }
 0x1a5   :  { %9689 = vmatpush1.bf16.msra.mxu0 %v13588_v45  ;;  %v1057_v45 = vld [vmem:[%s20246_s1 + $0x1fa0] sm:$0xff] }
 0x1a6   :  { %9690 = vmatprep.subr.bf16.mxu0 %v13597_v47  ;;  %v13636_v47 = vcombine.low %v1045_v36, %v1049_v37  ;;  %v13645_v55 = vcombine.high %v1053_v44, %v1057_v45 }
 0x1a7   :  { %10101 = vmatpush1.bf16.msra.mxu1 %v13342_v59  ;;  %v1061_v59 = vld [vmem:[%s20246_s1 + $0x1fc0] sm:$0xff] }
 0x1a8   :  { %10102 = vmatprep.subr.bf16.mxu1 %v13351_v12  ;;  %v13390_v12 = vcombine.low %v798_v42, %v802_v43 }
 0x1a9   :  { %9691 = vmatpush1.bf16.msra.mxu0 %v13596_v60  ;;  %v1065_v60 = vld [vmem:[%s20246_s1 + $0x1fe0] sm:$0xff] }
 0x1aa   :  { %9692 = vmatprep.subr.bf16.mxu0 %v13605_v63  ;;  %v13644_v63 = vcombine.low %v1053_v44, %v1057_v45  ;;  %v13653_v1 = vcombine.high %v1061_v59, %v1065_v60 }
 0x1ab   :  { %10103 = vmatpush1.bf16.msra.mxu1 %v13350_v5  ;;  %v1069_v5 = vld [vmem:[%s20246_s1 + $0x2000] sm:$0xff] }
 0x1ac   :  { %10104 = vmatprep.subr.bf16.mxu1 %v13359_v8  ;;  %v13398_v8 = vcombine.low %v806_v56, %v810_v57 }
 0x1ad   :  { %9693 = vmatpush1.bf16.msra.mxu0 %v13604_v6  ;;  %v1073_v6 = vld [vmem:[%s20246_s1 + $0x2020] sm:$0xff] }
 0x1ae   :  { %9694 = vmatprep.subr.bf16.mxu0 %v13613_v9  ;;  %v13652_v9 = vcombine.low %v1061_v59, %v1065_v60  ;;  %v13661_v11 = vcombine.high %v1069_v5, %v1073_v6  ;;  %v13660_v23 = vcombine.low %v1069_v5, %v1073_v6 }
 0x1af   :  { %10105 = vmatpush1.bf16.msra.mxu1 %v13358_v17  ;;  %v1077_v17 = vld [vmem:[%s20246_s1 + $0x2040] sm:$0xff] }
 0x1b0   :  { %10106 = vmatprep.subr.bf16.mxu1 %v13367_v20  ;;  %v16369_v20 = vld [vmem:[%s20247_s0 + $0x40] sm:$0xff] }
 0x1b1   :  { %9695 = vmatpush1.bf16.msra.mxu0 %v13612_v18  ;;  %v1081_v18 = vld [vmem:[%s20246_s1 + $0x2060] sm:$0xff] }
 0x1b2   :  { %9696 = vmatprep.subr.bf16.mxu0 %v13621_v53  ;;  %v13406_v53 = vcombine.low %v814_v2, %v818_v4  ;;  %v13669_v25 = vcombine.high %v1077_v17, %v1081_v18  ;;  %v13668_v35 = vcombine.low %v1077_v17, %v1081_v18 }
 0x1b3   :  { %10107 = vmatpush1.bf16.msra.mxu1 %v13366_v54  ;;  %v830_v54 = vld [vmem:[%s20246_s1 + $0x1888] sm:$0xff] }
 0x1b4   :  { %10108 = vmatprep.subr.bf16.mxu1 %v13375_v28  ;;  %v16383_v28 = vcombine.high %v16369_v20, %v16369_v20 }
 0x1b5   :  { %9697 = vmatpush1.bf16.msra.mxu0 %v13620_v27  ;;  %v834_v27 = vld [vmem:[%s20246_s1 + $0x18a8] sm:$0xff] }
 0x1b6   :  { %9698 = vmatprep.subr.bf16.mxu0 %v13629_v29  ;;  %v1089_v29 = vld [vmem:[%s20246_s1 + $0x20a0] sm:$0xff]  ;;  %v13423_v36 = vcombine.high %v830_v54, %v834_v27  ;;  %v13422_v42 = vcombine.low %v830_v54, %v834_v27 }
 0x1b7   :  { %10109 = vmatpush1.bf16.msra.mxu1 %v13374_v38  ;;  %v13677_v37 = vcombine.high %v1085_v30, %v1089_v29  ;;  %v838_v38 = vld [vmem:[%s20246_s1 + $0x18c8] sm:$0xff]  ;;  %v13676_v43 = vcombine.low %v1085_v30, %v1089_v29 }
 0x1b8   :  { %10110 = vmatprep.subr.bf16.mxu1 %v13383_v48  ;;  %v1093_v48 = vld [vmem:[%s20246_s1 + $0x20c0] sm:$0xff] }
 0x1b9   :  { %9699 = vmatpush1.bf16.msra.mxu0 %v13628_v39  ;;  %v842_v39 = vld [vmem:[%s20246_s1 + $0x18e8] sm:$0xff] }
 0x1ba   :  { %9700 = vmatprep.subr.bf16.mxu0 %v13637_v41  ;;  %v1097_v41 = vld [vmem:[%s20246_s1 + $0x20e0] sm:$0xff]  ;;  %v13431_v44 = vcombine.high %v838_v38, %v842_v39  ;;  %v13430_v56 = vcombine.low %v838_v38, %v842_v39 }
 0x1bb   :  { %10111 = vmatpush1.bf16.msra.mxu1 %v13382_v46  ;;  %v13685_v45 = vcombine.high %v1093_v48, %v1097_v41  ;;  %v846_v46 = vld [vmem:[%s20246_s1 + $0x1908] sm:$0xff]  ;;  %v13684_v57 = vcombine.low %v1093_v48, %v1097_v41 }
 0x1bc   :  { %10112 = vmatprep.subr.bf16.mxu1 %v13391_v49  ;;  %v1101_v49 = vld [vmem:[%s20246_s1 + $0x2100] sm:$0xff] }
 0x1bd   :  { %9701 = vmatpush1.bf16.msra.mxu0 %v13636_v47  ;;  %v850_v47 = vld [vmem:[%s20246_s1 + $0x1928] sm:$0xff] }
 0x1be   :  { %9702 = vmatprep.subr.bf16.mxu0 %v13645_v55  ;;  %v1105_v55 = vld [vmem:[%s20246_s1 + $0x2120] sm:$0xff]  ;;  %v13439_v59 = vcombine.high %v846_v46, %v850_v47  ;;  %v13438_v2 = vcombine.low %v846_v46, %v850_v47 }
 0x1bf   :  { %10113 = vmatpush1.bf16.msra.mxu1 %v13390_v12  ;;  %v13693_v60 = vcombine.high %v1101_v49, %v1105_v55  ;;  %v854_v12 = vld [vmem:[%s20246_s1 + $0x1948] sm:$0xff]  ;;  %v13692_v4 = vcombine.low %v1101_v49, %v1105_v55 }
 0x1c0   :  { %10114 = vmatprep.subr.bf16.mxu1 %v13399_v0  ;;  %v1109_v0 = vld [vmem:[%s20246_s1 + $0x2140] sm:$0xff] }
 0x1c1   :  { %9703 = vmatpush1.bf16.msra.mxu0 %v13644_v63  ;;  %v858_v63 = vld [vmem:[%s20246_s1 + $0x1968] sm:$0xff] }
 0x1c2   :  { %9704 = vmatprep.subr.bf16.mxu0 %v13653_v1  ;;  %v1113_v1 = vld [vmem:[%s20246_s1 + $0x2160] sm:$0xff]  ;;  %v13447_v5 = vcombine.high %v854_v12, %v858_v63  ;;  %v13446_v13 = vcombine.low %v854_v12, %v858_v63 }
 0x1c3   :  { %10115 = vmatpush1.bf16.msra.mxu1 %v13398_v8  ;;  %v13701_v6 = vcombine.high %v1109_v0, %v1113_v1  ;;  %v862_v8 = vld [vmem:[%s20246_s1 + $0x1988] sm:$0xff]  ;;  %v13700_v15 = vcombine.low %v1109_v0, %v1113_v1 }
 0x1c4   :  { %10125 = vmatprep.subr.bf16.mxu1 %v13407_v10  ;;  %v1117_v10 = vld [vmem:[%s20246_s1 + $0x2180] sm:$0xff] }
 0x1c5   :  { %9705 = vmatpush1.bf16.msra.mxu0 %v13652_v9  ;;  %v866_v9 = vld [vmem:[%s20246_s1 + $0x19a8] sm:$0xff] }
 0x1c6   :  { %9715 = vmatprep.subr.bf16.mxu0 %v13661_v11  ;;  %10117 = vmatmul.mubr.bf16.vlgmr.msra.gmra.mrb[4].mxu1 %v15955_v51  ;;  %v1121_v11 = vld [vmem:[%s20246_s1 + $0x21a0] sm:$0xff]  ;;  %v13455_v17 = vcombine.high %v862_v8, %v866_v9  ;;  %v13454_v54 = vcombine.low %v862_v8, %v866_v9 }
 0x1c7   :  { %10126 = vmatpush1.bf16.msra.mxu1 %v13406_v53  ;;  %10157 = vmatprep.mubr.bf16.mxu1 %v15965_v32  ;;  %v13709_v18 = vcombine.high %v1117_v10, %v1121_v11  ;;  %v870_v53 = vld [vmem:[%s20246_s1 + $0x19c8] sm:$0xff]  ;;  %v13708_v27 = vcombine.low %v1117_v10, %v1121_v11 }
 0x1c8   :  { %9707 = vmatmul.mubr.bf16.vlgmr.msra.gmra.mrb[0].mxu0 %v16373_v50  ;;  %10127 = vmatprep.subr.bf16.mxu1 %v13415_v24  ;;  %v1125_v24 = vld [vmem:[%s20246_s1 + $0x21c0] sm:$0xff] }
 0x1c9   :  { %9716 = vmatpush1.bf16.msra.mxu0 %v13660_v23  ;;  %9747 = vmatprep.mubr.bf16.mxu0 %v16383_v28  ;;  %v874_v23 = vld [vmem:[%s20246_s1 + $0x19e8] sm:$0xff] }
 0x1ca   :  { %9717 = vmatprep.subr.bf16.mxu0 %v13669_v25  ;;  %v1129_v25 = vld [vmem:[%s20246_s1 + $0x21e0] sm:$0xff]  ;;  %v13463_v30 = vcombine.high %v870_v53, %v874_v23  ;;  %v13462_v38 = vcombine.low %v870_v53, %v874_v23 }
 0x1cb   :  { %10128 = vmatpush1.bf16.msra.mxu1 %v13414_v31  ;;  %v13717_v29 = vcombine.high %v1125_v24, %v1129_v25  ;;  %v878_v31 = vld [vmem:[%s20246_s1 + $0x1a08] sm:$0xff]  ;;  %v13716_v39 = vcombine.low %v1125_v24, %v1129_v25 }
 0x1cc   :  { %10129 = vmatprep.subr.bf16.mxu1 %v13423_v36  ;;  %v1133_v36 = vld [vmem:[%s20246_s1 + $0x2200] sm:$0xff] }
 0x1cd   :  { %9718 = vmatpush1.bf16.msra.mxu0 %v13668_v35  ;;  %v882_v35 = vld [vmem:[%s20246_s1 + $0x1a28] sm:$0xff] }
 0x1ce   :  { %9719 = vmatprep.subr.bf16.mxu0 %v13677_v37  ;;  %v1137_v37 = vld [vmem:[%s20246_s1 + $0x2220] sm:$0xff]  ;;  %v13471_v48 = vcombine.high %v878_v31, %v882_v35  ;;  %v13470_v46 = vcombine.low %v878_v31, %v882_v35 }
 0x1cf   :  { %10130 = vmatpush1.bf16.msra.mxu1 %v13422_v42  ;;  %v13725_v41 = vcombine.high %v1133_v36, %v1137_v37  ;;  %v886_v42 = vld [vmem:[%s20246_s1 + $0x1a48] sm:$0xff]  ;;  %v13724_v47 = vcombine.low %v1133_v36, %v1137_v37 }
 0x1d0   :  { %10131 = vmatprep.subr.bf16.mxu1 %v13431_v44  ;;  %v1141_v44 = vld [vmem:[%s20246_s1 + $0x2240] sm:$0xff] }
 0x1d1   :  { %9720 = vmatpush1.bf16.msra.mxu0 %v13676_v43  ;;  %v890_v43 = vld [vmem:[%s20246_s1 + $0x1a68] sm:$0xff] }
 0x1d2   :  { %9721 = vmatprep.subr.bf16.mxu0 %v13685_v45  ;;  %v1145_v45 = vld [vmem:[%s20246_s1 + $0x2260] sm:$0xff]  ;;  %v13479_v49 = vcombine.high %v886_v42, %v890_v43  ;;  %v13478_v12 = vcombine.low %v886_v42, %v890_v43 }
 0x1d3   :  { %10132 = vmatpush1.bf16.msra.mxu1 %v13430_v56  ;;  %v13733_v55 = vcombine.high %v1141_v44, %v1145_v45  ;;  %v894_v56 = vld [vmem:[%s20246_s1 + $0x1a88] sm:$0xff]  ;;  %v13732_v63 = vcombine.low %v1141_v44, %v1145_v45 }
 0x1d4   :  { %10133 = vmatprep.subr.bf16.mxu1 %v13439_v59  ;;  %v1149_v59 = vld [vmem:[%s20246_s1 + $0x2280] sm:$0xff] }
 0x1d5   :  { %9722 = vmatpush1.bf16.msra.mxu0 %v13684_v57  ;;  %v898_v57 = vld [vmem:[%s20246_s1 + $0x1aa8] sm:$0xff] }
 0x1d6   :  { %9723 = vmatprep.subr.bf16.mxu0 %v13693_v60  ;;  %v1153_v60 = vld [vmem:[%s20246_s1 + $0x22a0] sm:$0xff]  ;;  %v13487_v0 = vcombine.high %v894_v56, %v898_v57  ;;  %v13486_v8 = vcombine.low %v894_v56, %v898_v57 }
 0x1d7   :  { %10134 = vmatpush1.bf16.msra.mxu1 %v13438_v2  ;;  %v13741_v1 = vcombine.high %v1149_v59, %v1153_v60  ;;  %v902_v2 = vld [vmem:[%s20246_s1 + $0x1ac8] sm:$0xff]  ;;  %v13740_v9 = vcombine.low %v1149_v59, %v1153_v60 }
 0x1d8   :  { %10135 = vmatprep.subr.bf16.mxu1 %v13447_v5  ;;  %v1157_v5 = vld [vmem:[%s20246_s1 + $0x22c0] sm:$0xff] }
 0x1d9   :  { %9724 = vmatpush1.bf16.msra.mxu0 %v13692_v4  ;;  %v906_v4 = vld [vmem:[%s20246_s1 + $0x1ae8] sm:$0xff] }
 0x1da   :  { %9725 = vmatprep.subr.bf16.mxu0 %v13701_v6  ;;  %v1161_v6 = vld [vmem:[%s20246_s1 + $0x22e0] sm:$0xff]  ;;  %v13495_v10 = vcombine.high %v902_v2, %v906_v4  ;;  %v13494_v53 = vcombine.low %v902_v2, %v906_v4 }
 0x1db   :  { %10136 = vmatpush1.bf16.msra.mxu1 %v13446_v13  ;;  %v13749_v11 = vcombine.high %v1157_v5, %v1161_v6  ;;  %v910_v13 = vld [vmem:[%s20246_s1 + $0x1b08] sm:$0xff]  ;;  %v13748_v23 = vcombine.low %v1157_v5, %v1161_v6 }
 0x1dc   :  { %10137 = vmatprep.subr.bf16.mxu1 %v13455_v17  ;;  %v1165_v17 = vld [vmem:[%s20246_s1 + $0x2300] sm:$0xff] }
 0x1dd   :  { %9726 = vmatpush1.bf16.msra.mxu0 %v13700_v15  ;;  %v914_v15 = vld [vmem:[%s20246_s1 + $0x1b28] sm:$0xff] }
 0x1de   :  { %9727 = vmatprep.subr.bf16.mxu0 %v13709_v18  ;;  %v1169_v18 = vld [vmem:[%s20246_s1 + $0x2320] sm:$0xff]  ;;  %v13503_v24 = vcombine.high %v910_v13, %v914_v15  ;;  %v13502_v31 = vcombine.low %v910_v13, %v914_v15  ;;  %v16578_v13 = vld [vmem:[%s20247_s0 + $0x48] sm:$0xff] }
 0x1df   :  { %10138 = vmatpush1.bf16.msra.mxu1 %v13454_v54  ;;  %v13757_v25 = vcombine.high %v1165_v17, %v1169_v18  ;;  %v918_v54 = vld [vmem:[%s20246_s1 + $0x1b48] sm:$0xff]  ;;  %v13756_v35 = vcombine.low %v1165_v17, %v1169_v18  ;;  %v16582_v17 = vcombine.low %v16369_v20, %v16369_v20  ;;  %v1213_v20 = vld [vmem:[%s20246_s1 + $0x2480] sm:$0xff] }
 0x1e0   :  { %10139 = vmatprep.subr.bf16.mxu1 %v13463_v30  ;;  %v1173_v30 = vld [vmem:[%s20246_s1 + $0x2340] sm:$0xff] }
 0x1e1   :  { %9728 = vmatpush1.bf16.msra.mxu0 %v13708_v27  ;;  %v922_v27 = vld [vmem:[%s20246_s1 + $0x1b68] sm:$0xff] }
 0x1e2   :  { %9729 = vmatprep.subr.bf16.mxu0 %v13717_v29  ;;  %v1177_v29 = vld [vmem:[%s20246_s1 + $0x2360] sm:$0xff]  ;;  %v13511_v36 = vcombine.high %v918_v54, %v922_v27  ;;  %v13510_v42 = vcombine.low %v918_v54, %v922_v27  ;;  %v16592_v54 = vcombine.high %v16578_v13, %v16578_v13 }
 0x1e3   :  { %10140 = vmatpush1.bf16.msra.mxu1 %v13462_v38  ;;  %v13765_v37 = vcombine.high %v1173_v30, %v1177_v29  ;;  %v926_v38 = vld [vmem:[%s20246_s1 + $0x1b88] sm:$0xff]  ;;  %v13764_v43 = vcombine.low %v1173_v30, %v1177_v29  ;;  %v1217_v27 = vld [vmem:[%s20246_s1 + $0x24a0] sm:$0xff] }
 0x1e4   :  { %10141 = vmatprep.subr.bf16.mxu1 %v13471_v48  ;;  %v1181_v48 = vld [vmem:[%s20246_s1 + $0x2380] sm:$0xff] }
 0x1e5   :  { %9730 = vmatpush1.bf16.msra.mxu0 %v13716_v39  ;;  %v930_v39 = vld [vmem:[%s20246_s1 + $0x1ba8] sm:$0xff] }
 0x1e6   :  { %9731 = vmatprep.subr.bf16.mxu0 %v13725_v41  ;;  %v1185_v41 = vld [vmem:[%s20246_s1 + $0x23a0] sm:$0xff]  ;;  %v13519_v44 = vcombine.high %v926_v38, %v930_v39  ;;  %v13518_v56 = vcombine.low %v926_v38, %v930_v39 }
 0x1e7   :  { %10142 = vmatpush1.bf16.msra.mxu1 %v13470_v46  ;;  %v13773_v45 = vcombine.high %v1181_v48, %v1185_v41  ;;  %v934_v46 = vld [vmem:[%s20246_s1 + $0x1bc8] sm:$0xff]  ;;  %v13772_v57 = vcombine.low %v1181_v48, %v1185_v41  ;;  %v1221_v38 = vld [vmem:[%s20246_s1 + $0x24c0] sm:$0xff]  ;;  %v13804_v41 = vcombine.low %v1213_v20, %v1217_v27 }
 0x1e8   :  { %10143 = vmatprep.subr.bf16.mxu1 %v13479_v49  ;;  %v1189_v49 = vld [vmem:[%s20246_s1 + $0x23c0] sm:$0xff] }
 0x1e9   :  { %9732 = vmatpush1.bf16.msra.mxu0 %v13724_v47  ;;  %v938_v47 = vld [vmem:[%s20246_s1 + $0x1be8] sm:$0xff]  ;;  %v1225_v39 = vld [vmem:[%s20246_s1 + $0x24e0] sm:$0xff] }
 0x1ea   :  { %9733 = vmatprep.subr.bf16.mxu0 %v13733_v55  ;;  %v1193_v55 = vld [vmem:[%s20246_s1 + $0x23e0] sm:$0xff]  ;;  %v13527_v59 = vcombine.high %v934_v46, %v938_v47  ;;  %v13526_v2 = vcombine.low %v934_v46, %v938_v47 }
 0x1eb   :  { %10144 = vmatpush1.bf16.msra.mxu1 %v13478_v12  ;;  %v13781_v60 = vcombine.high %v1189_v49, %v1193_v55  ;;  %v942_v12 = vld [vmem:[%s20246_s1 + $0x1c08] sm:$0xff]  ;;  %v13780_v4 = vcombine.low %v1189_v49, %v1193_v55  ;;  %v1229_v46 = vld [vmem:[%s20246_s1 + $0x2500] sm:$0xff]  ;;  %v13812_v55 = vcombine.low %v1221_v38, %v1225_v39 }
 0x1ec   :  { %10145 = vmatprep.subr.bf16.mxu1 %v13487_v0  ;;  %v1197_v0 = vld [vmem:[%s20246_s1 + $0x2400] sm:$0xff] }
 0x1ed   :  { %9734 = vmatpush1.bf16.msra.mxu0 %v13732_v63  ;;  %v946_v63 = vld [vmem:[%s20246_s1 + $0x1c28] sm:$0xff]  ;;  %v1233_v47 = vld [vmem:[%s20246_s1 + $0x2520] sm:$0xff] }
 0x1ee   :  { %9735 = vmatprep.subr.bf16.mxu0 %v13741_v1  ;;  %v1201_v1 = vld [vmem:[%s20246_s1 + $0x2420] sm:$0xff]  ;;  %v13535_v5 = vcombine.high %v942_v12, %v946_v63  ;;  %v13534_v15 = vcombine.low %v942_v12, %v946_v63 }
 0x1ef   :  { %10146 = vmatpush1.bf16.msra.mxu1 %v13486_v8  ;;  %v13789_v6 = vcombine.high %v1197_v0, %v1201_v1  ;;  %v950_v8 = vld [vmem:[%s20246_s1 + $0x1c48] sm:$0xff]  ;;  %v13788_v18 = vcombine.low %v1197_v0, %v1201_v1  ;;  %v1237_v12 = vld [vmem:[%s20246_s1 + $0x2540] sm:$0xff]  ;;  %v13820_v1 = vcombine.low %v1229_v46, %v1233_v47 }
 0x1f0   :  { %10147 = vmatprep.subr.bf16.mxu1 %v13495_v10  ;;  %v1205_v10 = vld [vmem:[%s20246_s1 + $0x2440] sm:$0xff] }
 0x1f1   :  { %9736 = vmatpush1.bf16.msra.mxu0 %v13740_v9  ;;  %v954_v9 = vld [vmem:[%s20246_s1 + $0x1c68] sm:$0xff]  ;;  %v1241_v63 = vld [vmem:[%s20246_s1 + $0x2560] sm:$0xff] }
 0x1f2   :  { %9737 = vmatprep.subr.bf16.mxu0 %v13749_v11  ;;  %v1209_v11 = vld [vmem:[%s20246_s1 + $0x2460] sm:$0xff]  ;;  %v13542_v30 = vcombine.low %v950_v8, %v954_v9 }
 0x1f3   :  { %10148 = vmatpush1.bf16.msra.mxu1 %v13494_v53  ;;  %v13543_v53 = vcombine.high %v950_v8, %v954_v9  ;;  %v13796_v29 = vcombine.low %v1205_v10, %v1209_v11  ;;  %v1245_v8 = vld [vmem:[%s20246_s1 + $0x2580] sm:$0xff] }
 0x1f4   :  { %10149 = vmatprep.subr.bf16.mxu1 %v13503_v24  ;;  %v958_v24 = vld [vmem:[%s20246_s1 + $0x1c88] sm:$0xff]  ;;  %v1249_v9 = vld [vmem:[%s20246_s1 + $0x25a0] sm:$0xff] }
 0x1f5   :  { %9738 = vmatpush1.bf16.msra.mxu0 %v13748_v23  ;;  %v13797_v23 = vcombine.high %v1205_v10, %v1209_v11  ;;  %v13828_v11 = vcombine.low %v1237_v12, %v1241_v63 }
 0x1f6   :  { %9739 = vmatprep.subr.bf16.mxu0 %v13757_v25  ;;  %v962_v25 = vld [vmem:[%s20246_s1 + $0x1ca8] sm:$0xff] }
 0x1f7   :  { %10150 = vmatpush1.bf16.msra.mxu1 %v13502_v31  ;;  %v13551_v31 = vcombine.high %v958_v24, %v962_v25  ;;  %v13550_v48 = vcombine.low %v958_v24, %v962_v25  ;;  %v1253_v24 = vld [vmem:[%s20246_s1 + $0x25c0] sm:$0xff] }
 0x1f8   :  { %10151 = vmatprep.subr.bf16.mxu1 %v13511_v36  ;;  %v966_v36 = vld [vmem:[%s20246_s1 + $0x1cc8] sm:$0xff]  ;;  %v1257_v25 = vld [vmem:[%s20246_s1 + $0x25e0] sm:$0xff] }
 0x1f9   :  { %9740 = vmatpush1.bf16.msra.mxu0 %v13756_v35  ;;  %v13805_v35 = vcombine.high %v1213_v20, %v1217_v27  ;;  %v13836_v27 = vcombine.low %v1245_v8, %v1249_v9 }
 0x1fa   :  { %9741 = vmatprep.subr.bf16.mxu0 %v13765_v37  ;;  %v970_v37 = vld [vmem:[%s20246_s1 + $0x1ce8] sm:$0xff] }
 0x1fb   :  { %10152 = vmatpush1.bf16.msra.mxu1 %v13510_v42  ;;  %v13559_v42 = vcombine.high %v966_v36, %v970_v37  ;;  %v13558_v49 = vcombine.low %v966_v36, %v970_v37  ;;  %v1261_v36 = vld [vmem:[%s20246_s1 + $0x2600] sm:$0xff] }
 0x1fc   :  { %10153 = vmatprep.subr.bf16.mxu1 %v13519_v44  ;;  %v974_v44 = vld [vmem:[%s20246_s1 + $0x1d08] sm:$0xff]  ;;  %v1265_v37 = vld [vmem:[%s20246_s1 + $0x2620] sm:$0xff] }
 0x1fd   :  { %9742 = vmatpush1.bf16.msra.mxu0 %v13764_v43  ;;  %v13813_v43 = vcombine.high %v1221_v38, %v1225_v39  ;;  %v13844_v39 = vcombine.low %v1253_v24, %v1257_v25 }
 0x1fe   :  { %9743 = vmatprep.subr.bf16.mxu0 %v13773_v45  ;;  %v978_v45 = vld [vmem:[%s20246_s1 + $0x1d28] sm:$0xff] }
 0x1ff   :  { %10154 = vmatpush1.bf16.msra.mxu1 %v13518_v56  ;;  %v13567_v56 = vcombine.high %v974_v44, %v978_v45  ;;  %v13566_v0 = vcombine.low %v974_v44, %v978_v45  ;;  %v1269_v44 = vld [vmem:[%s20246_s1 + $0x2640] sm:$0xff] }
 0x200   :  { %10155 = vmatprep.subr.bf16.mxu1 %v13527_v59  ;;  %v982_v59 = vld [vmem:[%s20246_s1 + $0x1d48] sm:$0xff]  ;;  %v1273_v45 = vld [vmem:[%s20246_s1 + $0x2660] sm:$0xff] }
 0x201   :  { %9744 = vmatpush1.bf16.msra.mxu0 %v13772_v57  ;;  %v13821_v57 = vcombine.high %v1229_v46, %v1233_v47  ;;  %v13852_v47 = vcombine.low %v1261_v36, %v1265_v37 }
 0x202   :  { %9745 = vmatprep.subr.bf16.mxu0 %v13781_v60  ;;  %v986_v60 = vld [vmem:[%s20246_s1 + $0x1d68] sm:$0xff] }
 0x203   :  { %10156 = vmatpush1.bf16.msra.mxu1 %v13526_v2  ;;  %v13575_v2 = vcombine.high %v982_v59, %v986_v60  ;;  %v13574_v10 = vcombine.low %v982_v59, %v986_v60  ;;  %v1277_v59 = vld [vmem:[%s20246_s1 + $0x2680] sm:$0xff] }
 0x204   :  { %10166 = vmatprep.subr.bf16.mxu1 %v13535_v5  ;;  %v990_v5 = vld [vmem:[%s20246_s1 + $0x1d88] sm:$0xff]  ;;  %v1281_v60 = vld [vmem:[%s20246_s1 + $0x26a0] sm:$0xff] }
 0x205   :  { %9746 = vmatpush1.bf16.msra.mxu0 %v13780_v4  ;;  %v13829_v4 = vcombine.high %v1237_v12, %v1241_v63  ;;  %v13860_v63 = vcombine.low %v1269_v44, %v1273_v45 }
 0x206   :  { %9756 = vmatprep.subr.bf16.mxu0 %v13789_v6  ;;  %10158 = vmatmul.mubr.bf16.vlgmr.msra.gmra.mrb[4].mxu1 %v16164_v33  ;;  %v994_v6 = vld [vmem:[%s20246_s1 + $0x1da8] sm:$0xff] }
 0x207   :  { %10167 = vmatpush1.bf16.msra.mxu1 %v13534_v15  ;;  %10198 = vmatprep.mubr.bf16.mxu1 %v16174_v19  ;;  %v13583_v15 = vcombine.high %v990_v5, %v994_v6  ;;  %v13582_v20 = vcombine.low %v990_v5, %v994_v6  ;;  %v1285_v5 = vld [vmem:[%s20246_s1 + $0x26c0] sm:$0xff] }
 0x208   :  { %9748 = vmatmul.mubr.bf16.vlgmr.msra.gmra.mrb[0].mxu0 %v16582_v17  ;;  %10168 = vmatprep.subr.bf16.mxu1 %v13543_v53  ;;  %v998_v53 = vld [vmem:[%s20246_s1 + $0x1dc8] sm:$0xff]  ;;  %v1289_v6 = vld [vmem:[%s20246_s1 + $0x26e0] sm:$0xff] }
 0x209   :  { %9757 = vmatpush1.bf16.msra.mxu0 %v13788_v18  ;;  %9788 = vmatprep.mubr.bf16.mxu0 %v16592_v54  ;;  %v13837_v18 = vcombine.high %v1245_v8, %v1249_v9  ;;  %v13868_v9 = vcombine.low %v1277_v59, %v1281_v60 }
 0x20a   :  { %9758 = vmatprep.subr.bf16.mxu0 %v13797_v23  ;;  %v1002_v23 = vld [vmem:[%s20246_s1 + $0x1de8] sm:$0xff] }
 0x20b   :  { %10169 = vmatpush1.bf16.msra.mxu1 %v13542_v30  ;;  %v13591_v30 = vcombine.high %v998_v53, %v1002_v23  ;;  %v13590_v38 = vcombine.low %v998_v53, %v1002_v23  ;;  %v1293_v53 = vld [vmem:[%s20246_s1 + $0x2700] sm:$0xff] }
 0x20c   :  { %10170 = vmatprep.subr.bf16.mxu1 %v13551_v31  ;;  %v1006_v31 = vld [vmem:[%s20246_s1 + $0x1e08] sm:$0xff]  ;;  %v1297_v23 = vld [vmem:[%s20246_s1 + $0x2720] sm:$0xff] }
 0x20d   :  { %9759 = vmatpush1.bf16.msra.mxu0 %v13796_v29  ;;  %v13845_v29 = vcombine.high %v1253_v24, %v1257_v25  ;;  %v13876_v25 = vcombine.low %v1285_v5, %v1289_v6 }
 0x20e   :  { %9760 = vmatprep.subr.bf16.mxu0 %v13805_v35  ;;  %v1010_v35 = vld [vmem:[%s20246_s1 + $0x1e28] sm:$0xff] }
 0x20f   :  { %10171 = vmatpush1.bf16.msra.mxu1 %v13550_v48  ;;  %v13599_v48 = vcombine.high %v1006_v31, %v1010_v35  ;;  %v13598_v46 = vcombine.low %v1006_v31, %v1010_v35  ;;  %v1301_v31 = vld [vmem:[%s20246_s1 + $0x2740] sm:$0xff] }
 0x210   :  { %10172 = vmatprep.subr.bf16.mxu1 %v13559_v42  ;;  %v1014_v42 = vld [vmem:[%s20246_s1 + $0x1e48] sm:$0xff]  ;;  %v1305_v35 = vld [vmem:[%s20246_s1 + $0x2760] sm:$0xff] }
 0x211   :  { %9761 = vmatpush1.bf16.msra.mxu0 %v13804_v41  ;;  %v13853_v41 = vcombine.high %v1261_v36, %v1265_v37  ;;  %v13884_v37 = vcombine.low %v1293_v53, %v1297_v23 }
 0x212   :  { %9762 = vmatprep.subr.bf16.mxu0 %v13813_v43  ;;  %v1018_v43 = vld [vmem:[%s20246_s1 + $0x1e68] sm:$0xff] }
 0x213   :  { %10173 = vmatpush1.bf16.msra.mxu1 %v13558_v49  ;;  %v13607_v49 = vcombine.high %v1014_v42, %v1018_v43  ;;  %v13606_v12 = vcombine.low %v1014_v42, %v1018_v43  ;;  %v1309_v42 = vld [vmem:[%s20246_s1 + $0x2780] sm:$0xff] }
 0x214   :  { %10174 = vmatprep.subr.bf16.mxu1 %v13567_v56  ;;  %v1022_v56 = vld [vmem:[%s20246_s1 + $0x1e88] sm:$0xff]  ;;  %v1313_v43 = vld [vmem:[%s20246_s1 + $0x27a0] sm:$0xff] }
 0x215   :  { %9763 = vmatpush1.bf16.msra.mxu0 %v13812_v55  ;;  %v13861_v55 = vcombine.high %v1269_v44, %v1273_v45  ;;  %v13892_v45 = vcombine.low %v1301_v31, %v1305_v35 }
 0x216   :  { %9764 = vmatprep.subr.bf16.mxu0 %v13821_v57  ;;  %v1026_v57 = vld [vmem:[%s20246_s1 + $0x1ea8] sm:$0xff] }
 0x217   :  { %10175 = vmatpush1.bf16.msra.mxu1 %v13566_v0  ;;  %v13615_v0 = vcombine.high %v1022_v56, %v1026_v57  ;;  %v13614_v8 = vcombine.low %v1022_v56, %v1026_v57  ;;  %v1317_v56 = vld [vmem:[%s20246_s1 + $0x27c0] sm:$0xff] }
 0x218   :  { %10176 = vmatprep.subr.bf16.mxu1 %v13575_v2  ;;  %v1030_v2 = vld [vmem:[%s20246_s1 + $0x1ec8] sm:$0xff]  ;;  %v1321_v57 = vld [vmem:[%s20246_s1 + $0x27e0] sm:$0xff] }
 0x219   :  { %9765 = vmatpush1.bf16.msra.mxu0 %v13820_v1  ;;  %v13869_v1 = vcombine.high %v1277_v59, %v1281_v60  ;;  %v13900_v60 = vcombine.low %v1309_v42, %v1313_v43 }
 0x21a   :  { %9766 = vmatprep.subr.bf16.mxu0 %v13829_v4  ;;  %v1034_v4 = vld [vmem:[%s20246_s1 + $0x1ee8] sm:$0xff] }
 0x21b   :  { %10177 = vmatpush1.bf16.msra.mxu1 %v13574_v10  ;;  %v13623_v10 = vcombine.high %v1030_v2, %v1034_v4  ;;  %v13622_v24 = vcombine.low %v1030_v2, %v1034_v4  ;;  %v1325_v2 = vld [vmem:[%s20246_s1 + $0x2800] sm:$0xff] }
 0x21c   :  { %10178 = vmatprep.subr.bf16.mxu1 %v13583_v15  ;;  %v1038_v15 = vld [vmem:[%s20246_s1 + $0x1f08] sm:$0xff]  ;;  %v1329_v4 = vld [vmem:[%s20246_s1 + $0x2820] sm:$0xff] }
 0x21d   :  { %9767 = vmatpush1.bf16.msra.mxu0 %v13828_v11  ;;  %v13877_v11 = vcombine.high %v1285_v5, %v1289_v6  ;;  %v13908_v6 = vcombine.low %v1317_v56, %v1321_v57 }
 0x21e   :  { %9768 = vmatprep.subr.bf16.mxu0 %v13837_v18  ;;  %v1042_v18 = vld [vmem:[%s20246_s1 + $0x1f28] sm:$0xff] }
 0x21f   :  { %10179 = vmatpush1.bf16.msra.mxu1 %v13582_v20  ;;  %v13631_v20 = vcombine.high %v1038_v15, %v1042_v18  ;;  %v13630_v36 = vcombine.low %v1038_v15, %v1042_v18  ;;  %v1333_v15 = vld [vmem:[%s20246_s1 + $0x2840] sm:$0xff] }
 0x220   :  { %10180 = vmatprep.subr.bf16.mxu1 %v13591_v30  ;;  %v1046_v30 = vld [vmem:[%s20246_s1 + $0x1f48] sm:$0xff]  ;;  %v1337_v18 = vld [vmem:[%s20246_s1 + $0x2860] sm:$0xff] }
 0x221   :  { %9769 = vmatpush1.bf16.msra.mxu0 %v13836_v27  ;;  %v13885_v27 = vcombine.high %v1293_v53, %v1297_v23  ;;  %v16787_v53 = vld [vmem:[%s20247_s0 + $0x50] sm:$0xff] }
 0x222   :  { %9770 = vmatprep.subr.bf16.mxu0 %v13845_v29  ;;  %v1050_v29 = vld [vmem:[%s20246_s1 + $0x1f68] sm:$0xff] }
 0x223   :  { %10181 = vmatpush1.bf16.msra.mxu1 %v13590_v38  ;;  %v13639_v38 = vcombine.high %v1046_v30, %v1050_v29  ;;  %v13638_v44 = vcombine.low %v1046_v30, %v1050_v29  ;;  %v1086_v30 = vld [vmem:[%s20246_s1 + $0x2088] sm:$0xff] }
 0x224   :  { %10182 = vmatprep.subr.bf16.mxu1 %v13599_v48  ;;  %v1054_v48 = vld [vmem:[%s20246_s1 + $0x1f88] sm:$0xff] }
 0x225   :  { %9771 = vmatpush1.bf16.msra.mxu0 %v13844_v39  ;;  %v13893_v39 = vcombine.high %v1301_v31, %v1305_v35  ;;  %v1090_v29 = vld [vmem:[%s20246_s1 + $0x20a8] sm:$0xff]  ;;  %v16801_v31 = vcombine.high %v16787_v53, %v16787_v53  ;;  %v1345_v35 = vld [vmem:[%s20246_s1 + $0x28a0] sm:$0xff] }
 0x226   :  { %9772 = vmatprep.subr.bf16.mxu0 %v13853_v41  ;;  %v1058_v41 = vld [vmem:[%s20246_s1 + $0x1fa8] sm:$0xff] }
 0x227   :  { %10183 = vmatpush1.bf16.msra.mxu1 %v13598_v46  ;;  %v13647_v46 = vcombine.high %v1054_v48, %v1058_v41  ;;  %v13646_v59 = vcombine.low %v1054_v48, %v1058_v41  ;;  %v1094_v48 = vld [vmem:[%s20246_s1 + $0x20c8] sm:$0xff] }
 0x228   :  { %10184 = vmatprep.subr.bf16.mxu1 %v13607_v49  ;;  %v1062_v49 = vld [vmem:[%s20246_s1 + $0x1fc8] sm:$0xff] }
 0x229   :  { %9773 = vmatpush1.bf16.msra.mxu0 %v13852_v47  ;;  %v13901_v47 = vcombine.high %v1309_v42, %v1313_v43  ;;  %v1098_v41 = vld [vmem:[%s20246_s1 + $0x20e8] sm:$0xff]  ;;  %v1349_v42 = vld [vmem:[%s20246_s1 + $0x28c0] sm:$0xff] }
 0x22a   :  { %9774 = vmatprep.subr.bf16.mxu0 %v13861_v55  ;;  %v1066_v55 = vld [vmem:[%s20246_s1 + $0x1fe8] sm:$0xff]  ;;  %v1353_v43 = vld [vmem:[%s20246_s1 + $0x28e0] sm:$0xff] }
 0x22b   :  { %10185 = vmatpush1.bf16.msra.mxu1 %v13606_v12  ;;  %v13655_v12 = vcombine.high %v1062_v49, %v1066_v55  ;;  %v13654_v5 = vcombine.low %v1062_v49, %v1066_v55  ;;  %v1102_v49 = vld [vmem:[%s20246_s1 + $0x2108] sm:$0xff] }
 0x22c   :  { %10186 = vmatprep.subr.bf16.mxu1 %v13615_v0  ;;  %v1070_v0 = vld [vmem:[%s20246_s1 + $0x2008] sm:$0xff] }
 0x22d   :  { %9775 = vmatpush1.bf16.msra.mxu0 %v13860_v63  ;;  %v13909_v63 = vcombine.high %v1317_v56, %v1321_v57  ;;  %v1106_v55 = vld [vmem:[%s20246_s1 + $0x2128] sm:$0xff]  ;;  %v1357_v56 = vld [vmem:[%s20246_s1 + $0x2900] sm:$0xff] }
 0x22e   :  { %9776 = vmatprep.subr.bf16.mxu0 %v13869_v1  ;;  %v1074_v1 = vld [vmem:[%s20246_s1 + $0x2028] sm:$0xff]  ;;  %v1361_v57 = vld [vmem:[%s20246_s1 + $0x2920] sm:$0xff] }
 0x22f   :  { %10187 = vmatpush1.bf16.msra.mxu1 %v13614_v8  ;;  %v13663_v8 = vcombine.high %v1070_v0, %v1074_v1  ;;  %v13662_v23 = vcombine.low %v1070_v0, %v1074_v1  ;;  %v1110_v0 = vld [vmem:[%s20246_s1 + $0x2148] sm:$0xff] }
 0x230   :  { %10188 = vmatprep.subr.bf16.mxu1 %v13623_v10  ;;  %v1078_v10 = vld [vmem:[%s20246_s1 + $0x2048] sm:$0xff] }
 0x231   :  { %9777 = vmatpush1.bf16.msra.mxu0 %v13868_v9  ;;  %v13917_v9 = vcombine.high %v1325_v2, %v1329_v4  ;;  %v1114_v1 = vld [vmem:[%s20246_s1 + $0x2168] sm:$0xff] }
 0x232   :  { %9778 = vmatprep.subr.bf16.mxu0 %v13877_v11  ;;  %v1082_v11 = vld [vmem:[%s20246_s1 + $0x2068] sm:$0xff] }
 0x233   :  { %10189 = vmatpush1.bf16.msra.mxu1 %v13622_v24  ;;  %v16791_v24 = vcombine.low %v16578_v13, %v16578_v13  ;;  %v1341_v13 = vld [vmem:[%s20246_s1 + $0x2880] sm:$0xff] }
 0x234   :  { %10190 = vmatprep.subr.bf16.mxu1 %v13631_v20  ;;  %v13671_v20 = vcombine.high %v1078_v10, %v1082_v11 }
 0x235   :  { %9779 = vmatpush1.bf16.msra.mxu0 %v13876_v25  ;;  %v13916_v25 = vcombine.low %v1325_v2, %v1329_v4  ;;  %v1365_v2 = vld [vmem:[%s20246_s1 + $0x2940] sm:$0xff] }
 0x236   :  { %9780 = vmatprep.subr.bf16.mxu0 %v13885_v27  ;;  %v13925_v27 = vcombine.high %v1333_v15, %v1337_v18  ;;  %v1369_v4 = vld [vmem:[%s20246_s1 + $0x2960] sm:$0xff] }
 0x237   :  { %10191 = vmatpush1.bf16.msra.mxu1 %v13630_v36  ;;  %v13670_v36 = vcombine.low %v1078_v10, %v1082_v11  ;;  %v1118_v10 = vld [vmem:[%s20246_s1 + $0x2188] sm:$0xff] }
 0x238   :  { %10192 = vmatprep.subr.bf16.mxu1 %v13639_v38  ;;  %v13679_v38 = vcombine.high %v1086_v30, %v1090_v29  ;;  %v1122_v11 = vld [vmem:[%s20246_s1 + $0x21a8] sm:$0xff] }
 0x239   :  { %9781 = vmatpush1.bf16.msra.mxu0 %v13884_v37  ;;  %v13924_v37 = vcombine.low %v1333_v15, %v1337_v18  ;;  %v1373_v15 = vld [vmem:[%s20246_s1 + $0x2980] sm:$0xff] }
 0x23a   :  { %9782 = vmatprep.subr.bf16.mxu0 %v13893_v39  ;;  %v13933_v39 = vcombine.high %v1341_v13, %v1345_v35  ;;  %v1377_v18 = vld [vmem:[%s20246_s1 + $0x29a0] sm:$0xff] }
 0x23b   :  { %10193 = vmatpush1.bf16.msra.mxu1 %v13638_v44  ;;  %v13678_v44 = vcombine.low %v1086_v30, %v1090_v29  ;;  %v1126_v30 = vld [vmem:[%s20246_s1 + $0x21c8] sm:$0xff] }
 0x23c   :  { %10194 = vmatprep.subr.bf16.mxu1 %v13647_v46  ;;  %v13687_v46 = vcombine.high %v1094_v48, %v1098_v41  ;;  %v1130_v29 = vld [vmem:[%s20246_s1 + $0x21e8] sm:$0xff] }
 0x23d   :  { %9783 = vmatpush1.bf16.msra.mxu0 %v13892_v45  ;;  %v13932_v45 = vcombine.low %v1341_v13, %v1345_v35  ;;  %v1381_v13 = vld [vmem:[%s20246_s1 + $0x29c0] sm:$0xff] }
 0x23e   :  { %9784 = vmatprep.subr.bf16.mxu0 %v13901_v47  ;;  %v13941_v47 = vcombine.high %v1349_v42, %v1353_v43  ;;  %v1385_v35 = vld [vmem:[%s20246_s1 + $0x29e0] sm:$0xff] }
 0x23f   :  { %10195 = vmatpush1.bf16.msra.mxu1 %v13646_v59  ;;  %v13686_v59 = vcombine.low %v1094_v48, %v1098_v41  ;;  %v1134_v48 = vld [vmem:[%s20246_s1 + $0x2208] sm:$0xff] }
 0x240   :  { %10196 = vmatprep.subr.bf16.mxu1 %v13655_v12  ;;  %v13695_v12 = vcombine.high %v1102_v49, %v1106_v55  ;;  %v1138_v41 = vld [vmem:[%s20246_s1 + $0x2228] sm:$0xff] }
 0x241   :  { %9785 = vmatpush1.bf16.msra.mxu0 %v13900_v60  ;;  %v13940_v60 = vcombine.low %v1349_v42, %v1353_v43  ;;  %v1389_v42 = vld [vmem:[%s20246_s1 + $0x2a00] sm:$0xff] }
 0x242   :  { %9786 = vmatprep.subr.bf16.mxu0 %v13909_v63  ;;  %v13949_v63 = vcombine.high %v1357_v56, %v1361_v57  ;;  %v1393_v43 = vld [vmem:[%s20246_s1 + $0x2a20] sm:$0xff] }
 0x243   :  { %10197 = vmatpush1.bf16.msra.mxu1 %v13654_v5  ;;  %v13694_v5 = vcombine.low %v1102_v49, %v1106_v55  ;;  %v1142_v49 = vld [vmem:[%s20246_s1 + $0x2248] sm:$0xff] }
 0x244   :  { %10207 = vmatprep.subr.bf16.mxu1 %v13663_v8  ;;  %v13703_v8 = vcombine.high %v1110_v0, %v1114_v1  ;;  %v1146_v55 = vld [vmem:[%s20246_s1 + $0x2268] sm:$0xff] }
 0x245   :  { %9787 = vmatpush1.bf16.msra.mxu0 %v13908_v6  ;;  %v13948_v6 = vcombine.low %v1357_v56, %v1361_v57  ;;  %v1397_v56 = vld [vmem:[%s20246_s1 + $0x2a40] sm:$0xff] }
 0x246   :  { %9797 = vmatprep.subr.bf16.mxu0 %v13917_v9  ;;  %10199 = vmatmul.mubr.bf16.vlgmr.msra.gmra.mrb[4].mxu1 %v16373_v50  ;;  %v13957_v9 = vcombine.high %v1365_v2, %v1369_v4  ;;  %v1401_v57 = vld [vmem:[%s20246_s1 + $0x2a60] sm:$0xff] }
 0x247   :  { %10208 = vmatpush1.bf16.msra.mxu1 %v13662_v23  ;;  %10239 = vmatprep.mubr.bf16.mxu1 %v16383_v28  ;;  %v13702_v23 = vcombine.low %v1110_v0, %v1114_v1  ;;  %v1150_v0 = vld [vmem:[%s20246_s1 + $0x2288] sm:$0xff] }
 0x248   :  { %9789 = vmatmul.mubr.bf16.vlgmr.msra.gmra.mrb[0].mxu0 %v16791_v24  ;;  %10209 = vmatprep.subr.bf16.mxu1 %v13671_v20  ;;  %v13711_v20 = vcombine.high %v1118_v10, %v1122_v11  ;;  %v1154_v1 = vld [vmem:[%s20246_s1 + $0x22a8] sm:$0xff] }
 0x249   :  { %9798 = vmatpush1.bf16.msra.mxu0 %v13916_v25  ;;  %9829 = vmatprep.mubr.bf16.mxu0 %v16801_v31  ;;  %v13956_v25 = vcombine.low %v1365_v2, %v1369_v4  ;;  %v1405_v2 = vld [vmem:[%s20246_s1 + $0x2a80] sm:$0xff] }
 0x24a   :  { %9799 = vmatprep.subr.bf16.mxu0 %v13925_v27  ;;  %v13965_v27 = vcombine.high %v1373_v15, %v1377_v18  ;;  %v1409_v4 = vld [vmem:[%s20246_s1 + $0x2aa0] sm:$0xff] }
 0x24b   :  { %10210 = vmatpush1.bf16.msra.mxu1 %v13670_v36  ;;  %v13710_v36 = vcombine.low %v1118_v10, %v1122_v11  ;;  %v1158_v10 = vld [vmem:[%s20246_s1 + $0x22c8] sm:$0xff] }
 0x24c   :  { %10211 = vmatprep.subr.bf16.mxu1 %v13679_v38  ;;  %v13719_v38 = vcombine.high %v1126_v30, %v1130_v29  ;;  %v1162_v11 = vld [vmem:[%s20246_s1 + $0x22e8] sm:$0xff] }
 0x24d   :  { %9800 = vmatpush1.bf16.msra.mxu0 %v13924_v37  ;;  %v13964_v37 = vcombine.low %v1373_v15, %v1377_v18  ;;  %v1413_v15 = vld [vmem:[%s20246_s1 + $0x2ac0] sm:$0xff] }
 0x24e   :  { %9801 = vmatprep.subr.bf16.mxu0 %v13933_v39  ;;  %v13973_v39 = vcombine.high %v1381_v13, %v1385_v35  ;;  %v1417_v18 = vld [vmem:[%s20246_s1 + $0x2ae0] sm:$0xff] }
 0x24f   :  { %10212 = vmatpush1.bf16.msra.mxu1 %v13678_v44  ;;  %v13718_v44 = vcombine.low %v1126_v30, %v1130_v29  ;;  %v1166_v30 = vld [vmem:[%s20246_s1 + $0x2308] sm:$0xff] }
 0x250   :  { %10213 = vmatprep.subr.bf16.mxu1 %v13687_v46  ;;  %v13727_v46 = vcombine.high %v1134_v48, %v1138_v41  ;;  %v1170_v29 = vld [vmem:[%s20246_s1 + $0x2328] sm:$0xff] }
 0x251   :  { %9802 = vmatpush1.bf16.msra.mxu0 %v13932_v45  ;;  %v13972_v45 = vcombine.low %v1381_v13, %v1385_v35  ;;  %v1421_v13 = vld [vmem:[%s20246_s1 + $0x2b00] sm:$0xff] }
 0x252   :  { %9803 = vmatprep.subr.bf16.mxu0 %v13941_v47  ;;  %v13981_v47 = vcombine.high %v1389_v42, %v1393_v43  ;;  %v1425_v35 = vld [vmem:[%s20246_s1 + $0x2b20] sm:$0xff] }
 0x253   :  { %10214 = vmatpush1.bf16.msra.mxu1 %v13686_v59  ;;  %v13726_v59 = vcombine.low %v1134_v48, %v1138_v41  ;;  %v1174_v48 = vld [vmem:[%s20246_s1 + $0x2348] sm:$0xff] }
 0x254   :  { %10215 = vmatprep.subr.bf16.mxu1 %v13695_v12  ;;  %v13735_v12 = vcombine.high %v1142_v49, %v1146_v55  ;;  %v1178_v41 = vld [vmem:[%s20246_s1 + $0x2368] sm:$0xff] }
 0x255   :  { %9804 = vmatpush1.bf16.msra.mxu0 %v13940_v60  ;;  %v13980_v60 = vcombine.low %v1389_v42, %v1393_v43  ;;  %v1429_v42 = vld [vmem:[%s20246_s1 + $0x2b40] sm:$0xff] }
 0x256   :  { %9805 = vmatprep.subr.bf16.mxu0 %v13949_v63  ;;  %v13989_v63 = vcombine.high %v1397_v56, %v1401_v57  ;;  %v1433_v43 = vld [vmem:[%s20246_s1 + $0x2b60] sm:$0xff] }
 0x257   :  { %10216 = vmatpush1.bf16.msra.mxu1 %v13694_v5  ;;  %v13734_v5 = vcombine.low %v1142_v49, %v1146_v55  ;;  %v1182_v49 = vld [vmem:[%s20246_s1 + $0x2388] sm:$0xff] }
 0x258   :  { %10217 = vmatprep.subr.bf16.mxu1 %v13703_v8  ;;  %v13743_v8 = vcombine.high %v1150_v0, %v1154_v1  ;;  %v1186_v55 = vld [vmem:[%s20246_s1 + $0x23a8] sm:$0xff] }
 0x259   :  { %9806 = vmatpush1.bf16.msra.mxu0 %v13948_v6  ;;  %v13988_v6 = vcombine.low %v1397_v56, %v1401_v57  ;;  %v1437_v56 = vld [vmem:[%s20246_s1 + $0x2b80] sm:$0xff] }
 0x25a   :  { %9807 = vmatprep.subr.bf16.mxu0 %v13957_v9  ;;  %v13997_v9 = vcombine.high %v1405_v2, %v1409_v4  ;;  %v1441_v57 = vld [vmem:[%s20246_s1 + $0x2ba0] sm:$0xff] }
 0x25b   :  { %10218 = vmatpush1.bf16.msra.mxu1 %v13702_v23  ;;  %v13742_v23 = vcombine.low %v1150_v0, %v1154_v1  ;;  %v1190_v0 = vld [vmem:[%s20246_s1 + $0x23c8] sm:$0xff] }
 0x25c   :  { %10219 = vmatprep.subr.bf16.mxu1 %v13711_v20  ;;  %v13751_v20 = vcombine.high %v1158_v10, %v1162_v11  ;;  %v1194_v1 = vld [vmem:[%s20246_s1 + $0x23e8] sm:$0xff] }
 0x25d   :  { %9808 = vmatpush1.bf16.msra.mxu0 %v13956_v25  ;;  %v13996_v25 = vcombine.low %v1405_v2, %v1409_v4  ;;  %v1445_v2 = vld [vmem:[%s20246_s1 + $0x2bc0] sm:$0xff] }
 0x25e   :  { %9809 = vmatprep.subr.bf16.mxu0 %v13965_v27  ;;  %v14005_v27 = vcombine.high %v1413_v15, %v1417_v18  ;;  %v1449_v4 = vld [vmem:[%s20246_s1 + $0x2be0] sm:$0xff] }
 0x25f   :  { %10220 = vmatpush1.bf16.msra.mxu1 %v13710_v36  ;;  %v13750_v36 = vcombine.low %v1158_v10, %v1162_v11  ;;  %v1198_v10 = vld [vmem:[%s20246_s1 + $0x2408] sm:$0xff] }
 0x260   :  { %10221 = vmatprep.subr.bf16.mxu1 %v13719_v38  ;;  %v13759_v38 = vcombine.high %v1166_v30, %v1170_v29  ;;  %v1202_v11 = vld [vmem:[%s20246_s1 + $0x2428] sm:$0xff] }
 0x261   :  { %9810 = vmatpush1.bf16.msra.mxu0 %v13964_v37  ;;  %v14004_v37 = vcombine.low %v1413_v15, %v1417_v18  ;;  %v1453_v15 = vld [vmem:[%s20246_s1 + $0x2c00] sm:$0xff] }
 0x262   :  { %9811 = vmatprep.subr.bf16.mxu0 %v13973_v39  ;;  %v14013_v39 = vcombine.high %v1421_v13, %v1425_v35  ;;  %v1457_v18 = vld [vmem:[%s20246_s1 + $0x2c20] sm:$0xff] }
 0x263   :  { %10222 = vmatpush1.bf16.msra.mxu1 %v13718_v44  ;;  %v13758_v44 = vcombine.low %v1166_v30, %v1170_v29  ;;  %v1206_v30 = vld [vmem:[%s20246_s1 + $0x2448] sm:$0xff] }
 0x264   :  { %10223 = vmatprep.subr.bf16.mxu1 %v13727_v46  ;;  %v13767_v46 = vcombine.high %v1174_v48, %v1178_v41  ;;  %v1210_v29 = vld [vmem:[%s20246_s1 + $0x2468] sm:$0xff] }
 0x265   :  { %9812 = vmatpush1.bf16.msra.mxu0 %v13972_v45  ;;  %v14012_v45 = vcombine.low %v1421_v13, %v1425_v35  ;;  %v1461_v13 = vld [vmem:[%s20246_s1 + $0x2c40] sm:$0xff] }
 0x266   :  { %9813 = vmatprep.subr.bf16.mxu0 %v13981_v47  ;;  %v14021_v47 = vcombine.high %v1429_v42, %v1433_v43  ;;  %v1465_v35 = vld [vmem:[%s20246_s1 + $0x2c60] sm:$0xff] }
 0x267   :  { %10224 = vmatpush1.bf16.msra.mxu1 %v13726_v59  ;;  %v13766_v59 = vcombine.low %v1174_v48, %v1178_v41  ;;  %v13799_v48 = vcombine.high %v1206_v30, %v1210_v29  ;;  %v14053_v41 = vcombine.high %v1461_v13, %v1465_v35 }
 0x268   :  { %10225 = vmatprep.subr.bf16.mxu1 %v13735_v12  ;;  %v13775_v12 = vcombine.high %v1182_v49, %v1186_v55 }
 0x269   :  { %9814 = vmatpush1.bf16.msra.mxu0 %v13980_v60  ;;  %v14020_v60 = vcombine.low %v1429_v42, %v1433_v43  ;;  %v1214_v42 = vld [vmem:[%s20246_s1 + $0x2488] sm:$0xff] }
 0x26a   :  { %9815 = vmatprep.subr.bf16.mxu0 %v13989_v63  ;;  %v14029_v63 = vcombine.high %v1437_v56, %v1441_v57  ;;  %v1218_v43 = vld [vmem:[%s20246_s1 + $0x24a8] sm:$0xff] }
 0x26b   :  { %10226 = vmatpush1.bf16.msra.mxu1 %v13734_v5  ;;  %v13774_v5 = vcombine.low %v1182_v49, %v1186_v55  ;;  %v13807_v49 = vcombine.high %v1214_v42, %v1218_v43 }
 0x26c   :  { %10227 = vmatprep.subr.bf16.mxu1 %v13743_v8  ;;  %v13783_v8 = vcombine.high %v1190_v0, %v1194_v1 }
 0x26d   :  { %9816 = vmatpush1.bf16.msra.mxu0 %v13988_v6  ;;  %v14028_v6 = vcombine.low %v1437_v56, %v1441_v57  ;;  %v1222_v56 = vld [vmem:[%s20246_s1 + $0x24c8] sm:$0xff] }
 0x26e   :  { %9817 = vmatprep.subr.bf16.mxu0 %v13997_v9  ;;  %v14037_v9 = vcombine.high %v1445_v2, %v1449_v4  ;;  %v1226_v57 = vld [vmem:[%s20246_s1 + $0x24e8] sm:$0xff] }
 0x26f   :  { %10228 = vmatpush1.bf16.msra.mxu1 %v13742_v23  ;;  %v13782_v23 = vcombine.low %v1190_v0, %v1194_v1  ;;  %v13815_v0 = vcombine.high %v1222_v56, %v1226_v57 }
 0x270   :  { %10229 = vmatprep.subr.bf16.mxu1 %v13751_v20  ;;  %v13791_v20 = vcombine.high %v1198_v10, %v1202_v11 }
 0x271   :  { %9818 = vmatpush1.bf16.msra.mxu0 %v13996_v25  ;;  %v14036_v25 = vcombine.low %v1445_v2, %v1449_v4  ;;  %v1230_v2 = vld [vmem:[%s20246_s1 + $0x2508] sm:$0xff] }
 0x272   :  { %9819 = vmatprep.subr.bf16.mxu0 %v14005_v27  ;;  %v14045_v27 = vcombine.high %v1453_v15, %v1457_v18  ;;  %v1234_v4 = vld [vmem:[%s20246_s1 + $0x2528] sm:$0xff] }
 0x273   :  { %10230 = vmatpush1.bf16.msra.mxu1 %v13750_v36  ;;  %v16996_v36 = vld [vmem:[%s20247_s0 + $0x58] sm:$0xff] }
 0x274   :  { %10231 = vmatprep.subr.bf16.mxu1 %v13759_v38  ;;  %v17000_v38 = vcombine.low %v16787_v53, %v16787_v53  ;;  %v1469_v53 = vld [vmem:[%s20246_s1 + $0x2c80] sm:$0xff] }
 0x275   :  { %9820 = vmatpush1.bf16.msra.mxu0 %v14004_v37  ;;  %v13790_v37 = vcombine.low %v1198_v10, %v1202_v11  ;;  %v13823_v10 = vcombine.high %v1230_v2, %v1234_v4 }
 0x276   :  { %9821 = vmatprep.subr.bf16.mxu0 %v14013_v39  ;;  %v14044_v39 = vcombine.low %v1453_v15, %v1457_v18  ;;  %v1238_v15 = vld [vmem:[%s20246_s1 + $0x2548] sm:$0xff] }
 0x277   :  { %10232 = vmatpush1.bf16.msra.mxu1 %v13758_v44  ;;  %v17010_v44 = vcombine.high %v16996_v36, %v16996_v36  ;;  %v1242_v18 = vld [vmem:[%s20246_s1 + $0x2568] sm:$0xff] }
 0x278   :  { %10233 = vmatprep.subr.bf16.mxu1 %v13767_v46  ;;  %v13798_v46 = vcombine.low %v1206_v30, %v1210_v29  ;;  %v13831_v30 = vcombine.high %v1238_v15, %v1242_v18 }
 0x279   :  { %9822 = vmatpush1.bf16.msra.mxu0 %v14012_v45  ;;  %v1473_v45 = vld [vmem:[%s20246_s1 + $0x2ca0] sm:$0xff] }
 0x27a   :  { %9823 = vmatprep.subr.bf16.mxu0 %v14021_v47  ;;  %v14052_v47 = vcombine.low %v1461_v13, %v1465_v35  ;;  %v14061_v55 = vcombine.high %v1469_v53, %v1473_v45  ;;  %v1246_v13 = vld [vmem:[%s20246_s1 + $0x2588] sm:$0xff] }
 0x27b   :  { %10234 = vmatpush1.bf16.msra.mxu1 %v13766_v59  ;;  %v1477_v59 = vld [vmem:[%s20246_s1 + $0x2cc0] sm:$0xff]  ;;  %v1250_v35 = vld [vmem:[%s20246_s1 + $0x25a8] sm:$0xff] }
 0x27c   :  { %10235 = vmatprep.subr.bf16.mxu1 %v13775_v12  ;;  %v13806_v12 = vcombine.low %v1214_v42, %v1218_v43  ;;  %v13839_v42 = vcombine.high %v1246_v13, %v1250_v35 }
 0x27d   :  { %9824 = vmatpush1.bf16.msra.mxu0 %v14020_v60  ;;  %v1481_v60 = vld [vmem:[%s20246_s1 + $0x2ce0] sm:$0xff] }
 0x27e   :  { %9825 = vmatprep.subr.bf16.mxu0 %v14029_v63  ;;  %v14060_v63 = vcombine.low %v1469_v53, %v1473_v45  ;;  %v14069_v1 = vcombine.high %v1477_v59, %v1481_v60  ;;  %v1254_v53 = vld [vmem:[%s20246_s1 + $0x25c8] sm:$0xff] }
 0x27f   :  { %10236 = vmatpush1.bf16.msra.mxu1 %v13774_v5  ;;  %v1485_v5 = vld [vmem:[%s20246_s1 + $0x2d00] sm:$0xff]  ;;  %v1258_v45 = vld [vmem:[%s20246_s1 + $0x25e8] sm:$0xff] }
 0x280   :  { %10237 = vmatprep.subr.bf16.mxu1 %v13783_v8  ;;  %v13814_v8 = vcombine.low %v1222_v56, %v1226_v57  ;;  %v13847_v56 = vcombine.high %v1254_v53, %v1258_v45 }
 0x281   :  { %9826 = vmatpush1.bf16.msra.mxu0 %v14028_v6  ;;  %v1489_v6 = vld [vmem:[%s20246_s1 + $0x2d20] sm:$0xff] }
 0x282   :  { %9827 = vmatprep.subr.bf16.mxu0 %v14037_v9  ;;  %v14068_v9 = vcombine.low %v1477_v59, %v1481_v60  ;;  %v14077_v11 = vcombine.high %v1485_v5, %v1489_v6  ;;  %v1262_v59 = vld [vmem:[%s20246_s1 + $0x2608] sm:$0xff] }
 0x283   :  { %10238 = vmatpush1.bf16.msra.mxu1 %v13782_v23  ;;  %v1493_v23 = vld [vmem:[%s20246_s1 + $0x2d40] sm:$0xff]  ;;  %v1266_v60 = vld [vmem:[%s20246_s1 + $0x2628] sm:$0xff] }
 0x284   :  { %10248 = vmatprep.subr.bf16.mxu1 %v13791_v20  ;;  %v13822_v20 = vcombine.low %v1230_v2, %v1234_v4  ;;  %v13855_v2 = vcombine.high %v1262_v59, %v1266_v60 }
 0x285   :  { %9828 = vmatpush1.bf16.msra.mxu0 %v14036_v25  ;;  %v1497_v25 = vld [vmem:[%s20246_s1 + $0x2d60] sm:$0xff] }
 0x286   :  { %9838 = vmatprep.subr.bf16.mxu0 %v14045_v27  ;;  %10240 = vmatmul.mubr.bf16.vlgmr.msra.gmra.mrb[4].mxu1 %v16582_v17  ;;  %v14076_v27 = vcombine.low %v1485_v5, %v1489_v6  ;;  %v14085_v29 = vcombine.high %v1493_v23, %v1497_v25  ;;  %v1270_v5 = vld [vmem:[%s20246_s1 + $0x2648] sm:$0xff] }
 0x287   :  { %10249 = vmatpush1.bf16.msra.mxu1 %v13790_v37  ;;  %10280 = vmatprep.mubr.bf16.mxu1 %v16592_v54  ;;  %v1501_v37 = vld [vmem:[%s20246_s1 + $0x2d80] sm:$0xff]  ;;  %v1274_v6 = vld [vmem:[%s20246_s1 + $0x2668] sm:$0xff] }
 0x288   :  { %9830 = vmatmul.mubr.bf16.vlgmr.msra.gmra.mrb[0].mxu0 %v17000_v38  ;;  %10250 = vmatprep.subr.bf16.mxu1 %v13799_v48  ;;  %v13830_v48 = vcombine.low %v1238_v15, %v1242_v18  ;;  %v13863_v15 = vcombine.high %v1270_v5, %v1274_v6 }
 0x289   :  { %9839 = vmatpush1.bf16.msra.mxu0 %v14044_v39  ;;  %9870 = vmatprep.mubr.bf16.mxu0 %v17010_v44  ;;  %v1505_v39 = vld [vmem:[%s20246_s1 + $0x2da0] sm:$0xff] }
 0x28a   :  { %9840 = vmatprep.subr.bf16.mxu0 %v14053_v41  ;;  %v14084_v41 = vcombine.low %v1493_v23, %v1497_v25  ;;  %v14093_v43 = vcombine.high %v1501_v37, %v1505_v39  ;;  %v1278_v23 = vld [vmem:[%s20246_s1 + $0x2688] sm:$0xff] }
 0x28b   :  { %10251 = vmatpush1.bf16.msra.mxu1 %v13798_v46  ;;  %v1509_v46 = vld [vmem:[%s20246_s1 + $0x2dc0] sm:$0xff]  ;;  %v1282_v25 = vld [vmem:[%s20246_s1 + $0x26a8] sm:$0xff] }
 0x28c   :  { %10252 = vmatprep.subr.bf16.mxu1 %v13807_v49  ;;  %v13838_v49 = vcombine.low %v1246_v13, %v1250_v35  ;;  %v13871_v13 = vcombine.high %v1278_v23, %v1282_v25 }
 0x28d   :  { %9841 = vmatpush1.bf16.msra.mxu0 %v14052_v47  ;;  %v1513_v47 = vld [vmem:[%s20246_s1 + $0x2de0] sm:$0xff] }
 0x28e   :  { %9842 = vmatprep.subr.bf16.mxu0 %v14061_v55  ;;  %v14092_v55 = vcombine.low %v1501_v37, %v1505_v39  ;;  %v14101_v57 = vcombine.high %v1509_v46, %v1513_v47  ;;  %v1286_v37 = vld [vmem:[%s20246_s1 + $0x26c8] sm:$0xff] }
 0x28f   :  { %10253 = vmatpush1.bf16.msra.mxu1 %v13806_v12  ;;  %v1517_v12 = vld [vmem:[%s20246_s1 + $0x2e00] sm:$0xff]  ;;  %v1290_v39 = vld [vmem:[%s20246_s1 + $0x26e8] sm:$0xff] }
 0x290   :  { %10254 = vmatprep.subr.bf16.mxu1 %v13815_v0  ;;  %v13846_v0 = vcombine.low %v1254_v53, %v1258_v45  ;;  %v13879_v53 = vcombine.high %v1286_v37, %v1290_v39 }
 0x291   :  { %9843 = vmatpush1.bf16.msra.mxu0 %v14060_v63  ;;  %v1521_v63 = vld [vmem:[%s20246_s1 + $0x2e20] sm:$0xff] }
 0x292   :  { %9844 = vmatprep.subr.bf16.mxu0 %v14069_v1  ;;  %v14100_v1 = vcombine.low %v1509_v46, %v1513_v47  ;;  %v14109_v4 = vcombine.high %v1517_v12, %v1521_v63  ;;  %v1294_v46 = vld [vmem:[%s20246_s1 + $0x2708] sm:$0xff] }
 0x293   :  { %10255 = vmatpush1.bf16.msra.mxu1 %v13814_v8  ;;  %v1525_v8 = vld [vmem:[%s20246_s1 + $0x2e40] sm:$0xff]  ;;  %v1298_v47 = vld [vmem:[%s20246_s1 + $0x2728] sm:$0xff] }
 0x294   :  { %10256 = vmatprep.subr.bf16.mxu1 %v13823_v10  ;;  %v13854_v10 = vcombine.low %v1262_v59, %v1266_v60  ;;  %v13887_v59 = vcombine.high %v1294_v46, %v1298_v47 }
 0x295   :  { %9845 = vmatpush1.bf16.msra.mxu0 %v14068_v9  ;;  %v1529_v9 = vld [vmem:[%s20246_s1 + $0x2e60] sm:$0xff] }
 0x296   :  { %9846 = vmatprep.subr.bf16.mxu0 %v14077_v11  ;;  %v14108_v11 = vcombine.low %v1517_v12, %v1521_v63  ;;  %v14117_v18 = vcombine.high %v1525_v8, %v1529_v9  ;;  %v1302_v12 = vld [vmem:[%s20246_s1 + $0x2748] sm:$0xff] }
 0x297   :  { %10257 = vmatpush1.bf16.msra.mxu1 %v13822_v20  ;;  %v1533_v20 = vld [vmem:[%s20246_s1 + $0x2e80] sm:$0xff]  ;;  %v1306_v63 = vld [vmem:[%s20246_s1 + $0x2768] sm:$0xff] }
 0x298   :  { %10258 = vmatprep.subr.bf16.mxu1 %v13831_v30  ;;  %v13862_v30 = vcombine.low %v1270_v5, %v1274_v6  ;;  %v13895_v5 = vcombine.high %v1302_v12, %v1306_v63 }
 0x299   :  { %9847 = vmatpush1.bf16.msra.mxu0 %v14076_v27  ;;  %v1537_v27 = vld [vmem:[%s20246_s1 + $0x2ea0] sm:$0xff] }
 0x29a   :  { %9848 = vmatprep.subr.bf16.mxu0 %v14085_v29  ;;  %v14116_v29 = vcombine.low %v1525_v8, %v1529_v9  ;;  %v14125_v35 = vcombine.high %v1533_v20, %v1537_v27  ;;  %v1310_v8 = vld [vmem:[%s20246_s1 + $0x2788] sm:$0xff] }
 0x29b   :  { %10259 = vmatpush1.bf16.msra.mxu1 %v13830_v48  ;;  %v1541_v48 = vld [vmem:[%s20246_s1 + $0x2ec0] sm:$0xff]  ;;  %v1314_v9 = vld [vmem:[%s20246_s1 + $0x27a8] sm:$0xff] }
 0x29c   :  { %10260 = vmatprep.subr.bf16.mxu1 %v13839_v42  ;;  %v13870_v42 = vcombine.low %v1278_v23, %v1282_v25  ;;  %v13903_v23 = vcombine.high %v1310_v8, %v1314_v9 }
 0x29d   :  { %9849 = vmatpush1.bf16.msra.mxu0 %v14084_v41  ;;  %v1545_v41 = vld [vmem:[%s20246_s1 + $0x2ee0] sm:$0xff] }
 0x29e   :  { %9850 = vmatprep.subr.bf16.mxu0 %v14093_v43  ;;  %v14124_v43 = vcombine.low %v1533_v20, %v1537_v27  ;;  %v14133_v45 = vcombine.high %v1541_v48, %v1545_v41  ;;  %v1318_v20 = vld [vmem:[%s20246_s1 + $0x27c8] sm:$0xff] }
 0x29f   :  { %10261 = vmatpush1.bf16.msra.mxu1 %v13838_v49  ;;  %v1549_v49 = vld [vmem:[%s20246_s1 + $0x2f00] sm:$0xff]  ;;  %v1322_v27 = vld [vmem:[%s20246_s1 + $0x27e8] sm:$0xff] }
 0x2a0   :  { %10262 = vmatprep.subr.bf16.mxu1 %v13847_v56  ;;  %v13878_v56 = vcombine.low %v1286_v37, %v1290_v39  ;;  %v13911_v37 = vcombine.high %v1318_v20, %v1322_v27 }
 0x2a1   :  { %9851 = vmatpush1.bf16.msra.mxu0 %v14092_v55  ;;  %v1553_v55 = vld [vmem:[%s20246_s1 + $0x2f20] sm:$0xff] }
 0x2a2   :  { %9852 = vmatprep.subr.bf16.mxu0 %v14101_v57  ;;  %v14132_v57 = vcombine.low %v1541_v48, %v1545_v41  ;;  %v14141_v60 = vcombine.high %v1549_v49, %v1553_v55  ;;  %v1326_v48 = vld [vmem:[%s20246_s1 + $0x2808] sm:$0xff] }
 0x2a3   :  { %10263 = vmatpush1.bf16.msra.mxu1 %v13846_v0  ;;  %v1557_v0 = vld [vmem:[%s20246_s1 + $0x2f40] sm:$0xff]  ;;  %v1330_v41 = vld [vmem:[%s20246_s1 + $0x2828] sm:$0xff] }
 0x2a4   :  { %10264 = vmatprep.subr.bf16.mxu1 %v13855_v2  ;;  %v13886_v2 = vcombine.low %v1294_v46, %v1298_v47  ;;  %v13919_v46 = vcombine.high %v1326_v48, %v1330_v41 }
 0x2a5   :  { %9853 = vmatpush1.bf16.msra.mxu0 %v14100_v1  ;;  %v1561_v1 = vld [vmem:[%s20246_s1 + $0x2f60] sm:$0xff] }
 0x2a6   :  { %9854 = vmatprep.subr.bf16.mxu0 %v14109_v4  ;;  %v14140_v4 = vcombine.low %v1549_v49, %v1553_v55  ;;  %v14149_v6 = vcombine.high %v1557_v0, %v1561_v1  ;;  %v1334_v49 = vld [vmem:[%s20246_s1 + $0x2848] sm:$0xff] }
 0x2a7   :  { %10265 = vmatpush1.bf16.msra.mxu1 %v13854_v10  ;;  %v1565_v10 = vld [vmem:[%s20246_s1 + $0x2f80] sm:$0xff]  ;;  %v1338_v55 = vld [vmem:[%s20246_s1 + $0x2868] sm:$0xff] }
 0x2a8   :  { %10266 = vmatprep.subr.bf16.mxu1 %v13863_v15  ;;  %v13894_v15 = vcombine.low %v1302_v12, %v1306_v63  ;;  %v13927_v63 = vcombine.high %v1334_v49, %v1338_v55 }
 0x2a9   :  { %9855 = vmatpush1.bf16.msra.mxu0 %v14108_v11  ;;  %v1569_v11 = vld [vmem:[%s20246_s1 + $0x2fa0] sm:$0xff] }
 0x2aa   :  { %9856 = vmatprep.subr.bf16.mxu0 %v14117_v18  ;;  %v14148_v18 = vcombine.low %v1557_v0, %v1561_v1  ;;  %v14157_v25 = vcombine.high %v1565_v10, %v1569_v11  ;;  %v1342_v1 = vld [vmem:[%s20246_s1 + $0x2888] sm:$0xff] }
 0x2ab   :  { %10267 = vmatpush1.bf16.msra.mxu1 %v13862_v30  ;;  %v1573_v30 = vld [vmem:[%s20246_s1 + $0x2fc0] sm:$0xff] }
 0x2ac   :  { %10268 = vmatprep.subr.bf16.mxu1 %v13871_v13  ;;  %v13902_v13 = vcombine.low %v1310_v8, %v1314_v9 }
 0x2ad   :  { %9857 = vmatpush1.bf16.msra.mxu0 %v14116_v29  ;;  %v1577_v29 = vld [vmem:[%s20246_s1 + $0x2fe0] sm:$0xff] }
 0x2ae   :  { %9858 = vmatprep.subr.bf16.mxu0 %v14125_v35  ;;  %v14156_v35 = vcombine.low %v1565_v10, %v1569_v11  ;;  %v14165_v39 = vcombine.high %v1573_v30, %v1577_v29  ;;  %v1350_v10 = vld [vmem:[%s20246_s1 + $0x28c8] sm:$0xff] }
 0x2af   :  { %10269 = vmatpush1.bf16.msra.mxu1 %v13870_v42  ;;  %v47_v42 = vld [vmem:[%s20246_s1 + $0x10] sm:$0xff]  ;;  %v1354_v11 = vld [vmem:[%s20246_s1 + $0x28e8] sm:$0xff] }
 0x2b0   :  { %10270 = vmatprep.subr.bf16.mxu1 %v13879_v53  ;;  %v13910_v53 = vcombine.low %v1318_v20, %v1322_v27  ;;  %v13943_v20 = vcombine.high %v1350_v10, %v1354_v11 }
 0x2b1   :  { %9859 = vmatpush1.bf16.msra.mxu0 %v14124_v43  ;;  %v51_v43 = vld [vmem:[%s20246_s1 + $0x30] sm:$0xff] }
 0x2b2   :  { %9860 = vmatprep.subr.bf16.mxu0 %v14133_v45  ;;  %v14164_v45 = vcombine.low %v1573_v30, %v1577_v29  ;;  %v12641_v47 = vcombine.high %v47_v42, %v51_v43  ;;  %v12640_v12 = vcombine.low %v47_v42, %v51_v43  ;;  %v1358_v30 = vld [vmem:[%s20246_s1 + $0x2908] sm:$0xff] }
 0x2b3   :  { %10271 = vmatpush1.bf16.msra.mxu1 %v13878_v56  ;;  %v55_v56 = vld [vmem:[%s20246_s1 + $0x50] sm:$0xff]  ;;  %v1362_v29 = vld [vmem:[%s20246_s1 + $0x2928] sm:$0xff] }
 0x2b4   :  { %10272 = vmatprep.subr.bf16.mxu1 %v13887_v59  ;;  %v17204_v59 = vcombine.low %v16996_v36, %v16996_v36  ;;  %v63_v36 = vld [vmem:[%s20246_s1 + $0x90] sm:$0xff]  ;;  %v1366_v42 = vld [vmem:[%s20246_s1 + $0x2948] sm:$0xff] }
 0x2b5   :  { %9861 = vmatpush1.bf16.msra.mxu0 %v14132_v57  ;;  %v59_v57 = vld [vmem:[%s20246_s1 + $0x70] sm:$0xff]  ;;  %v1370_v43 = vld [vmem:[%s20246_s1 + $0x2968] sm:$0xff] }
 0x2b6   :  { %9862 = vmatprep.subr.bf16.mxu0 %v14141_v60  ;;  %v13918_v60 = vcombine.low %v1326_v48, %v1330_v41  ;;  %v12649_v0 = vcombine.high %v55_v56, %v59_v57  ;;  %v13951_v48 = vcombine.high %v1358_v30, %v1362_v29 }
 0x2b7   :  { %10273 = vmatpush1.bf16.msra.mxu1 %v13886_v2  ;;  %v1346_v2 = vld [vmem:[%s20246_s1 + $0x28a8] sm:$0xff] }
 0x2b8   :  { %10274 = vmatprep.subr.bf16.mxu1 %v13895_v5  ;;  %v13926_v5 = vcombine.low %v1334_v49, %v1338_v55  ;;  %v13935_v8 = vcombine.high %v1342_v1, %v1346_v2  ;;  %v13959_v49 = vcombine.high %v1366_v42, %v1370_v43 }
 0x2b9   :  { %9863 = vmatpush1.bf16.msra.mxu0 %v14140_v4  ;;  %v67_v4 = vld [vmem:[%s20246_s1 + $0xb0] sm:$0xff] }
 0x2ba   :  { %9864 = vmatprep.subr.bf16.mxu0 %v14149_v6  ;;  %v12648_v6 = vcombine.low %v55_v56, %v59_v57  ;;  %v12657_v9 = vcombine.high %v63_v36, %v67_v4  ;;  %v1374_v56 = vld [vmem:[%s20246_s1 + $0x2988] sm:$0xff] }
 0x2bb   :  { %10275 = vmatpush1.bf16.msra.mxu1 %v13894_v15  ;;  %v71_v15 = vld [vmem:[%s20246_s1 + $0xd0] sm:$0xff]  ;;  %v1378_v57 = vld [vmem:[%s20246_s1 + $0x29a8] sm:$0xff] }
 0x2bc   :  { %10276 = vmatprep.subr.bf16.mxu1 %v13903_v23  ;;  %v13934_v23 = vcombine.low %v1342_v1, %v1346_v2  ;;  %v13967_v1 = vcombine.high %v1374_v56, %v1378_v57 }
 0x2bd   :  { %9865 = vmatpush1.bf16.msra.mxu0 %v14148_v18  ;;  %v75_v18 = vld [vmem:[%s20246_s1 + $0xf0] sm:$0xff] }
 0x2be   :  { %9866 = vmatprep.subr.bf16.mxu0 %v14157_v25  ;;  %v12656_v25 = vcombine.low %v63_v36, %v67_v4  ;;  %v12665_v27 = vcombine.high %v71_v15, %v75_v18  ;;  %v1382_v36 = vld [vmem:[%s20246_s1 + $0x29c8] sm:$0xff] }
 0x2bf   :  { %10277 = vmatpush1.bf16.msra.mxu1 %v13902_v13  ;;  %v79_v13 = vld [vmem:[%s20246_s1 + $0x110] sm:$0xff]  ;;  %v1386_v4 = vld [vmem:[%s20246_s1 + $0x29e8] sm:$0xff] }
 0x2c0   :  { %10278 = vmatprep.subr.bf16.mxu1 %v13911_v37  ;;  %v13942_v37 = vcombine.low %v1350_v10, %v1354_v11  ;;  %v13975_v10 = vcombine.high %v1382_v36, %v1386_v4 }
 0x2c1   :  { %9867 = vmatpush1.bf16.msra.mxu0 %v14156_v35  ;;  %v83_v35 = vld [vmem:[%s20246_s1 + $0x130] sm:$0xff] }
 0x2c2   :  { %9868 = vmatprep.subr.bf16.mxu0 %v14165_v39  ;;  %v12664_v39 = vcombine.low %v71_v15, %v75_v18  ;;  %v12673_v41 = vcombine.high %v79_v13, %v83_v35  ;;  %v1390_v15 = vld [vmem:[%s20246_s1 + $0x2a08] sm:$0xff] }
 0x2c3   :  { %10279 = vmatpush1.bf16.msra.mxu1 %v13910_v53  ;;  %v87_v53 = vld [vmem:[%s20246_s1 + $0x150] sm:$0xff]  ;;  %v1394_v18 = vld [vmem:[%s20246_s1 + $0x2a28] sm:$0xff] }
 0x2c4   :  { %10289 = vmatprep.subr.bf16.mxu1 %v13919_v46  ;;  %v13950_v46 = vcombine.low %v1358_v30, %v1362_v29  ;;  %v13983_v30 = vcombine.high %v1390_v15, %v1394_v18 }
 0x2c5   :  { %9869 = vmatpush1.bf16.msra.mxu0 %v14164_v45  ;;  %v91_v45 = vld [vmem:[%s20246_s1 + $0x170] sm:$0xff] }
 0x2c6   :  { %10371 = vmatprep.subr.bf16.mxu0 %v12641_v47  ;;  %10281 = vmatmul.mubr.bf16.vlgmr.msra.gmra.mrb[4].mxu1 %v16791_v24  ;;  %v12672_v47 = vcombine.low %v79_v13, %v83_v35  ;;  %v12681_v55 = vcombine.high %v87_v53, %v91_v45  ;;  %v1398_v13 = vld [vmem:[%s20246_s1 + $0x2a48] sm:$0xff] }
 0x2c7   :  { %10290 = vmatpush1.bf16.msra.mxu1 %v13918_v60  ;;  %10321 = vmatprep.mubr.bf16.mxu1 %v16801_v31  ;;  %v95_v60 = vld [vmem:[%s20246_s1 + $0x190] sm:$0xff]  ;;  %v1402_v35 = vld [vmem:[%s20246_s1 + $0x2a68] sm:$0xff] }
 0x2c8   :  { %9871 = vmatmul.mubr.bf16.vlgmr.msra.gmra.mrb[0].mxu0 %v17204_v59  ;;  %10291 = vmatprep.subr.bf16.mxu1 %v13927_v63  ;;  %v13958_v63 = vcombine.low %v1366_v42, %v1370_v43  ;;  %v13991_v42 = vcombine.high %v1398_v13, %v1402_v35 }
 0x2c9   :  { %10372 = vmatpush1.bf16.msra.mxu0 %v12640_v12  ;;  %10403 = vmatprep.mubr.bf16.mxu0 %v14970_v58  ;;  %v99_v12 = vld [vmem:[%s20246_s1 + $0x1b0] sm:$0xff] }
 0x2ca   :  { %10373 = vmatprep.subr.bf16.mxu0 %v12649_v0  ;;  %v12680_v0 = vcombine.low %v87_v53, %v91_v45  ;;  %v12689_v2 = vcombine.high %v95_v60, %v99_v12  ;;  %v1406_v53 = vld [vmem:[%s20246_s1 + $0x2a88] sm:$0xff] }
 0x2cb   :  { %10292 = vmatpush1.bf16.msra.mxu1 %v13926_v5  ;;  %v103_v5 = vld [vmem:[%s20246_s1 + $0x1d0] sm:$0xff]  ;;  %v1410_v45 = vld [vmem:[%s20246_s1 + $0x2aa8] sm:$0xff] }
 0x2cc   :  { %10293 = vmatprep.subr.bf16.mxu1 %v13935_v8  ;;  %v13966_v8 = vcombine.low %v1374_v56, %v1378_v57  ;;  %v13999_v56 = vcombine.high %v1406_v53, %v1410_v45 }
 0x2cd   :  { %10374 = vmatpush1.bf16.msra.mxu0 %v12648_v6  ;;  %v107_v6 = vld [vmem:[%s20246_s1 + $0x1f0] sm:$0xff] }
 0x2ce   :  { %10375 = vmatprep.subr.bf16.mxu0 %v12657_v9  ;;  %v12688_v9 = vcombine.low %v95_v60, %v99_v12  ;;  %v12697_v11 = vcombine.high %v103_v5, %v107_v6  ;;  %v1414_v60 = vld [vmem:[%s20246_s1 + $0x2ac8] sm:$0xff] }
 0x2cf   :  { %10294 = vmatpush1.bf16.msra.mxu1 %v13934_v23  ;;  %v111_v23 = vld [vmem:[%s20246_s1 + $0x210] sm:$0xff]  ;;  %v1418_v12 = vld [vmem:[%s20246_s1 + $0x2ae8] sm:$0xff] }
 0x2d0   :  { %10295 = vmatprep.subr.bf16.mxu1 %v13943_v20  ;;  %v13974_v20 = vcombine.low %v1382_v36, %v1386_v4  ;;  %v14007_v36 = vcombine.high %v1414_v60, %v1418_v12 }
 0x2d1   :  { %10376 = vmatpush1.bf16.msra.mxu0 %v12656_v25  ;;  %v115_v25 = vld [vmem:[%s20246_s1 + $0x230] sm:$0xff] }
 0x2d2   :  { %10377 = vmatprep.subr.bf16.mxu0 %v12665_v27  ;;  %v12696_v27 = vcombine.low %v103_v5, %v107_v6  ;;  %v12705_v29 = vcombine.high %v111_v23, %v115_v25  ;;  %v1422_v5 = vld [vmem:[%s20246_s1 + $0x2b08] sm:$0xff] }
 0x2d3   :  { %10296 = vmatpush1.bf16.msra.mxu1 %v13942_v37  ;;  %v119_v37 = vld [vmem:[%s20246_s1 + $0x250] sm:$0xff]  ;;  %v1426_v6 = vld [vmem:[%s20246_s1 + $0x2b28] sm:$0xff] }
 0x2d4   :  { %10297 = vmatprep.subr.bf16.mxu1 %v13951_v48  ;;  %v13982_v48 = vcombine.low %v1390_v15, %v1394_v18  ;;  %v14015_v15 = vcombine.high %v1422_v5, %v1426_v6 }
 0x2d5   :  { %10378 = vmatpush1.bf16.msra.mxu0 %v12664_v39  ;;  %v123_v39 = vld [vmem:[%s20246_s1 + $0x270] sm:$0xff] }
 0x2d6   :  { %10379 = vmatprep.subr.bf16.mxu0 %v12673_v41  ;;  %v12704_v41 = vcombine.low %v111_v23, %v115_v25  ;;  %v12713_v43 = vcombine.high %v119_v37, %v123_v39  ;;  %v1430_v23 = vld [vmem:[%s20246_s1 + $0x2b48] sm:$0xff] }
 0x2d7   :  { %10298 = vmatpush1.bf16.msra.mxu1 %v13950_v46  ;;  %v127_v46 = vld [vmem:[%s20246_s1 + $0x290] sm:$0xff]  ;;  %v1434_v25 = vld [vmem:[%s20246_s1 + $0x2b68] sm:$0xff] }
 0x2d8   :  { %10299 = vmatprep.subr.bf16.mxu1 %v13959_v49  ;;  %v13990_v49 = vcombine.low %v1398_v13, %v1402_v35  ;;  %v14023_v13 = vcombine.high %v1430_v23, %v1434_v25 }
 0x2d9   :  { %10380 = vmatpush1.bf16.msra.mxu0 %v12672_v47  ;;  %v131_v47 = vld [vmem:[%s20246_s1 + $0x2b0] sm:$0xff] }
 0x2da   :  { %10381 = vmatprep.subr.bf16.mxu0 %v12681_v55  ;;  %v12712_v55 = vcombine.low %v119_v37, %v123_v39  ;;  %v12721_v57 = vcombine.high %v127_v46, %v131_v47  ;;  %v1438_v37 = vld [vmem:[%s20246_s1 + $0x2b88] sm:$0xff] }
 0x2db   :  { %10300 = vmatpush1.bf16.msra.mxu1 %v13958_v63  ;;  %v135_v63 = vld [vmem:[%s20246_s1 + $0x2d0] sm:$0xff]  ;;  %v1442_v39 = vld [vmem:[%s20246_s1 + $0x2ba8] sm:$0xff] }
 0x2dc   :  { %10301 = vmatprep.subr.bf16.mxu1 %v13967_v1  ;;  %v13998_v1 = vcombine.low %v1406_v53, %v1410_v45  ;;  %v14031_v53 = vcombine.high %v1438_v37, %v1442_v39 }
 0x2dd   :  { %10382 = vmatpush1.bf16.msra.mxu0 %v12680_v0  ;;  %v139_v0 = vld [vmem:[%s20246_s1 + $0x2f0] sm:$0xff] }
 0x2de   :  { %10383 = vmatprep.subr.bf16.mxu0 %v12689_v2  ;;  %v12720_v2 = vcombine.low %v127_v46, %v131_v47  ;;  %v12729_v4 = vcombine.high %v135_v63, %v139_v0  ;;  %v1446_v46 = vld [vmem:[%s20246_s1 + $0x2bc8] sm:$0xff] }
 0x2df   :  { %10302 = vmatpush1.bf16.msra.mxu1 %v13966_v8  ;;  %v143_v8 = vld [vmem:[%s20246_s1 + $0x310] sm:$0xff]  ;;  %v1450_v47 = vld [vmem:[%s20246_s1 + $0x2be8] sm:$0xff] }
 0x2e0   :  { %10303 = vmatprep.subr.bf16.mxu1 %v13975_v10  ;;  %v14006_v10 = vcombine.low %v1414_v60, %v1418_v12  ;;  %v14039_v60 = vcombine.high %v1446_v46, %v1450_v47 }
 0x2e1   :  { %10384 = vmatpush1.bf16.msra.mxu0 %v12688_v9  ;;  %v147_v9 = vld [vmem:[%s20246_s1 + $0x330] sm:$0xff] }
 0x2e2   :  { %10385 = vmatprep.subr.bf16.mxu0 %v12697_v11  ;;  %v12728_v11 = vcombine.low %v135_v63, %v139_v0  ;;  %v12737_v18 = vcombine.high %v143_v8, %v147_v9  ;;  %v1454_v63 = vld [vmem:[%s20246_s1 + $0x2c08] sm:$0xff] }
 0x2e3   :  { %10304 = vmatpush1.bf16.msra.mxu1 %v13974_v20  ;;  %v151_v20 = vld [vmem:[%s20246_s1 + $0x350] sm:$0xff]  ;;  %v1458_v0 = vld [vmem:[%s20246_s1 + $0x2c28] sm:$0xff] }
 0x2e4   :  { %10305 = vmatprep.subr.bf16.mxu1 %v13983_v30  ;;  %v14014_v30 = vcombine.low %v1422_v5, %v1426_v6  ;;  %v14047_v5 = vcombine.high %v1454_v63, %v1458_v0 }
 0x2e5   :  { %10386 = vmatpush1.bf16.msra.mxu0 %v12696_v27  ;;  %v155_v27 = vld [vmem:[%s20246_s1 + $0x370] sm:$0xff] }
 0x2e6   :  { %10387 = vmatprep.subr.bf16.mxu0 %v12705_v29  ;;  %v12736_v29 = vcombine.low %v143_v8, %v147_v9  ;;  %v12745_v35 = vcombine.high %v151_v20, %v155_v27  ;;  %v1462_v8 = vld [vmem:[%s20246_s1 + $0x2c48] sm:$0xff] }
 0x2e7   :  { %10306 = vmatpush1.bf16.msra.mxu1 %v13982_v48  ;;  %v159_v48 = vld [vmem:[%s20246_s1 + $0x390] sm:$0xff]  ;;  %v1466_v9 = vld [vmem:[%s20246_s1 + $0x2c68] sm:$0xff] }
 0x2e8   :  { %10307 = vmatprep.subr.bf16.mxu1 %v13991_v42  ;;  %v14022_v42 = vcombine.low %v1430_v23, %v1434_v25  ;;  %v14055_v23 = vcombine.high %v1462_v8, %v1466_v9 }
 0x2e9   :  { %10388 = vmatpush1.bf16.msra.mxu0 %v12704_v41  ;;  %v163_v41 = vld [vmem:[%s20246_s1 + $0x3b0] sm:$0xff] }
 0x2ea   :  { %10389 = vmatprep.subr.bf16.mxu0 %v12713_v43  ;;  %v12744_v43 = vcombine.low %v151_v20, %v155_v27  ;;  %v12753_v45 = vcombine.high %v159_v48, %v163_v41  ;;  %v1470_v20 = vld [vmem:[%s20246_s1 + $0x2c88] sm:$0xff] }
 0x2eb   :  { %10308 = vmatpush1.bf16.msra.mxu1 %v13990_v49  ;;  %v167_v49 = vld [vmem:[%s20246_s1 + $0x3d0] sm:$0xff]  ;;  %v1474_v27 = vld [vmem:[%s20246_s1 + $0x2ca8] sm:$0xff] }
 0x2ec   :  { %10309 = vmatprep.subr.bf16.mxu1 %v13999_v56  ;;  %v14030_v56 = vcombine.low %v1438_v37, %v1442_v39  ;;  %v14063_v37 = vcombine.high %v1470_v20, %v1474_v27 }
 0x2ed   :  { %10390 = vmatpush1.bf16.msra.mxu0 %v12712_v55  ;;  %v171_v55 = vld [vmem:[%s20246_s1 + $0x3f0] sm:$0xff] }
 0x2ee   :  { %10391 = vmatprep.subr.bf16.mxu0 %v12721_v57  ;;  %v12752_v57 = vcombine.low %v159_v48, %v163_v41  ;;  %v12761_v12 = vcombine.high %v167_v49, %v171_v55  ;;  %v1478_v48 = vld [vmem:[%s20246_s1 + $0x2cc8] sm:$0xff] }
 0x2ef   :  { %10310 = vmatpush1.bf16.msra.mxu1 %v13998_v1  ;;  %v175_v1 = vld [vmem:[%s20246_s1 + $0x410] sm:$0xff]  ;;  %v1482_v41 = vld [vmem:[%s20246_s1 + $0x2ce8] sm:$0xff] }
 0x2f0   :  { %10311 = vmatprep.subr.bf16.mxu1 %v14007_v36  ;;  %v14038_v36 = vcombine.low %v1446_v46, %v1450_v47  ;;  %v14071_v46 = vcombine.high %v1478_v48, %v1482_v41 }
 0x2f1   :  { %10392 = vmatpush1.bf16.msra.mxu0 %v12720_v2  ;;  %v179_v2 = vld [vmem:[%s20246_s1 + $0x430] sm:$0xff] }
 0x2f2   :  { %10393 = vmatprep.subr.bf16.mxu0 %v12729_v4  ;;  %v12760_v4 = vcombine.low %v167_v49, %v171_v55  ;;  %v12769_v6 = vcombine.high %v175_v1, %v179_v2  ;;  %v1486_v49 = vld [vmem:[%s20246_s1 + $0x2d08] sm:$0xff] }
 0x2f3   :  { %10312 = vmatpush1.bf16.msra.mxu1 %v14006_v10  ;;  %v183_v10 = vld [vmem:[%s20246_s1 + $0x450] sm:$0xff]  ;;  %v1490_v55 = vld [vmem:[%s20246_s1 + $0x2d28] sm:$0xff] }
 0x2f4   :  { %10313 = vmatprep.subr.bf16.mxu1 %v14015_v15  ;;  %v14046_v15 = vcombine.low %v1454_v63, %v1458_v0  ;;  %v14079_v63 = vcombine.high %v1486_v49, %v1490_v55 }
 0x2f5   :  { %10394 = vmatpush1.bf16.msra.mxu0 %v12728_v11  ;;  %v187_v11 = vld [vmem:[%s20246_s1 + $0x470] sm:$0xff] }
 0x2f6   :  { %10395 = vmatprep.subr.bf16.mxu0 %v12737_v18  ;;  %v12768_v18 = vcombine.low %v175_v1, %v179_v2  ;;  %v12777_v25 = vcombine.high %v183_v10, %v187_v11  ;;  %v1494_v1 = vld [vmem:[%s20246_s1 + $0x2d48] sm:$0xff] }
 0x2f7   :  { %10314 = vmatpush1.bf16.msra.mxu1 %v14014_v30  ;;  %v191_v30 = vld [vmem:[%s20246_s1 + $0x490] sm:$0xff]  ;;  %v1498_v2 = vld [vmem:[%s20246_s1 + $0x2d68] sm:$0xff] }
 0x2f8   :  { %10315 = vmatprep.subr.bf16.mxu1 %v14023_v13  ;;  %v14054_v13 = vcombine.low %v1462_v8, %v1466_v9  ;;  %v14087_v8 = vcombine.high %v1494_v1, %v1498_v2 }
 0x2f9   :  { %10396 = vmatpush1.bf16.msra.mxu0 %v12736_v29  ;;  %v195_v29 = vld [vmem:[%s20246_s1 + $0x4b0] sm:$0xff] }
 0x2fa   :  { %10397 = vmatprep.subr.bf16.mxu0 %v12745_v35  ;;  %v12776_v35 = vcombine.low %v183_v10, %v187_v11  ;;  %v12785_v39 = vcombine.high %v191_v30, %v195_v29  ;;  %v1502_v10 = vld [vmem:[%s20246_s1 + $0x2d88] sm:$0xff] }
 0x2fb   :  { %10316 = vmatpush1.bf16.msra.mxu1 %v14022_v42  ;;  %v199_v42 = vld [vmem:[%s20246_s1 + $0x4d0] sm:$0xff]  ;;  %v1506_v11 = vld [vmem:[%s20246_s1 + $0x2da8] sm:$0xff] }
 0x2fc   :  { %10317 = vmatprep.subr.bf16.mxu1 %v14031_v53  ;;  %v14062_v53 = vcombine.low %v1470_v20, %v1474_v27  ;;  %v14095_v20 = vcombine.high %v1502_v10, %v1506_v11 }
 0x2fd   :  { %10398 = vmatpush1.bf16.msra.mxu0 %v12744_v43  ;;  %v203_v43 = vld [vmem:[%s20246_s1 + $0x4f0] sm:$0xff] }
 0x2fe   :  { %10399 = vmatprep.subr.bf16.mxu0 %v12753_v45  ;;  %v12784_v45 = vcombine.low %v191_v30, %v195_v29  ;;  %v12793_v47 = vcombine.high %v199_v42, %v203_v43  ;;  %v1510_v30 = vld [vmem:[%s20246_s1 + $0x2dc8] sm:$0xff] }
 0x2ff   :  { %10318 = vmatpush1.bf16.msra.mxu1 %v14030_v56  ;;  %v207_v56 = vld [vmem:[%s20246_s1 + $0x510] sm:$0xff]  ;;  %v1514_v29 = vld [vmem:[%s20246_s1 + $0x2de8] sm:$0xff] }
 0x300   :  { %10319 = vmatprep.subr.bf16.mxu1 %v14039_v60  ;;  %v14070_v60 = vcombine.low %v1478_v48, %v1482_v41  ;;  %v14103_v48 = vcombine.high %v1510_v30, %v1514_v29 }
 0x301   :  { %10400 = vmatpush1.bf16.msra.mxu0 %v12752_v57  ;;  %v211_v57 = vld [vmem:[%s20246_s1 + $0x530] sm:$0xff] }
 0x302   :  { %10401 = vmatprep.subr.bf16.mxu0 %v12761_v12  ;;  %v12792_v12 = vcombine.low %v199_v42, %v203_v43  ;;  %v12801_v0 = vcombine.high %v207_v56, %v211_v57  ;;  %v1518_v42 = vld [vmem:[%s20246_s1 + $0x2e08] sm:$0xff] }
 0x303   :  { %10320 = vmatpush1.bf16.msra.mxu1 %v14038_v36  ;;  %v215_v36 = vld [vmem:[%s20246_s1 + $0x550] sm:$0xff]  ;;  %v1522_v43 = vld [vmem:[%s20246_s1 + $0x2e28] sm:$0xff] }
 0x304   :  { %10330 = vmatprep.subr.bf16.mxu1 %v14047_v5  ;;  %v14078_v5 = vcombine.low %v1486_v49, %v1490_v55  ;;  %v14111_v49 = vcombine.high %v1518_v42, %v1522_v43 }
 0x305   :  { %10402 = vmatpush1.bf16.msra.mxu0 %v12760_v4  ;;  %v219_v4 = vld [vmem:[%s20246_s1 + $0x570] sm:$0xff] }
 0x306   :  { %10412 = vmatprep.subr.bf16.mxu0 %v12769_v6  ;;  %10322 = vmatmul.mubr.bf16.vlgmr.msra.gmra.mrb[4].mxu1 %v17000_v38  ;;  %v12800_v6 = vcombine.low %v207_v56, %v211_v57  ;;  %v12809_v9 = vcombine.high %v215_v36, %v219_v4  ;;  %v1526_v56 = vld [vmem:[%s20246_s1 + $0x2e48] sm:$0xff] }
 0x307   :  { %10331 = vmatpush1.bf16.msra.mxu1 %v14046_v15  ;;  %10362 = vmatprep.mubr.bf16.mxu1 %v17010_v44  ;;  %v223_v15 = vld [vmem:[%s20246_s1 + $0x590] sm:$0xff]  ;;  %v1530_v57 = vld [vmem:[%s20246_s1 + $0x2e68] sm:$0xff] }
 0x308   :  { %10404 = vmatmul.mubr.bf16.vlgmr.msra.gmra.mrb[4].mxu0 %v15100_v16  ;;  %10332 = vmatprep.subr.bf16.mxu1 %v14055_v23  ;;  %v14086_v23 = vcombine.low %v1494_v1, %v1498_v2  ;;  %v14119_v1 = vcombine.high %v1526_v56, %v1530_v57 }
 0x309   :  { %10413 = vmatpush1.bf16.msra.mxu0 %v12768_v18  ;;  %10444 = vmatprep.mubr.bf16.mxu0 %v14980_v61  ;;  %v227_v18 = vld [vmem:[%s20246_s1 + $0x5b0] sm:$0xff] }
 0x30a   :  { %10414 = vmatprep.subr.bf16.mxu0 %v12777_v25  ;;  %v12808_v25 = vcombine.low %v215_v36, %v219_v4  ;;  %v12817_v27 = vcombine.high %v223_v15, %v227_v18  ;;  %v1534_v36 = vld [vmem:[%s20246_s1 + $0x2e88] sm:$0xff] }
 0x30b   :  { %10333 = vmatpush1.bf16.msra.mxu1 %v14054_v13  ;;  %v231_v13 = vld [vmem:[%s20246_s1 + $0x5d0] sm:$0xff]  ;;  %v1538_v4 = vld [vmem:[%s20246_s1 + $0x2ea8] sm:$0xff] }
 0x30c   :  { %10334 = vmatprep.subr.bf16.mxu1 %v14063_v37  ;;  %v14094_v37 = vcombine.low %v1502_v10, %v1506_v11  ;;  %v14127_v10 = vcombine.high %v1534_v36, %v1538_v4 }
 0x30d   :  { %10415 = vmatpush1.bf16.msra.mxu0 %v12776_v35  ;;  %v235_v35 = vld [vmem:[%s20246_s1 + $0x5f0] sm:$0xff] }
 0x30e   :  { %10416 = vmatprep.subr.bf16.mxu0 %v12785_v39  ;;  %v12816_v39 = vcombine.low %v223_v15, %v227_v18  ;;  %v12825_v41 = vcombine.high %v231_v13, %v235_v35  ;;  %v1542_v15 = vld [vmem:[%s20246_s1 + $0x2ec8] sm:$0xff] }
 0x30f   :  { %10335 = vmatpush1.bf16.msra.mxu1 %v14062_v53  ;;  %v239_v53 = vld [vmem:[%s20246_s1 + $0x610] sm:$0xff]  ;;  %v1546_v18 = vld [vmem:[%s20246_s1 + $0x2ee8] sm:$0xff] }
 0x310   :  { %10336 = vmatprep.subr.bf16.mxu1 %v14071_v46  ;;  %v14102_v46 = vcombine.low %v1510_v30, %v1514_v29  ;;  %v14135_v30 = vcombine.high %v1542_v15, %v1546_v18 }
 0x311   :  { %10417 = vmatpush1.bf16.msra.mxu0 %v12784_v45  ;;  %v243_v45 = vld [vmem:[%s20246_s1 + $0x630] sm:$0xff] }
 0x312   :  { %10418 = vmatprep.subr.bf16.mxu0 %v12793_v47  ;;  %v12824_v47 = vcombine.low %v231_v13, %v235_v35  ;;  %v12833_v55 = vcombine.high %v239_v53, %v243_v45  ;;  %v1550_v13 = vld [vmem:[%s20246_s1 + $0x2f08] sm:$0xff] }
 0x313   :  { %10337 = vmatpush1.bf16.msra.mxu1 %v14070_v60  ;;  %v247_v60 = vld [vmem:[%s20246_s1 + $0x650] sm:$0xff]  ;;  %v1554_v35 = vld [vmem:[%s20246_s1 + $0x2f28] sm:$0xff] }
 0x314   :  { %10338 = vmatprep.subr.bf16.mxu1 %v14079_v63  ;;  %v14110_v63 = vcombine.low %v1518_v42, %v1522_v43  ;;  %v14143_v42 = vcombine.high %v1550_v13, %v1554_v35 }
 0x315   :  { %10419 = vmatpush1.bf16.msra.mxu0 %v12792_v12  ;;  %v251_v12 = vld [vmem:[%s20246_s1 + $0x670] sm:$0xff] }
 0x316   :  { %10420 = vmatprep.subr.bf16.mxu0 %v12801_v0  ;;  %v12832_v0 = vcombine.low %v239_v53, %v243_v45  ;;  %v12841_v2 = vcombine.high %v247_v60, %v251_v12  ;;  %v1558_v53 = vld [vmem:[%s20246_s1 + $0x2f48] sm:$0xff] }
 0x317   :  { %10339 = vmatpush1.bf16.msra.mxu1 %v14078_v5  ;;  %v255_v5 = vld [vmem:[%s20246_s1 + $0x690] sm:$0xff]  ;;  %v1562_v45 = vld [vmem:[%s20246_s1 + $0x2f68] sm:$0xff] }
 0x318   :  { %10340 = vmatprep.subr.bf16.mxu1 %v14087_v8  ;;  %v14118_v8 = vcombine.low %v1526_v56, %v1530_v57  ;;  %v14151_v56 = vcombine.high %v1558_v53, %v1562_v45 }
 0x319   :  { %10421 = vmatpush1.bf16.msra.mxu0 %v12800_v6  ;;  %v259_v6 = vld [vmem:[%s20246_s1 + $0x6b0] sm:$0xff] }
 0x31a   :  { %10422 = vmatprep.subr.bf16.mxu0 %v12809_v9  ;;  %v12840_v9 = vcombine.low %v247_v60, %v251_v12  ;;  %v12849_v11 = vcombine.high %v255_v5, %v259_v6  ;;  %v1566_v60 = vld [vmem:[%s20246_s1 + $0x2f88] sm:$0xff] }
 0x31b   :  { %10341 = vmatpush1.bf16.msra.mxu1 %v14086_v23  ;;  %v263_v23 = vld [vmem:[%s20246_s1 + $0x6d0] sm:$0xff]  ;;  %v1570_v12 = vld [vmem:[%s20246_s1 + $0x2fa8] sm:$0xff] }
 0x31c   :  { %10342 = vmatprep.subr.bf16.mxu1 %v14095_v20  ;;  %v14126_v20 = vcombine.low %v1534_v36, %v1538_v4  ;;  %v14159_v36 = vcombine.high %v1566_v60, %v1570_v12 }
 0x31d   :  { %10423 = vmatpush1.bf16.msra.mxu0 %v12808_v25  ;;  %v267_v25 = vld [vmem:[%s20246_s1 + $0x6f0] sm:$0xff] }
 0x31e   :  { %10424 = vmatprep.subr.bf16.mxu0 %v12817_v27  ;;  %v12848_v27 = vcombine.low %v255_v5, %v259_v6  ;;  %v12857_v29 = vcombine.high %v263_v23, %v267_v25  ;;  %v1574_v5 = vld [vmem:[%s20246_s1 + $0x2fc8] sm:$0xff] }
 0x31f   :  { %10343 = vmatpush1.bf16.msra.mxu1 %v14094_v37  ;;  %v271_v37 = vld [vmem:[%s20246_s1 + $0x710] sm:$0xff]  ;;  %v1578_v6 = vld [vmem:[%s20246_s1 + $0x2fe8] sm:$0xff] }
 0x320   :  { %10344 = vmatprep.subr.bf16.mxu1 %v14103_v48  ;;  %v14134_v48 = vcombine.low %v1542_v15, %v1546_v18  ;;  %v14167_v15 = vcombine.high %v1574_v5, %v1578_v6 }
 0x321   :  { %10425 = vmatpush1.bf16.msra.mxu0 %v12816_v39  ;;  %v275_v39 = vld [vmem:[%s20246_s1 + $0x730] sm:$0xff] }
 0x322   :  { %10426 = vmatprep.subr.bf16.mxu0 %v12825_v41  ;;  %v12856_v41 = vcombine.low %v263_v23, %v267_v25  ;;  %v12865_v43 = vcombine.high %v271_v37, %v275_v39  ;;  %v48_v23 = vld [vmem:[%s20246_s1 + $0x18] sm:$0xff] }
 0x323   :  { %10345 = vmatpush1.bf16.msra.mxu1 %v14102_v46  ;;  %v279_v46 = vld [vmem:[%s20246_s1 + $0x750] sm:$0xff]  ;;  %v52_v25 = vld [vmem:[%s20246_s1 + $0x38] sm:$0xff] }
 0x324   :  { %10346 = vmatprep.subr.bf16.mxu1 %v14111_v49  ;;  %v14142_v49 = vcombine.low %v1550_v13, %v1554_v35  ;;  %v12643_v13 = vcombine.high %v48_v23, %v52_v25 }
 0x325   :  { %10427 = vmatpush1.bf16.msra.mxu0 %v12824_v47  ;;  %v283_v47 = vld [vmem:[%s20246_s1 + $0x770] sm:$0xff] }
 0x326   :  { %10428 = vmatprep.subr.bf16.mxu0 %v12833_v55  ;;  %v12864_v55 = vcombine.low %v271_v37, %v275_v39  ;;  %v12873_v57 = vcombine.high %v279_v46, %v283_v47  ;;  %v56_v37 = vld [vmem:[%s20246_s1 + $0x58] sm:$0xff] }
 0x327   :  { %10347 = vmatpush1.bf16.msra.mxu1 %v14110_v63  ;;  %v287_v63 = vld [vmem:[%s20246_s1 + $0x790] sm:$0xff]  ;;  %v60_v39 = vld [vmem:[%s20246_s1 + $0x78] sm:$0xff] }
 0x328   :  { %10348 = vmatprep.subr.bf16.mxu1 %v14119_v1  ;;  %v14150_v1 = vcombine.low %v1558_v53, %v1562_v45  ;;  %v12651_v53 = vcombine.high %v56_v37, %v60_v39 }
 0x329   :  { %10429 = vmatpush1.bf16.msra.mxu0 %v12832_v0  ;;  %v291_v0 = vld [vmem:[%s20246_s1 + $0x7b0] sm:$0xff] }
 0x32a   :  { %10430 = vmatprep.subr.bf16.mxu0 %v12841_v2  ;;  %v12872_v2 = vcombine.low %v279_v46, %v283_v47  ;;  %v12881_v4 = vcombine.high %v287_v63, %v291_v0  ;;  %v64_v46 = vld [vmem:[%s20246_s1 + $0x98] sm:$0xff] }
 0x32b   :  { %10349 = vmatpush1.bf16.msra.mxu1 %v14118_v8  ;;  %v295_v8 = vld [vmem:[%s20246_s1 + $0x7d0] sm:$0xff]  ;;  %v68_v47 = vld [vmem:[%s20246_s1 + $0xb8] sm:$0xff] }
 0x32c   :  { %10350 = vmatprep.subr.bf16.mxu1 %v14127_v10  ;;  %v14158_v10 = vcombine.low %v1566_v60, %v1570_v12  ;;  %v12659_v60 = vcombine.high %v64_v46, %v68_v47 }
 0x32d   :  { %10431 = vmatpush1.bf16.msra.mxu0 %v12840_v9  ;;  %v299_v9 = vld [vmem:[%s20246_s1 + $0x7f0] sm:$0xff] }
 0x32e   :  { %10432 = vmatprep.subr.bf16.mxu0 %v12849_v11  ;;  %v12880_v11 = vcombine.low %v287_v63, %v291_v0  ;;  %v12889_v18 = vcombine.high %v295_v8, %v299_v9  ;;  %v72_v63 = vld [vmem:[%s20246_s1 + $0xd8] sm:$0xff] }
 0x32f   :  { %10351 = vmatpush1.bf16.msra.mxu1 %v14126_v20  ;;  %v303_v20 = vld [vmem:[%s20246_s1 + $0x810] sm:$0xff]  ;;  %v76_v0 = vld [vmem:[%s20246_s1 + $0xf8] sm:$0xff] }
 0x330   :  { %10352 = vmatprep.subr.bf16.mxu1 %v14135_v30  ;;  %v14166_v30 = vcombine.low %v1574_v5, %v1578_v6  ;;  %v12667_v5 = vcombine.high %v72_v63, %v76_v0 }
 0x331   :  { %10433 = vmatpush1.bf16.msra.mxu0 %v12848_v27  ;;  %v307_v27 = vld [vmem:[%s20246_s1 + $0x830] sm:$0xff] }
 0x332   :  { %10434 = vmatprep.subr.bf16.mxu0 %v12857_v29  ;;  %v12888_v29 = vcombine.low %v295_v8, %v299_v9  ;;  %v12897_v35 = vcombine.high %v303_v20, %v307_v27  ;;  %v80_v8 = vld [vmem:[%s20246_s1 + $0x118] sm:$0xff] }
 0x333   :  { %10353 = vmatpush1.bf16.msra.mxu1 %v14134_v48  ;;  %v311_v48 = vld [vmem:[%s20246_s1 + $0x850] sm:$0xff]  ;;  %v84_v9 = vld [vmem:[%s20246_s1 + $0x138] sm:$0xff] }
 0x334   :  { %10354 = vmatprep.subr.bf16.mxu1 %v14143_v42  ;;  %v12642_v42 = vcombine.low %v48_v23, %v52_v25  ;;  %v88_v25 = vld [vmem:[%s20246_s1 + $0x158] sm:$0xff] }
 0x335   :  { %10435 = vmatpush1.bf16.msra.mxu0 %v12856_v41  ;;  %v315_v41 = vld [vmem:[%s20246_s1 + $0x870] sm:$0xff] }
 0x336   :  { %10436 = vmatprep.subr.bf16.mxu0 %v12865_v43  ;;  %v12896_v43 = vcombine.low %v303_v20, %v307_v27  ;;  %v12905_v45 = vcombine.high %v311_v48, %v315_v41  ;;  %v92_v20 = vld [vmem:[%s20246_s1 + $0x178] sm:$0xff]  ;;  %v343_v27 = vld [vmem:[%s20246_s1 + $0x950] sm:$0xff] }
 0x337   :  { %10355 = vmatpush1.bf16.msra.mxu1 %v14142_v49  ;;  %v319_v49 = vld [vmem:[%s20246_s1 + $0x890] sm:$0xff] }
 0x338   :  { %10356 = vmatprep.subr.bf16.mxu1 %v14151_v56  ;;  %v12650_v56 = vcombine.low %v56_v37, %v60_v39  ;;  %v96_v39 = vld [vmem:[%s20246_s1 + $0x198] sm:$0xff] }
 0x339   :  { %10437 = vmatpush1.bf16.msra.mxu0 %v12864_v55  ;;  %v323_v55 = vld [vmem:[%s20246_s1 + $0x8b0] sm:$0xff] }
 0x33a   :  { %10438 = vmatprep.subr.bf16.mxu0 %v12873_v57  ;;  %v12904_v57 = vcombine.low %v311_v48, %v315_v41  ;;  %v12913_v12 = vcombine.high %v319_v49, %v323_v55  ;;  %v100_v48 = vld [vmem:[%s20246_s1 + $0x1b8] sm:$0xff]  ;;  %v351_v41 = vld [vmem:[%s20246_s1 + $0x990] sm:$0xff] }
 0x33b   :  { %10357 = vmatpush1.bf16.msra.mxu1 %v14150_v1  ;;  %v327_v1 = vld [vmem:[%s20246_s1 + $0x8d0] sm:$0xff] }
 0x33c   :  { %10358 = vmatprep.subr.bf16.mxu1 %v14159_v36  ;;  %v12658_v36 = vcombine.low %v64_v46, %v68_v47  ;;  %v104_v47 = vld [vmem:[%s20246_s1 + $0x1d8] sm:$0xff] }
 0x33d   :  { %10439 = vmatpush1.bf16.msra.mxu0 %v12872_v2  ;;  %v331_v2 = vld [vmem:[%s20246_s1 + $0x8f0] sm:$0xff] }
 0x33e   :  { %10440 = vmatprep.subr.bf16.mxu0 %v12881_v4  ;;  %v12912_v4 = vcombine.low %v319_v49, %v323_v55  ;;  %v12921_v6 = vcombine.high %v327_v1, %v331_v2  ;;  %v108_v49 = vld [vmem:[%s20246_s1 + $0x1f8] sm:$0xff]  ;;  %v359_v55 = vld [vmem:[%s20246_s1 + $0x9d0] sm:$0xff] }
 0x33f   :  { %10359 = vmatpush1.bf16.msra.mxu1 %v14158_v10  ;;  %v339_v10 = vld [vmem:[%s20246_s1 + $0x930] sm:$0xff] }
 0x340   :  { %10360 = vmatprep.subr.bf16.mxu1 %v14167_v15  ;;  %v12920_v15 = vcombine.low %v327_v1, %v331_v2  ;;  %v116_v1 = vld [vmem:[%s20246_s1 + $0x238] sm:$0xff]  ;;  %v367_v2 = vld [vmem:[%s20246_s1 + $0xa10] sm:$0xff] }
 0x341   :  { %10441 = vmatpush1.bf16.msra.mxu0 %v12880_v11  ;;  %v12666_v11 = vcombine.low %v72_v63, %v76_v0  ;;  %v112_v0 = vld [vmem:[%s20246_s1 + $0x218] sm:$0xff] }
 0x342   :  { %10442 = vmatprep.subr.bf16.mxu0 %v12889_v18  ;;  %v12675_v18 = vcombine.high %v80_v8, %v84_v9 }
 0x343   :  { %10361 = vmatpush1.bf16.msra.mxu1 %v14166_v30  ;;  %v347_v30 = vld [vmem:[%s20246_s1 + $0x970] sm:$0xff] }
 0x344   :  { %10863 = vmatprep.subr.bf16.mxu1 %v12643_v13  ;;  %v12937_v37 = vcombine.high %v343_v27, %v347_v30 }
 0x345   :  { %10443 = vmatpush1.bf16.msra.mxu0 %v12888_v29  ;;  %v12674_v29 = vcombine.low %v80_v8, %v84_v9  ;;  %v120_v9 = vld [vmem:[%s20246_s1 + $0x258] sm:$0xff] }
 0x346   :  { %10453 = vmatprep.subr.bf16.mxu0 %v12897_v35  ;;  %10363 = vmatmul.mubr.bf16.vlgmr.msra.gmra.mrb[4].mxu1 %v17204_v59  ;;  %v12683_v35 = vcombine.high %v88_v25, %v92_v20 }
 0x347   :  { %10864 = vmatpush1.bf16.msra.mxu1 %v12642_v42  ;;  %10895 = vmatprep.mubr.bf16.mxu1 %v14970_v58  ;;  %v335_v58 = vld [vmem:[%s20246_s1 + $0x910] sm:$0xff] }
 0x348   :  { %10445 = vmatmul.mubr.bf16.vlgmr.msra.gmra.mrb[4].mxu0 %v15115_v21  ;;  %10865 = vmatprep.subr.bf16.mxu1 %v12651_v53  ;;  %v12929_v23 = vcombine.high %v335_v58, %v339_v10  ;;  %v12928_v13 = vcombine.low %v335_v58, %v339_v10  ;;  %v355_v42 = vld [vmem:[%s20246_s1 + $0x9b0] sm:$0xff]  ;;  %v12936_v53 = vcombine.low %v343_v27, %v347_v30  ;;  %v124_v58 = vld [vmem:[%s20246_s1 + $0x278] sm:$0xff] }
 0x349   :  { %10454 = vmatpush1.bf16.msra.mxu0 %v12896_v43  ;;  %10485 = vmatprep.mubr.bf16.mxu0 %v15125_v26  ;;  %v12682_v43 = vcombine.low %v88_v25, %v92_v20  ;;  %v12945_v46 = vcombine.high %v351_v41, %v355_v42  ;;  %v375_v10 = vld [vmem:[%s20246_s1 + $0xa50] sm:$0xff]  ;;  %v128_v20 = vld [vmem:[%s20246_s1 + $0x298] sm:$0xff] }
 0x34a   :  { %10455 = vmatprep.subr.bf16.mxu0 %v12905_v45  ;;  %v12691_v45 = vcombine.high %v96_v39, %v100_v48  ;;  %v132_v27 = vld [vmem:[%s20246_s1 + $0x2b8] sm:$0xff]  ;;  %v383_v30 = vld [vmem:[%s20246_s1 + $0xa90] sm:$0xff] }
 0x34b   :  { %10866 = vmatpush1.bf16.msra.mxu1 %v12650_v56  ;;  %v363_v56 = vld [vmem:[%s20246_s1 + $0x9f0] sm:$0xff] }
 0x34c   :  { %10867 = vmatprep.subr.bf16.mxu1 %v12659_v60  ;;  %v12944_v60 = vcombine.low %v351_v41, %v355_v42  ;;  %v12953_v63 = vcombine.high %v359_v55, %v363_v56  ;;  %v140_v41 = vld [vmem:[%s20246_s1 + $0x2f8] sm:$0xff]  ;;  %v391_v42 = vld [vmem:[%s20246_s1 + $0xad0] sm:$0xff] }
 0x34d   :  { %10456 = vmatpush1.bf16.msra.mxu0 %v12904_v57  ;;  %v12690_v57 = vcombine.low %v96_v39, %v100_v48  ;;  %v136_v48 = vld [vmem:[%s20246_s1 + $0x2d8] sm:$0xff] }
 0x34e   :  { %10457 = vmatprep.subr.bf16.mxu0 %v12913_v12  ;;  %v12699_v12 = vcombine.high %v104_v47, %v108_v49 }
 0x34f   :  { %10868 = vmatpush1.bf16.msra.mxu1 %v12658_v36  ;;  %v371_v36 = vld [vmem:[%s20246_s1 + $0xa30] sm:$0xff] }
 0x350   :  { %10869 = vmatprep.subr.bf16.mxu1 %v12667_v5  ;;  %v12952_v5 = vcombine.low %v359_v55, %v363_v56  ;;  %v12961_v8 = vcombine.high %v367_v2, %v371_v36  ;;  %v148_v55 = vld [vmem:[%s20246_s1 + $0x338] sm:$0xff]  ;;  %v399_v56 = vld [vmem:[%s20246_s1 + $0xb10] sm:$0xff] }
 0x351   :  { %10458 = vmatpush1.bf16.msra.mxu0 %v12912_v4  ;;  %v12698_v4 = vcombine.low %v104_v47, %v108_v49  ;;  %v144_v49 = vld [vmem:[%s20246_s1 + $0x318] sm:$0xff] }
 0x352   :  { %10459 = vmatprep.subr.bf16.mxu0 %v12921_v6  ;;  %v12707_v6 = vcombine.high %v112_v0, %v116_v1 }
 0x353   :  { %10870 = vmatpush1.bf16.msra.mxu1 %v12666_v11  ;;  %v379_v11 = vld [vmem:[%s20246_s1 + $0xa70] sm:$0xff] }
 0x354   :  { %10871 = vmatprep.subr.bf16.mxu1 %v12675_v18  ;;  %v12960_v18 = vcombine.low %v367_v2, %v371_v36  ;;  %v12969_v25 = vcombine.high %v375_v10, %v379_v11  ;;  %v156_v2 = vld [vmem:[%s20246_s1 + $0x378] sm:$0xff]  ;;  %v407_v36 = vld [vmem:[%s20246_s1 + $0xb50] sm:$0xff] }
 0x355   :  { %10460 = vmatpush1.bf16.msra.mxu0 %v12920_v15  ;;  %v12706_v15 = vcombine.low %v112_v0, %v116_v1  ;;  %v152_v1 = vld [vmem:[%s20246_s1 + $0x358] sm:$0xff] }
 0x356   :  { %10461 = vmatprep.subr.bf16.mxu0 %v12929_v23  ;;  %v12715_v23 = vcombine.high %v120_v9, %v124_v58 }
 0x357   :  { %10872 = vmatpush1.bf16.msra.mxu1 %v12674_v29  ;;  %v387_v29 = vld [vmem:[%s20246_s1 + $0xab0] sm:$0xff] }
 0x358   :  { %10873 = vmatprep.subr.bf16.mxu1 %v12683_v35  ;;  %v12968_v35 = vcombine.low %v375_v10, %v379_v11  ;;  %v12977_v39 = vcombine.high %v383_v30, %v387_v29  ;;  %v164_v10 = vld [vmem:[%s20246_s1 + $0x3b8] sm:$0xff]  ;;  %v415_v11 = vld [vmem:[%s20246_s1 + $0xb90] sm:$0xff] }
 0x359   :  { %10462 = vmatpush1.bf16.msra.mxu0 %v12928_v13  ;;  %v12714_v13 = vcombine.low %v120_v9, %v124_v58  ;;  %v160_v58 = vld [vmem:[%s20246_s1 + $0x398] sm:$0xff] }
 0x35a   :  { %10463 = vmatprep.subr.bf16.mxu0 %v12937_v37  ;;  %v12723_v37 = vcombine.high %v128_v20, %v132_v27 }
 0x35b   :  { %10874 = vmatpush1.bf16.msra.mxu1 %v12682_v43  ;;  %v395_v43 = vld [vmem:[%s20246_s1 + $0xaf0] sm:$0xff] }
 0x35c   :  { %10875 = vmatprep.subr.bf16.mxu1 %v12691_v45  ;;  %v12976_v45 = vcombine.low %v383_v30, %v387_v29  ;;  %v12985_v47 = vcombine.high %v391_v42, %v395_v43  ;;  %v172_v30 = vld [vmem:[%s20246_s1 + $0x3f8] sm:$0xff]  ;;  %v423_v29 = vld [vmem:[%s20246_s1 + $0xbd0] sm:$0xff] }
 0x35d   :  { %10464 = vmatpush1.bf16.msra.mxu0 %v12936_v53  ;;  %v12722_v53 = vcombine.low %v128_v20, %v132_v27  ;;  %v168_v27 = vld [vmem:[%s20246_s1 + $0x3d8] sm:$0xff] }
 0x35e   :  { %10465 = vmatprep.subr.bf16.mxu0 %v12945_v46  ;;  %v12731_v46 = vcombine.high %v136_v48, %v140_v41 }
 0x35f   :  { %10876 = vmatpush1.bf16.msra.mxu1 %v12690_v57  ;;  %v403_v57 = vld [vmem:[%s20246_s1 + $0xb30] sm:$0xff] }
 0x360   :  { %10877 = vmatprep.subr.bf16.mxu1 %v12699_v12  ;;  %v12984_v12 = vcombine.low %v391_v42, %v395_v43  ;;  %v12993_v0 = vcombine.high %v399_v56, %v403_v57  ;;  %v180_v42 = vld [vmem:[%s20246_s1 + $0x438] sm:$0xff]  ;;  %v431_v43 = vld [vmem:[%s20246_s1 + $0xc10] sm:$0xff] }
 0x361   :  { %10466 = vmatpush1.bf16.msra.mxu0 %v12944_v60  ;;  %v12730_v60 = vcombine.low %v136_v48, %v140_v41  ;;  %v176_v41 = vld [vmem:[%s20246_s1 + $0x418] sm:$0xff] }
 0x362   :  { %10467 = vmatprep.subr.bf16.mxu0 %v12953_v63  ;;  %v12739_v63 = vcombine.high %v144_v49, %v148_v55 }
 0x363   :  { %10878 = vmatpush1.bf16.msra.mxu1 %v12698_v4  ;;  %v411_v4 = vld [vmem:[%s20246_s1 + $0xb70] sm:$0xff] }
 0x364   :  { %10879 = vmatprep.subr.bf16.mxu1 %v12707_v6  ;;  %v12992_v6 = vcombine.low %v399_v56, %v403_v57  ;;  %v13001_v9 = vcombine.high %v407_v36, %v411_v4  ;;  %v188_v56 = vld [vmem:[%s20246_s1 + $0x478] sm:$0xff]  ;;  %v439_v57 = vld [vmem:[%s20246_s1 + $0xc50] sm:$0xff] }
 0x365   :  { %10468 = vmatpush1.bf16.msra.mxu0 %v12952_v5  ;;  %v12738_v5 = vcombine.low %v144_v49, %v148_v55  ;;  %v184_v55 = vld [vmem:[%s20246_s1 + $0x458] sm:$0xff] }
 0x366   :  { %10469 = vmatprep.subr.bf16.mxu0 %v12961_v8  ;;  %v12747_v8 = vcombine.high %v152_v1, %v156_v2 }
 0x367   :  { %10880 = vmatpush1.bf16.msra.mxu1 %v12706_v15  ;;  %v419_v15 = vld [vmem:[%s20246_s1 + $0xbb0] sm:$0xff] }
 0x368   :  { %10881 = vmatprep.subr.bf16.mxu1 %v12715_v23  ;;  %v13000_v23 = vcombine.low %v407_v36, %v411_v4  ;;  %v13009_v20 = vcombine.high %v415_v11, %v419_v15  ;;  %v196_v36 = vld [vmem:[%s20246_s1 + $0x4b8] sm:$0xff]  ;;  %v447_v4 = vld [vmem:[%s20246_s1 + $0xc90] sm:$0xff] }
 0x369   :  { %10470 = vmatpush1.bf16.msra.mxu0 %v12960_v18  ;;  %v12746_v18 = vcombine.low %v152_v1, %v156_v2  ;;  %v192_v2 = vld [vmem:[%s20246_s1 + $0x498] sm:$0xff] }
 0x36a   :  { %10471 = vmatprep.subr.bf16.mxu0 %v12969_v25  ;;  %v12755_v25 = vcombine.high %v160_v58, %v164_v10 }
 0x36b   :  { %10882 = vmatpush1.bf16.msra.mxu1 %v12714_v13  ;;  %v427_v13 = vld [vmem:[%s20246_s1 + $0xbf0] sm:$0xff] }
 0x36c   :  { %10883 = vmatprep.subr.bf16.mxu1 %v12723_v37  ;;  %v13008_v37 = vcombine.low %v415_v11, %v419_v15  ;;  %v13017_v48 = vcombine.high %v423_v29, %v427_v13  ;;  %v204_v11 = vld [vmem:[%s20246_s1 + $0x4f8] sm:$0xff]  ;;  %v455_v15 = vld [vmem:[%s20246_s1 + $0xcd0] sm:$0xff] }
 0x36d   :  { %10472 = vmatpush1.bf16.msra.mxu0 %v12968_v35  ;;  %v12754_v35 = vcombine.low %v160_v58, %v164_v10  ;;  %v1583_v58 = vlaneseq }
 0x36e   :  { %10473 = vmatprep.subr.bf16.mxu0 %v12977_v39  ;;  %v12763_v39 = vcombine.high %v168_v27, %v172_v30 }
 0x36f   :  { %10884 = vmatpush1.bf16.msra.mxu1 %v12722_v53  ;;  %v435_v53 = vld [vmem:[%s20246_s1 + $0xc30] sm:$0xff] }
 0x370   :  { %10885 = vmatprep.subr.bf16.mxu1 %v12731_v46  ;;  %v13016_v46 = vcombine.low %v423_v29, %v427_v13  ;;  %v13025_v49 = vcombine.high %v431_v43, %v435_v53  ;;  %v208_v29 = vld [vmem:[%s20246_s1 + $0x518] sm:$0xff] }
 0x371   :  { %10474 = vmatpush1.bf16.msra.mxu0 %v12976_v45  ;;  %v12762_v45 = vcombine.low %v168_v27, %v172_v30  ;;  %v17822_v27 = vshrl.u32 %v1583_v58, 7  ;;  %v212_v13 = vld [vmem:[%s20246_s1 + $0x538] sm:$0xff] }
 0x372   :  { %10475 = vmatprep.subr.bf16.mxu0 %v12985_v47  ;;  %v12771_v47 = vcombine.high %v176_v41, %v180_v42  ;;  %v232_v58 = vld [vmem:[%s20246_s1 + $0x5d8] sm:$0xff] }
 0x373   :  { %10886 = vmatpush1.bf16.msra.mxu1 %v12730_v60  ;;  %v443_v60 = vld [vmem:[%s20246_s1 + $0xc70] sm:$0xff] }
 0x374   :  { %10887 = vmatprep.subr.bf16.mxu1 %v12739_v63  ;;  %v13024_v63 = vcombine.low %v431_v43, %v435_v53  ;;  %v13033_v1 = vcombine.high %v439_v57, %v443_v60  ;;  %v216_v43 = vld [vmem:[%s20246_s1 + $0x558] sm:$0xff] }
 0x375   :  { %10476 = vmatpush1.bf16.msra.mxu0 %v12984_v12  ;;  %v12770_v12 = vcombine.low %v176_v41, %v180_v42  ;;  %v1585_v41 = vsub.s32 0, %v17822_v27  ;;  %v220_v53 = vld [vmem:[%s20246_s1 + $0x578] sm:$0xff] }
 0x376   :  { %10477 = vmatprep.subr.bf16.mxu0 %v12993_v0  ;;  %v12779_v0 = vcombine.high %v184_v55, %v188_v56 }
 0x377   :  { %10888 = vmatpush1.bf16.msra.mxu1 %v12738_v5  ;;  %v451_v5 = vld [vmem:[%s20246_s1 + $0xcb0] sm:$0xff] }
 0x378   :  { %10889 = vmatprep.subr.bf16.mxu1 %v12747_v8  ;;  %v13032_v8 = vcombine.low %v439_v57, %v443_v60  ;;  %v13041_v10 = vcombine.high %v447_v4, %v451_v5  ;;  %v12811_v57 = vcombine.high %v216_v43, %v220_v53 }
 0x379   :  { %10478 = vmatpush1.bf16.msra.mxu0 %v12992_v6  ;;  %v12778_v6 = vcombine.low %v184_v55, %v188_v56  ;;  %v12802_v55 = vcombine.low %v208_v29, %v212_v13 }
 0x37a   :  { %10479 = vmatprep.subr.bf16.mxu0 %v13001_v9  ;;  %v12787_v9 = vcombine.high %v192_v2, %v196_v36 }
 0x37b   :  { %10890 = vmatpush1.bf16.msra.mxu1 %v12746_v18  ;;  %v459_v18 = vld [vmem:[%s20246_s1 + $0xcf0] sm:$0xff] }
 0x37c   :  { %10891 = vmatprep.subr.bf16.mxu1 %v12755_v25  ;;  %v13040_v25 = vcombine.low %v447_v4, %v451_v5  ;;  %v13049_v30 = vcombine.high %v455_v15, %v459_v18  ;;  %v12810_v4 = vcombine.low %v216_v43, %v220_v53 }
 0x37d   :  { %10480 = vmatpush1.bf16.msra.mxu0 %v13000_v23  ;;  %v12786_v23 = vcombine.low %v192_v2, %v196_v36  ;;  %v479_v2 = vld [vmem:[%s20246_s1 + $0xd90] sm:$0xff] }
 0x37e   :  { %10481 = vmatprep.subr.bf16.mxu0 %v13009_v20  ;;  %v483_v36 = vld [vmem:[%s20246_s1 + $0xdb0] sm:$0xff] }
 0x37f   :  { %10892 = vmatpush1.bf16.msra.mxu1 %v12754_v35  ;;  %v467_v35 = vld [vmem:[%s20246_s1 + $0xd30] sm:$0xff] }
 0x380   :  { %10893 = vmatprep.subr.bf16.mxu1 %v12763_v39  ;;  %v13048_v39 = vcombine.low %v455_v15, %v459_v18  ;;  %v487_v15 = vld [vmem:[%s20246_s1 + $0xdd0] sm:$0xff] }
 0x381   :  { %10482 = vmatpush1.bf16.msra.mxu0 %v13008_v37 }
 0x382   :  { %10483 = vmatprep.subr.bf16.mxu0 %v13017_v48  ;;  %v12803_v48 = vcombine.high %v208_v29, %v212_v13  ;;  %v13072_v29 = vcombine.low %v479_v2, %v483_v36 }
 0x383   :  { %10894 = vmatpush1.bf16.msra.mxu1 %v12762_v45  ;;  %v1581_v45 = vld [vmem:[%s20248_s2] sm:$0xff] }
 0x384   :  { %10904 = vmatprep.subr.bf16.mxu1 %v12771_v47  ;;  %v471_v47 = vld [vmem:[%s20246_s1 + $0xd50] sm:$0xff]  ;;  %v1586_v60 = vrot.slane %v1581_v45, %v1585_v41 }
 0x385   :  { %10484 = vmatpush1.bf16.msra.mxu0 %v13016_v46  ;;  %v1589_v46 = vsub.s32 1, %v17822_v27 }
 0x386   :  { %10494 = vmatprep.subr.bf16.mxu0 %v13025_v49  ;;  %10896 = vmatmul.mubr.bf16.vlgmr.msra.gmra.mrb[8].mxu1 %v15100_v16  ;;  %v200_v16 = vld [vmem:[%s20246_s1 + $0x4d8] sm:$0xff]  ;;  %v475_v49 = vld [vmem:[%s20246_s1 + $0xd70] sm:$0xff] }
 0x387   :  { %10905 = vmatpush1.bf16.msra.mxu1 %v12770_v12  ;;  %10936 = vmatprep.mubr.bf16.mxu1 %v14980_v61  ;;  %v12795_v20 = vcombine.high %v200_v16, %v204_v11  ;;  %v463_v61 = vld [vmem:[%s20246_s1 + $0xd10] sm:$0xff]  ;;  %v12794_v37 = vcombine.low %v200_v16, %v204_v11  ;;  %v13065_v12 = vcombine.high %v471_v47, %v475_v49 }
 0x388   :  { %10486 = vmatmul.mubr.bf16.vlgmr.msra.gmra.mrb[4].mxu0 %v15324_v34  ;;  %10906 = vmatprep.subr.bf16.mxu1 %v12779_v0  ;;  %v13057_v42 = vcombine.high %v463_v61, %v467_v35  ;;  %v13056_v56 = vcombine.low %v463_v61, %v467_v35  ;;  %v228_v0 = vld [vmem:[%s20246_s1 + $0x5b8] sm:$0xff]  ;;  %v13064_v5 = vcombine.low %v471_v47, %v475_v49 }
 0x389   :  { %10495 = vmatpush1.bf16.msra.mxu0 %v13024_v63  ;;  %10526 = vmatprep.mubr.bf16.mxu0 %v15334_v40  ;;  %v224_v63 = vld [vmem:[%s20246_s1 + $0x598] sm:$0xff] }
 0x38a   :  { %10496 = vmatprep.subr.bf16.mxu0 %v13033_v1  ;;  %v1590_v1 = vrot.slane %v1581_v45, %v1589_v46  ;;  %v240_v35 = vld [vmem:[%s20246_s1 + $0x618] sm:$0xff] }
 0x38b   :  { %10907 = vmatpush1.bf16.msra.mxu1 %v12778_v6  ;;  %v12819_v6 = vcombine.high %v224_v63, %v228_v0  ;;  %v248_v47 = vld [vmem:[%s20246_s1 + $0x658] sm:$0xff] }
 0x38c   :  { %10908 = vmatprep.subr.bf16.mxu1 %v12787_v9  ;;  %v13073_v9 = vcombine.high %v479_v2, %v483_v36  ;;  %v9424_v16 = vadd.f32 %v15820_v7, %v1590_v1  ;;  %v252_v49 = vld [vmem:[%s20246_s1 + $0x678] sm:$0xff]  ;;  %v511_v2 = vld [vmem:[%s20246_s1 + $0xe90] sm:$0xff] }
 0x38d   :  { %10497 = vmatpush1.bf16.msra.mxu0 %v13032_v8  ;;  %v9422_v8 = vadd.f32 %v15812_v3, %v1586_v60  ;;  %v491_v3 = vld [vmem:[%s20246_s1 + $0xdf0] sm:$0xff]  ;;  %v260_v1 = vld [vmem:[%s20246_s1 + $0x6b8] sm:$0xff] }
 0x38e   :  { %10498 = vmatprep.subr.bf16.mxu0 %v13041_v10  ;;  %v236_v10 = vld [vmem:[%s20246_s1 + $0x5f8] sm:$0xff]  ;;  %v13081_v61 = vcombine.high %v487_v15, %v491_v3  ;;  %v13080_v43 = vcombine.low %v487_v15, %v491_v3  ;;  %v515_v36 = vld [vmem:[%s20246_s1 + $0xeb0] sm:$0xff] }
 0x38f   :  { %10909 = vmatpush1.bf16.msra.mxu1 %v12786_v23  ;;  %v12827_v7 = vcombine.high %v232_v58, %v236_v10  ;;  %v13104_v15 = vcombine.low %v511_v2, %v515_v36 }
 0x390   :  { %10910 = vmatprep.subr.bf16.mxu1 %v12795_v20 }
 0x391   :  { %10499 = vmatpush1.bf16.msra.mxu0 %v13040_v25  ;;  %v12818_v25 = vcombine.low %v224_v63, %v228_v0  ;;  %v256_v0 = vld [vmem:[%s20246_s1 + $0x698] sm:$0xff] }
 0x392   :  { %10500 = vmatprep.subr.bf16.mxu0 %v13049_v30 }
 0x393   :  { %10911 = vmatpush1.bf16.msra.mxu1 %v12794_v37  ;;  %v244_v37 = vld [vmem:[%s20246_s1 + $0x638] sm:$0xff] }
 0x394   :  { %10912 = vmatprep.subr.bf16.mxu1 %v12803_v48  ;;  %v499_v48 = vld [vmem:[%s20246_s1 + $0xe30] sm:$0xff]  ;;  %v12835_v53 = vcombine.high %v240_v35, %v244_v37 }
 0x395   :  { %10501 = vmatpush1.bf16.msra.mxu0 %v13048_v39  ;;  %v495_v39 = vld [vmem:[%s20246_s1 + $0xe10] sm:$0xff] }
 0x396   :  { %10502 = vmatprep.subr.bf16.mxu0 %v13057_v42  ;;  %v12826_v42 = vcombine.low %v232_v58, %v236_v10  ;;  %v13089_v45 = vcombine.high %v495_v39, %v499_v48  ;;  %v13088_v60 = vcombine.low %v495_v39, %v499_v48  ;;  %v268_v58 = vld [vmem:[%s20246_s1 + $0x6f8] sm:$0xff]  ;;  %v519_v10 = vld [vmem:[%s20246_s1 + $0xed0] sm:$0xff] }
 0x397   :  { %10913 = vmatpush1.bf16.msra.mxu1 %v12802_v55  ;;  %v503_v55 = vld [vmem:[%s20246_s1 + $0xe50] sm:$0xff]  ;;  %v280_v39 = vld [vmem:[%s20246_s1 + $0x758] sm:$0xff] }
 0x398   :  { %10914 = vmatprep.subr.bf16.mxu1 %v12811_v57  ;;  %v12834_v57 = vcombine.low %v240_v35, %v244_v37  ;;  %v284_v48 = vld [vmem:[%s20246_s1 + $0x778] sm:$0xff] }
 0x399   :  { %10503 = vmatpush1.bf16.msra.mxu0 %v13056_v56  ;;  %v507_v56 = vld [vmem:[%s20246_s1 + $0xe70] sm:$0xff] }
 0x39a   :  { %10504 = vmatprep.subr.bf16.mxu0 %v13065_v12  ;;  %v12843_v12 = vcombine.high %v248_v47, %v252_v49  ;;  %v13097_v63 = vcombine.high %v503_v55, %v507_v56 }
 0x39b   :  { %v9872_v11 = vpop.f32.mrb[0].mxu0  ;;  %10915 = vmatpush1.bf16.msra.mxu1 %v12810_v4  ;;  %v12842_v4 = vcombine.low %v248_v47, %v252_v49  ;;  %v12875_v47 = vcombine.high %v280_v39, %v284_v48 }
 0x39c   :  { %v17883_v18 = vadd.f32 %v9872_v11, %v9422_v8  ;;  %v9874_v23 = vpop.f32.mrb[1].mxu0  ;;  %10916 = vmatprep.subr.bf16.mxu1 %v12819_v6  ;;  %v12851_v6 = vcombine.high %v256_v0, %v260_v1  ;;  %v13105_v8 = vcombine.high %v511_v2, %v515_v36  ;;  %v12850_v11 = vcombine.low %v256_v0, %v260_v1  ;;  %v296_v2 = vld [vmem:[%s20246_s1 + $0x7d8] sm:$0xff] }
 0x39d   :  { %v17885_v20 = vadd.f32 %v9874_v23, %v9424_v16  ;;  %v9876_v30 = vpop.f32.mrb[2].mxu0  ;;  %10505 = vmatpush1.bf16.msra.mxu0 %v13064_v5  ;;  %v13096_v5 = vcombine.low %v503_v55, %v507_v56  ;;  %v523_v16 = vld [vmem:[%s20246_s1 + $0xef0] sm:$0xff]  ;;  %v288_v55 = vld [vmem:[%s20246_s1 + $0x798] sm:$0xff] }
 0x39e   :  { %v9877_v13 = vpop.f32.mrb[3].mxu0  ;;  %10506 = vmatprep.subr.bf16.mxu0 %v13073_v9  ;;  %v264_v9 = vld [vmem:[%s20246_s1 + $0x6d8] sm:$0xff]  ;;  %v13113_v23 = vcombine.high %v519_v10, %v523_v16 }
 0x39f   :  { %10917 = vmatpush1.bf16.msra.mxu1 %v12818_v25  ;;  %v12859_v3 = vcombine.high %v264_v9, %v268_v58  ;;  %v272_v25 = vld [vmem:[%s20246_s1 + $0x718] sm:$0xff]  ;;  %v12858_v13 = vcombine.low %v264_v9, %v268_v58 }
 0x3a0   :  { %10918 = vmatprep.subr.bf16.mxu1 %v12827_v7  ;;  %v276_v30 = vld [vmem:[%s20246_s1 + $0x738] sm:$0xff]  ;;  %v531_v7 = vld [vmem:[%s20246_s1 + $0xf30] sm:$0xff] }
 0x3a1   :  { %10507 = vmatpush1.bf16.msra.mxu0 %v13072_v29  ;;  %v527_v29 = vld [vmem:[%s20246_s1 + $0xf10] sm:$0xff]  ;;  %v12867_v35 = vcombine.high %v272_v25, %v276_v30  ;;  %v292_v56 = vld [vmem:[%s20246_s1 + $0x7b8] sm:$0xff] }
 0x3a2   :  { %10508 = vmatprep.subr.bf16.mxu0 %v13081_v61  ;;  %v13112_v61 = vcombine.low %v519_v10, %v523_v16  ;;  %v13121_v37 = vcombine.high %v527_v29, %v531_v7  ;;  %v12883_v0 = vcombine.high %v288_v55, %v292_v56  ;;  %v300_v36 = vld [vmem:[%s20246_s1 + $0x7f8] sm:$0xff] }
 0x3a3   :  { %10919 = vmatpush1.bf16.msra.mxu1 %v12826_v42  ;;  %v535_v42 = vld [vmem:[%s20246_s1 + $0xf50] sm:$0xff]  ;;  %v12891_v9 = vcombine.high %v296_v2, %v300_v36  ;;  %v304_v10 = vld [vmem:[%s20246_s1 + $0x818] sm:$0xff] }
 0x3a4   :  { %10920 = vmatprep.subr.bf16.mxu1 %v12835_v53  ;;  %v12866_v53 = vcombine.low %v272_v25, %v276_v30  ;;  %v308_v16 = vld [vmem:[%s20246_s1 + $0x838] sm:$0xff] }
 0x3a5   :  { %10509 = vmatpush1.bf16.msra.mxu0 %v13080_v43  ;;  %v539_v43 = vld [vmem:[%s20246_s1 + $0xf70] sm:$0xff]  ;;  %v12899_v25 = vcombine.high %v304_v10, %v308_v16 }
 0x3a6   :  { %10510 = vmatprep.subr.bf16.mxu0 %v13089_v45  ;;  %v13120_v45 = vcombine.low %v527_v29, %v531_v7  ;;  %v13129_v49 = vcombine.high %v535_v42, %v539_v43  ;;  %v312_v29 = vld [vmem:[%s20246_s1 + $0x858] sm:$0xff] }
 0x3a7   :  { %10921 = vmatpush1.bf16.msra.mxu1 %v12834_v57  ;;  %v543_v57 = vld [vmem:[%s20246_s1 + $0xf90] sm:$0xff]  ;;  %v316_v7 = vld [vmem:[%s20246_s1 + $0x878] sm:$0xff] }
 0x3a8   :  { %10922 = vmatprep.subr.bf16.mxu1 %v12843_v12  ;;  %v12874_v12 = vcombine.low %v280_v39, %v284_v48  ;;  %v12907_v39 = vcombine.high %v312_v29, %v316_v7 }
 0x3a9   :  { %10511 = vmatpush1.bf16.msra.mxu0 %v13088_v60  ;;  %v547_v60 = vld [vmem:[%s20246_s1 + $0xfb0] sm:$0xff] }
 0x3aa   :  { %10512 = vmatprep.subr.bf16.mxu0 %v13097_v63  ;;  %v13128_v63 = vcombine.low %v535_v42, %v539_v43  ;;  %v13137_v1 = vcombine.high %v543_v57, %v547_v60  ;;  %v320_v42 = vld [vmem:[%s20246_s1 + $0x898] sm:$0xff] }
 0x3ab   :  { %10923 = vmatpush1.bf16.msra.mxu1 %v12842_v4  ;;  %v551_v4 = vld [vmem:[%s20246_s1 + $0xfd0] sm:$0xff]  ;;  %v324_v43 = vld [vmem:[%s20246_s1 + $0x8b8] sm:$0xff] }
 0x3ac   :  { %10924 = vmatprep.subr.bf16.mxu1 %v12851_v6  ;;  %v12882_v6 = vcombine.low %v288_v55, %v292_v56  ;;  %v12915_v55 = vcombine.high %v320_v42, %v324_v43 }
 0x3ad   :  { %10513 = vmatpush1.bf16.msra.mxu0 %v13096_v5  ;;  %v555_v5 = vld [vmem:[%s20246_s1 + $0xff0] sm:$0xff] }
 0x3ae   :  { %10514 = vmatprep.subr.bf16.mxu0 %v13105_v8  ;;  %v13136_v8 = vcombine.low %v543_v57, %v547_v60  ;;  %v13145_v58 = vcombine.high %v551_v4, %v555_v5  ;;  %v332_v57 = vld [vmem:[%s20246_s1 + $0x8f8] sm:$0xff]  ;;  %v583_v60 = vld [vmem:[%s20246_s1 + $0x10d0] sm:$0xff] }
 0x3af   :  { %10925 = vmatpush1.bf16.msra.mxu1 %v12850_v11  ;;  %v559_v11 = vld [vmem:[%s20246_s1 + $0x1010] sm:$0xff] }
 0x3b0   :  { %10926 = vmatprep.subr.bf16.mxu1 %v12859_v3  ;;  %v12890_v3 = vcombine.low %v296_v2, %v300_v36  ;;  %v336_v36 = vld [vmem:[%s20246_s1 + $0x918] sm:$0xff] }
 0x3b1   :  { %10515 = vmatpush1.bf16.msra.mxu0 %v13104_v15  ;;  %v563_v15 = vld [vmem:[%s20246_s1 + $0x1030] sm:$0xff] }
 0x3b2   :  { %10516 = vmatprep.subr.bf16.mxu0 %v13113_v23  ;;  %v13144_v23 = vcombine.low %v551_v4, %v555_v5  ;;  %v13153_v30 = vcombine.high %v559_v11, %v563_v15  ;;  %v340_v4 = vld [vmem:[%s20246_s1 + $0x938] sm:$0xff]  ;;  %v595_v5 = vld [vmem:[%s20246_s1 + $0x1130] sm:$0xff] }
 0x3b3   :  { %10927 = vmatpush1.bf16.msra.mxu1 %v12858_v13  ;;  %v567_v13 = vld [vmem:[%s20246_s1 + $0x1050] sm:$0xff] }
 0x3b4   :  { %10928 = vmatprep.subr.bf16.mxu1 %v12867_v35  ;;  %v12898_v35 = vcombine.low %v304_v10, %v308_v16  ;;  %v344_v10 = vld [vmem:[%s20246_s1 + $0x958] sm:$0xff] }
 0x3b5   :  { %10517 = vmatpush1.bf16.msra.mxu0 %v13112_v61  ;;  %v571_v61 = vld [vmem:[%s20246_s1 + $0x1070] sm:$0xff]  ;;  %v348_v16 = vld [vmem:[%s20246_s1 + $0x978] sm:$0xff] }
 0x3b6   :  { %10518 = vmatprep.subr.bf16.mxu0 %v13121_v37  ;;  %v13152_v37 = vcombine.low %v559_v11, %v563_v15  ;;  %v13161_v48 = vcombine.high %v567_v13, %v571_v61  ;;  %v599_v11 = vld [vmem:[%s20246_s1 + $0x1150] sm:$0xff] }
 0x3b7   :  { %10929 = vmatpush1.bf16.msra.mxu1 %v12866_v53  ;;  %v575_v53 = vld [vmem:[%s20246_s1 + $0x1090] sm:$0xff] }
 0x3b8   :  { %10930 = vmatprep.subr.bf16.mxu1 %v12875_v47  ;;  %v12906_v47 = vcombine.low %v312_v29, %v316_v7  ;;  %v603_v15 = vld [vmem:[%s20246_s1 + $0x1170] sm:$0xff]  ;;  %v352_v29 = vld [vmem:[%s20246_s1 + $0x998] sm:$0xff] }
 0x3b9   :  { %10519 = vmatpush1.bf16.msra.mxu0 %v13120_v45  ;;  %v579_v45 = vld [vmem:[%s20246_s1 + $0x10b0] sm:$0xff]  ;;  %v356_v7 = vld [vmem:[%s20246_s1 + $0x9b8] sm:$0xff] }
 0x3ba   :  { %10520 = vmatprep.subr.bf16.mxu0 %v13129_v49  ;;  %v13160_v49 = vcombine.low %v567_v13, %v571_v61  ;;  %v13169_v56 = vcombine.high %v575_v53, %v579_v45  ;;  %v607_v13 = vld [vmem:[%s20246_s1 + $0x1190] sm:$0xff] }
 0x3bb   :  { %10931 = vmatpush1.bf16.msra.mxu1 %v12874_v12  ;;  %v587_v12 = vld [vmem:[%s20246_s1 + $0x10f0] sm:$0xff] }
 0x3bc   :  { %10932 = vmatprep.subr.bf16.mxu1 %v12883_v0  ;;  %v13168_v0 = vcombine.low %v575_v53, %v579_v45  ;;  %v13177_v2 = vcombine.high %v583_v60, %v587_v12  ;;  %v611_v61 = vld [vmem:[%s20246_s1 + $0x11b0] sm:$0xff] }
 0x3bd   :  { %10521 = vmatpush1.bf16.msra.mxu0 %v13128_v63  ;;  %v12914_v63 = vcombine.low %v320_v42, %v324_v43  ;;  %v360_v42 = vld [vmem:[%s20246_s1 + $0x9d8] sm:$0xff]  ;;  %v615_v53 = vld [vmem:[%s20246_s1 + $0x11d0] sm:$0xff] }
 0x3be   :  { %10522 = vmatprep.subr.bf16.mxu0 %v13137_v1  ;;  %v364_v43 = vld [vmem:[%s20246_s1 + $0x9f8] sm:$0xff]  ;;  %v619_v45 = vld [vmem:[%s20246_s1 + $0x11f0] sm:$0xff] }
 0x3bf   :  { %10933 = vmatpush1.bf16.msra.mxu1 %v12882_v6 }
 0x3c0   :  { %10934 = vmatprep.subr.bf16.mxu1 %v12891_v9  ;;  %v12931_v9 = vcombine.high %v336_v36, %v340_v4 }
 0x3c1   :  { %10523 = vmatpush1.bf16.msra.mxu0 %v13136_v8  ;;  %v13176_v8 = vcombine.low %v583_v60, %v587_v12  ;;  %v623_v60 = vld [vmem:[%s20246_s1 + $0x1210] sm:$0xff] }
 0x3c2   :  { %10524 = vmatprep.subr.bf16.mxu0 %v13145_v58  ;;  %v627_v12 = vld [vmem:[%s20246_s1 + $0x1230] sm:$0xff] }
 0x3c3   :  { %10935 = vmatpush1.bf16.msra.mxu1 %v12890_v3  ;;  %v12930_v3 = vcombine.low %v336_v36, %v340_v4  ;;  %v376_v36 = vld [vmem:[%s20246_s1 + $0xa58] sm:$0xff] }
 0x3c4   :  { %10945 = vmatprep.subr.bf16.mxu1 %v12899_v25  ;;  %v12939_v25 = vcombine.high %v344_v10, %v348_v16  ;;  %v380_v4 = vld [vmem:[%s20246_s1 + $0xa78] sm:$0xff] }
 0x3c5   :  { %10525 = vmatpush1.bf16.msra.mxu0 %v13144_v23 }
 0x3c6   :  { %10535 = vmatprep.subr.bf16.mxu0 %v13153_v30  ;;  %10937 = vmatmul.mubr.bf16.vlgmr.msra.gmra.mrb[8].mxu1 %v15115_v21  ;;  %v328_v21 = vld [vmem:[%s20246_s1 + $0x8d8] sm:$0xff]  ;;  %v13193_v30 = vcombine.high %v599_v11, %v603_v15 }
 0x3c7   :  { %10946 = vmatpush1.bf16.msra.mxu1 %v12898_v35  ;;  %10977 = vmatprep.mubr.bf16.mxu1 %v15125_v26  ;;  %v12923_v1 = vcombine.high %v328_v21, %v332_v57  ;;  %v591_v26 = vld [vmem:[%s20246_s1 + $0x1110] sm:$0xff]  ;;  %v12922_v6 = vcombine.low %v328_v21, %v332_v57  ;;  %v12938_v35 = vcombine.low %v344_v10, %v348_v16  ;;  %v368_v21 = vld [vmem:[%s20246_s1 + $0xa18] sm:$0xff] }
 0x3c8   :  { %10527 = vmatmul.mubr.bf16.vlgmr.msra.gmra.mrb[4].mxu0 %v15533_v52  ;;  %10947 = vmatprep.subr.bf16.mxu1 %v12907_v39  ;;  %v13185_v58 = vcombine.high %v591_v26, %v595_v5  ;;  %v13184_v23 = vcombine.low %v591_v26, %v595_v5  ;;  %v12947_v39 = vcombine.high %v352_v29, %v356_v7  ;;  %v372_v57 = vld [vmem:[%s20246_s1 + $0xa38] sm:$0xff]  ;;  %v631_v26 = vld [vmem:[%s20246_s1 + $0x1250] sm:$0xff] }
 0x3c9   :  { %10536 = vmatpush1.bf16.msra.mxu0 %v13152_v37  ;;  %10567 = vmatprep.mubr.bf16.mxu0 %v15543_v62  ;;  %v13192_v37 = vcombine.low %v599_v11, %v603_v15  ;;  %v635_v5 = vld [vmem:[%s20246_s1 + $0x1270] sm:$0xff]  ;;  %v384_v10 = vld [vmem:[%s20246_s1 + $0xa98] sm:$0xff] }
 0x3ca   :  { %10537 = vmatprep.subr.bf16.mxu0 %v13161_v48  ;;  %v13201_v48 = vcombine.high %v607_v13, %v611_v61  ;;  %v388_v16 = vld [vmem:[%s20246_s1 + $0xab8] sm:$0xff]  ;;  %v639_v11 = vld [vmem:[%s20246_s1 + $0x1290] sm:$0xff] }
 0x3cb   :  { %10948 = vmatpush1.bf16.msra.mxu1 %v12906_v47  ;;  %v12946_v47 = vcombine.low %v352_v29, %v356_v7  ;;  %v643_v15 = vld [vmem:[%s20246_s1 + $0x12b0] sm:$0xff]  ;;  %v392_v29 = vld [vmem:[%s20246_s1 + $0xad8] sm:$0xff] }
 0x3cc   :  { %10949 = vmatprep.subr.bf16.mxu1 %v12915_v55  ;;  %v12955_v55 = vcombine.high %v360_v42, %v364_v43  ;;  %v396_v7 = vld [vmem:[%s20246_s1 + $0xaf8] sm:$0xff] }
 0x3cd   :  { %10538 = vmatpush1.bf16.msra.mxu0 %v13160_v49  ;;  %v13200_v49 = vcombine.low %v607_v13, %v611_v61  ;;  %v647_v13 = vld [vmem:[%s20246_s1 + $0x12d0] sm:$0xff] }
 0x3ce   :  { %10539 = vmatprep.subr.bf16.mxu0 %v13169_v56  ;;  %v13209_v56 = vcombine.high %v615_v53, %v619_v45  ;;  %v651_v61 = vld [vmem:[%s20246_s1 + $0x12f0] sm:$0xff] }
 0x3cf   :  { %10950 = vmatpush1.bf16.msra.mxu1 %v12914_v63  ;;  %v12954_v63 = vcombine.low %v360_v42, %v364_v43  ;;  %v400_v42 = vld [vmem:[%s20246_s1 + $0xb18] sm:$0xff] }
 0x3d0   :  { %10951 = vmatprep.subr.bf16.mxu1 %v12923_v1  ;;  %v12963_v1 = vcombine.high %v368_v21, %v372_v57  ;;  %v404_v43 = vld [vmem:[%s20246_s1 + $0xb38] sm:$0xff] }
 0x3d1   :  { %10540 = vmatpush1.bf16.msra.mxu0 %v13168_v0  ;;  %v13208_v0 = vcombine.low %v615_v53, %v619_v45  ;;  %v655_v53 = vld [vmem:[%s20246_s1 + $0x1310] sm:$0xff] }
 0x3d2   :  { %10541 = vmatprep.subr.bf16.mxu0 %v13177_v2  ;;  %v13217_v2 = vcombine.high %v623_v60, %v627_v12  ;;  %v659_v45 = vld [vmem:[%s20246_s1 + $0x1330] sm:$0xff] }
 0x3d3   :  { %10952 = vmatpush1.bf16.msra.mxu1 %v12922_v6  ;;  %v12962_v6 = vcombine.low %v368_v21, %v372_v57  ;;  %v408_v21 = vld [vmem:[%s20246_s1 + $0xb58] sm:$0xff] }
 0x3d4   :  { %10953 = vmatprep.subr.bf16.mxu1 %v12931_v9  ;;  %v12971_v9 = vcombine.high %v376_v36, %v380_v4  ;;  %v412_v57 = vld [vmem:[%s20246_s1 + $0xb78] sm:$0xff] }
 0x3d5   :  { %10542 = vmatpush1.bf16.msra.mxu0 %v13176_v8  ;;  %v13216_v8 = vcombine.low %v623_v60, %v627_v12  ;;  %v663_v60 = vld [vmem:[%s20246_s1 + $0x1350] sm:$0xff] }
 0x3d6   :  { %10543 = vmatprep.subr.bf16.mxu0 %v13185_v58  ;;  %v13225_v58 = vcombine.high %v631_v26, %v635_v5  ;;  %v667_v12 = vld [vmem:[%s20246_s1 + $0x1370] sm:$0xff] }
 0x3d7   :  { %10954 = vmatpush1.bf16.msra.mxu1 %v12930_v3  ;;  %v12970_v3 = vcombine.low %v376_v36, %v380_v4  ;;  %v416_v36 = vld [vmem:[%s20246_s1 + $0xb98] sm:$0xff] }
 0x3d8   :  { %10955 = vmatprep.subr.bf16.mxu1 %v12939_v25  ;;  %v12979_v25 = vcombine.high %v384_v10, %v388_v16  ;;  %v420_v4 = vld [vmem:[%s20246_s1 + $0xbb8] sm:$0xff] }
 0x3d9   :  { %10544 = vmatpush1.bf16.msra.mxu0 %v13184_v23  ;;  %v13224_v23 = vcombine.low %v631_v26, %v635_v5  ;;  %v671_v26 = vld [vmem:[%s20246_s1 + $0x1390] sm:$0xff] }
 0x3da   :  { %10545 = vmatprep.subr.bf16.mxu0 %v13193_v30  ;;  %v13233_v30 = vcombine.high %v639_v11, %v643_v15  ;;  %v675_v5 = vld [vmem:[%s20246_s1 + $0x13b0] sm:$0xff] }
 0x3db   :  { %10956 = vmatpush1.bf16.msra.mxu1 %v12938_v35  ;;  %v12978_v35 = vcombine.low %v384_v10, %v388_v16  ;;  %v424_v10 = vld [vmem:[%s20246_s1 + $0xbd8] sm:$0xff] }
 0x3dc   :  { %10957 = vmatprep.subr.bf16.mxu1 %v12947_v39  ;;  %v12987_v39 = vcombine.high %v392_v29, %v396_v7  ;;  %v428_v16 = vld [vmem:[%s20246_s1 + $0xbf8] sm:$0xff] }
 0x3dd   :  { %10546 = vmatpush1.bf16.msra.mxu0 %v13192_v37  ;;  %v13232_v37 = vcombine.low %v639_v11, %v643_v15  ;;  %v679_v11 = vld [vmem:[%s20246_s1 + $0x13d0] sm:$0xff] }
 0x3de   :  { %10547 = vmatprep.subr.bf16.mxu0 %v13201_v48  ;;  %v13241_v48 = vcombine.high %v647_v13, %v651_v61  ;;  %v683_v15 = vld [vmem:[%s20246_s1 + $0x13f0] sm:$0xff] }
 0x3df   :  { %10958 = vmatpush1.bf16.msra.mxu1 %v12946_v47  ;;  %v12986_v47 = vcombine.low %v392_v29, %v396_v7  ;;  %v432_v29 = vld [vmem:[%s20246_s1 + $0xc18] sm:$0xff] }
 0x3e0   :  { %10959 = vmatprep.subr.bf16.mxu1 %v12955_v55  ;;  %v12995_v55 = vcombine.high %v400_v42, %v404_v43  ;;  %v436_v7 = vld [vmem:[%s20246_s1 + $0xc38] sm:$0xff] }
 0x3e1   :  { %10548 = vmatpush1.bf16.msra.mxu0 %v13200_v49  ;;  %v13240_v49 = vcombine.low %v647_v13, %v651_v61  ;;  %v687_v13 = vld [vmem:[%s20246_s1 + $0x1410] sm:$0xff] }
 0x3e2   :  { %10549 = vmatprep.subr.bf16.mxu0 %v13209_v56  ;;  %v13249_v56 = vcombine.high %v655_v53, %v659_v45  ;;  %v691_v61 = vld [vmem:[%s20246_s1 + $0x1430] sm:$0xff] }
 0x3e3   :  { %10960 = vmatpush1.bf16.msra.mxu1 %v12954_v63  ;;  %v12994_v63 = vcombine.low %v400_v42, %v404_v43  ;;  %v440_v42 = vld [vmem:[%s20246_s1 + $0xc58] sm:$0xff] }
 0x3e4   :  { %10961 = vmatprep.subr.bf16.mxu1 %v12963_v1  ;;  %v13003_v1 = vcombine.high %v408_v21, %v412_v57  ;;  %v444_v43 = vld [vmem:[%s20246_s1 + $0xc78] sm:$0xff] }
 0x3e5   :  { %10550 = vmatpush1.bf16.msra.mxu0 %v13208_v0  ;;  %v13248_v0 = vcombine.low %v655_v53, %v659_v45  ;;  %v695_v53 = vld [vmem:[%s20246_s1 + $0x1450] sm:$0xff] }
 0x3e6   :  { %10551 = vmatprep.subr.bf16.mxu0 %v13217_v2  ;;  %v13257_v2 = vcombine.high %v663_v60, %v667_v12  ;;  %v699_v45 = vld [vmem:[%s20246_s1 + $0x1470] sm:$0xff] }
 0x3e7   :  { %10962 = vmatpush1.bf16.msra.mxu1 %v12962_v6  ;;  %v13002_v6 = vcombine.low %v408_v21, %v412_v57  ;;  %v448_v21 = vld [vmem:[%s20246_s1 + $0xc98] sm:$0xff] }
 0x3e8   :  { %10963 = vmatprep.subr.bf16.mxu1 %v12971_v9  ;;  %v13011_v9 = vcombine.high %v416_v36, %v420_v4  ;;  %v452_v57 = vld [vmem:[%s20246_s1 + $0xcb8] sm:$0xff] }
 0x3e9   :  { %10552 = vmatpush1.bf16.msra.mxu0 %v13216_v8  ;;  %v13256_v8 = vcombine.low %v663_v60, %v667_v12  ;;  %v703_v60 = vld [vmem:[%s20246_s1 + $0x1490] sm:$0xff] }
 0x3ea   :  { %10553 = vmatprep.subr.bf16.mxu0 %v13225_v58  ;;  %v13265_v58 = vcombine.high %v671_v26, %v675_v5  ;;  %v707_v12 = vld [vmem:[%s20246_s1 + $0x14b0] sm:$0xff] }
 0x3eb   :  { %10964 = vmatpush1.bf16.msra.mxu1 %v12970_v3  ;;  %v13010_v3 = vcombine.low %v416_v36, %v420_v4  ;;  %v460_v36 = vld [vmem:[%s20246_s1 + $0xcf8] sm:$0xff]  ;;  %v711_v4 = vld [vmem:[%s20246_s1 + $0x14d0] sm:$0xff] }
 0x3ec   :  { %10965 = vmatprep.subr.bf16.mxu1 %v12979_v25  ;;  %v13019_v25 = vcombine.high %v424_v10, %v428_v16 }
 0x3ed   :  { %10554 = vmatpush1.bf16.msra.mxu0 %v13224_v23  ;;  %v13264_v23 = vcombine.low %v671_v26, %v675_v5  ;;  %v715_v26 = vld [vmem:[%s20246_s1 + $0x14f0] sm:$0xff]  ;;  %v13042_v5 = vcombine.low %v448_v21, %v452_v57 }
 0x3ee   :  { %10555 = vmatprep.subr.bf16.mxu0 %v13233_v30  ;;  %v13273_v30 = vcombine.high %v679_v11, %v683_v15 }
 0x3ef   :  { %10966 = vmatpush1.bf16.msra.mxu1 %v12978_v35  ;;  %v13018_v35 = vcombine.low %v424_v10, %v428_v16  ;;  %v468_v10 = vld [vmem:[%s20246_s1 + $0xd38] sm:$0xff]  ;;  %v723_v16 = vld [vmem:[%s20246_s1 + $0x1530] sm:$0xff] }
 0x3f0   :  { %10967 = vmatprep.subr.bf16.mxu1 %v12987_v39  ;;  %v13027_v39 = vcombine.high %v432_v29, %v436_v7 }
 0x3f1   :  { %10556 = vmatpush1.bf16.msra.mxu0 %v13232_v37  ;;  %v13272_v37 = vcombine.low %v679_v11, %v683_v15  ;;  %v13304_v15 = vcombine.low %v711_v4, %v715_v26 }
 0x3f2   :  { %10557 = vmatprep.subr.bf16.mxu0 %v13241_v48  ;;  %v13281_v48 = vcombine.high %v687_v13, %v691_v61 }
 0x3f3   :  { %10968 = vmatpush1.bf16.msra.mxu1 %v12986_v47  ;;  %v13026_v47 = vcombine.low %v432_v29, %v436_v7  ;;  %v727_v29 = vld [vmem:[%s20246_s1 + $0x1550] sm:$0xff] }
 0x3f4   :  { %10969 = vmatprep.subr.bf16.mxu1 %v12995_v55  ;;  %v13035_v55 = vcombine.high %v440_v42, %v444_v43  ;;  %v731_v7 = vld [vmem:[%s20246_s1 + $0x1570] sm:$0xff] }
 0x3f5   :  { %10558 = vmatpush1.bf16.msra.mxu0 %v13240_v49  ;;  %v13280_v49 = vcombine.low %v687_v13, %v691_v61 }
 0x3f6   :  { %10559 = vmatprep.subr.bf16.mxu0 %v13249_v56  ;;  %v13289_v56 = vcombine.high %v695_v53, %v699_v45 }
 0x3f7   :  { %10970 = vmatpush1.bf16.msra.mxu1 %v12994_v63  ;;  %v13034_v63 = vcombine.low %v440_v42, %v444_v43  ;;  %v735_v42 = vld [vmem:[%s20246_s1 + $0x1590] sm:$0xff] }
 0x3f8   :  { %10971 = vmatprep.subr.bf16.mxu1 %v13003_v1  ;;  %v13043_v1 = vcombine.high %v448_v21, %v452_v57  ;;  %v739_v43 = vld [vmem:[%s20246_s1 + $0x15b0] sm:$0xff]  ;;  %v492_v21 = vld [vmem:[%s20246_s1 + $0xdf8] sm:$0xff] }
 0x3f9   :  { %10560 = vmatpush1.bf16.msra.mxu0 %v13248_v0  ;;  %v13288_v0 = vcombine.low %v695_v53, %v699_v45  ;;  %v13320_v45 = vcombine.low %v727_v29, %v731_v7 }
 0x3fa   :  { %10561 = vmatprep.subr.bf16.mxu0 %v13257_v2  ;;  %v13297_v2 = vcombine.high %v703_v60, %v707_v12 }
 0x3fb   :  { %10972 = vmatpush1.bf16.msra.mxu1 %v13002_v6  ;;  %v13296_v6 = vcombine.low %v703_v60, %v707_v12  ;;  %v743_v60 = vld [vmem:[%s20246_s1 + $0x15d0] sm:$0xff] }
 0x3fc   :  { %10973 = vmatprep.subr.bf16.mxu1 %v13011_v9  ;;  %v13305_v9 = vcombine.high %v711_v4, %v715_v26  ;;  %v747_v12 = vld [vmem:[%s20246_s1 + $0x15f0] sm:$0xff]  ;;  %v496_v4 = vld [vmem:[%s20246_s1 + $0xe18] sm:$0xff] }
 0x3fd   :  { %10562 = vmatpush1.bf16.msra.mxu0 %v13256_v8  ;;  %v500_v26 = vld [vmem:[%s20246_s1 + $0xe38] sm:$0xff] }
 0x3fe   :  { %10563 = vmatprep.subr.bf16.mxu0 %v13265_v58  ;;  %v464_v58 = vld [vmem:[%s20246_s1 + $0xd18] sm:$0xff] }
 0x3ff   :  { %10974 = vmatpush1.bf16.msra.mxu1 %v13010_v3  ;;  %v13059_v3 = vcombine.high %v464_v58, %v468_v10  ;;  %v13058_v13 = vcombine.low %v464_v58, %v468_v10  ;;  %v13091_v58 = vcombine.high %v496_v4, %v500_v26 }
 0x400   :  { %10975 = vmatprep.subr.bf16.mxu1 %v13019_v25  ;;  %v472_v25 = vld [vmem:[%s20246_s1 + $0xd58] sm:$0xff] }
 0x401   :  { %10564 = vmatpush1.bf16.msra.mxu0 %v13264_v23 }
 0x402   :  { %10565 = vmatprep.subr.bf16.mxu0 %v13273_v30  ;;  %v476_v30 = vld [vmem:[%s20246_s1 + $0xd78] sm:$0xff] }
 0x403   :  { %10976 = vmatpush1.bf16.msra.mxu1 %v13018_v35  ;;  %v13067_v35 = vcombine.high %v472_v25, %v476_v30  ;;  %v13066_v53 = vcombine.low %v472_v25, %v476_v30 }
 0x404   :  { %10986 = vmatprep.subr.bf16.mxu1 %v13027_v39  ;;  %v480_v39 = vld [vmem:[%s20246_s1 + $0xd98] sm:$0xff] }
 0x405   :  { %10566 = vmatpush1.bf16.msra.mxu0 %v13272_v37  ;;  %v13321_v37 = vcombine.high %v727_v29, %v731_v7  ;;  %v512_v29 = vld [vmem:[%s20246_s1 + $0xe98] sm:$0xff] }
 0x406   :  { %10576 = vmatprep.subr.bf16.mxu0 %v13281_v48  ;;  %10978 = vmatmul.mubr.bf16.vlgmr.msra.gmra.mrb[8].mxu1 %v15324_v34  ;;  %v456_v34 = vld [vmem:[%s20246_s1 + $0xcd8] sm:$0xff] }
 0x407   :  { %10987 = vmatpush1.bf16.msra.mxu1 %v13026_v47  ;;  %11018 = vmatprep.mubr.bf16.mxu1 %v15334_v40  ;;  %v13051_v8 = vcombine.high %v456_v34, %v460_v36  ;;  %v719_v40 = vld [vmem:[%s20246_s1 + $0x1510] sm:$0xff]  ;;  %v13050_v11 = vcombine.low %v456_v34, %v460_v36  ;;  %v484_v48 = vld [vmem:[%s20246_s1 + $0xdb8] sm:$0xff]  ;;  %v13337_v36 = vcombine.high %v743_v60, %v747_v12 }
 0x408   :  { %10568 = vmatmul.mubr.bf16.vlgmr.msra.gmra.mrb[4].mxu0 %v15742_v14  ;;  %10988 = vmatprep.subr.bf16.mxu1 %v13035_v55  ;;  %v13313_v23 = vcombine.high %v719_v40, %v723_v16  ;;  %v13312_v61 = vcombine.low %v719_v40, %v723_v16  ;;  %v13075_v47 = vcombine.high %v480_v39, %v484_v48  ;;  %v504_v40 = vld [vmem:[%s20246_s1 + $0xe58] sm:$0xff] }
 0x409   :  { %10577 = vmatpush1.bf16.msra.mxu0 %v13280_v49  ;;  %10608 = vmatprep.mubr.bf16.mxu0 %v15752_v22  ;;  %v13329_v55 = vcombine.high %v735_v42, %v739_v43  ;;  %v508_v16 = vld [vmem:[%s20246_s1 + $0xe78] sm:$0xff] }
 0x40a   :  { %10578 = vmatprep.subr.bf16.mxu0 %v13289_v56  ;;  %v488_v56 = vld [vmem:[%s20246_s1 + $0xdd8] sm:$0xff]  ;;  %v13099_v25 = vcombine.high %v504_v40, %v508_v16 }
 0x40b   :  { %10989 = vmatpush1.bf16.msra.mxu1 %v13034_v63  ;;  %v13083_v34 = vcombine.high %v488_v56, %v492_v21  ;;  %v516_v7 = vld [vmem:[%s20246_s1 + $0xeb8] sm:$0xff] }
 0x40c   :  { %10990 = vmatprep.subr.bf16.mxu1 %v13043_v1 }
 0x40d   :  { %10579 = vmatpush1.bf16.msra.mxu0 %v13288_v0  ;;  %v13074_v0 = vcombine.low %v480_v39, %v484_v48  ;;  %v13107_v39 = vcombine.high %v512_v29, %v516_v7 }
 0x40e   :  { %10580 = vmatprep.subr.bf16.mxu0 %v13297_v2  ;;  %v13328_v2 = vcombine.low %v735_v42, %v739_v43  ;;  %v520_v42 = vld [vmem:[%s20246_s1 + $0xed8] sm:$0xff] }
 0x40f   :  { %10991 = vmatpush1.bf16.msra.mxu1 %v13042_v5  ;;  %v751_v5 = vld [vmem:[%s20246_s1 + $0x1610] sm:$0xff]  ;;  %v524_v43 = vld [vmem:[%s20246_s1 + $0xef8] sm:$0xff] }
 0x410   :  { %10992 = vmatprep.subr.bf16.mxu1 %v13051_v8  ;;  %v13082_v8 = vcombine.low %v488_v56, %v492_v21  ;;  %v13115_v56 = vcombine.high %v520_v42, %v524_v43 }
 0x411   :  { %10581 = vmatpush1.bf16.msra.mxu0 %v13296_v6  ;;  %v755_v6 = vld [vmem:[%s20246_s1 + $0x1630] sm:$0xff] }
 0x412   :  { %10582 = vmatprep.subr.bf16.mxu0 %v13305_v9  ;;  %v13336_v9 = vcombine.low %v743_v60, %v747_v12  ;;  %v13345_v10 = vcombine.high %v751_v5, %v755_v6  ;;  %v528_v60 = vld [vmem:[%s20246_s1 + $0xf18] sm:$0xff] }
 0x413   :  { %10993 = vmatpush1.bf16.msra.mxu1 %v13050_v11  ;;  %v759_v11 = vld [vmem:[%s20246_s1 + $0x1650] sm:$0xff]  ;;  %v532_v12 = vld [vmem:[%s20246_s1 + $0xf38] sm:$0xff] }
 0x414   :  { %10994 = vmatprep.subr.bf16.mxu1 %v13059_v3  ;;  %v13090_v3 = vcombine.low %v496_v4, %v500_v26  ;;  %v536_v4 = vld [vmem:[%s20246_s1 + $0xf58] sm:$0xff] }
 0x415   :  { %10583 = vmatpush1.bf16.msra.mxu0 %v13304_v15  ;;  %v763_v15 = vld [vmem:[%s20246_s1 + $0x1670] sm:$0xff]  ;;  %v540_v26 = vld [vmem:[%s20246_s1 + $0xf78] sm:$0xff] }
 0x416   :  { %10584 = vmatprep.subr.bf16.mxu0 %v13313_v23  ;;  %v13344_v23 = vcombine.low %v751_v5, %v755_v6  ;;  %v13353_v30 = vcombine.high %v759_v11, %v763_v15  ;;  %v791_v5 = vld [vmem:[%s20246_s1 + $0x1750] sm:$0xff] }
 0x417   :  { %10995 = vmatpush1.bf16.msra.mxu1 %v13058_v13  ;;  %v767_v13 = vld [vmem:[%s20246_s1 + $0x1690] sm:$0xff] }
 0x418   :  { %10996 = vmatprep.subr.bf16.mxu1 %v13067_v35  ;;  %v13098_v35 = vcombine.low %v504_v40, %v508_v16  ;;  %v795_v6 = vld [vmem:[%s20246_s1 + $0x1770] sm:$0xff]  ;;  %v544_v40 = vld [vmem:[%s20246_s1 + $0xf98] sm:$0xff] }
 0x419   :  { %10585 = vmatpush1.bf16.msra.mxu0 %v13312_v61  ;;  %v18267_v49 = vpop.f32.mrb[4].mxu1  ;;  %v771_v61 = vld [vmem:[%s20246_s1 + $0x16b0] sm:$0xff]  ;;  %v548_v16 = vld [vmem:[%s20246_s1 + $0xfb8] sm:$0xff] }
 0x41a   :  { %10586 = vmatprep.subr.bf16.mxu0 %v13321_v37  ;;  %v18275_v57 = vpop.f32.mrb[5].mxu1  ;;  %v13352_v37 = vcombine.low %v759_v11, %v763_v15  ;;  %v13361_v48 = vcombine.high %v767_v13, %v771_v61  ;;  %v799_v11 = vld [vmem:[%s20246_s1 + $0x1790] sm:$0xff] }
 0x41b   :  { %v10368_v63 = vpop.f32.mrb[6].mxu1  ;;  %10997 = vmatpush1.bf16.msra.mxu1 %v13066_v53  ;;  %v775_v53 = vld [vmem:[%s20246_s1 + $0x16d0] sm:$0xff] }
 0x41c   :  { %v10369_v1 = vpop.f32.mrb[7].mxu1  ;;  %10998 = vmatprep.subr.bf16.mxu1 %v13075_v47  ;;  %v13106_v47 = vcombine.low %v512_v29, %v516_v7  ;;  %v783_v63 = vld [vmem:[%s20246_s1 + $0x1710] sm:$0xff]  ;;  %v552_v29 = vld [vmem:[%s20246_s1 + $0xfd8] sm:$0xff] }
 0x41d   :  { %10587 = vmatpush1.bf16.msra.mxu0 %v13320_v45  ;;  %v779_v45 = vld [vmem:[%s20246_s1 + $0x16f0] sm:$0xff]  ;;  %v13114_v1 = vcombine.low %v520_v42, %v524_v43  ;;  %v556_v7 = vld [vmem:[%s20246_s1 + $0xff8] sm:$0xff] }
 0x41e   :  { %10588 = vmatprep.subr.bf16.mxu0 %v13329_v55  ;;  %v13360_v55 = vcombine.low %v767_v13, %v771_v61  ;;  %v13369_v21 = vcombine.high %v775_v53, %v779_v45  ;;  %v803_v15 = vld [vmem:[%s20246_s1 + $0x17b0] sm:$0xff]  ;;  %v560_v42 = vld [vmem:[%s20246_s1 + $0x1018] sm:$0xff] }
 0x41f   :  { %10999 = vmatpush1.bf16.msra.mxu1 %v13074_v0  ;;  %v787_v0 = vld [vmem:[%s20246_s1 + $0x1730] sm:$0xff]  ;;  %v564_v43 = vld [vmem:[%s20246_s1 + $0x1038] sm:$0xff] }
 0x420   :  { %11000 = vmatprep.subr.bf16.mxu1 %v13083_v34  ;;  %v13123_v34 = vcombine.high %v528_v60, %v532_v12  ;;  %v807_v13 = vld [vmem:[%s20246_s1 + $0x17d0] sm:$0xff] }
 0x421   :  { %10589 = vmatpush1.bf16.msra.mxu0 %v13328_v2  ;;  %v13368_v2 = vcombine.low %v775_v53, %v779_v45  ;;  %v811_v61 = vld [vmem:[%s20246_s1 + $0x17f0] sm:$0xff] }
 0x422   :  { %10590 = vmatprep.subr.bf16.mxu0 %v13337_v36  ;;  %v13377_v36 = vcombine.high %v783_v63, %v787_v0  ;;  %v815_v53 = vld [vmem:[%s20246_s1 + $0x1810] sm:$0xff] }
 0x423   :  { %11001 = vmatpush1.bf16.msra.mxu1 %v13082_v8  ;;  %v13122_v8 = vcombine.low %v528_v60, %v532_v12  ;;  %v819_v45 = vld [vmem:[%s20246_s1 + $0x1830] sm:$0xff]  ;;  %v568_v60 = vld [vmem:[%s20246_s1 + $0x1058] sm:$0xff] }
 0x424   :  { %11002 = vmatprep.subr.bf16.mxu1 %v13091_v58  ;;  %v13131_v58 = vcombine.high %v536_v4, %v540_v26  ;;  %v572_v12 = vld [vmem:[%s20246_s1 + $0x1078] sm:$0xff] }
 0x425   :  { %10591 = vmatpush1.bf16.msra.mxu0 %v13336_v9  ;;  %v13376_v9 = vcombine.low %v783_v63, %v787_v0  ;;  %v823_v63 = vld [vmem:[%s20246_s1 + $0x1850] sm:$0xff] }
 0x426   :  { %10592 = vmatprep.subr.bf16.mxu0 %v13345_v10  ;;  %v13385_v10 = vcombine.high %v791_v5, %v795_v6  ;;  %v827_v0 = vld [vmem:[%s20246_s1 + $0x1870] sm:$0xff] }
 0x427   :  { %11003 = vmatpush1.bf16.msra.mxu1 %v13090_v3  ;;  %v13130_v3 = vcombine.low %v536_v4, %v540_v26  ;;  %v576_v4 = vld [vmem:[%s20246_s1 + $0x1098] sm:$0xff] }
 0x428   :  { %11004 = vmatprep.subr.bf16.mxu1 %v13099_v25  ;;  %v13139_v25 = vcombine.high %v544_v40, %v548_v16  ;;  %v580_v26 = vld [vmem:[%s20246_s1 + $0x10b8] sm:$0xff] }
 0x429   :  { %10593 = vmatpush1.bf16.msra.mxu0 %v13344_v23  ;;  %v13384_v23 = vcombine.low %v791_v5, %v795_v6  ;;  %v831_v5 = vld [vmem:[%s20246_s1 + $0x1890] sm:$0xff] }
 0x42a   :  { %10594 = vmatprep.subr.bf16.mxu0 %v13353_v30  ;;  %v13393_v30 = vcombine.high %v799_v11, %v803_v15  ;;  %v835_v6 = vld [vmem:[%s20246_s1 + $0x18b0] sm:$0xff] }
 0x42b   :  { %11005 = vmatpush1.bf16.msra.mxu1 %v13098_v35  ;;  %v13138_v35 = vcombine.low %v544_v40, %v548_v16  ;;  %v588_v40 = vld [vmem:[%s20246_s1 + $0x10f8] sm:$0xff]  ;;  %v839_v16 = vld [vmem:[%s20246_s1 + $0x18d0] sm:$0xff] }
 0x42c   :  { %11006 = vmatprep.subr.bf16.mxu1 %v13107_v39  ;;  %v13147_v39 = vcombine.high %v552_v29, %v556_v7 }
 0x42d   :  { %10595 = vmatpush1.bf16.msra.mxu0 %v13352_v37  ;;  %v13392_v37 = vcombine.low %v799_v11, %v803_v15  ;;  %v843_v11 = vld [vmem:[%s20246_s1 + $0x18f0] sm:$0xff]  ;;  %v13170_v15 = vcombine.low %v576_v4, %v580_v26 }
 0x42e   :  { %10596 = vmatprep.subr.bf16.mxu0 %v13361_v48  ;;  %v13401_v48 = vcombine.high %v807_v13, %v811_v61 }
 0x42f   :  { %11007 = vmatpush1.bf16.msra.mxu1 %v13106_v47  ;;  %v13146_v47 = vcombine.low %v552_v29, %v556_v7  ;;  %v596_v29 = vld [vmem:[%s20246_s1 + $0x1138] sm:$0xff]  ;;  %v851_v7 = vld [vmem:[%s20246_s1 + $0x1930] sm:$0xff] }
 0x430   :  { %11008 = vmatprep.subr.bf16.mxu1 %v13115_v56  ;;  %v13155_v56 = vcombine.high %v560_v42, %v564_v43 }
 0x431   :  { %10597 = vmatpush1.bf16.msra.mxu0 %v13360_v55  ;;  %v13400_v55 = vcombine.low %v807_v13, %v811_v61  ;;  %v13432_v61 = vcombine.low %v839_v16, %v843_v11 }
 0x432   :  { %10598 = vmatprep.subr.bf16.mxu0 %v13369_v21  ;;  %v13409_v21 = vcombine.high %v815_v53, %v819_v45 }
 0x433   :  { %11009 = vmatpush1.bf16.msra.mxu1 %v13114_v1  ;;  %v13154_v1 = vcombine.low %v560_v42, %v564_v43  ;;  %v855_v42 = vld [vmem:[%s20246_s1 + $0x1950] sm:$0xff] }
 0x434   :  { %11010 = vmatprep.subr.bf16.mxu1 %v13123_v34  ;;  %v13163_v34 = vcombine.high %v568_v60, %v572_v12  ;;  %v859_v43 = vld [vmem:[%s20246_s1 + $0x1970] sm:$0xff] }
 0x435   :  { %10599 = vmatpush1.bf16.msra.mxu0 %v13368_v2  ;;  %v13408_v2 = vcombine.low %v815_v53, %v819_v45 }
 0x436   :  { %10600 = vmatprep.subr.bf16.mxu0 %v13377_v36  ;;  %v13417_v36 = vcombine.high %v823_v63, %v827_v0 }
 0x437   :  { %11011 = vmatpush1.bf16.msra.mxu1 %v13122_v8  ;;  %v13162_v8 = vcombine.low %v568_v60, %v572_v12  ;;  %v863_v60 = vld [vmem:[%s20246_s1 + $0x1990] sm:$0xff] }
 0x438   :  { %11012 = vmatprep.subr.bf16.mxu1 %v13131_v58  ;;  %v13171_v58 = vcombine.high %v576_v4, %v580_v26  ;;  %v867_v12 = vld [vmem:[%s20246_s1 + $0x19b0] sm:$0xff] }
 0x439   :  { %10601 = vmatpush1.bf16.msra.mxu0 %v13376_v9  ;;  %v13416_v9 = vcombine.low %v823_v63, %v827_v0  ;;  %v13448_v0 = vcombine.low %v855_v42, %v859_v43  ;;  %v871_v4 = vld [vmem:[%s20246_s1 + $0x19d0] sm:$0xff] }
 0x43a   :  { %10602 = vmatprep.subr.bf16.mxu0 %v13385_v10  ;;  %v13425_v10 = vcombine.high %v831_v5, %v835_v6  ;;  %v875_v26 = vld [vmem:[%s20246_s1 + $0x19f0] sm:$0xff] }
 0x43b   :  { %11013 = vmatpush1.bf16.msra.mxu1 %v13130_v3  ;;  %v13424_v3 = vcombine.low %v831_v5, %v835_v6  ;;  %v13456_v6 = vcombine.low %v863_v60, %v867_v12 }
 0x43c   :  { %11014 = vmatprep.subr.bf16.mxu1 %v13139_v25  ;;  %v13433_v25 = vcombine.high %v839_v16, %v843_v11  ;;  %v13464_v11 = vcombine.low %v871_v4, %v875_v26 }
 0x43d   :  { %10603 = vmatpush1.bf16.msra.mxu0 %v13384_v23 }
 0x43e   :  { %10604 = vmatprep.subr.bf16.mxu0 %v13393_v30  ;;  %v592_v30 = vld [vmem:[%s20246_s1 + $0x1118] sm:$0xff] }
 0x43f   :  { %11015 = vmatpush1.bf16.msra.mxu1 %v13138_v35  ;;  %v13187_v35 = vcombine.high %v592_v30, %v596_v29  ;;  %v13186_v53 = vcombine.low %v592_v30, %v596_v29  ;;  %v887_v30 = vld [vmem:[%s20246_s1 + $0x1a50] sm:$0xff] }
 0x440   :  { %11016 = vmatprep.subr.bf16.mxu1 %v13147_v39  ;;  %v600_v39 = vld [vmem:[%s20246_s1 + $0x1158] sm:$0xff]  ;;  %v891_v29 = vld [vmem:[%s20246_s1 + $0x1a70] sm:$0xff] }
 0x441   :  { %10605 = vmatpush1.bf16.msra.mxu0 %v13392_v37 }
 0x442   :  { %10606 = vmatprep.subr.bf16.mxu0 %v13401_v48  ;;  %v604_v48 = vld [vmem:[%s20246_s1 + $0x1178] sm:$0xff] }
 0x443   :  { %11017 = vmatpush1.bf16.msra.mxu1 %v13146_v47  ;;  %v13195_v47 = vcombine.high %v600_v39, %v604_v48  ;;  %v13194_v63 = vcombine.low %v600_v39, %v604_v48  ;;  %v895_v39 = vld [vmem:[%s20246_s1 + $0x1a90] sm:$0xff] }
 0x444   :  { %11027 = vmatprep.subr.bf16.mxu1 %v13155_v56  ;;  %v608_v56 = vld [vmem:[%s20246_s1 + $0x1198] sm:$0xff]  ;;  %v899_v48 = vld [vmem:[%s20246_s1 + $0x1ab0] sm:$0xff] }
 0x445   :  { %10607 = vmatpush1.bf16.msra.mxu0 %v13400_v55  ;;  %v13449_v55 = vcombine.high %v855_v42, %v859_v43  ;;  %v13480_v43 = vcombine.low %v887_v30, %v891_v29 }
 0x446   :  { %10617 = vmatprep.subr.bf16.mxu0 %v13409_v21  ;;  %11019 = vmatmul.mubr.bf16.vlgmr.msra.gmra.mrb[8].mxu1 %v15533_v52  ;;  %v584_v52 = vld [vmem:[%s20246_s1 + $0x10d8] sm:$0xff] }
 0x447   :  { %11028 = vmatpush1.bf16.msra.mxu1 %v13154_v1  ;;  %11059 = vmatprep.mubr.bf16.mxu1 %v15543_v62  ;;  %v13179_v23 = vcombine.high %v584_v52, %v588_v40  ;;  %v847_v62 = vld [vmem:[%s20246_s1 + $0x1910] sm:$0xff]  ;;  %v13178_v13 = vcombine.low %v584_v52, %v588_v40  ;;  %v612_v21 = vld [vmem:[%s20246_s1 + $0x11b8] sm:$0xff] }
 0x448   :  { %10609 = vmatmul.mubr.bf16.vlgmr.msra.gmra.mrb[4].mxu0 %v15955_v51  ;;  %11029 = vmatprep.subr.bf16.mxu1 %v13163_v34  ;;  %v13441_v37 = vcombine.high %v847_v62, %v851_v7  ;;  %v13440_v45 = vcombine.low %v847_v62, %v851_v7  ;;  %v13203_v1 = vcombine.high %v608_v56, %v612_v21  ;;  %v616_v34 = vld [vmem:[%s20246_s1 + $0x11d8] sm:$0xff]  ;;  %v879_v52 = vld [vmem:[%s20246_s1 + $0x1a10] sm:$0xff] }
 0x449   :  { %10618 = vmatpush1.bf16.msra.mxu0 %v13408_v2  ;;  %10649 = vmatprep.mubr.bf16.mxu0 %v15965_v32  ;;  %v13457_v2 = vcombine.high %v863_v60, %v867_v12  ;;  %v13202_v5 = vcombine.low %v608_v56, %v612_v21  ;;  %v883_v40 = vld [vmem:[%s20246_s1 + $0x1a30] sm:$0xff]  ;;  %v13488_v12 = vcombine.low %v895_v39, %v899_v48 }
 0x44a   :  { %10619 = vmatprep.subr.bf16.mxu0 %v13417_v36  ;;  %v620_v36 = vld [vmem:[%s20246_s1 + $0x11f8] sm:$0xff]  ;;  %v13472_v7 = vcombine.low %v879_v52, %v883_v40  ;;  %v903_v56 = vld [vmem:[%s20246_s1 + $0x1ad0] sm:$0xff] }
 0x44b   :  { %11030 = vmatpush1.bf16.msra.mxu1 %v13162_v8  ;;  %v13211_v8 = vcombine.high %v616_v34, %v620_v36  ;;  %v13210_v16 = vcombine.low %v616_v34, %v620_v36  ;;  %v907_v21 = vld [vmem:[%s20246_s1 + $0x1af0] sm:$0xff] }
 0x44c   :  { %11031 = vmatprep.subr.bf16.mxu1 %v13171_v58  ;;  %v624_v58 = vld [vmem:[%s20246_s1 + $0x1218] sm:$0xff]  ;;  %v911_v34 = vld [vmem:[%s20246_s1 + $0x1b10] sm:$0xff] }
 0x44d   :  { %10620 = vmatpush1.bf16.msra.mxu0 %v13416_v9  ;;  %v13465_v9 = vcombine.high %v871_v4, %v875_v26  ;;  %v915_v36 = vld [vmem:[%s20246_s1 + $0x1b30] sm:$0xff]  ;;  %v13496_v26 = vcombine.low %v903_v56, %v907_v21 }
 0x44e   :  { %10621 = vmatprep.subr.bf16.mxu0 %v13425_v10  ;;  %v628_v10 = vld [vmem:[%s20246_s1 + $0x1238] sm:$0xff] }
 0x44f   :  { %11032 = vmatpush1.bf16.msra.mxu1 %v13170_v15  ;;  %v13219_v15 = vcombine.high %v624_v58, %v628_v10  ;;  %v13218_v62 = vcombine.low %v624_v58, %v628_v10  ;;  %v919_v58 = vld [vmem:[%s20246_s1 + $0x1b50] sm:$0xff] }
 0x450   :  { %11033 = vmatprep.subr.bf16.mxu1 %v13179_v23  ;;  %v632_v23 = vld [vmem:[%s20246_s1 + $0x1258] sm:$0xff]  ;;  %v923_v10 = vld [vmem:[%s20246_s1 + $0x1b70] sm:$0xff] }
 0x451   :  { %10622 = vmatpush1.bf16.msra.mxu0 %v13424_v3  ;;  %v13473_v3 = vcombine.high %v879_v52, %v883_v40  ;;  %v13504_v40 = vcombine.low %v911_v34, %v915_v36 }
 0x452   :  { %10623 = vmatprep.subr.bf16.mxu0 %v13433_v25  ;;  %v636_v25 = vld [vmem:[%s20246_s1 + $0x1278] sm:$0xff] }
 0x453   :  { %11034 = vmatpush1.bf16.msra.mxu1 %v13178_v13  ;;  %v13227_v13 = vcombine.high %v632_v23, %v636_v25  ;;  %v13226_v42 = vcombine.low %v632_v23, %v636_v25  ;;  %v927_v23 = vld [vmem:[%s20246_s1 + $0x1b90] sm:$0xff] }
 0x454   :  { %11035 = vmatprep.subr.bf16.mxu1 %v13187_v35  ;;  %v640_v35 = vld [vmem:[%s20246_s1 + $0x1298] sm:$0xff]  ;;  %v931_v25 = vld [vmem:[%s20246_s1 + $0x1bb0] sm:$0xff] }
 0x455   :  { %10624 = vmatpush1.bf16.msra.mxu0 %v13432_v61  ;;  %v13481_v61 = vcombine.high %v887_v30, %v891_v29  ;;  %v13512_v29 = vcombine.low %v919_v58, %v923_v10 }
 0x456   :  { %10625 = vmatprep.subr.bf16.mxu0 %v13441_v37  ;;  %v644_v37 = vld [vmem:[%s20246_s1 + $0x12b8] sm:$0xff] }
 0x457   :  { %11036 = vmatpush1.bf16.msra.mxu1 %v13186_v53  ;;  %v13235_v53 = vcombine.high %v640_v35, %v644_v37  ;;  %v13234_v60 = vcombine.low %v640_v35, %v644_v37  ;;  %v935_v35 = vld [vmem:[%s20246_s1 + $0x1bd0] sm:$0xff] }
 0x458   :  { %11037 = vmatprep.subr.bf16.mxu1 %v13195_v47  ;;  %v648_v47 = vld [vmem:[%s20246_s1 + $0x12d8] sm:$0xff]  ;;  %v939_v37 = vld [vmem:[%s20246_s1 + $0x1bf0] sm:$0xff] }
 0x459   :  { %10626 = vmatpush1.bf16.msra.mxu0 %v13440_v45  ;;  %v13489_v45 = vcombine.high %v895_v39, %v899_v48  ;;  %v13520_v48 = vcombine.low %v927_v23, %v931_v25 }
 0x45a   :  { %10627 = vmatprep.subr.bf16.mxu0 %v13449_v55  ;;  %v652_v55 = vld [vmem:[%s20246_s1 + $0x12f8] sm:$0xff] }
 0x45b   :  { %11038 = vmatpush1.bf16.msra.mxu1 %v13194_v63  ;;  %v13243_v63 = vcombine.high %v648_v47, %v652_v55  ;;  %v13242_v4 = vcombine.low %v648_v47, %v652_v55  ;;  %v943_v47 = vld [vmem:[%s20246_s1 + $0x1c10] sm:$0xff] }
 0x45c   :  { %11039 = vmatprep.subr.bf16.mxu1 %v13203_v1  ;;  %v656_v1 = vld [vmem:[%s20246_s1 + $0x1318] sm:$0xff]  ;;  %v947_v55 = vld [vmem:[%s20246_s1 + $0x1c30] sm:$0xff] }
 0x45d   :  { %10628 = vmatpush1.bf16.msra.mxu0 %v13448_v0  ;;  %v13497_v0 = vcombine.high %v903_v56, %v907_v21  ;;  %v13528_v21 = vcombine.low %v935_v35, %v939_v37 }
 0x45e   :  { %10629 = vmatprep.subr.bf16.mxu0 %v13457_v2  ;;  %v660_v2 = vld [vmem:[%s20246_s1 + $0x1338] sm:$0xff] }
 0x45f   :  { %11040 = vmatpush1.bf16.msra.mxu1 %v13202_v5  ;;  %v13251_v5 = vcombine.high %v656_v1, %v660_v2  ;;  %v13250_v52 = vcombine.low %v656_v1, %v660_v2  ;;  %v951_v1 = vld [vmem:[%s20246_s1 + $0x1c50] sm:$0xff] }
 0x460   :  { %11041 = vmatprep.subr.bf16.mxu1 %v13211_v8  ;;  %v664_v8 = vld [vmem:[%s20246_s1 + $0x1358] sm:$0xff]  ;;  %v955_v2 = vld [vmem:[%s20246_s1 + $0x1c70] sm:$0xff] }
 0x461   :  { %10630 = vmatpush1.bf16.msra.mxu0 %v13456_v6  ;;  %v13505_v6 = vcombine.high %v911_v34, %v915_v36  ;;  %v13536_v36 = vcombine.low %v943_v47, %v947_v55 }
 0x462   :  { %10631 = vmatprep.subr.bf16.mxu0 %v13465_v9  ;;  %v668_v9 = vld [vmem:[%s20246_s1 + $0x1378] sm:$0xff] }
 0x463   :  { %11042 = vmatpush1.bf16.msra.mxu1 %v13210_v16  ;;  %v13259_v16 = vcombine.high %v664_v8, %v668_v9  ;;  %v13258_v30 = vcombine.low %v664_v8, %v668_v9  ;;  %v959_v8 = vld [vmem:[%s20246_s1 + $0x1c90] sm:$0xff] }
 0x464   :  { %11043 = vmatprep.subr.bf16.mxu1 %v13219_v15  ;;  %v672_v15 = vld [vmem:[%s20246_s1 + $0x1398] sm:$0xff]  ;;  %v963_v9 = vld [vmem:[%s20246_s1 + $0x1cb0] sm:$0xff] }
 0x465   :  { %10632 = vmatpush1.bf16.msra.mxu0 %v13464_v11  ;;  %v13513_v11 = vcombine.high %v919_v58, %v923_v10  ;;  %v13544_v10 = vcombine.low %v951_v1, %v955_v2 }
 0x466   :  { %10633 = vmatprep.subr.bf16.mxu0 %v13473_v3  ;;  %v676_v3 = vld [vmem:[%s20246_s1 + $0x13b8] sm:$0xff] }
 0x467   :  { %11044 = vmatpush1.bf16.msra.mxu1 %v13218_v62  ;;  %v13267_v62 = vcombine.high %v672_v15, %v676_v3  ;;  %v13266_v39 = vcombine.low %v672_v15, %v676_v3  ;;  %v971_v15 = vld [vmem:[%s20246_s1 + $0x1cf0] sm:$0xff] }
 0x468   :  { %11045 = vmatprep.subr.bf16.mxu1 %v13227_v13  ;;  %v680_v13 = vld [vmem:[%s20246_s1 + $0x13d8] sm:$0xff] }
 0x469   :  { %10634 = vmatpush1.bf16.msra.mxu0 %v13472_v7  ;;  %v13521_v7 = vcombine.high %v927_v23, %v931_v25  ;;  %v13552_v23 = vcombine.low %v959_v8, %v963_v9 }
 0x46a   :  { %10635 = vmatprep.subr.bf16.mxu0 %v13481_v61  ;;  %v684_v61 = vld [vmem:[%s20246_s1 + $0x13f8] sm:$0xff] }
 0x46b   :  { %11046 = vmatpush1.bf16.msra.mxu1 %v13226_v42  ;;  %v13275_v42 = vcombine.high %v680_v13, %v684_v61  ;;  %v13274_v56 = vcombine.low %v680_v13, %v684_v61 }
 0x46c   :  { %11047 = vmatprep.subr.bf16.mxu1 %v13235_v53  ;;  %v688_v53 = vld [vmem:[%s20246_s1 + $0x1418] sm:$0xff] }
 0x46d   :  { %10636 = vmatpush1.bf16.msra.mxu0 %v13480_v43  ;;  %v13529_v43 = vcombine.high %v935_v35, %v939_v37 }
 0x46e   :  { %10637 = vmatprep.subr.bf16.mxu0 %v13489_v45  ;;  %v692_v45 = vld [vmem:[%s20246_s1 + $0x1438] sm:$0xff] }
 0x46f   :  { %11048 = vmatpush1.bf16.msra.mxu1 %v13234_v60  ;;  %v13283_v60 = vcombine.high %v688_v53, %v692_v45  ;;  %v13282_v34 = vcombine.low %v688_v53, %v692_v45 }
 0x470   :  { %11049 = vmatprep.subr.bf16.mxu1 %v13243_v63  ;;  %v696_v63 = vld [vmem:[%s20246_s1 + $0x1458] sm:$0xff] }
 0x471   :  { %10638 = vmatpush1.bf16.msra.mxu0 %v13488_v12  ;;  %v13537_v12 = vcombine.high %v943_v47, %v947_v55 }
 0x472   :  { %10639 = vmatprep.subr.bf16.mxu0 %v13497_v0  ;;  %v700_v0 = vld [vmem:[%s20246_s1 + $0x1478] sm:$0xff] }
 0x473   :  { %11050 = vmatpush1.bf16.msra.mxu1 %v13242_v4  ;;  %v13291_v4 = vcombine.high %v696_v63, %v700_v0  ;;  %v13290_v58 = vcombine.low %v696_v63, %v700_v0 }
 0x474   :  { %11051 = vmatprep.subr.bf16.mxu1 %v13251_v5  ;;  %v704_v5 = vld [vmem:[%s20246_s1 + $0x1498] sm:$0xff] }
 0x475   :  { %10640 = vmatpush1.bf16.msra.mxu0 %v13496_v26  ;;  %v13545_v26 = vcombine.high %v951_v1, %v955_v2 }
 0x476   :  { %10641 = vmatprep.subr.bf16.mxu0 %v13505_v6  ;;  %v708_v6 = vld [vmem:[%s20246_s1 + $0x14b8] sm:$0xff] }
 0x477   :  { %11052 = vmatpush1.bf16.msra.mxu1 %v13250_v52  ;;  %v13299_v52 = vcombine.high %v704_v5, %v708_v6  ;;  %v13298_v3 = vcombine.low %v704_v5, %v708_v6 }
 0x478   :  { %11053 = vmatprep.subr.bf16.mxu1 %v13259_v16  ;;  %v716_v16 = vld [vmem:[%s20246_s1 + $0x14f8] sm:$0xff] }
 0x479   :  { %10642 = vmatpush1.bf16.msra.mxu0 %v13504_v40  ;;  %v13553_v40 = vcombine.high %v959_v8, %v963_v9 }
 0x47a   :  { %10643 = vmatprep.subr.bf16.mxu0 %v13513_v11  ;;  %v967_v11 = vld [vmem:[%s20246_s1 + $0x1cd0] sm:$0xff] }
 0x47b   :  { %11054 = vmatpush1.bf16.msra.mxu1 %v13258_v30  ;;  %v13561_v30 = vcombine.high %v967_v11, %v971_v15  ;;  %v13560_v61 = vcombine.low %v967_v11, %v971_v15 }
 0x47c   :  { %11055 = vmatprep.subr.bf16.mxu1 %v13267_v62  ;;  %v724_v62 = vld [vmem:[%s20246_s1 + $0x1538] sm:$0xff] }
 0x47d   :  { %10644 = vmatpush1.bf16.msra.mxu0 %v13512_v29  ;;  %v720_v29 = vld [vmem:[%s20246_s1 + $0x1518] sm:$0xff] }
 0x47e   :  { %10645 = vmatprep.subr.bf16.mxu0 %v13521_v7  ;;  %v979_v7 = vld [vmem:[%s20246_s1 + $0x1d30] sm:$0xff]  ;;  %v13315_v35 = vcombine.high %v720_v29, %v724_v62  ;;  %v13314_v53 = vcombine.low %v720_v29, %v724_v62 }
 0x47f   :  { %11056 = vmatpush1.bf16.msra.mxu1 %v13266_v39  ;;  %v728_v39 = vld [vmem:[%s20246_s1 + $0x1558] sm:$0xff] }
 0x480   :  { %11057 = vmatprep.subr.bf16.mxu1 %v13275_v42  ;;  %v983_v42 = vld [vmem:[%s20246_s1 + $0x1d50] sm:$0xff] }
 0x481   :  { %10646 = vmatpush1.bf16.msra.mxu0 %v13520_v48  ;;  %v732_v48 = vld [vmem:[%s20246_s1 + $0x1578] sm:$0xff] }
 0x482   :  { %10647 = vmatprep.subr.bf16.mxu0 %v13529_v43  ;;  %v987_v43 = vld [vmem:[%s20246_s1 + $0x1d70] sm:$0xff]  ;;  %v13323_v47 = vcombine.high %v728_v39, %v732_v48  ;;  %v13322_v63 = vcombine.low %v728_v39, %v732_v48 }
 0x483   :  { %11058 = vmatpush1.bf16.msra.mxu1 %v13274_v56  ;;  %v13577_v55 = vcombine.high %v983_v42, %v987_v43  ;;  %v736_v56 = vld [vmem:[%s20246_s1 + $0x1598] sm:$0xff]  ;;  %v13576_v0 = vcombine.low %v983_v42, %v987_v43 }
 0x484   :  { %11068 = vmatprep.subr.bf16.mxu1 %v13283_v60  ;;  %v991_v60 = vld [vmem:[%s20246_s1 + $0x1d90] sm:$0xff] }
 0x485   :  { %10648 = vmatpush1.bf16.msra.mxu0 %v13528_v21  ;;  %v740_v21 = vld [vmem:[%s20246_s1 + $0x15b8] sm:$0xff] }
 0x486   :  { %10658 = vmatprep.subr.bf16.mxu0 %v13537_v12  ;;  %11060 = vmatmul.mubr.bf16.vlgmr.msra.gmra.mrb[8].mxu1 %v15742_v14  ;;  %v712_v14 = vld [vmem:[%s20246_s1 + $0x14d8] sm:$0xff]  ;;  %v995_v12 = vld [vmem:[%s20246_s1 + $0x1db0] sm:$0xff]  ;;  %v13331_v1 = vcombine.high %v736_v56, %v740_v21  ;;  %v13330_v5 = vcombine.low %v736_v56, %v740_v21 }
 0x487   :  { %11069 = vmatpush1.bf16.msra.mxu1 %v13282_v34  ;;  %11100 = vmatprep.mubr.bf16.mxu1 %v15752_v22  ;;  %v13307_v25 = vcombine.high %v712_v14, %v716_v16  ;;  %v975_v22 = vld [vmem:[%s20246_s1 + $0x1d10] sm:$0xff]  ;;  %v13306_v13 = vcombine.low %v712_v14, %v716_v16  ;;  %v13585_v2 = vcombine.high %v991_v60, %v995_v12  ;;  %v744_v34 = vld [vmem:[%s20246_s1 + $0x15d8] sm:$0xff] }
 0x488   :  { %10650 = vmatmul.mubr.bf16.vlgmr.msra.gmra.mrb[4].mxu0 %v16164_v33  ;;  %11070 = vmatprep.subr.bf16.mxu1 %v13291_v4  ;;  %v13569_v37 = vcombine.high %v975_v22, %v979_v7  ;;  %v13568_v45 = vcombine.low %v975_v22, %v979_v7  ;;  %v999_v4 = vld [vmem:[%s20246_s1 + $0x1dd0] sm:$0xff]  ;;  %v13584_v6 = vcombine.low %v991_v60, %v995_v12 }
 0x489   :  { %10659 = vmatpush1.bf16.msra.mxu0 %v13536_v36  ;;  %10690 = vmatprep.mubr.bf16.mxu0 %v16174_v19  ;;  %v748_v36 = vld [vmem:[%s20246_s1 + $0x15f8] sm:$0xff] }
 0x48a   :  { %10660 = vmatprep.subr.bf16.mxu0 %v13545_v26  ;;  %v1003_v26 = vld [vmem:[%s20246_s1 + $0x1df0] sm:$0xff]  ;;  %v13339_v8 = vcombine.high %v744_v34, %v748_v36  ;;  %v13338_v14 = vcombine.low %v744_v34, %v748_v36 }
 0x48b   :  { %11071 = vmatpush1.bf16.msra.mxu1 %v13290_v58  ;;  %v13593_v9 = vcombine.high %v999_v4, %v1003_v26  ;;  %v752_v58 = vld [vmem:[%s20246_s1 + $0x1618] sm:$0xff]  ;;  %v13592_v16 = vcombine.low %v999_v4, %v1003_v26 }
 0x48c   :  { %11072 = vmatprep.subr.bf16.mxu1 %v13299_v52  ;;  %v1007_v52 = vld [vmem:[%s20246_s1 + $0x1e10] sm:$0xff] }
 0x48d   :  { %10661 = vmatpush1.bf16.msra.mxu0 %v13544_v10  ;;  %v756_v10 = vld [vmem:[%s20246_s1 + $0x1638] sm:$0xff] }
 0x48e   :  { %10662 = vmatprep.subr.bf16.mxu0 %v13553_v40  ;;  %v1011_v40 = vld [vmem:[%s20246_s1 + $0x1e30] sm:$0xff]  ;;  %v13347_v11 = vcombine.high %v752_v58, %v756_v10  ;;  %v13346_v29 = vcombine.low %v752_v58, %v756_v10 }
 0x48f   :  { %11073 = vmatpush1.bf16.msra.mxu1 %v13298_v3  ;;  %v13601_v15 = vcombine.high %v1007_v52, %v1011_v40  ;;  %v760_v3 = vld [vmem:[%s20246_s1 + $0x1658] sm:$0xff]  ;;  %v13600_v62 = vcombine.low %v1007_v52, %v1011_v40 }
 0x490   :  { %11074 = vmatprep.subr.bf16.mxu1 %v13307_v25  ;;  %v1015_v25 = vld [vmem:[%s20246_s1 + $0x1e50] sm:$0xff] }
 0x491   :  { %10663 = vmatpush1.bf16.msra.mxu0 %v13552_v23  ;;  %v764_v23 = vld [vmem:[%s20246_s1 + $0x1678] sm:$0xff] }
 0x492   :  { %10664 = vmatprep.subr.bf16.mxu0 %v13561_v30  ;;  %v1019_v30 = vld [vmem:[%s20246_s1 + $0x1e70] sm:$0xff]  ;;  %v13355_v22 = vcombine.high %v760_v3, %v764_v23  ;;  %v13354_v39 = vcombine.low %v760_v3, %v764_v23 }
 0x493   :  { %11075 = vmatpush1.bf16.msra.mxu1 %v13306_v13  ;;  %v13609_v7 = vcombine.high %v1015_v25, %v1019_v30  ;;  %v768_v13 = vld [vmem:[%s20246_s1 + $0x1698] sm:$0xff]  ;;  %v13608_v48 = vcombine.low %v1015_v25, %v1019_v30 }
 0x494   :  { %11076 = vmatprep.subr.bf16.mxu1 %v13315_v35  ;;  %v1023_v35 = vld [vmem:[%s20246_s1 + $0x1e90] sm:$0xff] }
 0x495   :  { %10665 = vmatpush1.bf16.msra.mxu0 %v13560_v61  ;;  %v772_v61 = vld [vmem:[%s20246_s1 + $0x16b8] sm:$0xff] }
 0x496   :  { %10666 = vmatprep.subr.bf16.mxu0 %v13569_v37  ;;  %v1027_v37 = vld [vmem:[%s20246_s1 + $0x1eb0] sm:$0xff]  ;;  %v13363_v42 = vcombine.high %v768_v13, %v772_v61  ;;  %v13362_v56 = vcombine.low %v768_v13, %v772_v61 }
 0x497   :  { %11077 = vmatpush1.bf16.msra.mxu1 %v13314_v53  ;;  %v13617_v43 = vcombine.high %v1023_v35, %v1027_v37  ;;  %v776_v53 = vld [vmem:[%s20246_s1 + $0x16d8] sm:$0xff]  ;;  %v13616_v21 = vcombine.low %v1023_v35, %v1027_v37 }
 0x498   :  { %11078 = vmatprep.subr.bf16.mxu1 %v13323_v47  ;;  %v1031_v47 = vld [vmem:[%s20246_s1 + $0x1ed0] sm:$0xff] }
 0x499   :  { %10667 = vmatpush1.bf16.msra.mxu0 %v13568_v45  ;;  %v780_v45 = vld [vmem:[%s20246_s1 + $0x16f8] sm:$0xff] }
 0x49a   :  { %10668 = vmatprep.subr.bf16.mxu0 %v13577_v55  ;;  %v1035_v55 = vld [vmem:[%s20246_s1 + $0x1ef0] sm:$0xff]  ;;  %v13371_v60 = vcombine.high %v776_v53, %v780_v45  ;;  %v13370_v34 = vcombine.low %v776_v53, %v780_v45 }
 0x49b   :  { %11079 = vmatpush1.bf16.msra.mxu1 %v13322_v63  ;;  %v13625_v12 = vcombine.high %v1031_v47, %v1035_v55  ;;  %v784_v63 = vld [vmem:[%s20246_s1 + $0x1718] sm:$0xff]  ;;  %v13624_v36 = vcombine.low %v1031_v47, %v1035_v55 }
 0x49c   :  { %11080 = vmatprep.subr.bf16.mxu1 %v13331_v1  ;;  %v1039_v1 = vld [vmem:[%s20246_s1 + $0x1f10] sm:$0xff] }
 0x49d   :  { %10669 = vmatpush1.bf16.msra.mxu0 %v13576_v0  ;;  %v788_v0 = vld [vmem:[%s20246_s1 + $0x1738] sm:$0xff] }
 0x49e   :  { %10670 = vmatprep.subr.bf16.mxu0 %v13585_v2  ;;  %v1043_v2 = vld [vmem:[%s20246_s1 + $0x1f30] sm:$0xff]  ;;  %v13379_v4 = vcombine.high %v784_v63, %v788_v0  ;;  %v13378_v58 = vcombine.low %v784_v63, %v788_v0 }
 0x49f   :  { %11081 = vmatpush1.bf16.msra.mxu1 %v13330_v5  ;;  %v13633_v26 = vcombine.high %v1039_v1, %v1043_v2  ;;  %v792_v5 = vld [vmem:[%s20246_s1 + $0x1758] sm:$0xff]  ;;  %v13632_v10 = vcombine.low %v1039_v1, %v1043_v2 }
 0x4a0   :  { %11082 = vmatprep.subr.bf16.mxu1 %v13339_v8  ;;  %v1047_v8 = vld [vmem:[%s20246_s1 + $0x1f50] sm:$0xff] }
 0x4a1   :  { %10671 = vmatpush1.bf16.msra.mxu0 %v13584_v6  ;;  %v796_v6 = vld [vmem:[%s20246_s1 + $0x1778] sm:$0xff] }
 0x4a2   :  { %10672 = vmatprep.subr.bf16.mxu0 %v13593_v9  ;;  %v1051_v9 = vld [vmem:[%s20246_s1 + $0x1f70] sm:$0xff]  ;;  %v13387_v52 = vcombine.high %v792_v5, %v796_v6  ;;  %v13386_v3 = vcombine.low %v792_v5, %v796_v6 }
 0x4a3   :  { %11083 = vmatpush1.bf16.msra.mxu1 %v13338_v14  ;;  %v13641_v40 = vcombine.high %v1047_v8, %v1051_v9  ;;  %v800_v14 = vld [vmem:[%s20246_s1 + $0x1798] sm:$0xff]  ;;  %v13640_v23 = vcombine.low %v1047_v8, %v1051_v9 }
 0x4a4   :  { %11084 = vmatprep.subr.bf16.mxu1 %v13347_v11  ;;  %v1055_v11 = vld [vmem:[%s20246_s1 + $0x1f90] sm:$0xff] }
 0x4a5   :  { %10673 = vmatpush1.bf16.msra.mxu0 %v13592_v16  ;;  %v804_v16 = vld [vmem:[%s20246_s1 + $0x17b8] sm:$0xff] }
 0x4a6   :  { %10674 = vmatprep.subr.bf16.mxu0 %v13601_v15  ;;  %v1059_v15 = vld [vmem:[%s20246_s1 + $0x1fb0] sm:$0xff]  ;;  %v13395_v25 = vcombine.high %v800_v14, %v804_v16  ;;  %v13394_v13 = vcombine.low %v800_v14, %v804_v16 }
 0x4a7   :  { %11085 = vmatpush1.bf16.msra.mxu1 %v13346_v29  ;;  %v13649_v30 = vcombine.high %v1055_v11, %v1059_v15  ;;  %v808_v29 = vld [vmem:[%s20246_s1 + $0x17d8] sm:$0xff]  ;;  %v13648_v61 = vcombine.low %v1055_v11, %v1059_v15 }
 0x4a8   :  { %11086 = vmatprep.subr.bf16.mxu1 %v13355_v22  ;;  %v1063_v22 = vld [vmem:[%s20246_s1 + $0x1fd0] sm:$0xff]  ;;  %v848_v15 = vld [vmem:[%s20246_s1 + $0x1918] sm:$0xff] }
 0x4a9   :  { %10675 = vmatpush1.bf16.msra.mxu0 %v13600_v62  ;;  %v812_v62 = vld [vmem:[%s20246_s1 + $0x17f8] sm:$0xff] }
 0x4aa   :  { %10676 = vmatprep.subr.bf16.mxu0 %v13609_v7  ;;  %v1067_v7 = vld [vmem:[%s20246_s1 + $0x1ff0] sm:$0xff]  ;;  %v13403_v35 = vcombine.high %v808_v29, %v812_v62  ;;  %v13402_v53 = vcombine.low %v808_v29, %v812_v62 }
 0x4ab   :  { %11087 = vmatpush1.bf16.msra.mxu1 %v13354_v39  ;;  %v13657_v37 = vcombine.high %v1063_v22, %v1067_v7  ;;  %v816_v39 = vld [vmem:[%s20246_s1 + $0x1818] sm:$0xff]  ;;  %v13656_v45 = vcombine.low %v1063_v22, %v1067_v7 }
 0x4ac   :  { %11088 = vmatprep.subr.bf16.mxu1 %v13363_v42  ;;  %v1071_v42 = vld [vmem:[%s20246_s1 + $0x2010] sm:$0xff]  ;;  %v856_v22 = vld [vmem:[%s20246_s1 + $0x1958] sm:$0xff] }
 0x4ad   :  { %10677 = vmatpush1.bf16.msra.mxu0 %v13608_v48  ;;  %v820_v48 = vld [vmem:[%s20246_s1 + $0x1838] sm:$0xff] }
 0x4ae   :  { %10678 = vmatprep.subr.bf16.mxu0 %v13617_v43  ;;  %v1075_v43 = vld [vmem:[%s20246_s1 + $0x2030] sm:$0xff]  ;;  %v13411_v47 = vcombine.high %v816_v39, %v820_v48  ;;  %v13410_v63 = vcombine.low %v816_v39, %v820_v48  ;;  %v860_v7 = vld [vmem:[%s20246_s1 + $0x1978] sm:$0xff] }
 0x4af   :  { %11089 = vmatpush1.bf16.msra.mxu1 %v13362_v56  ;;  %v13665_v55 = vcombine.high %v1071_v42, %v1075_v43  ;;  %v824_v56 = vld [vmem:[%s20246_s1 + $0x1858] sm:$0xff]  ;;  %v13664_v0 = vcombine.low %v1071_v42, %v1075_v43  ;;  %v13451_v39 = vcombine.high %v856_v22, %v860_v7 }
 0x4b0   :  { %11090 = vmatprep.subr.bf16.mxu1 %v13371_v60  ;;  %v1079_v60 = vld [vmem:[%s20246_s1 + $0x2050] sm:$0xff]  ;;  %v864_v42 = vld [vmem:[%s20246_s1 + $0x1998] sm:$0xff] }
 0x4b1   :  { %10679 = vmatpush1.bf16.msra.mxu0 %v13616_v21  ;;  %v828_v21 = vld [vmem:[%s20246_s1 + $0x1878] sm:$0xff] }
 0x4b2   :  { %10680 = vmatprep.subr.bf16.mxu0 %v13625_v12  ;;  %v1083_v12 = vld [vmem:[%s20246_s1 + $0x2070] sm:$0xff]  ;;  %v13419_v1 = vcombine.high %v824_v56, %v828_v21  ;;  %v13418_v5 = vcombine.low %v824_v56, %v828_v21  ;;  %v868_v43 = vld [vmem:[%s20246_s1 + $0x19b8] sm:$0xff] }
 0x4b3   :  { %11091 = vmatpush1.bf16.msra.mxu1 %v13370_v34  ;;  %v13673_v2 = vcombine.high %v1079_v60, %v1083_v12  ;;  %v832_v34 = vld [vmem:[%s20246_s1 + $0x1898] sm:$0xff]  ;;  %v13672_v6 = vcombine.low %v1079_v60, %v1083_v12  ;;  %v13459_v56 = vcombine.high %v864_v42, %v868_v43 }
 0x4b4   :  { %11092 = vmatprep.subr.bf16.mxu1 %v13379_v4  ;;  %v1087_v4 = vld [vmem:[%s20246_s1 + $0x2090] sm:$0xff]  ;;  %v872_v60 = vld [vmem:[%s20246_s1 + $0x19d8] sm:$0xff] }
 0x4b5   :  { %10681 = vmatpush1.bf16.msra.mxu0 %v13624_v36  ;;  %v836_v36 = vld [vmem:[%s20246_s1 + $0x18b8] sm:$0xff] }
 0x4b6   :  { %10682 = vmatprep.subr.bf16.mxu0 %v13633_v26  ;;  %v1091_v26 = vld [vmem:[%s20246_s1 + $0x20b0] sm:$0xff]  ;;  %v13427_v8 = vcombine.high %v832_v34, %v836_v36  ;;  %v876_v12 = vld [vmem:[%s20246_s1 + $0x19f8] sm:$0xff] }
 0x4b7   :  { %11093 = vmatpush1.bf16.msra.mxu1 %v13378_v58  ;;  %v13681_v9 = vcombine.high %v1087_v4, %v1091_v26  ;;  %v844_v58 = vld [vmem:[%s20246_s1 + $0x18f8] sm:$0xff]  ;;  %v13680_v14 = vcombine.low %v1087_v4, %v1091_v26 }
 0x4b8   :  { %11094 = vmatprep.subr.bf16.mxu1 %v13387_v52  ;;  %v1099_v52 = vld [vmem:[%s20246_s1 + $0x20f0] sm:$0xff]  ;;  %v880_v4 = vld [vmem:[%s20246_s1 + $0x1a18] sm:$0xff] }
 0x4b9   :  { %10683 = vmatpush1.bf16.msra.mxu0 %v13632_v10  ;;  %v1095_v10 = vld [vmem:[%s20246_s1 + $0x20d0] sm:$0xff]  ;;  %v884_v26 = vld [vmem:[%s20246_s1 + $0x1a38] sm:$0xff] }
 0x4ba   :  { %10684 = vmatprep.subr.bf16.mxu0 %v13641_v40  ;;  %v13426_v40 = vcombine.low %v832_v34, %v836_v36  ;;  %v13689_v11 = vcombine.high %v1095_v10, %v1099_v52  ;;  %v13467_v34 = vcombine.high %v872_v60, %v876_v12 }
 0x4bb   :  { %11095 = vmatpush1.bf16.msra.mxu1 %v13386_v3  ;;  %v852_v3 = vld [vmem:[%s20246_s1 + $0x1938] sm:$0xff] }
 0x4bc   :  { %11096 = vmatprep.subr.bf16.mxu1 %v13395_v25  ;;  %v13443_v29 = vcombine.high %v848_v15, %v852_v3 }
 0x4bd   :  { %10685 = vmatpush1.bf16.msra.mxu0 %v13640_v23  ;;  %v1107_v23 = vld [vmem:[%s20246_s1 + $0x2130] sm:$0xff] }
 0x4be   :  { %10686 = vmatprep.subr.bf16.mxu0 %v13649_v30  ;;  %v13688_v30 = vcombine.low %v1095_v10, %v1099_v52  ;;  %v888_v10 = vld [vmem:[%s20246_s1 + $0x1a58] sm:$0xff] }
 0x4bf   :  { %11097 = vmatpush1.bf16.msra.mxu1 %v13394_v13  ;;  %v1111_v13 = vld [vmem:[%s20246_s1 + $0x2150] sm:$0xff]  ;;  %v892_v52 = vld [vmem:[%s20246_s1 + $0x1a78] sm:$0xff] }
 0x4c0   :  { %11098 = vmatprep.subr.bf16.mxu1 %v13403_v35  ;;  %v13442_v35 = vcombine.low %v848_v15, %v852_v3  ;;  %v13483_v15 = vcombine.high %v888_v10, %v892_v52 }
 0x4c1   :  { %10687 = vmatpush1.bf16.msra.mxu0 %v13648_v61  ;;  %v1115_v61 = vld [vmem:[%s20246_s1 + $0x2170] sm:$0xff] }
 0x4c2   :  { %10688 = vmatprep.subr.bf16.mxu0 %v13657_v37  ;;  %v13705_v48 = vcombine.high %v1111_v13, %v1115_v61 }
 0x4c3   :  { %11099 = vmatpush1.bf16.msra.mxu1 %v13402_v53  ;;  %v1119_v53 = vld [vmem:[%s20246_s1 + $0x2190] sm:$0xff] }
 0x4c4   :  { %11109 = vmatprep.subr.bf16.mxu1 %v13411_v47  ;;  %v13450_v47 = vcombine.low %v856_v22, %v860_v7 }
 0x4c5   :  { %10689 = vmatpush1.bf16.msra.mxu0 %v13656_v45  ;;  %v1123_v45 = vld [vmem:[%s20246_s1 + $0x21b0] sm:$0xff] }
 0x4c6   :  { %10699 = vmatprep.subr.bf16.mxu0 %v13665_v55  ;;  %11101 = vmatmul.mubr.bf16.vlgmr.msra.gmra.mrb[8].mxu1 %v15955_v51  ;;  %v840_v51 = vld [vmem:[%s20246_s1 + $0x18d8] sm:$0xff]  ;;  %v13704_v55 = vcombine.low %v1111_v13, %v1115_v61  ;;  %v13713_v21 = vcombine.high %v1119_v53, %v1123_v45 }
 0x4c7   :  { %11110 = vmatpush1.bf16.msra.mxu1 %v13410_v63  ;;  %11141 = vmatprep.mubr.bf16.mxu1 %v15965_v32  ;;  %v13435_v16 = vcombine.high %v840_v51, %v844_v58  ;;  %v1103_v32 = vld [vmem:[%s20246_s1 + $0x2110] sm:$0xff]  ;;  %v13434_v25 = vcombine.low %v840_v51, %v844_v58  ;;  %v13475_v51 = vcombine.high %v880_v4, %v884_v26  ;;  %v904_v13 = vld [vmem:[%s20246_s1 + $0x1ad8] sm:$0xff] }
 0x4c8   :  { %10691 = vmatmul.mubr.bf16.vlgmr.msra.gmra.mrb[4].mxu0 %v16373_v50  ;;  %11111 = vmatprep.subr.bf16.mxu1 %v13419_v1  ;;  %v13697_v62 = vcombine.high %v1103_v32, %v1107_v23  ;;  %v13696_v37 = vcombine.low %v1103_v32, %v1107_v23  ;;  %v1127_v63 = vld [vmem:[%s20246_s1 + $0x21d0] sm:$0xff]  ;;  %v13458_v1 = vcombine.low %v864_v42, %v868_v43  ;;  %v896_v32 = vld [vmem:[%s20246_s1 + $0x1a98] sm:$0xff] }
 0x4c9   :  { %10700 = vmatpush1.bf16.msra.mxu0 %v13664_v0  ;;  %10731 = vmatprep.mubr.bf16.mxu0 %v16383_v28  ;;  %v1131_v0 = vld [vmem:[%s20246_s1 + $0x21f0] sm:$0xff]  ;;  %v900_v23 = vld [vmem:[%s20246_s1 + $0x1ab8] sm:$0xff] }
 0x4ca   :  { %10701 = vmatprep.subr.bf16.mxu0 %v13673_v2  ;;  %v13712_v2 = vcombine.low %v1119_v53, %v1123_v45  ;;  %v13721_v36 = vcombine.high %v1127_v63, %v1131_v0  ;;  %v13491_v22 = vcombine.high %v896_v32, %v900_v23  ;;  %v908_v61 = vld [vmem:[%s20246_s1 + $0x1af8] sm:$0xff] }
 0x4cb   :  { %11112 = vmatpush1.bf16.msra.mxu1 %v13418_v5  ;;  %v1135_v5 = vld [vmem:[%s20246_s1 + $0x2210] sm:$0xff]  ;;  %v13499_v42 = vcombine.high %v904_v13, %v908_v61  ;;  %v912_v53 = vld [vmem:[%s20246_s1 + $0x1b18] sm:$0xff] }
 0x4cc   :  { %11113 = vmatprep.subr.bf16.mxu1 %v13427_v8  ;;  %v13466_v8 = vcombine.low %v872_v60, %v876_v12  ;;  %v916_v45 = vld [vmem:[%s20246_s1 + $0x1b38] sm:$0xff] }
 0x4cd   :  { %10702 = vmatpush1.bf16.msra.mxu0 %v13672_v6  ;;  %v1139_v6 = vld [vmem:[%s20246_s1 + $0x2230] sm:$0xff]  ;;  %v13507_v60 = vcombine.high %v912_v53, %v916_v45 }
 0x4ce   :  { %10703 = vmatprep.subr.bf16.mxu0 %v13681_v9  ;;  %v13720_v9 = vcombine.low %v1127_v63, %v1131_v0  ;;  %v13729_v58 = vcombine.high %v1135_v5, %v1139_v6  ;;  %v920_v63 = vld [vmem:[%s20246_s1 + $0x1b58] sm:$0xff] }
 0x4cf   :  { %11114 = vmatpush1.bf16.msra.mxu1 %v13426_v40  ;;  %v1143_v40 = vld [vmem:[%s20246_s1 + $0x2250] sm:$0xff]  ;;  %v924_v0 = vld [vmem:[%s20246_s1 + $0x1b78] sm:$0xff] }
 0x4d0   :  { %11115 = vmatprep.subr.bf16.mxu1 %v13435_v16  ;;  %v13474_v16 = vcombine.low %v880_v4, %v884_v26  ;;  %v13515_v4 = vcombine.high %v920_v63, %v924_v0 }
 0x4d1   :  { %10704 = vmatpush1.bf16.msra.mxu0 %v13680_v14  ;;  %v1147_v14 = vld [vmem:[%s20246_s1 + $0x2270] sm:$0xff] }
 0x4d2   :  { %10705 = vmatprep.subr.bf16.mxu0 %v13689_v11  ;;  %v13728_v11 = vcombine.low %v1135_v5, %v1139_v6  ;;  %v13737_v3 = vcombine.high %v1143_v40, %v1147_v14  ;;  %v928_v5 = vld [vmem:[%s20246_s1 + $0x1b98] sm:$0xff] }
 0x4d3   :  { %11116 = vmatpush1.bf16.msra.mxu1 %v13434_v25  ;;  %v1151_v25 = vld [vmem:[%s20246_s1 + $0x2290] sm:$0xff]  ;;  %v932_v6 = vld [vmem:[%s20246_s1 + $0x1bb8] sm:$0xff] }
 0x4d4   :  { %11117 = vmatprep.subr.bf16.mxu1 %v13443_v29  ;;  %v13482_v29 = vcombine.low %v888_v10, %v892_v52  ;;  %v13523_v10 = vcombine.high %v928_v5, %v932_v6 }
 0x4d5   :  { %10706 = vmatpush1.bf16.msra.mxu0 %v13688_v30  ;;  %v1155_v30 = vld [vmem:[%s20246_s1 + $0x22b0] sm:$0xff] }
 0x4d6   :  { %10707 = vmatprep.subr.bf16.mxu0 %v13697_v62  ;;  %v13736_v62 = vcombine.low %v1143_v40, %v1147_v14  ;;  %v13745_v7 = vcombine.high %v1151_v25, %v1155_v30  ;;  %v936_v40 = vld [vmem:[%s20246_s1 + $0x1bd8] sm:$0xff] }
 0x4d7   :  { %11118 = vmatpush1.bf16.msra.mxu1 %v13442_v35  ;;  %v1159_v35 = vld [vmem:[%s20246_s1 + $0x22d0] sm:$0xff]  ;;  %v940_v14 = vld [vmem:[%s20246_s1 + $0x1bf8] sm:$0xff] }
 0x4d8   :  { %11119 = vmatprep.subr.bf16.mxu1 %v13451_v39  ;;  %v13490_v39 = vcombine.low %v896_v32, %v900_v23  ;;  %v13531_v32 = vcombine.high %v936_v40, %v940_v14 }
 0x4d9   :  { %10708 = vmatpush1.bf16.msra.mxu0 %v13696_v37  ;;  %v1163_v37 = vld [vmem:[%s20246_s1 + $0x22f0] sm:$0xff] }
 0x4da   :  { %10709 = vmatprep.subr.bf16.mxu0 %v13705_v48  ;;  %v13744_v48 = vcombine.low %v1151_v25, %v1155_v30  ;;  %v13753_v43 = vcombine.high %v1159_v35, %v1163_v37  ;;  %v944_v25 = vld [vmem:[%s20246_s1 + $0x1c18] sm:$0xff] }
 0x4db   :  { %11120 = vmatpush1.bf16.msra.mxu1 %v13450_v47  ;;  %v1167_v47 = vld [vmem:[%s20246_s1 + $0x2310] sm:$0xff]  ;;  %v948_v30 = vld [vmem:[%s20246_s1 + $0x1c38] sm:$0xff] }
 0x4dc   :  { %11121 = vmatprep.subr.bf16.mxu1 %v13459_v56  ;;  %v13498_v56 = vcombine.low %v904_v13, %v908_v61  ;;  %v13539_v13 = vcombine.high %v944_v25, %v948_v30 }
 0x4dd   :  { %10710 = vmatpush1.bf16.msra.mxu0 %v13704_v55  ;;  %v1171_v55 = vld [vmem:[%s20246_s1 + $0x2330] sm:$0xff] }
 0x4de   :  { %10711 = vmatprep.subr.bf16.mxu0 %v13713_v21  ;;  %v13752_v21 = vcombine.low %v1159_v35, %v1163_v37  ;;  %v13761_v12 = vcombine.high %v1167_v47, %v1171_v55  ;;  %v952_v35 = vld [vmem:[%s20246_s1 + $0x1c58] sm:$0xff] }
 0x4df   :  { %11122 = vmatpush1.bf16.msra.mxu1 %v13458_v1  ;;  %v1175_v1 = vld [vmem:[%s20246_s1 + $0x2350] sm:$0xff]  ;;  %v956_v37 = vld [vmem:[%s20246_s1 + $0x1c78] sm:$0xff] }
 0x4e0   :  { %11123 = vmatprep.subr.bf16.mxu1 %v13467_v34  ;;  %v13506_v34 = vcombine.low %v912_v53, %v916_v45  ;;  %v13547_v53 = vcombine.high %v952_v35, %v956_v37 }
 0x4e1   :  { %10712 = vmatpush1.bf16.msra.mxu0 %v13712_v2  ;;  %v1179_v2 = vld [vmem:[%s20246_s1 + $0x2370] sm:$0xff] }
 0x4e2   :  { %10713 = vmatprep.subr.bf16.mxu0 %v13721_v36  ;;  %v13760_v36 = vcombine.low %v1167_v47, %v1171_v55  ;;  %v13769_v26 = vcombine.high %v1175_v1, %v1179_v2  ;;  %v960_v47 = vld [vmem:[%s20246_s1 + $0x1c98] sm:$0xff] }
 0x4e3   :  { %11124 = vmatpush1.bf16.msra.mxu1 %v13466_v8  ;;  %v1183_v8 = vld [vmem:[%s20246_s1 + $0x2390] sm:$0xff]  ;;  %v964_v55 = vld [vmem:[%s20246_s1 + $0x1cb8] sm:$0xff] }
 0x4e4   :  { %11125 = vmatprep.subr.bf16.mxu1 %v13475_v51  ;;  %v13514_v51 = vcombine.low %v920_v63, %v924_v0  ;;  %v13555_v63 = vcombine.high %v960_v47, %v964_v55 }
 0x4e5   :  { %10714 = vmatpush1.bf16.msra.mxu0 %v13720_v9  ;;  %v1187_v9 = vld [vmem:[%s20246_s1 + $0x23b0] sm:$0xff] }
 0x4e6   :  { %10715 = vmatprep.subr.bf16.mxu0 %v13729_v58  ;;  %v13768_v58 = vcombine.low %v1175_v1, %v1179_v2  ;;  %v13777_v52 = vcombine.high %v1183_v8, %v1187_v9  ;;  %v972_v1 = vld [vmem:[%s20246_s1 + $0x1cf8] sm:$0xff]  ;;  %v1223_v2 = vld [vmem:[%s20246_s1 + $0x24d0] sm:$0xff] }
 0x4e7   :  { %11126 = vmatpush1.bf16.msra.mxu1 %v13474_v16  ;;  %v1191_v16 = vld [vmem:[%s20246_s1 + $0x23d0] sm:$0xff] }
 0x4e8   :  { %11127 = vmatprep.subr.bf16.mxu1 %v13483_v15  ;;  %v13522_v15 = vcombine.low %v928_v5, %v932_v6  ;;  %v976_v6 = vld [vmem:[%s20246_s1 + $0x1d18] sm:$0xff] }
 0x4e9   :  { %10716 = vmatpush1.bf16.msra.mxu0 %v13728_v11  ;;  %v1195_v11 = vld [vmem:[%s20246_s1 + $0x23f0] sm:$0xff] }
 0x4ea   :  { %10717 = vmatprep.subr.bf16.mxu0 %v13737_v3  ;;  %v13776_v3 = vcombine.low %v1183_v8, %v1187_v9  ;;  %v13785_v23 = vcombine.high %v1191_v16, %v1195_v11  ;;  %v980_v8 = vld [vmem:[%s20246_s1 + $0x1d38] sm:$0xff]  ;;  %v1235_v9 = vld [vmem:[%s20246_s1 + $0x2530] sm:$0xff] }
 0x4eb   :  { %11128 = vmatpush1.bf16.msra.mxu1 %v13482_v29  ;;  %v1199_v29 = vld [vmem:[%s20246_s1 + $0x2410] sm:$0xff] }
 0x4ec   :  { %11129 = vmatprep.subr.bf16.mxu1 %v13491_v22  ;;  %v13530_v22 = vcombine.low %v936_v40, %v940_v14  ;;  %v984_v40 = vld [vmem:[%s20246_s1 + $0x1d58] sm:$0xff] }
 0x4ed   :  { %10718 = vmatpush1.bf16.msra.mxu0 %v13736_v62  ;;  %v1203_v62 = vld [vmem:[%s20246_s1 + $0x2430] sm:$0xff]  ;;  %v988_v14 = vld [vmem:[%s20246_s1 + $0x1d78] sm:$0xff] }
 0x4ee   :  { %10719 = vmatprep.subr.bf16.mxu0 %v13745_v7  ;;  %v13784_v7 = vcombine.low %v1191_v16, %v1195_v11  ;;  %v13793_v61 = vcombine.high %v1199_v29, %v1203_v62  ;;  %v1239_v16 = vld [vmem:[%s20246_s1 + $0x2550] sm:$0xff] }
 0x4ef   :  { %11130 = vmatpush1.bf16.msra.mxu1 %v13490_v39  ;;  %v1207_v39 = vld [vmem:[%s20246_s1 + $0x2450] sm:$0xff] }
 0x4f0   :  { %11131 = vmatprep.subr.bf16.mxu1 %v13499_v42  ;;  %v13538_v42 = vcombine.low %v944_v25, %v948_v30  ;;  %v1243_v11 = vld [vmem:[%s20246_s1 + $0x2570] sm:$0xff]  ;;  %v992_v25 = vld [vmem:[%s20246_s1 + $0x1d98] sm:$0xff] }
 0x4f1   :  { %10720 = vmatpush1.bf16.msra.mxu0 %v13744_v48  ;;  %v1211_v48 = vld [vmem:[%s20246_s1 + $0x2470] sm:$0xff]  ;;  %v996_v30 = vld [vmem:[%s20246_s1 + $0x1db8] sm:$0xff] }
 0x4f2   :  { %10721 = vmatprep.subr.bf16.mxu0 %v13753_v43  ;;  %v13792_v43 = vcombine.low %v1199_v29, %v1203_v62  ;;  %v13801_v45 = vcombine.high %v1207_v39, %v1211_v48  ;;  %v1247_v29 = vld [vmem:[%s20246_s1 + $0x2590] sm:$0xff] }
 0x4f3   :  { %11132 = vmatpush1.bf16.msra.mxu1 %v13498_v56  ;;  %v1215_v56 = vld [vmem:[%s20246_s1 + $0x2490] sm:$0xff] }
 0x4f4   :  { %11133 = vmatprep.subr.bf16.mxu1 %v13507_v60  ;;  %v13546_v60 = vcombine.low %v952_v35, %v956_v37  ;;  %v1251_v62 = vld [vmem:[%s20246_s1 + $0x25b0] sm:$0xff]  ;;  %v1000_v35 = vld [vmem:[%s20246_s1 + $0x1dd8] sm:$0xff] }
 0x4f5   :  { %10722 = vmatpush1.bf16.msra.mxu0 %v13752_v21  ;;  %v1219_v21 = vld [vmem:[%s20246_s1 + $0x24b0] sm:$0xff]  ;;  %v1004_v37 = vld [vmem:[%s20246_s1 + $0x1df8] sm:$0xff] }
 0x4f6   :  { %10723 = vmatprep.subr.bf16.mxu0 %v13761_v12  ;;  %v13800_v12 = vcombine.low %v1207_v39, %v1211_v48  ;;  %v13809_v0 = vcombine.high %v1215_v56, %v1219_v21  ;;  %v1255_v39 = vld [vmem:[%s20246_s1 + $0x25d0] sm:$0xff] }
 0x4f7   :  { %11134 = vmatpush1.bf16.msra.mxu1 %v13506_v34  ;;  %v1227_v34 = vld [vmem:[%s20246_s1 + $0x24f0] sm:$0xff] }
 0x4f8   :  { %11135 = vmatprep.subr.bf16.mxu1 %v13515_v4  ;;  %v13808_v4 = vcombine.low %v1215_v56, %v1219_v21  ;;  %v13817_v5 = vcombine.high %v1223_v2, %v1227_v34  ;;  %v1259_v48 = vld [vmem:[%s20246_s1 + $0x25f0] sm:$0xff] }
 0x4f9   :  { %10724 = vmatpush1.bf16.msra.mxu0 %v13760_v36  ;;  %v13554_v36 = vcombine.low %v960_v47, %v964_v55  ;;  %v1008_v47 = vld [vmem:[%s20246_s1 + $0x1e18] sm:$0xff]  ;;  %v1263_v56 = vld [vmem:[%s20246_s1 + $0x2610] sm:$0xff] }
 0x4fa   :  { %10725 = vmatprep.subr.bf16.mxu0 %v13769_v26  ;;  %v1012_v55 = vld [vmem:[%s20246_s1 + $0x1e38] sm:$0xff]  ;;  %v1267_v21 = vld [vmem:[%s20246_s1 + $0x2630] sm:$0xff] }
 0x4fb   :  { %11136 = vmatpush1.bf16.msra.mxu1 %v13514_v51 }
 0x4fc   :  { %11137 = vmatprep.subr.bf16.mxu1 %v13523_v10  ;;  %v13571_v10 = vcombine.high %v976_v6, %v980_v8 }
 0x4fd   :  { %10726 = vmatpush1.bf16.msra.mxu0 %v13768_v58  ;;  %v13816_v58 = vcombine.low %v1223_v2, %v1227_v34  ;;  %v1271_v2 = vld [vmem:[%s20246_s1 + $0x2650] sm:$0xff] }
 0x4fe   :  { %10727 = vmatprep.subr.bf16.mxu0 %v13777_v52  ;;  %v1275_v34 = vld [vmem:[%s20246_s1 + $0x2670] sm:$0xff] }
 0x4ff   :  { %11138 = vmatpush1.bf16.msra.mxu1 %v13522_v15  ;;  %v13570_v15 = vcombine.low %v976_v6, %v980_v8  ;;  %v1024_v6 = vld [vmem:[%s20246_s1 + $0x1e98] sm:$0xff] }
 0x500   :  { %11139 = vmatprep.subr.bf16.mxu1 %v13531_v32  ;;  %v13579_v32 = vcombine.high %v984_v40, %v988_v14  ;;  %v1028_v8 = vld [vmem:[%s20246_s1 + $0x1eb8] sm:$0xff] }
 0x501   :  { %10728 = vmatpush1.bf16.msra.mxu0 %v13776_v3 }
 0x502   :  { %10729 = vmatprep.subr.bf16.mxu0 %v13785_v23  ;;  %v13833_v23 = vcombine.high %v1239_v16, %v1243_v11 }
 0x503   :  { %11140 = vmatpush1.bf16.msra.mxu1 %v13530_v22  ;;  %v13578_v22 = vcombine.low %v984_v40, %v988_v14  ;;  %v1032_v40 = vld [vmem:[%s20246_s1 + $0x1ed8] sm:$0xff] }
 0x504   :  { %11150 = vmatprep.subr.bf16.mxu1 %v13539_v13  ;;  %v13587_v13 = vcombine.high %v992_v25, %v996_v30  ;;  %v1036_v14 = vld [vmem:[%s20246_s1 + $0x1ef8] sm:$0xff] }
 0x505   :  { %10730 = vmatpush1.bf16.msra.mxu0 %v13784_v7  ;;  %v13832_v7 = vcombine.low %v1239_v16, %v1243_v11  ;;  %v1287_v16 = vld [vmem:[%s20246_s1 + $0x26d0] sm:$0xff] }
 0x506   :  { %10740 = vmatprep.subr.bf16.mxu0 %v13793_v61  ;;  %11142 = vmatmul.mubr.bf16.vlgmr.msra.gmra.mrb[8].mxu1 %v16164_v33  ;;  %v968_v33 = vld [vmem:[%s20246_s1 + $0x1cd8] sm:$0xff]  ;;  %v13841_v61 = vcombine.high %v1247_v29, %v1251_v62  ;;  %v1291_v11 = vld [vmem:[%s20246_s1 + $0x26f0] sm:$0xff] }
 0x507   :  { %11151 = vmatpush1.bf16.msra.mxu1 %v13538_v42  ;;  %11182 = vmatprep.mubr.bf16.mxu1 %v16174_v19  ;;  %v13563_v26 = vcombine.high %v968_v33, %v972_v1  ;;  %v1231_v19 = vld [vmem:[%s20246_s1 + $0x2510] sm:$0xff]  ;;  %v13562_v51 = vcombine.low %v968_v33, %v972_v1  ;;  %v13586_v42 = vcombine.low %v992_v25, %v996_v30  ;;  %v1016_v33 = vld [vmem:[%s20246_s1 + $0x1e58] sm:$0xff] }
 0x508   :  { %10732 = vmatmul.mubr.bf16.vlgmr.msra.gmra.mrb[4].mxu0 %v16582_v17  ;;  %11152 = vmatprep.subr.bf16.mxu1 %v13547_v53  ;;  %v13825_v52 = vcombine.high %v1231_v19, %v1235_v9  ;;  %v13824_v3 = vcombine.low %v1231_v19, %v1235_v9  ;;  %v13595_v53 = vcombine.high %v1000_v35, %v1004_v37  ;;  %v1020_v1 = vld [vmem:[%s20246_s1 + $0x1e78] sm:$0xff]  ;;  %v1279_v19 = vld [vmem:[%s20246_s1 + $0x2690] sm:$0xff] }
 0x509   :  { %10741 = vmatpush1.bf16.msra.mxu0 %v13792_v43  ;;  %10772 = vmatprep.mubr.bf16.mxu0 %v16592_v54  ;;  %v13840_v43 = vcombine.low %v1247_v29, %v1251_v62  ;;  %v1283_v9 = vld [vmem:[%s20246_s1 + $0x26b0] sm:$0xff]  ;;  %v1040_v25 = vld [vmem:[%s20246_s1 + $0x1f18] sm:$0xff] }
 0x50a   :  { %10742 = vmatprep.subr.bf16.mxu0 %v13801_v45  ;;  %v13849_v45 = vcombine.high %v1255_v39, %v1259_v48  ;;  %v1044_v30 = vld [vmem:[%s20246_s1 + $0x1f38] sm:$0xff]  ;;  %v1295_v29 = vld [vmem:[%s20246_s1 + $0x2710] sm:$0xff] }
 0x50b   :  { %11153 = vmatpush1.bf16.msra.mxu1 %v13546_v60  ;;  %v13594_v60 = vcombine.low %v1000_v35, %v1004_v37  ;;  %v1299_v62 = vld [vmem:[%s20246_s1 + $0x2730] sm:$0xff]  ;;  %v1048_v35 = vld [vmem:[%s20246_s1 + $0x1f58] sm:$0xff] }
 0x50c   :  { %11154 = vmatprep.subr.bf16.mxu1 %v13555_v63  ;;  %v13603_v63 = vcombine.high %v1008_v47, %v1012_v55  ;;  %v1052_v37 = vld [vmem:[%s20246_s1 + $0x1f78] sm:$0xff] }
 0x50d   :  { %10743 = vmatpush1.bf16.msra.mxu0 %v13800_v12  ;;  %v13848_v12 = vcombine.low %v1255_v39, %v1259_v48  ;;  %v1303_v39 = vld [vmem:[%s20246_s1 + $0x2750] sm:$0xff] }
 0x50e   :  { %10744 = vmatprep.subr.bf16.mxu0 %v13809_v0  ;;  %v13857_v0 = vcombine.high %v1263_v56, %v1267_v21  ;;  %v1307_v48 = vld [vmem:[%s20246_s1 + $0x2770] sm:$0xff] }
 0x50f   :  { %11155 = vmatpush1.bf16.msra.mxu1 %v13554_v36  ;;  %v13602_v36 = vcombine.low %v1008_v47, %v1012_v55  ;;  %v1056_v47 = vld [vmem:[%s20246_s1 + $0x1f98] sm:$0xff] }
 0x510   :  { %11156 = vmatprep.subr.bf16.mxu1 %v13563_v26  ;;  %v13611_v26 = vcombine.high %v1016_v33, %v1020_v1  ;;  %v1060_v55 = vld [vmem:[%s20246_s1 + $0x1fb8] sm:$0xff] }
 0x511   :  { %10745 = vmatpush1.bf16.msra.mxu0 %v13808_v4  ;;  %v13856_v4 = vcombine.low %v1263_v56, %v1267_v21  ;;  %v1311_v56 = vld [vmem:[%s20246_s1 + $0x2790] sm:$0xff] }
 0x512   :  { %10746 = vmatprep.subr.bf16.mxu0 %v13817_v5  ;;  %v13865_v5 = vcombine.high %v1271_v2, %v1275_v34  ;;  %v1315_v21 = vld [vmem:[%s20246_s1 + $0x27b0] sm:$0xff] }
 0x513   :  { %11157 = vmatpush1.bf16.msra.mxu1 %v13562_v51  ;;  %v13610_v51 = vcombine.low %v1016_v33, %v1020_v1  ;;  %v1064_v33 = vld [vmem:[%s20246_s1 + $0x1fd8] sm:$0xff] }
 0x514   :  { %11158 = vmatprep.subr.bf16.mxu1 %v13571_v10  ;;  %v13619_v10 = vcombine.high %v1024_v6, %v1028_v8  ;;  %v1068_v1 = vld [vmem:[%s20246_s1 + $0x1ff8] sm:$0xff] }
 0x515   :  { %10747 = vmatpush1.bf16.msra.mxu0 %v13816_v58  ;;  %v13864_v58 = vcombine.low %v1271_v2, %v1275_v34  ;;  %v1319_v2 = vld [vmem:[%s20246_s1 + $0x27d0] sm:$0xff] }
 0x516   :  { %10748 = vmatprep.subr.bf16.mxu0 %v13825_v52  ;;  %v13873_v52 = vcombine.high %v1279_v19, %v1283_v9  ;;  %v1323_v34 = vld [vmem:[%s20246_s1 + $0x27f0] sm:$0xff] }
 0x517   :  { %11159 = vmatpush1.bf16.msra.mxu1 %v13570_v15  ;;  %v13618_v15 = vcombine.low %v1024_v6, %v1028_v8  ;;  %v1072_v6 = vld [vmem:[%s20246_s1 + $0x2018] sm:$0xff] }
 0x518   :  { %11160 = vmatprep.subr.bf16.mxu1 %v13579_v32  ;;  %v13627_v32 = vcombine.high %v1032_v40, %v1036_v14  ;;  %v1076_v8 = vld [vmem:[%s20246_s1 + $0x2038] sm:$0xff] }
 0x519   :  { %10749 = vmatpush1.bf16.msra.mxu0 %v13824_v3  ;;  %v13872_v3 = vcombine.low %v1279_v19, %v1283_v9  ;;  %v1327_v19 = vld [vmem:[%s20246_s1 + $0x2810] sm:$0xff] }
 0x51a   :  { %10750 = vmatprep.subr.bf16.mxu0 %v13833_v23  ;;  %v13881_v23 = vcombine.high %v1287_v16, %v1291_v11  ;;  %v1331_v9 = vld [vmem:[%s20246_s1 + $0x2830] sm:$0xff] }
 0x51b   :  { %11161 = vmatpush1.bf16.msra.mxu1 %v13578_v22  ;;  %v13626_v22 = vcombine.low %v1032_v40, %v1036_v14  ;;  %v1080_v40 = vld [vmem:[%s20246_s1 + $0x2058] sm:$0xff] }
 0x51c   :  { %11162 = vmatprep.subr.bf16.mxu1 %v13587_v13  ;;  %v13635_v13 = vcombine.high %v1040_v25, %v1044_v30  ;;  %v1084_v14 = vld [vmem:[%s20246_s1 + $0x2078] sm:$0xff] }
 0x51d   :  { %10751 = vmatpush1.bf16.msra.mxu0 %v13832_v7  ;;  %v13880_v7 = vcombine.low %v1287_v16, %v1291_v11  ;;  %v1335_v16 = vld [vmem:[%s20246_s1 + $0x2850] sm:$0xff] }
 0x51e   :  { %10752 = vmatprep.subr.bf16.mxu0 %v13841_v61  ;;  %v13889_v61 = vcombine.high %v1295_v29, %v1299_v62  ;;  %v1339_v11 = vld [vmem:[%s20246_s1 + $0x2870] sm:$0xff] }
 0x51f   :  { %11163 = vmatpush1.bf16.msra.mxu1 %v13586_v42  ;;  %v13634_v42 = vcombine.low %v1040_v25, %v1044_v30  ;;  %v1088_v25 = vld [vmem:[%s20246_s1 + $0x2098] sm:$0xff]  ;;  %v13929_v30 = vcombine.high %v1335_v16, %v1339_v11 }
 0x520   :  { %11164 = vmatprep.subr.bf16.mxu1 %v13595_v53  ;;  %v13643_v53 = vcombine.high %v1048_v35, %v1052_v37 }
 0x521   :  { %10753 = vmatpush1.bf16.msra.mxu0 %v13840_v43  ;;  %v13888_v43 = vcombine.low %v1295_v29, %v1299_v62  ;;  %v1092_v29 = vld [vmem:[%s20246_s1 + $0x20b8] sm:$0xff]  ;;  %v1347_v62 = vld [vmem:[%s20246_s1 + $0x28b0] sm:$0xff] }
 0x522   :  { %10754 = vmatprep.subr.bf16.mxu0 %v13849_v45  ;;  %v13897_v45 = vcombine.high %v1303_v39, %v1307_v48 }
 0x523   :  { %11165 = vmatpush1.bf16.msra.mxu1 %v13594_v60  ;;  %v13642_v60 = vcombine.low %v1048_v35, %v1052_v37  ;;  %v1096_v37 = vld [vmem:[%s20246_s1 + $0x20d8] sm:$0xff] }
 0x524   :  { %11166 = vmatprep.subr.bf16.mxu1 %v13603_v63  ;;  %v13651_v63 = vcombine.high %v1056_v47, %v1060_v55 }
 0x525   :  { %10755 = vmatpush1.bf16.msra.mxu0 %v13848_v12  ;;  %v13896_v12 = vcombine.low %v1303_v39, %v1307_v48  ;;  %v1100_v39 = vld [vmem:[%s20246_s1 + $0x20f8] sm:$0xff]  ;;  %v13682_v48 = vcombine.low %v1088_v25, %v1092_v29 }
 0x526   :  { %10756 = vmatprep.subr.bf16.mxu0 %v13857_v0  ;;  %v13905_v0 = vcombine.high %v1311_v56, %v1315_v21 }
 0x527   :  { %11167 = vmatpush1.bf16.msra.mxu1 %v13602_v36  ;;  %v13650_v36 = vcombine.low %v1056_v47, %v1060_v55  ;;  %v1104_v47 = vld [vmem:[%s20246_s1 + $0x2118] sm:$0xff] }
 0x528   :  { %11168 = vmatprep.subr.bf16.mxu1 %v13611_v26  ;;  %v13659_v26 = vcombine.high %v1064_v33, %v1068_v1  ;;  %v1108_v55 = vld [vmem:[%s20246_s1 + $0x2138] sm:$0xff] }
 0x529   :  { %10757 = vmatpush1.bf16.msra.mxu0 %v13856_v4  ;;  %v13904_v4 = vcombine.low %v1311_v56, %v1315_v21  ;;  %v13690_v56 = vcombine.low %v1096_v37, %v1100_v39 }
 0x52a   :  { %10758 = vmatprep.subr.bf16.mxu0 %v13865_v5  ;;  %v13913_v5 = vcombine.high %v1319_v2, %v1323_v34 }
 0x52b   :  { %11169 = vmatpush1.bf16.msra.mxu1 %v13610_v51  ;;  %v13658_v51 = vcombine.low %v1064_v33, %v1068_v1  ;;  %v1116_v1 = vld [vmem:[%s20246_s1 + $0x2178] sm:$0xff] }
 0x52c   :  { %11170 = vmatprep.subr.bf16.mxu1 %v13619_v10  ;;  %v13667_v10 = vcombine.high %v1072_v6, %v1076_v8 }
 0x52d   :  { %10759 = vmatpush1.bf16.msra.mxu0 %v13864_v58  ;;  %v13912_v58 = vcombine.low %v1319_v2, %v1323_v34  ;;  %v13698_v2 = vcombine.low %v1104_v47, %v1108_v55 }
 0x52e   :  { %10760 = vmatprep.subr.bf16.mxu0 %v13873_v52  ;;  %v13921_v52 = vcombine.high %v1327_v19, %v1331_v9 }
 0x52f   :  { %11171 = vmatpush1.bf16.msra.mxu1 %v13618_v15  ;;  %v13666_v15 = vcombine.low %v1072_v6, %v1076_v8  ;;  %v1124_v8 = vld [vmem:[%s20246_s1 + $0x21b8] sm:$0xff] }
 0x530   :  { %11172 = vmatprep.subr.bf16.mxu1 %v13627_v32  ;;  %v13675_v32 = vcombine.high %v1080_v40, %v1084_v14 }
 0x531   :  { %10761 = vmatpush1.bf16.msra.mxu0 %v13872_v3  ;;  %v13920_v3 = vcombine.low %v1327_v19, %v1331_v9 }
 0x532   :  { %10762 = vmatprep.subr.bf16.mxu0 %v13881_v23  ;;  %v1343_v23 = vld [vmem:[%s20246_s1 + $0x2890] sm:$0xff] }
 0x533   :  { %11173 = vmatpush1.bf16.msra.mxu1 %v13626_v22  ;;  %v13674_v22 = vcombine.low %v1080_v40, %v1084_v14  ;;  %v13937_v35 = vcombine.high %v1343_v23, %v1347_v62  ;;  %v1132_v14 = vld [vmem:[%s20246_s1 + $0x21f8] sm:$0xff] }
 0x534   :  { %11174 = vmatprep.subr.bf16.mxu1 %v13635_v13  ;;  %v13683_v13 = vcombine.high %v1088_v25, %v1092_v29 }
 0x535   :  { %10763 = vmatpush1.bf16.msra.mxu0 %v13880_v7  ;;  %v13928_v7 = vcombine.low %v1335_v16, %v1339_v11 }
 0x536   :  { %10764 = vmatprep.subr.bf16.mxu0 %v13889_v61  ;;  %v1351_v61 = vld [vmem:[%s20246_s1 + $0x28d0] sm:$0xff] }
 0x537   :  { %11175 = vmatpush1.bf16.msra.mxu1 %v13634_v42  ;;  %v13936_v42 = vcombine.low %v1343_v23, %v1347_v62  ;;  %v1136_v23 = vld [vmem:[%s20246_s1 + $0x2218] sm:$0xff] }
 0x538   :  { %11176 = vmatprep.subr.bf16.mxu1 %v13643_v53  ;;  %v1359_v53 = vld [vmem:[%s20246_s1 + $0x2910] sm:$0xff] }
 0x539   :  { %10765 = vmatpush1.bf16.msra.mxu0 %v13888_v43  ;;  %v13691_v43 = vcombine.high %v1096_v37, %v1100_v39 }
 0x53a   :  { %10766 = vmatprep.subr.bf16.mxu0 %v13897_v45  ;;  %v1363_v45 = vld [vmem:[%s20246_s1 + $0x2930] sm:$0xff] }
 0x53b   :  { %11177 = vmatpush1.bf16.msra.mxu1 %v13642_v60  ;;  %v13699_v60 = vcombine.high %v1104_v47, %v1108_v55  ;;  %v13953_v33 = vcombine.high %v1359_v53, %v1363_v45  ;;  %v13952_v34 = vcombine.low %v1359_v53, %v1363_v45  ;;  %v1152_v53 = vld [vmem:[%s20246_s1 + $0x2298] sm:$0xff] }
 0x53c   :  { %11178 = vmatprep.subr.bf16.mxu1 %v13651_v63  ;;  %v1371_v63 = vld [vmem:[%s20246_s1 + $0x2970] sm:$0xff]  ;;  %v1156_v47 = vld [vmem:[%s20246_s1 + $0x22b8] sm:$0xff] }
 0x53d   :  { %10767 = vmatpush1.bf16.msra.mxu0 %v13896_v12  ;;  %v1367_v12 = vld [vmem:[%s20246_s1 + $0x2950] sm:$0xff] }
 0x53e   :  { %10768 = vmatprep.subr.bf16.mxu0 %v13905_v0  ;;  %v1112_v0 = vld [vmem:[%s20246_s1 + $0x2158] sm:$0xff]  ;;  %v13961_v6 = vcombine.high %v1367_v12, %v1371_v63  ;;  %v13960_v9 = vcombine.low %v1367_v12, %v1371_v63 }
 0x53f   :  { %11179 = vmatpush1.bf16.msra.mxu1 %v13650_v36  ;;  %v13707_v36 = vcombine.high %v1112_v0, %v1116_v1  ;;  %v13706_v19 = vcombine.low %v1112_v0, %v1116_v1  ;;  %v1160_v12 = vld [vmem:[%s20246_s1 + $0x22d8] sm:$0xff] }
 0x540   :  { %11180 = vmatprep.subr.bf16.mxu1 %v13659_v26  ;;  %v1379_v26 = vld [vmem:[%s20246_s1 + $0x29b0] sm:$0xff]  ;;  %v1164_v0 = vld [vmem:[%s20246_s1 + $0x22f8] sm:$0xff] }
 0x541   :  { %10769 = vmatpush1.bf16.msra.mxu0 %v13904_v4  ;;  %v1375_v4 = vld [vmem:[%s20246_s1 + $0x2990] sm:$0xff] }
 0x542   :  { %10770 = vmatprep.subr.bf16.mxu0 %v13913_v5  ;;  %v1120_v5 = vld [vmem:[%s20246_s1 + $0x2198] sm:$0xff]  ;;  %v13969_v40 = vcombine.high %v1375_v4, %v1379_v26  ;;  %v13968_v11 = vcombine.low %v1375_v4, %v1379_v26 }
 0x543   :  { %11181 = vmatpush1.bf16.msra.mxu1 %v13658_v51  ;;  %v13715_v51 = vcombine.high %v1120_v5, %v1124_v8  ;;  %v13714_v16 = vcombine.low %v1120_v5, %v1124_v8  ;;  %v1168_v4 = vld [vmem:[%s20246_s1 + $0x2318] sm:$0xff] }
 0x544   :  { %11191 = vmatprep.subr.bf16.mxu1 %v13667_v10  ;;  %v1387_v10 = vld [vmem:[%s20246_s1 + $0x29f0] sm:$0xff]  ;;  %v1172_v5 = vld [vmem:[%s20246_s1 + $0x2338] sm:$0xff] }
 0x545   :  { %10771 = vmatpush1.bf16.msra.mxu0 %v13912_v58  ;;  %v1383_v58 = vld [vmem:[%s20246_s1 + $0x29d0] sm:$0xff] }
 0x546   :  { %10781 = vmatprep.subr.bf16.mxu0 %v13921_v52  ;;  %11183 = vmatmul.mubr.bf16.vlgmr.msra.gmra.mrb[8].mxu1 %v16373_v50  ;;  %v1355_v50 = vld [vmem:[%s20246_s1 + $0x28f0] sm:$0xff]  ;;  %v1128_v52 = vld [vmem:[%s20246_s1 + $0x21d8] sm:$0xff]  ;;  %v13977_v25 = vcombine.high %v1383_v58, %v1387_v10  ;;  %v13976_v62 = vcombine.low %v1383_v58, %v1387_v10 }
 0x547   :  { %11192 = vmatpush1.bf16.msra.mxu1 %v13666_v15  ;;  %11223 = vmatprep.mubr.bf16.mxu1 %v16383_v28  ;;  %v13945_v28 = vcombine.high %v1351_v61, %v1355_v50  ;;  %v13944_v21 = vcombine.low %v1351_v61, %v1355_v50  ;;  %v13723_v15 = vcombine.high %v1128_v52, %v1132_v14  ;;  %v1144_v61 = vld [vmem:[%s20246_s1 + $0x2258] sm:$0xff] }
 0x548   :  { %10773 = vmatmul.mubr.bf16.vlgmr.msra.gmra.mrb[4].mxu0 %v16791_v24  ;;  %11193 = vmatprep.subr.bf16.mxu1 %v13675_v32  ;;  %v1395_v32 = vld [vmem:[%s20246_s1 + $0x2a30] sm:$0xff]  ;;  %v13722_v29 = vcombine.low %v1128_v52, %v1132_v14  ;;  %v1176_v58 = vld [vmem:[%s20246_s1 + $0x2358] sm:$0xff] }
 0x549   :  { %10782 = vmatpush1.bf16.msra.mxu0 %v13920_v3  ;;  %10813 = vmatprep.mubr.bf16.mxu0 %v16801_v31  ;;  %v1391_v3 = vld [vmem:[%s20246_s1 + $0x2a10] sm:$0xff]  ;;  %v1180_v52 = vld [vmem:[%s20246_s1 + $0x2378] sm:$0xff] }
 0x54a   :  { %10783 = vmatprep.subr.bf16.mxu0 %v13929_v30  ;;  %v1140_v30 = vld [vmem:[%s20246_s1 + $0x2238] sm:$0xff]  ;;  %v13985_v50 = vcombine.high %v1391_v3, %v1395_v32  ;;  %v13984_v39 = vcombine.low %v1391_v3, %v1395_v32 }
 0x54b   :  { %11194 = vmatpush1.bf16.msra.mxu1 %v13674_v22  ;;  %v13731_v22 = vcombine.high %v1136_v23, %v1140_v30  ;;  %v13730_v37 = vcombine.low %v1136_v23, %v1140_v30  ;;  %v1184_v3 = vld [vmem:[%s20246_s1 + $0x2398] sm:$0xff] }
 0x54c   :  { %11195 = vmatprep.subr.bf16.mxu1 %v13683_v13  ;;  %v1403_v13 = vld [vmem:[%s20246_s1 + $0x2a70] sm:$0xff]  ;;  %v1188_v23 = vld [vmem:[%s20246_s1 + $0x23b8] sm:$0xff] }
 0x54d   :  { %10784 = vmatpush1.bf16.msra.mxu0 %v13928_v7  ;;  %v1399_v7 = vld [vmem:[%s20246_s1 + $0x2a50] sm:$0xff] }
 0x54e   :  { %10785 = vmatprep.subr.bf16.mxu0 %v13937_v35  ;;  %v1148_v35 = vld [vmem:[%s20246_s1 + $0x2278] sm:$0xff]  ;;  %v13993_v45 = vcombine.high %v1399_v7, %v1403_v13  ;;  %v13992_v55 = vcombine.low %v1399_v7, %v1403_v13 }
 0x54f   :  { %11196 = vmatpush1.bf16.msra.mxu1 %v13682_v48  ;;  %v13739_v48 = vcombine.high %v1144_v61, %v1148_v35  ;;  %v1192_v7 = vld [vmem:[%s20246_s1 + $0x23d8] sm:$0xff] }
 0x550   :  { %11197 = vmatprep.subr.bf16.mxu1 %v13691_v43  ;;  %v1411_v43 = vld [vmem:[%s20246_s1 + $0x2ab0] sm:$0xff] }
 0x551   :  { %10786 = vmatpush1.bf16.msra.mxu0 %v13936_v42  ;;  %v1407_v42 = vld [vmem:[%s20246_s1 + $0x2a90] sm:$0xff] }
 0x552   :  { %10787 = vmatprep.subr.bf16.mxu0 %v13945_v28  ;;  %v13738_v28 = vcombine.low %v1144_v61, %v1148_v35  ;;  %v14001_v63 = vcombine.high %v1407_v42, %v1411_v43  ;;  %v14000_v1 = vcombine.low %v1407_v42, %v1411_v43  ;;  %v1196_v61 = vld [vmem:[%s20246_s1 + $0x23f8] sm:$0xff] }
 0x553   :  { %11198 = vmatpush1.bf16.msra.mxu1 %v13690_v56  ;;  %v13747_v56 = vcombine.high %v1152_v53, %v1156_v47  ;;  %v1200_v42 = vld [vmem:[%s20246_s1 + $0x2418] sm:$0xff] }
 0x554   :  { %11199 = vmatprep.subr.bf16.mxu1 %v13699_v60  ;;  %v1419_v60 = vld [vmem:[%s20246_s1 + $0x2af0] sm:$0xff] }
 0x555   :  { %10788 = vmatpush1.bf16.msra.mxu0 %v13944_v21  ;;  %v1415_v21 = vld [vmem:[%s20246_s1 + $0x2ad0] sm:$0xff] }
 0x556   :  { %10789 = vmatprep.subr.bf16.mxu0 %v13953_v33  ;;  %v13746_v33 = vcombine.low %v1152_v53, %v1156_v47  ;;  %v14009_v26 = vcombine.high %v1415_v21, %v1419_v60  ;;  %v14008_v8 = vcombine.low %v1415_v21, %v1419_v60  ;;  %v1204_v53 = vld [vmem:[%s20246_s1 + $0x2438] sm:$0xff] }
 0x557   :  { %11200 = vmatpush1.bf16.msra.mxu1 %v13698_v2  ;;  %v13755_v2 = vcombine.high %v1160_v12, %v1164_v0  ;;  %v1208_v21 = vld [vmem:[%s20246_s1 + $0x2458] sm:$0xff] }
 0x558   :  { %11201 = vmatprep.subr.bf16.mxu1 %v13707_v36  ;;  %v1427_v36 = vld [vmem:[%s20246_s1 + $0x2b30] sm:$0xff] }
 0x559   :  { %10790 = vmatpush1.bf16.msra.mxu0 %v13952_v34  ;;  %v1423_v34 = vld [vmem:[%s20246_s1 + $0x2b10] sm:$0xff] }
 0x55a   :  { %10791 = vmatprep.subr.bf16.mxu0 %v13961_v6  ;;  %v13754_v6 = vcombine.low %v1160_v12, %v1164_v0  ;;  %v14017_v10 = vcombine.high %v1423_v34, %v1427_v36  ;;  %v14016_v14 = vcombine.low %v1423_v34, %v1427_v36  ;;  %v1212_v12 = vld [vmem:[%s20246_s1 + $0x2478] sm:$0xff]  ;;  %v1471_v36 = vld [vmem:[%s20246_s1 + $0x2c90] sm:$0xff] }
 0x55b   :  { %11202 = vmatpush1.bf16.msra.mxu1 %v13706_v19  ;;  %v13763_v19 = vcombine.high %v1168_v4, %v1172_v5  ;;  %v1220_v34 = vld [vmem:[%s20246_s1 + $0x24b8] sm:$0xff] }
 0x55c   :  { %11203 = vmatprep.subr.bf16.mxu1 %v13715_v51  ;;  %v1435_v51 = vld [vmem:[%s20246_s1 + $0x2b70] sm:$0xff] }
 0x55d   :  { %10792 = vmatpush1.bf16.msra.mxu0 %v13960_v9  ;;  %v1431_v9 = vld [vmem:[%s20246_s1 + $0x2b50] sm:$0xff] }
 0x55e   :  { %10793 = vmatprep.subr.bf16.mxu0 %v13969_v40  ;;  %v13762_v40 = vcombine.low %v1168_v4, %v1172_v5  ;;  %v14025_v32 = vcombine.high %v1431_v9, %v1435_v51  ;;  %v14024_v30 = vcombine.low %v1431_v9, %v1435_v51  ;;  %v1475_v4 = vld [vmem:[%s20246_s1 + $0x2cb0] sm:$0xff] }
 0x55f   :  { %11204 = vmatpush1.bf16.msra.mxu1 %v13714_v16  ;;  %v13771_v16 = vcombine.high %v1176_v58, %v1180_v52  ;;  %v1479_v9 = vld [vmem:[%s20246_s1 + $0x2cd0] sm:$0xff] }
 0x560   :  { %11205 = vmatprep.subr.bf16.mxu1 %v13723_v15  ;;  %v1443_v15 = vld [vmem:[%s20246_s1 + $0x2bb0] sm:$0xff] }
 0x561   :  { %10794 = vmatpush1.bf16.msra.mxu0 %v13968_v11  ;;  %v1439_v11 = vld [vmem:[%s20246_s1 + $0x2b90] sm:$0xff] }
 0x562   :  { %10795 = vmatprep.subr.bf16.mxu0 %v13977_v25  ;;  %v13770_v25 = vcombine.low %v1176_v58, %v1180_v52  ;;  %v14033_v13 = vcombine.high %v1439_v11, %v1443_v15  ;;  %v14032_v35 = vcombine.low %v1439_v11, %v1443_v15  ;;  %v1483_v51 = vld [vmem:[%s20246_s1 + $0x2cf0] sm:$0xff] }
 0x563   :  { %11206 = vmatpush1.bf16.msra.mxu1 %v13722_v29  ;;  %v13779_v29 = vcombine.high %v1184_v3, %v1188_v23  ;;  %v1491_v11 = vld [vmem:[%s20246_s1 + $0x2d30] sm:$0xff] }
 0x564   :  { %11207 = vmatprep.subr.bf16.mxu1 %v13731_v22  ;;  %v1451_v22 = vld [vmem:[%s20246_s1 + $0x2bf0] sm:$0xff] }
 0x565   :  { %10796 = vmatpush1.bf16.msra.mxu0 %v13976_v62  ;;  %v1447_v62 = vld [vmem:[%s20246_s1 + $0x2bd0] sm:$0xff] }
 0x566   :  { %10797 = vmatprep.subr.bf16.mxu0 %v13985_v50  ;;  %v13778_v50 = vcombine.low %v1184_v3, %v1188_v23  ;;  %v14041_v43 = vcombine.high %v1447_v62, %v1451_v22  ;;  %v14040_v47 = vcombine.low %v1447_v62, %v1451_v22  ;;  %v14072_v3 = vcombine.low %v1479_v9, %v1483_v51  ;;  %v1499_v62 = vld [vmem:[%s20246_s1 + $0x2d70] sm:$0xff] }
 0x567   :  { %11208 = vmatpush1.bf16.msra.mxu1 %v13730_v37  ;;  %v13787_v37 = vcombine.high %v1192_v7, %v1196_v61 }
 0x568   :  { %11209 = vmatprep.subr.bf16.mxu1 %v13739_v48  ;;  %v1459_v48 = vld [vmem:[%s20246_s1 + $0x2c30] sm:$0xff] }
 0x569   :  { %10798 = vmatpush1.bf16.msra.mxu0 %v13984_v39  ;;  %v1455_v39 = vld [vmem:[%s20246_s1 + $0x2c10] sm:$0xff] }
 0x56a   :  { %10799 = vmatprep.subr.bf16.mxu0 %v13993_v45  ;;  %v13786_v45 = vcombine.low %v1192_v7, %v1196_v61  ;;  %v14049_v60 = vcombine.high %v1455_v39, %v1459_v48  ;;  %v14048_v0 = vcombine.low %v1455_v39, %v1459_v48  ;;  %v1507_v39 = vld [vmem:[%s20246_s1 + $0x2db0] sm:$0xff] }
 0x56b   :  { %11210 = vmatpush1.bf16.msra.mxu1 %v13738_v28  ;;  %v13795_v28 = vcombine.high %v1200_v42, %v1204_v53 }
 0x56c   :  { %11211 = vmatprep.subr.bf16.mxu1 %v13747_v56  ;;  %v1467_v56 = vld [vmem:[%s20246_s1 + $0x2c70] sm:$0xff] }
 0x56d   :  { %10800 = vmatpush1.bf16.msra.mxu0 %v13992_v55  ;;  %v1463_v55 = vld [vmem:[%s20246_s1 + $0x2c50] sm:$0xff] }
 0x56e   :  { %10801 = vmatprep.subr.bf16.mxu0 %v14001_v63  ;;  %v13794_v63 = vcombine.low %v1200_v42, %v1204_v53  ;;  %v14056_v5 = vcombine.low %v1463_v55, %v1467_v56 }
 0x56f   :  { %11212 = vmatpush1.bf16.msra.mxu1 %v13746_v33  ;;  %v13803_v33 = vcombine.high %v1208_v21, %v1212_v12 }
 0x570   :  { %11213 = vmatprep.subr.bf16.mxu1 %v13755_v2  ;;  %v1216_v2 = vld [vmem:[%s20246_s1 + $0x2498] sm:$0xff] }
 0x571   :  { %10802 = vmatpush1.bf16.msra.mxu0 %v14000_v1  ;;  %v14057_v1 = vcombine.high %v1463_v55, %v1467_v56  ;;  %v13810_v58 = vcombine.low %v1216_v2, %v1220_v34  ;;  %v1515_v55 = vld [vmem:[%s20246_s1 + $0x2df0] sm:$0xff] }
 0x572   :  { %10803 = vmatprep.subr.bf16.mxu0 %v14009_v26  ;;  %v13802_v26 = vcombine.low %v1208_v21, %v1212_v12 }
 0x573   :  { %11214 = vmatpush1.bf16.msra.mxu1 %v13754_v6  ;;  %v13811_v6 = vcombine.high %v1216_v2, %v1220_v34 }
 0x574   :  { %11215 = vmatprep.subr.bf16.mxu1 %v13763_v19  ;;  %v1228_v19 = vld [vmem:[%s20246_s1 + $0x24f8] sm:$0xff] }
 0x575   :  { %10804 = vmatpush1.bf16.msra.mxu0 %v14008_v8  ;;  %v14065_v8 = vcombine.high %v1471_v36, %v1475_v4 }
 0x576   :  { %10805 = vmatprep.subr.bf16.mxu0 %v14017_v10  ;;  %v14064_v10 = vcombine.low %v1471_v36, %v1475_v4 }
 0x577   :  { %11216 = vmatpush1.bf16.msra.mxu1 %v13762_v40  ;;  %v14073_v40 = vcombine.high %v1479_v9, %v1483_v51 }
 0x578   :  { %11217 = vmatprep.subr.bf16.mxu1 %v13771_v16  ;;  %v1236_v16 = vld [vmem:[%s20246_s1 + $0x2538] sm:$0xff] }
 0x579   :  { %10806 = vmatpush1.bf16.msra.mxu0 %v14016_v14  ;;  %v1232_v14 = vld [vmem:[%s20246_s1 + $0x2518] sm:$0xff] }
 0x57a   :  { %10807 = vmatprep.subr.bf16.mxu0 %v14025_v32  ;;  %v13827_v32 = vcombine.high %v1232_v14, %v1236_v16  ;;  %v13826_v22 = vcombine.low %v1232_v14, %v1236_v16 }
 0x57b   :  { %11218 = vmatpush1.bf16.msra.mxu1 %v13770_v25  ;;  %v1240_v25 = vld [vmem:[%s20246_s1 + $0x2558] sm:$0xff] }
 0x57c   :  { %11219 = vmatprep.subr.bf16.mxu1 %v13779_v29  ;;  %v1495_v29 = vld [vmem:[%s20246_s1 + $0x2d50] sm:$0xff] }
 0x57d   :  { %10808 = vmatpush1.bf16.msra.mxu0 %v14024_v30  ;;  %v1244_v30 = vld [vmem:[%s20246_s1 + $0x2578] sm:$0xff]  ;;  %v14089_v61 = vcombine.high %v1495_v29, %v1499_v62  ;;  %v14088_v42 = vcombine.low %v1495_v29, %v1499_v62 }
 0x57e   :  { %10809 = vmatprep.subr.bf16.mxu0 %v14033_v13  ;;  %v13835_v13 = vcombine.high %v1240_v25, %v1244_v30  ;;  %v13834_v48 = vcombine.low %v1240_v25, %v1244_v30 }
 0x57f   :  { %11220 = vmatpush1.bf16.msra.mxu1 %v13778_v50  ;;  %v1248_v50 = vld [vmem:[%s20246_s1 + $0x2598] sm:$0xff] }
 0x580   :  { %11221 = vmatprep.subr.bf16.mxu1 %v13787_v37  ;;  %v1503_v37 = vld [vmem:[%s20246_s1 + $0x2d90] sm:$0xff] }
 0x581   :  { %10810 = vmatpush1.bf16.msra.mxu0 %v14032_v35  ;;  %v1252_v35 = vld [vmem:[%s20246_s1 + $0x25b8] sm:$0xff]  ;;  %v14097_v53 = vcombine.high %v1503_v37, %v1507_v39  ;;  %v14096_v21 = vcombine.low %v1503_v37, %v1507_v39 }
 0x582   :  { %10811 = vmatprep.subr.bf16.mxu0 %v14041_v43  ;;  %v13843_v43 = vcombine.high %v1248_v50, %v1252_v35  ;;  %v13842_v56 = vcombine.low %v1248_v50, %v1252_v35 }
 0x583   :  { %11222 = vmatpush1.bf16.msra.mxu1 %v13786_v45  ;;  %v1256_v45 = vld [vmem:[%s20246_s1 + $0x25d8] sm:$0xff] }
 0x584   :  { %11232 = vmatprep.subr.bf16.mxu1 %v13795_v28  ;;  %v1511_v28 = vld [vmem:[%s20246_s1 + $0x2dd0] sm:$0xff] }
 0x585   :  { %10812 = vmatpush1.bf16.msra.mxu0 %v14040_v47  ;;  %v1260_v47 = vld [vmem:[%s20246_s1 + $0x25f8] sm:$0xff]  ;;  %v14105_v12 = vcombine.high %v1511_v28, %v1515_v55  ;;  %v14104_v34 = vcombine.low %v1511_v28, %v1515_v55 }
 0x586   :  { %10822 = vmatprep.subr.bf16.mxu0 %v14049_v60  ;;  %11224 = vmatmul.mubr.bf16.vlgmr.msra.gmra.mrb[8].mxu1 %v16582_v17  ;;  %v1224_v17 = vld [vmem:[%s20246_s1 + $0x24d8] sm:$0xff]  ;;  %v13851_v60 = vcombine.high %v1256_v45, %v1260_v47  ;;  %v13850_v2 = vcombine.low %v1256_v45, %v1260_v47 }
 0x587   :  { %11233 = vmatpush1.bf16.msra.mxu1 %v13794_v63  ;;  %11264 = vmatprep.mubr.bf16.mxu1 %v16592_v54  ;;  %v13819_v52 = vcombine.high %v1224_v17, %v1228_v19  ;;  %v1487_v54 = vld [vmem:[%s20246_s1 + $0x2d10] sm:$0xff]  ;;  %v13818_v15 = vcombine.low %v1224_v17, %v1228_v19  ;;  %v1264_v63 = vld [vmem:[%s20246_s1 + $0x2618] sm:$0xff] }
 0x588   :  { %10814 = vmatmul.mubr.bf16.vlgmr.msra.gmra.mrb[4].mxu0 %v17000_v38  ;;  %11234 = vmatprep.subr.bf16.mxu1 %v13803_v33  ;;  %v14081_v23 = vcombine.high %v1487_v54, %v1491_v11  ;;  %v14080_v7 = vcombine.low %v1487_v54, %v1491_v11  ;;  %v1519_v33 = vld [vmem:[%s20246_s1 + $0x2e10] sm:$0xff] }
 0x589   :  { %10823 = vmatpush1.bf16.msra.mxu0 %v14048_v0  ;;  %10854 = vmatprep.mubr.bf16.mxu0 %v17010_v44  ;;  %v1268_v0 = vld [vmem:[%s20246_s1 + $0x2638] sm:$0xff] }
 0x58a   :  { %10824 = vmatprep.subr.bf16.mxu0 %v14057_v1  ;;  %v1523_v1 = vld [vmem:[%s20246_s1 + $0x2e30] sm:$0xff]  ;;  %v13859_v36 = vcombine.high %v1264_v63, %v1268_v0  ;;  %v13858_v17 = vcombine.low %v1264_v63, %v1268_v0 }
 0x58b   :  { %11235 = vmatpush1.bf16.msra.mxu1 %v13802_v26  ;;  %v14113_v4 = vcombine.high %v1519_v33, %v1523_v1  ;;  %v1272_v26 = vld [vmem:[%s20246_s1 + $0x2658] sm:$0xff]  ;;  %v14112_v19 = vcombine.low %v1519_v33, %v1523_v1 }
 0x58c   :  { %11236 = vmatprep.subr.bf16.mxu1 %v13811_v6  ;;  %v1527_v6 = vld [vmem:[%s20246_s1 + $0x2e50] sm:$0xff] }
 0x58d   :  { %10825 = vmatpush1.bf16.msra.mxu0 %v14056_v5  ;;  %v1276_v5 = vld [vmem:[%s20246_s1 + $0x2678] sm:$0xff] }
 0x58e   :  { %10826 = vmatprep.subr.bf16.mxu0 %v14065_v8  ;;  %v1531_v8 = vld [vmem:[%s20246_s1 + $0x2e70] sm:$0xff]  ;;  %v13867_v9 = vcombine.high %v1272_v26, %v1276_v5  ;;  %v13866_v14 = vcombine.low %v1272_v26, %v1276_v5 }
 0x58f   :  { %11237 = vmatpush1.bf16.msra.mxu1 %v13810_v58  ;;  %v14121_v51 = vcombine.high %v1527_v6, %v1531_v8  ;;  %v1280_v58 = vld [vmem:[%s20246_s1 + $0x2698] sm:$0xff]  ;;  %v14120_v16 = vcombine.low %v1527_v6, %v1531_v8 }
 0x590   :  { %11238 = vmatprep.subr.bf16.mxu1 %v13819_v52  ;;  %v1535_v52 = vld [vmem:[%s20246_s1 + $0x2e90] sm:$0xff] }
 0x591   :  { %10827 = vmatpush1.bf16.msra.mxu0 %v14064_v10  ;;  %v1284_v10 = vld [vmem:[%s20246_s1 + $0x26b8] sm:$0xff] }
 0x592   :  { %10828 = vmatprep.subr.bf16.mxu0 %v14073_v40  ;;  %v1539_v40 = vld [vmem:[%s20246_s1 + $0x2eb0] sm:$0xff]  ;;  %v13875_v54 = vcombine.high %v1280_v58, %v1284_v10  ;;  %v13874_v25 = vcombine.low %v1280_v58, %v1284_v10  ;;  %v14601_v10 = vld [vmem:[%s20249_s3 + $0x4] ss:$8 sps:$4 sm:$0xff]  }
 0x593   :  { %11239 = vmatpush1.bf16.msra.mxu1 %v13818_v15  ;;  %v14129_v11 = vcombine.high %v1535_v52, %v1539_v40  ;;  %v1288_v15 = vld [vmem:[%s20246_s1 + $0x26d8] sm:$0xff]  ;;  %v14128_v30 = vcombine.low %v1535_v52, %v1539_v40  ;;  %v11356_v52 = vmax.f32 %v17885_v20, 0.0 }
 0x594   :  { %11240 = vmatprep.subr.bf16.mxu1 %v13827_v32  ;;  %v1543_v32 = vld [vmem:[%s20246_s1 + $0x2ed0] sm:$0xff]  ;;  %v1336_v40 = vld [vmem:[%s20246_s1 + $0x2858] sm:$0xff] }
 0x595   :  { %10829 = vmatpush1.bf16.msra.mxu0 %v14072_v3  ;;  %v1292_v3 = vld [vmem:[%s20246_s1 + $0x26f8] sm:$0xff] }
 0x596   :  { %10830 = vmatprep.subr.bf16.mxu0 %v14081_v23  ;;  %v1547_v23 = vld [vmem:[%s20246_s1 + $0x2ef0] sm:$0xff]  ;;  %v13883_v29 = vcombine.high %v1288_v15, %v1292_v3  ;;  %v13882_v50 = vcombine.low %v1288_v15, %v1292_v3  ;;  %v1344_v15 = vld [vmem:[%s20246_s1 + $0x2898] sm:$0xff] }
 0x597   :  { %11241 = vmatpush1.bf16.msra.mxu1 %v13826_v22  ;;  %v14137_v62 = vcombine.high %v1543_v32, %v1547_v23  ;;  %v1296_v22 = vld [vmem:[%s20246_s1 + $0x2718] sm:$0xff]  ;;  %v14136_v35 = vcombine.low %v1543_v32, %v1547_v23  ;;  %v11364_v32 = vpack.c.bf16 %v11356_v52, %v11356_v52 }
 0x598   :  { %11242 = vmatprep.subr.bf16.mxu1 %v13835_v13  ;;  %v1551_v13 = vld [vmem:[%s20246_s1 + $0x2f10] sm:$0xff]  ;;  %v1348_v3 = vld [vmem:[%s20246_s1 + $0x28b8] sm:$0xff] }
 0x599   :  { %10831 = vmatpush1.bf16.msra.mxu0 %v14080_v7  ;;  %v1300_v7 = vld [vmem:[%s20246_s1 + $0x2738] sm:$0xff] }
 0x59a   :  { %10832 = vmatprep.subr.bf16.mxu0 %v14089_v61  ;;  %v1555_v61 = vld [vmem:[%s20246_s1 + $0x2f30] sm:$0xff]  ;;  %v13891_v37 = vcombine.high %v1296_v22, %v1300_v7  ;;  %v13890_v45 = vcombine.low %v1296_v22, %v1300_v7  ;;  %v13938_v22 = vcombine.low %v1344_v15, %v1348_v3  ;;  %v14605_v7 = vld [vmem:[%s20249_s3 + $0x20] ss:$8 sps:$4 sm:$0xff]  }
 0x59b   :  { %11243 = vmatpush1.bf16.msra.mxu1 %v13834_v48  ;;  %v14145_v39 = vcombine.high %v1551_v13, %v1555_v61  ;;  %v1304_v48 = vld [vmem:[%s20246_s1 + $0x2758] sm:$0xff]  ;;  %v14144_v47 = vcombine.low %v1551_v13, %v1555_v61 }
 0x59c   :  { %11244 = vmatprep.subr.bf16.mxu1 %v13843_v43  ;;  %v1559_v43 = vld [vmem:[%s20246_s1 + $0x2f50] sm:$0xff] }
 0x59d   :  { %10833 = vmatpush1.bf16.msra.mxu0 %v14088_v42  ;;  %v1308_v42 = vld [vmem:[%s20246_s1 + $0x2778] sm:$0xff] }
 0x59e   :  { %10834 = vmatprep.subr.bf16.mxu0 %v14097_v53  ;;  %v1563_v53 = vld [vmem:[%s20246_s1 + $0x2f70] sm:$0xff]  ;;  %v13899_v28 = vcombine.high %v1304_v48, %v1308_v42  ;;  %v13898_v63 = vcombine.low %v1304_v48, %v1308_v42  ;;  %v14613_v48 = vld [vmem:[%s20249_s3 + $0x44] ss:$8 sps:$4 sm:$0xff]   ;;  %v1368_v42 = vld [vmem:[%s20246_s1 + $0x2958] sm:$0xff] }
 0x59f   :  { %11245 = vmatpush1.bf16.msra.mxu1 %v13842_v56  ;;  %v14153_v55 = vcombine.high %v1559_v43, %v1563_v53  ;;  %v1312_v56 = vld [vmem:[%s20246_s1 + $0x2798] sm:$0xff]  ;;  %v14152_v0 = vcombine.low %v1559_v43, %v1563_v53 }
 0x5a0   :  { %11246 = vmatprep.subr.bf16.mxu1 %v13851_v60  ;;  %v1567_v60 = vld [vmem:[%s20246_s1 + $0x2f90] sm:$0xff]  ;;  %v1372_v43 = vld [vmem:[%s20246_s1 + $0x2978] sm:$0xff] }
 0x5a1   :  { %10835 = vmatpush1.bf16.msra.mxu0 %v14096_v21  ;;  %v1316_v21 = vld [vmem:[%s20246_s1 + $0x27b8] sm:$0xff] }
 0x5a2   :  { %10836 = vmatprep.subr.bf16.mxu0 %v14105_v12  ;;  %v1571_v12 = vld [vmem:[%s20246_s1 + $0x2fb0] sm:$0xff]  ;;  %v13907_v33 = vcombine.high %v1312_v56, %v1316_v21  ;;  %v13906_v26 = vcombine.low %v1312_v56, %v1316_v21  ;;  %v1380_v56 = vld [vmem:[%s20246_s1 + $0x29b8] sm:$0xff]  ;;  %v13962_v21 = vcombine.low %v1368_v42, %v1372_v43 }
 0x5a3   :  { %11247 = vmatpush1.bf16.msra.mxu1 %v13850_v2  ;;  %v14161_v1 = vcombine.high %v1567_v60, %v1571_v12  ;;  %v1320_v2 = vld [vmem:[%s20246_s1 + $0x27d8] sm:$0xff]  ;;  %v14160_v5 = vcombine.low %v1567_v60, %v1571_v12 }
 0x5a4   :  { %11248 = vmatprep.subr.bf16.mxu1 %v13859_v36  ;;  %v1575_v36 = vld [vmem:[%s20246_s1 + $0x2fd0] sm:$0xff] }
 0x5a5   :  { %10837 = vmatpush1.bf16.msra.mxu0 %v14104_v34  ;;  %v1324_v34 = vld [vmem:[%s20246_s1 + $0x27f8] sm:$0xff] }
 0x5a6   :  { %10838 = vmatprep.subr.bf16.mxu0 %v14113_v4  ;;  %v1579_v4 = vld [vmem:[%s20246_s1 + $0x2ff0] sm:$0xff]  ;;  %v13915_v6 = vcombine.high %v1320_v2, %v1324_v34 }
 0x5a7   :  { %11249 = vmatpush1.bf16.msra.mxu1 %v13858_v17  ;;  %v14169_v8 = vcombine.high %v1575_v36, %v1579_v4  ;;  %v1328_v17 = vld [vmem:[%s20246_s1 + $0x2818] sm:$0xff] }
 0x5a8   :  { %11250 = vmatprep.subr.bf16.mxu1 %v13867_v9  ;;  %v13914_v9 = vcombine.low %v1320_v2, %v1324_v34  ;;  %v14604_v20 = vld [vmem:[%s20249_s3 + $0x14] ss:$8 sps:$4 sm:$0xff]   ;;  %v14614_v60 = vld [vmem:[%s20249_s3 + $0x50] ss:$8 sps:$4 sm:$0xff]   ;;  %v14617_v2 = vld [vmem:[%s20249_s3 + $0x60] ss:$8 sps:$4 sm:$0xff]  }
 0x5a9   :  { %10839 = vmatpush1.bf16.msra.mxu0 %v14112_v19  ;;  %v1332_v19 = vld [vmem:[%s20246_s1 + $0x2838] sm:$0xff] }
 0x5aa   :  { %10840 = vmatprep.subr.bf16.mxu0 %v14121_v51  ;;  %v14168_v51 = vcombine.low %v1575_v36, %v1579_v4  ;;  %v13923_v58 = vcombine.high %v1328_v17, %v1332_v19  ;;  %v14610_v61 = vld [vmem:[%s20249_s3 + $0x34] ss:$8 sps:$4 sm:$0xff]  }
 0x5ab   :  { %11251 = vmatpush1.bf16.msra.mxu1 %v13866_v14  ;;  %v1340_v14 = vld [vmem:[%s20246_s1 + $0x2878] sm:$0xff] }
 0x5ac   :  { %11252 = vmatprep.subr.bf16.mxu1 %v13875_v54  ;;  %v14599_v54 = vld [vmem:[%s20249_s3] ss:$8 sps:$4 sm:$0xff]   ;;  %v13930_v23 = vcombine.low %v1336_v40, %v1340_v14  ;;  %v14622_v36 = vld [vmem:[%s20249_s3 + $0x74] ss:$8 sps:$4 sm:$0xff]  }
 0x5ad   :  { %10841 = vmatpush1.bf16.msra.mxu0 %v14120_v16  ;;  %v13922_v16 = vcombine.low %v1328_v17, %v1332_v19  ;;  %v1392_v4 = vld [vmem:[%s20246_s1 + $0x2a18] sm:$0xff]  ;;  %v14625_v17 = vld [vmem:[%s20249_s3 + $0x84] ss:$8 sps:$4 sm:$0xff]  }
 0x5ae   :  { %10842 = vmatprep.subr.bf16.mxu0 %v14129_v11  ;;  %v13931_v11 = vcombine.high %v1336_v40, %v1340_v14  ;;  %v1400_v19 = vld [vmem:[%s20246_s1 + $0x2a58] sm:$0xff] }
 0x5af   :  { %11253 = vmatpush1.bf16.msra.mxu1 %v13874_v25  ;;  %v14602_v25 = vld [vmem:[%s20249_s3 + $0x10] ss:$8 sps:$4 sm:$0xff]   ;;  %v14628_v52 = vld [vmem:[%s20249_s3 + $0x94] ss:$8 sps:$4 sm:$0xff]  }
 0x5b0   :  { %11254 = vmatprep.subr.bf16.mxu1 %v13883_v29  ;;  %v14607_v29 = vld [vmem:[%s20249_s3 + $0x24] ss:$8 sps:$4 sm:$0xff]   ;;  %v1408_v40 = vld [vmem:[%s20246_s1 + $0x2a98] sm:$0xff] }
 0x5b1   :  { %10843 = vmatpush1.bf16.msra.mxu0 %v14128_v30  ;;  %v13939_v30 = vcombine.high %v1344_v15, %v1348_v3  ;;  %v1412_v14 = vld [vmem:[%s20246_s1 + $0x2ab8] sm:$0xff] }
 0x5b2   :  { %10844 = vmatprep.subr.bf16.mxu0 %v14137_v62  ;;  %v1356_v62 = vld [vmem:[%s20246_s1 + $0x28f8] sm:$0xff] }
 0x5b3   :  { %11255 = vmatpush1.bf16.msra.mxu1 %v13882_v50  ;;  %v1360_v50 = vld [vmem:[%s20246_s1 + $0x2918] sm:$0xff] }
 0x5b4   :  { %11256 = vmatprep.subr.bf16.mxu1 %v13891_v37  ;;  %v14608_v37 = vld [vmem:[%s20249_s3 + $0x30] ss:$8 sps:$4 sm:$0xff]  }
 0x5b5   :  { %10845 = vmatpush1.bf16.msra.mxu0 %v14136_v35  ;;  %v1416_v15 = vld [vmem:[%s20246_s1 + $0x2ad8] sm:$0xff] }
 0x5b6   :  { %10846 = vmatprep.subr.bf16.mxu0 %v14145_v39  ;;  %v1420_v3 = vld [vmem:[%s20246_s1 + $0x2af8] sm:$0xff] }
 0x5b7   :  { %11257 = vmatpush1.bf16.msra.mxu1 %v13890_v45  ;;  %v14611_v45 = vld [vmem:[%s20249_s3 + $0x40] ss:$8 sps:$4 sm:$0xff]  }
 0x5b8   :  { %11258 = vmatprep.subr.bf16.mxu1 %v13899_v28  ;;  %v14616_v28 = vld [vmem:[%s20249_s3 + $0x54] ss:$8 sps:$4 sm:$0xff]  }
 0x5b9   :  { %10847 = vmatpush1.bf16.msra.mxu0 %v14144_v47  ;;  %v13963_v47 = vcombine.high %v1368_v42, %v1372_v43  ;;  %v1444_v42 = vld [vmem:[%s20246_s1 + $0x2bb8] sm:$0xff]  ;;  %v1597_v43 = vsub.s32 3, %v17822_v27 }
 0x5ba   :  { %10848 = vmatprep.subr.bf16.mxu0 %v14153_v55  ;;  %v1376_v55 = vld [vmem:[%s20246_s1 + $0x2998] sm:$0xff] }
 0x5bb   :  { %11259 = vmatpush1.bf16.msra.mxu1 %v13898_v63  ;;  %v13971_v12 = vcombine.high %v1376_v55, %v1380_v56  ;;  %v14619_v63 = vld [vmem:[%s20249_s3 + $0x64] ss:$8 sps:$4 sm:$0xff]  }
 0x5bc   :  { %11260 = vmatprep.subr.bf16.mxu1 %v13907_v33  ;;  %v1388_v33 = vld [vmem:[%s20246_s1 + $0x29f8] sm:$0xff] }
 0x5bd   :  { %10849 = vmatpush1.bf16.msra.mxu0 %v14152_v0  ;;  %v1384_v0 = vld [vmem:[%s20246_s1 + $0x29d8] sm:$0xff] }
 0x5be   :  { %10850 = vmatprep.subr.bf16.mxu0 %v14161_v1  ;;  %v13970_v1 = vcombine.low %v1376_v55, %v1380_v56  ;;  %v13979_v34 = vcombine.high %v1384_v0, %v1388_v33  ;;  %v1448_v55 = vld [vmem:[%s20246_s1 + $0x2bd8] sm:$0xff] }
 0x5bf   :  { %11261 = vmatpush1.bf16.msra.mxu1 %v13906_v26  ;;  %v1396_v26 = vld [vmem:[%s20246_s1 + $0x2a38] sm:$0xff] }
 0x5c0   :  { %11262 = vmatprep.subr.bf16.mxu1 %v13915_v6  ;;  %v14620_v6 = vld [vmem:[%s20249_s3 + $0x70] ss:$8 sps:$4 sm:$0xff]  }
 0x5c1   :  { %10851 = vmatpush1.bf16.msra.mxu0 %v14160_v5  ;;  %v13978_v5 = vcombine.low %v1384_v0, %v1388_v33  ;;  %v1452_v56 = vld [vmem:[%s20246_s1 + $0x2bf8] sm:$0xff] }
 0x5c2   :  { %10852 = vmatprep.subr.bf16.mxu0 %v14169_v8  ;;  %v13987_v8 = vcombine.high %v1392_v4, %v1396_v26  ;;  %v14043_v0 = vcombine.high %v1448_v55, %v1452_v56  ;;  %v14646_v33 = vld [vmem:[%s20249_s3 + $0xf4] ss:$8 sps:$4 sm:$0xff]  }
 0x5c3   :  { %11263 = vmatpush1.bf16.msra.mxu1 %v13914_v9  ;;  %v1404_v9 = vld [vmem:[%s20246_s1 + $0x2a78] sm:$0xff] }
 0x5c4   :  { %11273 = vmatprep.subr.bf16.mxu1 %v13923_v58  ;;  %v14623_v58 = vld [vmem:[%s20249_s3 + $0x80] ss:$8 sps:$4 sm:$0xff]  }
 0x5c5   :  { %10853 = vmatpush1.bf16.msra.mxu0 %v14168_v51  ;;  %v13986_v51 = vcombine.low %v1392_v4, %v1396_v26  ;;  %v14644_v4 = vld [vmem:[%s20249_s3 + $0xf0] ss:$8 sps:$4 sm:$0xff]  }
 0x5c6   :  { %12151 = vmatprep.subr.bf16.mxu0 %v14601_v10  ;;  %11265 = vmatmul.mubr.bf16.vlgmr.msra.gmra.mrb[8].mxu1 %v16791_v24  ;;  %v1352_v24 = vld [vmem:[%s20246_s1 + $0x28d8] sm:$0xff]  ;;  %v13995_v10 = vcombine.high %v1400_v19, %v1404_v9 }
 0x5c7   :  { %11274 = vmatpush1.bf16.msra.mxu1 %v13922_v16  ;;  %11305 = vmatprep.mubr.bf16.mxu1 %v16801_v31  ;;  %v13947_v13 = vcombine.high %v1352_v24, %v1356_v62  ;;  %v1364_v31 = vld [vmem:[%s20246_s1 + $0x2938] sm:$0xff]  ;;  %v13946_v35 = vcombine.low %v1352_v24, %v1356_v62  ;;  %v13994_v16 = vcombine.low %v1400_v19, %v1404_v9 }
 0x5c8   :  { %10855 = vmatmul.mubr.bf16.vlgmr.msra.gmra.mrb[4].mxu0 %v17204_v59  ;;  %11275 = vmatprep.subr.bf16.mxu1 %v13931_v11  ;;  %v13955_v39 = vcombine.high %v1360_v50, %v1364_v31  ;;  %v13954_v53 = vcombine.low %v1360_v50, %v1364_v31  ;;  %v14003_v11 = vcombine.high %v1408_v40, %v1412_v14  ;;  %v1428_v24 = vld [vmem:[%s20246_s1 + $0x2b38] sm:$0xff] }
 0x5c9   :  { %12152 = vmatpush1.bf16.msra.mxu0 %v14599_v54  ;;  %12183 = vmatprep.mubr.bf16.mxu0 %v11364_v32  ;;  %v14626_v54 = vld [vmem:[%s20249_s3 + $0x90] ss:$8 sps:$4 sm:$0xff]   ;;  %v14002_v32 = vcombine.low %v1408_v40, %v1412_v14  ;;  %v14010_v62 = vcombine.low %v1416_v15, %v1420_v3 }
 0x5ca   :  { %12153 = vmatprep.subr.bf16.mxu0 %v14604_v20  ;;  %v14631_v20 = vld [vmem:[%s20249_s3 + $0xa4] ss:$8 sps:$4 sm:$0xff]   ;;  %v1436_v50 = vld [vmem:[%s20246_s1 + $0x2b78] sm:$0xff] }
 0x5cb   :  { %11276 = vmatpush1.bf16.msra.mxu1 %v13930_v23  ;;  %v14629_v23 = vld [vmem:[%s20249_s3 + $0xa0] ss:$8 sps:$4 sm:$0xff]  }
 0x5cc   :  { %11277 = vmatprep.subr.bf16.mxu1 %v13939_v30  ;;  %v14634_v30 = vld [vmem:[%s20249_s3 + $0xb4] ss:$8 sps:$4 sm:$0xff]  }
 0x5cd   :  { %12154 = vmatpush1.bf16.msra.mxu0 %v14602_v25  ;;  %v14011_v25 = vcombine.high %v1416_v15, %v1420_v3  ;;  %v14653_v3 = vld [vmem:[%s20249_s3 + $0x120] ss:$8 sps:$4 sm:$0xff]  }
 0x5ce   :  { %12155 = vmatprep.subr.bf16.mxu0 %v14607_v29  ;;  %v1424_v29 = vld [vmem:[%s20246_s1 + $0x2b18] sm:$0xff] }
 0x5cf   :  { %11278 = vmatpush1.bf16.msra.mxu1 %v13938_v22  ;;  %v14632_v22 = vld [vmem:[%s20249_s3 + $0xb0] ss:$8 sps:$4 sm:$0xff]   ;;  %v14018_v31 = vcombine.low %v1424_v29, %v1428_v24 }
 0x5d0   :  { %11279 = vmatprep.subr.bf16.mxu1 %v13947_v13  ;;  %v14637_v13 = vld [vmem:[%s20249_s3 + $0xc4] ss:$8 sps:$4 sm:$0xff]  }
 0x5d1   :  { %12156 = vmatpush1.bf16.msra.mxu0 %v14605_v7  ;;  %v14019_v7 = vcombine.high %v1424_v29, %v1428_v24  ;;  %v14656_v29 = vld [vmem:[%s20249_s3 + $0x130] ss:$8 sps:$4 sm:$0xff]  }
 0x5d2   :  { %12157 = vmatprep.subr.bf16.mxu0 %v14610_v61  ;;  %v1432_v61 = vld [vmem:[%s20246_s1 + $0x2b58] sm:$0xff] }
 0x5d3   :  { %11280 = vmatpush1.bf16.msra.mxu1 %v13946_v35  ;;  %v14635_v35 = vld [vmem:[%s20249_s3 + $0xc0] ss:$8 sps:$4 sm:$0xff]  }
 0x5d4   :  { %11281 = vmatprep.subr.bf16.mxu1 %v13955_v39  ;;  %v14640_v39 = vld [vmem:[%s20249_s3 + $0xd4] ss:$8 sps:$4 sm:$0xff]  }
 0x5d5   :  { %12158 = vmatpush1.bf16.msra.mxu0 %v14608_v37  ;;  %v14027_v37 = vcombine.high %v1432_v61, %v1436_v50 }
 0x5d6   :  { %12159 = vmatprep.subr.bf16.mxu0 %v14613_v48  ;;  %v1440_v48 = vld [vmem:[%s20246_s1 + $0x2b98] sm:$0xff] }
 0x5d7   :  { %11282 = vmatpush1.bf16.msra.mxu1 %v13954_v53  ;;  %v14026_v53 = vcombine.low %v1432_v61, %v1436_v50  ;;  %v14659_v61 = vld [vmem:[%s20249_s3 + $0x140] ss:$8 sps:$4 sm:$0xff]  }
 0x5d8   :  { %11283 = vmatprep.subr.bf16.mxu1 %v13963_v47  ;;  %v14035_v47 = vcombine.high %v1440_v48, %v1444_v42 }
 0x5d9   :  { %12160 = vmatpush1.bf16.msra.mxu0 %v14611_v45  ;;  %v14638_v45 = vld [vmem:[%s20249_s3 + $0xd0] ss:$8 sps:$4 sm:$0xff]  }
 0x5da   :  { %12161 = vmatprep.subr.bf16.mxu0 %v14616_v28  ;;  %v14643_v28 = vld [vmem:[%s20249_s3 + $0xe4] ss:$8 sps:$4 sm:$0xff]  }
 0x5db   :  { %11284 = vmatpush1.bf16.msra.mxu1 %v13962_v21  ;;  %v19746_v21 = vld [vmem:[%s20248_s2] sm:$0xff] }
 0x5dc   :  { %11285 = vmatprep.subr.bf16.mxu1 %v13971_v12  ;;  %v14034_v12 = vcombine.low %v1440_v48, %v1444_v42  ;;  %v14662_v48 = vld [vmem:[%s20249_s3 + $0x150] ss:$8 sps:$4 sm:$0xff]  }
 0x5dd   :  { %12162 = vmatpush1.bf16.msra.mxu0 %v14614_v60  ;;  %v1598_v60 = vrot.slane %v19746_v21, %v1597_v43  ;;  %v14667_v43 = vld [vmem:[%s20249_s3 + $0x164] ss:$8 sps:$4 sm:$0xff]  }
 0x5de   :  { %12163 = vmatprep.subr.bf16.mxu0 %v14619_v63  ;;  %v14641_v63 = vld [vmem:[%s20249_s3 + $0xe0] ss:$8 sps:$4 sm:$0xff]  }
 0x5df   :  { %11286 = vmatpush1.bf16.msra.mxu1 %v13970_v1  ;;  %v1456_v1 = vld [vmem:[%s20246_s1 + $0x2c18] sm:$0xff] }
 0x5e0   :  { %11287 = vmatprep.subr.bf16.mxu1 %v13979_v34  ;;  %v14382_v34 = vadd.f32 %v18275_v57, %v1598_v60  ;;  %v1464_v57 = vld [vmem:[%s20246_s1 + $0x2c58] sm:$0xff] }
 0x5e1   :  { %12164 = vmatpush1.bf16.msra.mxu0 %v14617_v2  ;;  %v1460_v2 = vld [vmem:[%s20246_s1 + $0x2c38] sm:$0xff] }
 0x5e2   :  { %12165 = vmatprep.subr.bf16.mxu0 %v14622_v36  ;;  %v14042_v36 = vcombine.low %v1448_v55, %v1452_v56  ;;  %v14051_v26 = vcombine.high %v1456_v1, %v1460_v2  ;;  %v14050_v19 = vcombine.low %v1456_v1, %v1460_v2  ;;  %v14670_v56 = vld [vmem:[%s20249_s3 + $0x174] ss:$8 sps:$4 sm:$0xff]   ;;  %v14673_v1 = vld [vmem:[%s20249_s3 + $0x184] ss:$8 sps:$4 sm:$0xff]  }
 0x5e3   :  { %11288 = vmatpush1.bf16.msra.mxu1 %v13978_v5  ;;  %v11355_v5 = vmax.f32 %v17883_v18, 0.0  ;;  %v14647_v18 = vld [vmem:[%s20249_s3 + $0x100] ss:$8 sps:$4 sm:$0xff]   ;;  %v1520_v60 = vld [vmem:[%s20246_s1 + $0x2e18] sm:$0xff] }
 0x5e4   :  { %11289 = vmatprep.subr.bf16.mxu1 %v13987_v8  ;;  %v11358_v8 = vmax.f32 %v14382_v34, 0.0  ;;  %v1528_v2 = vld [vmem:[%s20246_s1 + $0x2e58] sm:$0xff] }
 0x5e5   :  { %12166 = vmatpush1.bf16.msra.mxu0 %v14620_v6  ;;  %v14649_v6 = vld [vmem:[%s20249_s3 + $0x104] ss:$8 sps:$4 sm:$0xff]   ;;  %v11363_v9 = vpack.c.bf16 %v11355_v5, %v11355_v5  ;;  %v1532_v34 = vld [vmem:[%s20246_s1 + $0x2e78] sm:$0xff] }
 0x5e6   :  { %12167 = vmatprep.subr.bf16.mxu0 %v14625_v17  ;;  %v1468_v17 = vld [vmem:[%s20246_s1 + $0x2c78] sm:$0xff]  ;;  %v11366_v40 = vpack.c.bf16 %v11358_v8, %v11358_v8 }
 0x5e7   :  { %11290 = vmatpush1.bf16.msra.mxu1 %v13986_v51  ;;  %v14059_v51 = vcombine.high %v1464_v57, %v1468_v17  ;;  %v14058_v14 = vcombine.low %v1464_v57, %v1468_v17  ;;  %v14676_v5 = vld [vmem:[%s20249_s3 + $0x194] ss:$8 sps:$4 sm:$0xff]   ;;  %v14122_v57 = vcombine.low %v1528_v2, %v1532_v34  ;;  %v14674_v17 = vld [vmem:[%s20249_s3 + $0x190] ss:$8 sps:$4 sm:$0xff]  }
 0x5e8   :  { %11291 = vmatprep.subr.bf16.mxu1 %v13995_v10  ;;  %v1472_v10 = vld [vmem:[%s20246_s1 + $0x2c98] sm:$0xff] }
 0x5e9   :  { %12168 = vmatpush1.bf16.msra.mxu0 %v14623_v58  ;;  %v14652_v58 = vld [vmem:[%s20249_s3 + $0x114] ss:$8 sps:$4 sm:$0xff]  }
 0x5ea   :  { %12169 = vmatprep.subr.bf16.mxu0 %v14628_v52  ;;  %v1476_v52 = vld [vmem:[%s20246_s1 + $0x2cb8] sm:$0xff] }
 0x5eb   :  { %11292 = vmatpush1.bf16.msra.mxu1 %v13994_v16  ;;  %v14650_v16 = vld [vmem:[%s20249_s3 + $0x110] ss:$8 sps:$4 sm:$0xff]   ;;  %v14066_v15 = vcombine.low %v1472_v10, %v1476_v52 }
 0x5ec   :  { %11293 = vmatprep.subr.bf16.mxu1 %v14003_v11  ;;  %v14655_v11 = vld [vmem:[%s20249_s3 + $0x124] ss:$8 sps:$4 sm:$0xff]   ;;  %v1540_v8 = vld [vmem:[%s20246_s1 + $0x2eb8] sm:$0xff] }
 0x5ed   :  { %12170 = vmatpush1.bf16.msra.mxu0 %v14626_v54  ;;  %v14067_v54 = vcombine.high %v1472_v10, %v1476_v52  ;;  %v14677_v10 = vld [vmem:[%s20249_s3 + $0x1a0] ss:$8 sps:$4 sm:$0xff]  }
 0x5ee   :  { %12171 = vmatprep.subr.bf16.mxu0 %v14631_v20  ;;  %v1484_v20 = vld [vmem:[%s20246_s1 + $0x2cf8] sm:$0xff] }
 0x5ef   :  { %11294 = vmatpush1.bf16.msra.mxu1 %v14002_v32 }
 0x5f0   :  { %11295 = vmatprep.subr.bf16.mxu1 %v14011_v25  ;;  %v1488_v25 = vld [vmem:[%s20246_s1 + $0x2d18] sm:$0xff] }
 0x5f1   :  { %12172 = vmatpush1.bf16.msra.mxu0 %v14629_v23  ;;  %v14658_v23 = vld [vmem:[%s20249_s3 + $0x134] ss:$8 sps:$4 sm:$0xff]  }
 0x5f2   :  { %12173 = vmatprep.subr.bf16.mxu0 %v14634_v30 }
 0x5f3   :  { %11296 = vmatpush1.bf16.msra.mxu1 %v14010_v62  ;;  %v14661_v62 = vld [vmem:[%s20249_s3 + $0x144] ss:$8 sps:$4 sm:$0xff]  }
 0x5f4   :  { %11297 = vmatprep.subr.bf16.mxu1 %v14019_v7  ;;  %v1500_v7 = vld [vmem:[%s20246_s1 + $0x2d78] sm:$0xff] }
 0x5f5   :  { %12174 = vmatpush1.bf16.msra.mxu0 %v14632_v22  ;;  %v1496_v22 = vld [vmem:[%s20246_s1 + $0x2d58] sm:$0xff] }
 0x5f6   :  { %12175 = vmatprep.subr.bf16.mxu0 %v14637_v13  ;;  %v14091_v50 = vcombine.high %v1496_v22, %v1500_v7 }
 0x5f7   :  { %11298 = vmatpush1.bf16.msra.mxu1 %v14018_v31  ;;  %v14664_v31 = vld [vmem:[%s20249_s3 + $0x154] ss:$8 sps:$4 sm:$0xff]  }
 0x5f8   :  { %11299 = vmatprep.subr.bf16.mxu1 %v14027_v37  ;;  %v1508_v37 = vld [vmem:[%s20246_s1 + $0x2db8] sm:$0xff] }
 0x5f9   :  { %12176 = vmatpush1.bf16.msra.mxu0 %v14635_v35  ;;  %v1504_v35 = vld [vmem:[%s20246_s1 + $0x2d98] sm:$0xff] }
 0x5fa   :  { %12177 = vmatprep.subr.bf16.mxu0 %v14640_v39  ;;  %v14090_v39 = vcombine.low %v1496_v22, %v1500_v7  ;;  %v14099_v42 = vcombine.high %v1504_v35, %v1508_v37  ;;  %v14686_v22 = vld [vmem:[%s20249_s3 + $0x1d0] ss:$8 sps:$4 sm:$0xff]  }
 0x5fb   :  { %11300 = vmatpush1.bf16.msra.mxu1 %v14026_v53  ;;  %v1512_v53 = vld [vmem:[%s20246_s1 + $0x2dd8] sm:$0xff] }
 0x5fc   :  { %11301 = vmatprep.subr.bf16.mxu1 %v14035_v47  ;;  %v14098_v47 = vcombine.low %v1504_v35, %v1508_v37  ;;  %v14689_v37 = vld [vmem:[%s20249_s3 + $0x1e0] ss:$8 sps:$4 sm:$0xff]  }
 0x5fd   :  { %12178 = vmatpush1.bf16.msra.mxu0 %v14638_v45  ;;  %v1516_v45 = vld [vmem:[%s20246_s1 + $0x2df8] sm:$0xff] }
 0x5fe   :  { %12179 = vmatprep.subr.bf16.mxu0 %v14643_v28  ;;  %v14665_v28 = vld [vmem:[%s20249_s3 + $0x160] ss:$8 sps:$4 sm:$0xff]   ;;  %v14107_v55 = vcombine.high %v1512_v53, %v1516_v45 }
 0x5ff   :  { %11302 = vmatpush1.bf16.msra.mxu1 %v14034_v12  ;;  %v1524_v12 = vld [vmem:[%s20246_s1 + $0x2e38] sm:$0xff] }
 0x600   :  { %11303 = vmatprep.subr.bf16.mxu1 %v14043_v0  ;;  %v14668_v0 = vld [vmem:[%s20249_s3 + $0x170] ss:$8 sps:$4 sm:$0xff]  }
 0x601   :  { %12180 = vmatpush1.bf16.msra.mxu0 %v14641_v63  ;;  %v14106_v63 = vcombine.low %v1512_v53, %v1516_v45  ;;  %v14692_v53 = vld [vmem:[%s20249_s3 + $0x1f0] ss:$8 sps:$4 sm:$0xff]  }
 0x602   :  { %12181 = vmatprep.subr.bf16.mxu0 %v14646_v33  ;;  %v14115_v33 = vcombine.high %v1520_v60, %v1524_v12 }
 0x603   :  { %11304 = vmatpush1.bf16.msra.mxu1 %v14042_v36  ;;  %v14114_v36 = vcombine.low %v1520_v60, %v1524_v12  ;;  %v14703_v60 = vld [vmem:[%s20249_s3 + $0x224] ss:$8 sps:$4 sm:$0xff]   ;;  %v14701_v12 = vld [vmem:[%s20249_s3 + $0x220] ss:$8 sps:$4 sm:$0xff]  }
 0x604   :  { %11314 = vmatprep.subr.bf16.mxu1 %v14051_v26  ;;  %v14123_v26 = vcombine.high %v1528_v2, %v1532_v34  ;;  %v14710_v2 = vld [vmem:[%s20249_s3 + $0x250] ss:$8 sps:$4 sm:$0xff]   ;;  %v14715_v34 = vld [vmem:[%s20249_s3 + $0x264] ss:$8 sps:$4 sm:$0xff]  }
 0x605   :  { %12182 = vmatpush1.bf16.msra.mxu0 %v14644_v4  ;;  %v14671_v4 = vld [vmem:[%s20249_s3 + $0x180] ss:$8 sps:$4 sm:$0xff]  }
 0x606   :  { %12192 = vmatprep.subr.bf16.mxu0 %v14649_v6  ;;  %11306 = vmatmul.mubr.bf16.vlgmr.msra.gmra.mrb[8].mxu1 %v17000_v38  ;;  %v1480_v38 = vld [vmem:[%s20246_s1 + $0x2cd8] sm:$0xff] }
 0x607   :  { %11315 = vmatpush1.bf16.msra.mxu1 %v14050_v19  ;;  %11346 = vmatprep.mubr.bf16.mxu1 %v17010_v44  ;;  %v14075_v32 = vcombine.high %v1480_v38, %v1484_v20  ;;  %v1492_v44 = vld [vmem:[%s20246_s1 + $0x2d38] sm:$0xff]  ;;  %v14074_v30 = vcombine.low %v1480_v38, %v1484_v20  ;;  %v14685_v20 = vld [vmem:[%s20249_s3 + $0x1c4] ss:$8 sps:$4 sm:$0xff]  }
 0x608   :  { %12184 = vmatmul.mubr.bf16.vlgmr.msra.gmra.mrb[8].mxu0 %v11363_v9  ;;  %11316 = vmatprep.subr.bf16.mxu1 %v14059_v51  ;;  %v14083_v24 = vcombine.high %v1488_v25, %v1492_v44  ;;  %v14082_v13 = vcombine.low %v1488_v25, %v1492_v44  ;;  %v1536_v6 = vld [vmem:[%s20246_s1 + $0x2e98] sm:$0xff]  ;;  %v1593_v44 = vsub.s32 2, %v17822_v27 }
 0x609   :  { %12193 = vmatpush1.bf16.msra.mxu0 %v14647_v18  ;;  %12224 = vmatprep.mubr.bf16.mxu0 %v11366_v40  ;;  %v14131_v19 = vcombine.high %v1536_v6, %v1540_v8  ;;  %v14679_v18 = vld [vmem:[%s20249_s3 + $0x1a4] ss:$8 sps:$4 sm:$0xff]   ;;  %v1544_v9 = vld [vmem:[%s20246_s1 + $0x2ed8] sm:$0xff] }
 0x60a   :  { %12194 = vmatprep.subr.bf16.mxu0 %v14652_v58  ;;  %v1548_v51 = vld [vmem:[%s20246_s1 + $0x2ef8] sm:$0xff]  ;;  %v14130_v58 = vcombine.low %v1536_v6, %v1540_v8  ;;  %v14719_v6 = vld [vmem:[%s20249_s3 + $0x280] ss:$8 sps:$4 sm:$0xff]  }
 0x60b   :  { %11317 = vmatpush1.bf16.msra.mxu1 %v14058_v14  ;;  %v14139_v52 = vcombine.high %v1544_v9, %v1548_v51  ;;  %v14682_v40 = vld [vmem:[%s20249_s3 + $0x1b4] ss:$8 sps:$4 sm:$0xff]  }
 0x60c   :  { %11318 = vmatprep.subr.bf16.mxu1 %v14067_v54  ;;  %v1552_v14 = vld [vmem:[%s20246_s1 + $0x2f18] sm:$0xff]  ;;  %v14138_v54 = vcombine.low %v1544_v9, %v1548_v51  ;;  %v14733_v51 = vld [vmem:[%s20249_s3 + $0x2c4] ss:$8 sps:$4 sm:$0xff]  }
 0x60d   :  { %12195 = vmatpush1.bf16.msra.mxu0 %v14650_v16  ;;  %v1556_v16 = vld [vmem:[%s20246_s1 + $0x2f38] sm:$0xff] }
 0x60e   :  { %12196 = vmatprep.subr.bf16.mxu0 %v14655_v11  ;;  %v14680_v11 = vld [vmem:[%s20249_s3 + $0x1b0] ss:$8 sps:$4 sm:$0xff]   ;;  %v14147_v38 = vcombine.high %v1552_v14, %v1556_v16  ;;  %v14724_v8 = vld [vmem:[%s20249_s3 + $0x294] ss:$8 sps:$4 sm:$0xff]  }
 0x60f   :  { %11319 = vmatpush1.bf16.msra.mxu1 %v14066_v15  ;;  %v1560_v15 = vld [vmem:[%s20246_s1 + $0x2f58] sm:$0xff] }
 0x610   :  { %11320 = vmatprep.subr.bf16.mxu1 %v14075_v32  ;;  %v14146_v32 = vcombine.low %v1552_v14, %v1556_v16  ;;  %v14728_v9 = vld [vmem:[%s20249_s3 + $0x2b0] ss:$8 sps:$4 sm:$0xff]   ;;  %v14737_v14 = vld [vmem:[%s20249_s3 + $0x2e0] ss:$8 sps:$4 sm:$0xff]   ;;  %v14742_v16 = vld [vmem:[%s20249_s3 + $0x2f4] ss:$8 sps:$4 sm:$0xff]  }
 0x611   :  { %12197 = vmatpush1.bf16.msra.mxu0 %v14653_v3  ;;  %v1564_v3 = vld [vmem:[%s20246_s1 + $0x2f78] sm:$0xff] }
 0x612   :  { %12198 = vmatprep.subr.bf16.mxu0 %v14658_v23  ;;  %v14683_v23 = vld [vmem:[%s20249_s3 + $0x1c0] ss:$8 sps:$4 sm:$0xff]   ;;  %v14155_v25 = vcombine.high %v1560_v15, %v1564_v3 }
 0x613   :  { %11321 = vmatpush1.bf16.msra.mxu1 %v14074_v30  ;;  %v14688_v30 = vld [vmem:[%s20249_s3 + $0x1d4] ss:$8 sps:$4 sm:$0xff]  }
 0x614   :  { %11322 = vmatprep.subr.bf16.mxu1 %v14083_v24  ;;  %v1572_v24 = vld [vmem:[%s20246_s1 + $0x2fb8] sm:$0xff] }
 0x615   :  { %12199 = vmatpush1.bf16.msra.mxu0 %v14656_v29  ;;  %v1568_v29 = vld [vmem:[%s20246_s1 + $0x2f98] sm:$0xff] }
 0x616   :  { %12200 = vmatprep.subr.bf16.mxu0 %v14661_v62  ;;  %v14154_v62 = vcombine.low %v1560_v15, %v1564_v3  ;;  %v14163_v7 = vcombine.high %v1568_v29, %v1572_v24  ;;  %v14162_v35 = vcombine.low %v1568_v29, %v1572_v24 }
 0x617   :  { %11323 = vmatpush1.bf16.msra.mxu1 %v14082_v13  ;;  %v1594_v13 = vrot.slane %v19746_v21, %v1593_v44 }
 0x618   :  { %11324 = vmatprep.subr.bf16.mxu1 %v14091_v50  ;;  %v1576_v50 = vld [vmem:[%s20246_s1 + $0x2fd8] sm:$0xff] }
 0x619   :  { %12201 = vmatpush1.bf16.msra.mxu0 %v14659_v61  ;;  %v14691_v61 = vld [vmem:[%s20249_s3 + $0x1e4] ss:$8 sps:$4 sm:$0xff]  }
 0x61a   :  { %12202 = vmatprep.subr.bf16.mxu0 %v14664_v31  ;;  %v1580_v31 = vld [vmem:[%s20246_s1 + $0x2ff8] sm:$0xff] }
 0x61b   :  { %11325 = vmatpush1.bf16.msra.mxu1 %v14090_v39  ;;  %v14171_v39 = vcombine.high %v1576_v50, %v1580_v31 }
 0x61c   :  { %11326 = vmatprep.subr.bf16.mxu1 %v14099_v42  ;;  %v14694_v42 = vld [vmem:[%s20249_s3 + $0x1f4] ss:$8 sps:$4 sm:$0xff]  }
 0x61d   :  { %12203 = vmatpush1.bf16.msra.mxu0 %v14662_v48  ;;  %v14381_v48 = vadd.f32 %v18267_v49, %v1594_v13  ;;  %v14695_v49 = vld [vmem:[%s20249_s3 + $0x200] ss:$8 sps:$4 sm:$0xff]  }
 0x61e   :  { %12204 = vmatprep.subr.bf16.mxu0 %v14667_v43  ;;  %v14170_v43 = vcombine.low %v1576_v50, %v1580_v31  ;;  %v14746_v50 = vld [vmem:[%s20249_s3 + $0x310] ss:$8 sps:$4 sm:$0xff]   ;;  %v14751_v31 = vld [vmem:[%s20249_s3 + $0x324] ss:$8 sps:$4 sm:$0xff]  }
 0x61f   :  { %11327 = vmatpush1.bf16.msra.mxu1 %v14098_v47  ;;  %v11357_v45 = vmax.f32 %v14381_v48, 0.0  ;;  %v14697_v47 = vld [vmem:[%s20249_s3 + $0x204] ss:$8 sps:$4 sm:$0xff]  }
 0x620   :  { %11328 = vmatprep.subr.bf16.mxu1 %v14107_v55  ;;  %v14700_v55 = vld [vmem:[%s20249_s3 + $0x214] ss:$8 sps:$4 sm:$0xff]   ;;  %v14794_v48 = vld [vmem:[%s20250_s5 + $0x8] sm:$0xff]  }
 0x621   :  { %12205 = vmatpush1.bf16.msra.mxu0 %v14665_v28  ;;  %v11365_v28 = vpack.c.bf16 %v11357_v45, %v11357_v45  ;;  %v14796_v45 = vld [vmem:[%s20250_s5 + $0x10] sm:$0xff]  }
 0x622   :  { %12206 = vmatprep.subr.bf16.mxu0 %v14670_v56  ;;  %v14698_v56 = vld [vmem:[%s20249_s3 + $0x210] ss:$8 sps:$4 sm:$0xff]  }
 0x623   :  { %11329 = vmatpush1.bf16.msra.mxu1 %v14106_v63  ;;  %v14704_v63 = vld [vmem:[%s20249_s3 + $0x230] ss:$8 sps:$4 sm:$0xff]  }
 0x624   :  { %11330 = vmatprep.subr.bf16.mxu1 %v14115_v33  ;;  %v14707_v33 = vld [vmem:[%s20249_s3 + $0x240] ss:$8 sps:$4 sm:$0xff]  }
 0x625   :  { %12207 = vmatpush1.bf16.msra.mxu0 %v14668_v0  ;;  %v14709_v0 = vld [vmem:[%s20249_s3 + $0x244] ss:$8 sps:$4 sm:$0xff]  }
 0x626   :  { %12208 = vmatprep.subr.bf16.mxu0 %v14673_v1  ;;  %v14712_v1 = vld [vmem:[%s20249_s3 + $0x254] ss:$8 sps:$4 sm:$0xff]  }
 0x627   :  { %11331 = vmatpush1.bf16.msra.mxu1 %v14114_v36  ;;  %v14713_v36 = vld [vmem:[%s20249_s3 + $0x260] ss:$8 sps:$4 sm:$0xff]  }
 0x628   :  { %11332 = vmatprep.subr.bf16.mxu1 %v14123_v26  ;;  %v14716_v26 = vld [vmem:[%s20249_s3 + $0x270] ss:$8 sps:$4 sm:$0xff]  }
 0x629   :  { %12209 = vmatpush1.bf16.msra.mxu0 %v14671_v4  ;;  %v14718_v4 = vld [vmem:[%s20249_s3 + $0x274] ss:$8 sps:$4 sm:$0xff]  }
 0x62a   :  { %12210 = vmatprep.subr.bf16.mxu0 %v14676_v5  ;;  %v14721_v5 = vld [vmem:[%s20249_s3 + $0x284] ss:$8 sps:$4 sm:$0xff]  }
 0x62b   :  { %11333 = vmatpush1.bf16.msra.mxu1 %v14122_v57  ;;  %v14722_v57 = vld [vmem:[%s20249_s3 + $0x290] ss:$8 sps:$4 sm:$0xff]  }
 0x62c   :  { %11334 = vmatprep.subr.bf16.mxu1 %v14131_v19  ;;  %v14725_v19 = vld [vmem:[%s20249_s3 + $0x2a0] ss:$8 sps:$4 sm:$0xff]  }
 0x62d   :  { %12211 = vmatpush1.bf16.msra.mxu0 %v14674_v17  ;;  %v14727_v17 = vld [vmem:[%s20249_s3 + $0x2a4] ss:$8 sps:$4 sm:$0xff]  }
 0x62e   :  { %12212 = vmatprep.subr.bf16.mxu0 %v14679_v18  ;;  %v14730_v18 = vld [vmem:[%s20249_s3 + $0x2b4] ss:$8 sps:$4 sm:$0xff]  }
 0x62f   :  { %11335 = vmatpush1.bf16.msra.mxu1 %v14130_v58  ;;  %v14731_v58 = vld [vmem:[%s20249_s3 + $0x2c0] ss:$8 sps:$4 sm:$0xff]  }
 0x630   :  { %11336 = vmatprep.subr.bf16.mxu1 %v14139_v52  ;;  %v14734_v52 = vld [vmem:[%s20249_s3 + $0x2d0] ss:$8 sps:$4 sm:$0xff]  }
 0x631   :  { %12213 = vmatpush1.bf16.msra.mxu0 %v14677_v10  ;;  %v14736_v10 = vld [vmem:[%s20249_s3 + $0x2d4] ss:$8 sps:$4 sm:$0xff]  }
 0x632   :  { %12214 = vmatprep.subr.bf16.mxu0 %v14682_v40  ;;  %v14739_v40 = vld [vmem:[%s20249_s3 + $0x2e4] ss:$8 sps:$4 sm:$0xff]  }
 0x633   :  { %11337 = vmatpush1.bf16.msra.mxu1 %v14138_v54  ;;  %v14740_v54 = vld [vmem:[%s20249_s3 + $0x2f0] ss:$8 sps:$4 sm:$0xff]  }
 0x634   :  { %11338 = vmatprep.subr.bf16.mxu1 %v14147_v38  ;;  %v1601_v38 = vsub.s32 4, %v17822_v27 }
 0x635   :  { %12215 = vmatpush1.bf16.msra.mxu0 %v14680_v11  ;;  %v14745_v11 = vld [vmem:[%s20249_s3 + $0x304] ss:$8 sps:$4 sm:$0xff]  }
 0x636   :  { %12216 = vmatprep.subr.bf16.mxu0 %v14685_v20  ;;  %v1605_v20 = vsub.s32 5, %v17822_v27  ;;  %v1602_v15 = vrot.slane %v19746_v21, %v1601_v38 }
 0x637   :  { %11339 = vmatpush1.bf16.msra.mxu1 %v14146_v32 }
 0x638   :  { %11340 = vmatprep.subr.bf16.mxu1 %v14155_v25  ;;  %v1606_v3 = vrot.slane %v19746_v21, %v1605_v20 }
 0x639   :  { %12217 = vmatpush1.bf16.msra.mxu0 %v14683_v23 }
 0x63a   :  { %12218 = vmatprep.subr.bf16.mxu0 %v14688_v30 }
 0x63b   :  { %11341 = vmatpush1.bf16.msra.mxu1 %v14154_v62 }
 0x63c   :  { %11342 = vmatprep.subr.bf16.mxu1 %v14163_v7  ;;  %v14743_v7 = vld [vmem:[%s20249_s3 + $0x300] ss:$8 sps:$4 sm:$0xff]  }
 0x63d   :  { %12219 = vmatpush1.bf16.msra.mxu0 %v14686_v22 }
 0x63e   :  { %12220 = vmatprep.subr.bf16.mxu0 %v14691_v61  ;;  %v14748_v61 = vld [vmem:[%s20249_s3 + $0x314] ss:$8 sps:$4 sm:$0xff]  }
 0x63f   :  { %11343 = vmatpush1.bf16.msra.mxu1 %v14162_v35  ;;  %v14791_v35 = vld [vmem:[%s20250_s5 + $0x40] sm:$0xff]  }
 0x640   :  { %11344 = vmatprep.subr.bf16.mxu1 %v14171_v39  ;;  %v14793_v39 = vld [vmem:[%s20250_s5 + $0x48] sm:$0xff]  }
 0x641   :  { %12221 = vmatpush1.bf16.msra.mxu0 %v14689_v37  ;;  %v14792_v37 = vld [vmem:[%s20250_s5] sm:$0xff]  }
 0x642   :  { %12222 = vmatprep.subr.bf16.mxu0 %v14694_v42  ;;  %v14795_v42 = vld [vmem:[%s20250_s5 + $0x50] sm:$0xff]  }
 0x643   :  { %11345 = vmatpush1.bf16.msra.mxu1 %v14170_v43  ;;  %v14749_v43 = vld [vmem:[%s20249_s3 + $0x320] ss:$8 sps:$4 sm:$0xff]  }
 0x644   :  { %14326 = vmatprep.subr.bf16.mxu1 %v14791_v35 }
 0x645   :  { %12223 = vmatpush1.bf16.msra.mxu0 %v14692_v53  ;;  %v14754_v53 = vld [vmem:[%s20249_s3 + $0x334] ss:$8 sps:$4 sm:$0xff]  }
 0x646   :  { %12233 = vmatprep.subr.bf16.mxu0 %v14697_v47  ;;  %11347 = vmatmul.mubr.bf16.vlgmr.msra.gmra.mrb[8].mxu1 %v17204_v59  ;;  %v14706_v59 = vld [vmem:[%s20249_s3 + $0x234] ss:$8 sps:$4 sm:$0xff]  }
 0x647   :  { %14327 = vmatpush3.bf16.msra.mxu1 %v14792_v37  ;;  %v14797_v47 = vld [vmem:[%s20250_s5 + $0x58] sm:$0xff]  }
 0x648   :  { %12225 = vmatmul.mubr.bf16.vlgmr.msra.gmra.mrb[8].mxu0 %v11365_v28  ;;  %14328 = vmatprep.subr.bf16.mxu1 %v14793_v39  ;;  %v14757_v28 = vld [vmem:[%s20249_s3 + $0x344] ss:$8 sps:$4 sm:$0xff]  }
 0x649   :  { %12234 = vmatpush1.bf16.msra.mxu0 %v14695_v49  ;;  %v14752_v49 = vld [vmem:[%s20249_s3 + $0x330] ss:$8 sps:$4 sm:$0xff]  }
 0x64a   :  { %12235 = vmatprep.subr.bf16.mxu0 %v14700_v55  ;;  %v14755_v55 = vld [vmem:[%s20249_s3 + $0x340] ss:$8 sps:$4 sm:$0xff]  }
 0x64b   :  { %14329 = vmatpush3.bf16.msra.mxu1 %v14794_v48 }
 0x64c   :  { %14330 = vmatprep.subr.bf16.mxu1 %v14795_v42 }
 0x64d   :  { %12236 = vmatpush1.bf16.msra.mxu0 %v14698_v56  ;;  %v14798_v56 = vld [vmem:[%s20250_s5 + $0x18] sm:$0xff]  }
 0x64e   :  { %12237 = vmatprep.subr.bf16.mxu0 %v14703_v60  ;;  %v14760_v60 = vld [vmem:[%s20249_s3 + $0x354] ss:$8 sps:$4 sm:$0xff]  }
 0x64f   :  { %14331 = vmatpush3.bf16.msra.mxu1 %v14796_v45 }
 0x650   :  { %14332 = vmatprep.subr.bf16.mxu1 %v14797_v47 }
 0x651   :  { %12238 = vmatpush1.bf16.msra.mxu0 %v14701_v12  ;;  %v14799_v12 = vld [vmem:[%s20250_s5 + $0x60] sm:$0xff]  }
 0x652   :  { %12239 = vmatprep.subr.bf16.mxu0 %v14706_v59  ;;  %v14800_v59 = vld [vmem:[%s20250_s5 + $0x20] sm:$0xff]  }
 0x653   :  { %14333 = vmatpush3.bf16.msra.mxu1 %v14798_v56  ;;  %v14812_v56 = vld [vmem:[%s20251_s7 + $0x28] sm:$0xff]  }
 0x654   :  { %14334 = vmatprep.subr.bf16.mxu1 %v14799_v12  ;;  %v14814_v12 = vld [vmem:[%s20251_s7 + $0x38] sm:$0xff]  }
 0x655   :  { %12240 = vmatpush1.bf16.msra.mxu0 %v14704_v63  ;;  %v14801_v63 = vld [vmem:[%s20250_s5 + $0x68] sm:$0xff]  }
 0x656   :  { %12241 = vmatprep.subr.bf16.mxu0 %v14709_v0  ;;  %v14758_v0 = vld [vmem:[%s20249_s3 + $0x350] ss:$8 sps:$4 sm:$0xff]  }
 0x657   :  { %14335 = vmatpush3.bf16.msra.mxu1 %v14800_v59 }
 0x658   :  { %14336 = vmatprep.subr.bf16.mxu1 %v14801_v63  ;;  %v14300_v63 = vld [vmem:[%s20253_s6] ss:$0 sm:$0xff] }
 0x659   :  { %12242 = vmatpush1.bf16.msra.mxu0 %v14707_v33  ;;  %v14763_v33 = vld [vmem:[%s20249_s3 + $0x364] ss:$8 sps:$4 sm:$0xff]  }
 0x65a   :  { %12243 = vmatprep.subr.bf16.mxu0 %v14712_v1  ;;  %v14802_v1 = vld [vmem:[%s20250_s5 + $0x28] sm:$0xff]  }
 0x65b   :  { %14337 = vmatpush3.bf16.msra.mxu1 %v14802_v1 }
 0x65d   :  { %12244 = vmatpush1.bf16.msra.mxu0 %v14710_v2  ;;  %v14761_v2 = vld [vmem:[%s20249_s3 + $0x360] ss:$8 sps:$4 sm:$0xff]  }
 0x65e   :  { %12245 = vmatprep.subr.bf16.mxu0 %v14715_v34  ;;  %v14766_v34 = vld [vmem:[%s20249_s3 + $0x374] ss:$8 sps:$4 sm:$0xff]  }
 0x661   :  { %12246 = vmatpush1.bf16.msra.mxu0 %v14713_v36  ;;  %v14764_v36 = vld [vmem:[%s20249_s3 + $0x370] ss:$8 sps:$4 sm:$0xff]  }
 0x662   :  { %12247 = vmatprep.subr.bf16.mxu0 %v14718_v4  ;;  %v14769_v4 = vld [vmem:[%s20249_s3 + $0x384] ss:$8 sps:$4 sm:$0xff]  }
 0x665   :  { %12248 = vmatpush1.bf16.msra.mxu0 %v14716_v26  ;;  %v14767_v26 = vld [vmem:[%s20249_s3 + $0x380] ss:$8 sps:$4 sm:$0xff]  }
 0x666   :  { %12249 = vmatprep.subr.bf16.mxu0 %v14721_v5  ;;  %v14772_v5 = vld [vmem:[%s20249_s3 + $0x394] ss:$8 sps:$4 sm:$0xff]  }
 0x669   :  { %12250 = vmatpush1.bf16.msra.mxu0 %v14719_v6  ;;  %v14770_v6 = vld [vmem:[%s20249_s3 + $0x390] ss:$8 sps:$4 sm:$0xff]  }
 0x66a   :  { %12251 = vmatprep.subr.bf16.mxu0 %v14724_v8  ;;  %v14775_v8 = vld [vmem:[%s20249_s3 + $0x3a4] ss:$8 sps:$4 sm:$0xff]  }
 0x66d   :  { %12252 = vmatpush1.bf16.msra.mxu0 %v14722_v57  ;;  %v14773_v57 = vld [vmem:[%s20249_s3 + $0x3a0] ss:$8 sps:$4 sm:$0xff]  }
 0x66e   :  { %12253 = vmatprep.subr.bf16.mxu0 %v14727_v17  ;;  %v14778_v17 = vld [vmem:[%s20249_s3 + $0x3b4] ss:$8 sps:$4 sm:$0xff]  }
 0x671   :  { %12254 = vmatpush1.bf16.msra.mxu0 %v14725_v19  ;;  %v14776_v19 = vld [vmem:[%s20249_s3 + $0x3b0] ss:$8 sps:$4 sm:$0xff]  }
 0x672   :  { %12255 = vmatprep.subr.bf16.mxu0 %v14730_v18  ;;  %v14781_v18 = vld [vmem:[%s20249_s3 + $0x3c4] ss:$8 sps:$4 sm:$0xff]  }
 0x675   :  { %12256 = vmatpush1.bf16.msra.mxu0 %v14728_v9  ;;  %v14779_v9 = vld [vmem:[%s20249_s3 + $0x3c0] ss:$8 sps:$4 sm:$0xff]  }
 0x676   :  { %12257 = vmatprep.subr.bf16.mxu0 %v14733_v51  ;;  %v14784_v51 = vld [vmem:[%s20249_s3 + $0x3d4] ss:$8 sps:$4 sm:$0xff]  }
 0x679   :  { %12258 = vmatpush1.bf16.msra.mxu0 %v14731_v58  ;;  %v14782_v58 = vld [vmem:[%s20249_s3 + $0x3d0] ss:$8 sps:$4 sm:$0xff]  }
 0x67a   :  { %12259 = vmatprep.subr.bf16.mxu0 %v14736_v10  ;;  %v14787_v10 = vld [vmem:[%s20249_s3 + $0x3e4] ss:$8 sps:$4 sm:$0xff]  }
 0x67d   :  { %12260 = vmatpush1.bf16.msra.mxu0 %v14734_v52  ;;  %v14785_v52 = vld [vmem:[%s20249_s3 + $0x3e0] ss:$8 sps:$4 sm:$0xff]  }
 0x67e   :  { %12261 = vmatprep.subr.bf16.mxu0 %v14739_v40  ;;  %v14790_v40 = vld [vmem:[%s20249_s3 + $0x3f4] ss:$8 sps:$4 sm:$0xff]  }
 0x681   :  { %12262 = vmatpush1.bf16.msra.mxu0 %v14737_v14  ;;  %v14788_v14 = vld [vmem:[%s20249_s3 + $0x3f0] ss:$8 sps:$4 sm:$0xff]  }
 0x682   :  { %12263 = vmatprep.subr.bf16.mxu0 %v14742_v16  ;;  %v1609_v16 = vsub.s32 6, %v17822_v27 }
 0x685   :  { %12264 = vmatpush1.bf16.msra.mxu0 %v14740_v54  ;;  %v1613_v54 = vsub.s32 7, %v17822_v27  ;;  %v14808_v27 = vld [vmem:[%s20251_s7 + $0x8] sm:$0xff]  }
 0x686   :  { %12274 = vmatprep.subr.bf16.mxu0 %v14745_v11  ;;  %v1610_v11 = vrot.slane %v19746_v21, %v1609_v16 }
 0x687   :  { %v1614_v38 = vrot.slane %v19746_v21, %v1613_v54  ;;  %v14804_v21 = vld [vmem:[%s20250_s5 + $0x30] sm:$0xff]  }
 0x69b   :  { %v10856_v32 = vpop.f32.mrb[4].mxu0 }
 0x69c   :  { %v14383_v23 = vadd.f32 %v10856_v32, %v1602_v15  ;;  %v10858_v25 = vpop.f32.mrb[5].mxu0 }
 0x69d   :  { %v14384_v44 = vadd.f32 %v10858_v25, %v1606_v3  ;;  %v10860_v30 = vpop.f32.mrb[6].mxu0 }
 0x69e   :  { %v11359_v29 = vmax.f32 %v14383_v23, 0.0  ;;  %v10861_v24 = vpop.f32.mrb[7].mxu0 }
 0x69f   :  { %v11360_v62 = vmax.f32 %v14384_v44, 0.0 }
 0x6a0   :  { %v11367_v13 = vpack.c.bf16 %v11359_v29, %v11359_v29 }
 0x6a1   :  { %v11368_v22 = vpack.c.bf16 %v11360_v62, %v11360_v62  ;;  %v14803_v62 = vld [vmem:[%s20250_s5 + $0x70] sm:$0xff]  }
 0x6a2   :  { %14338 = vmatprep.subr.bf16.mxu1 %v14803_v62 }
 0x6a3   :  { %12265 = vmatprep.mubr.bf16.mxu0 %v11368_v22  ;;  %14339 = vmatpush3.bf16.msra.mxu1 %v14804_v21  ;;  %v14805_v22 = vld [vmem:[%s20250_s5 + $0x78] sm:$0xff]  }
 0x6a4   :  { %12266 = vmatmul.mubr.bf16.vlgmr.msra.gmra.mrb[8].mxu0 %v11367_v13  ;;  %14340 = vmatprep.subr.bf16.mxu1 %v14805_v22  ;;  %v14816_v13 = vmov 0.0  }
 0x6a5   :  { %12275 = vmatpush1.bf16.msra.mxu0 %v14743_v7  ;;  %v14806_v7 = vld [vmem:[%s20250_s5 + $0x38] sm:$0xff]  }
 0x6a6   :  { %12276 = vmatprep.subr.bf16.mxu0 %v14748_v61  ;;  %v11499_v61 = vld [vmem:[%s20252_s4] sm:$0x3] }
 0x6a7   :  { %14341 = vmatpush3.bf16.msra.mxu1 %v14806_v7 }
 0x6a8   :  { %14357 = vmatprep.subr.bf16.mxu1 %v14816_v13 }
 0x6a9   :  { %12277 = vmatpush1.bf16.msra.mxu0 %v14746_v50  ;;  %v11504_v50 = vrot.slane %v11499_v61, %v1585_v41  ;;  %v14809_v41 = vld [vmem:[%s20251_s7 + $0x10] sm:$0xff]  }
 0x6aa   :  { %12278 = vmatprep.subr.bf16.mxu0 %v14751_v31  ;;  %v11508_v31 = vrot.slane %v11499_v61, %v1589_v46  ;;  %v14810_v46 = vld [vmem:[%s20251_s7 + $0x18] sm:$0xff]  }
 0x6ad   :  { %12279 = vmatpush1.bf16.msra.mxu0 %v14749_v43 }
 0x6ae   :  { %12280 = vmatprep.subr.bf16.mxu0 %v14754_v53 }
 0x6b1   :  { %12281 = vmatpush1.bf16.msra.mxu0 %v14752_v49  ;;  %v14807_v49 = vld [vmem:[%s20251_s7] sm:$0xff]  }
 0x6b2   :  { %12282 = vmatprep.subr.bf16.mxu0 %v14757_v28 }
 0x6b5   :  { %12283 = vmatpush1.bf16.msra.mxu0 %v14755_v55  ;;  %v14811_v55 = vld [vmem:[%s20251_s7 + $0x20] sm:$0xff]  }
 0x6b6   :  { %12284 = vmatprep.subr.bf16.mxu0 %v14760_v60  ;;  %v14813_v60 = vld [vmem:[%s20251_s7 + $0x30] sm:$0xff]  }
 0x6b9   :  { %12285 = vmatpush1.bf16.msra.mxu0 %v14758_v0 }
 0x6ba   :  { %12286 = vmatprep.subr.bf16.mxu0 %v14763_v33 }
 0x6bd   :  { %12287 = vmatpush1.bf16.msra.mxu0 %v14761_v2 }
 0x6be   :  { %12288 = vmatprep.subr.bf16.mxu0 %v14766_v34 }
 0x6c1   :  { %12289 = vmatpush1.bf16.msra.mxu0 %v14764_v36 }
 0x6c2   :  { %12290 = vmatprep.subr.bf16.mxu0 %v14769_v4 }
 0x6c5   :  { %12291 = vmatpush1.bf16.msra.mxu0 %v14767_v26  ;;  %v14317_v26 = vld [vmem:[%s20254_s8] ss:$0 sm:$0xff] }
 0x6c6   :  { %12292 = vmatprep.subr.bf16.mxu0 %v14772_v5 }
 0x6c9   :  { %12293 = vmatpush1.bf16.msra.mxu0 %v14770_v6 }
 0x6ca   :  { %12294 = vmatprep.subr.bf16.mxu0 %v14775_v8 }
 0x6cd   :  { %12295 = vmatpush1.bf16.msra.mxu0 %v14773_v57 }
 0x6ce   :  { %12296 = vmatprep.subr.bf16.mxu0 %v14778_v17 }
 0x6d1   :  { %12297 = vmatpush1.bf16.msra.mxu0 %v14776_v19 }
 0x6d2   :  { %12298 = vmatprep.subr.bf16.mxu0 %v14781_v18 }
 0x6d5   :  { %12299 = vmatpush1.bf16.msra.mxu0 %v14779_v9 }
 0x6d6   :  { %12300 = vmatprep.subr.bf16.mxu0 %v14784_v51 }
 0x6d9   :  { %12301 = vmatpush1.bf16.msra.mxu0 %v14782_v58 }
 0x6da   :  { %12302 = vmatprep.subr.bf16.mxu0 %v14787_v10 }
 0x6dd   :  { %12303 = vmatpush1.bf16.msra.mxu0 %v14785_v52 }
 0x6de   :  { %12304 = vmatprep.subr.bf16.mxu0 %v14790_v40 }
 0x6e1   :  { %12305 = vmatpush1.bf16.msra.mxu0 %v14788_v14 }
 0x719   :  { %v11348_v20 = vpop.f32.mrb[8].mxu1 }
 0x71a   :  { %v14385_v15 = vadd.f32 %v11348_v20, %v1610_v11  ;;  %v11350_v3 = vpop.f32.mrb[9].mxu1 }
 0x71b   :  { %v14386_v32 = vadd.f32 %v11350_v3, %v1614_v38  ;;  %v11352_v23 = vpop.f32.mrb[10].mxu1 }
 0x71c   :  { %v11361_v25 = vmax.f32 %v14385_v15, 0.0  ;;  %v11353_v44 = vpop.f32.mrb[11].mxu1 }
 0x71d   :  { %v11362_v30 = vmax.f32 %v14386_v32, 0.0 }
 0x71e   :  { %v11369_v24 = vpack.c.bf16 %v11361_v25, %v11361_v25 }
 0x71f   :  { %v11370_v29 = vpack.c.bf16 %v11362_v30, %v11362_v30 }
 0x721   :  { %12306 = vmatprep.mubr.bf16.mxu0 %v11370_v29 }
 0x722   :  { %12307 = vmatmul.mubr.bf16.vlgmr.msra.gmra.mrb[8].mxu0 %v11369_v24 }
 0x7f5   :  { %v12308_v35 = vpop.f32.mrb[8].mxu0 }
 0x7f6   :  { %v14387_v37 = vadd.f32 %v12308_v35, %v11504_v50  ;;  %v12310_v39 = vpop.f32.mrb[9].mxu0 }
 0x7f7   :  { %v14388_v48 = vadd.f32 %v12310_v39, %v11508_v31  ;;  %v12312_v42 = vpop.f32.mrb[10].mxu0 }
 0x7f8   :  { %v12315_v43 = vmax.f32 %v14387_v37, 0.0  ;;  %v12313_v53 = vpop.f32.mrb[11].mxu0 }
 0x7f9   :  { %v12316_v45 = vmax.f32 %v14388_v48, 0.0 }
 0x7fa   :  { %v12317_v28 = vpack.c.bf16 %v12315_v43, %v12315_v43 }
 0x7fb   :  { %v12318_v47 = vpack.c.bf16 %v12316_v45, %v12316_v45 }
 0x7fd   :  { %12486 = vmatprep.mubr.bf16.mxu1 %v12318_v47 }
 0x7fe   :  { %12487 = vmatmul.mubr.bf16.vlgmr.msra.gmra.mrb[12].mxu1 %v12317_v28 }
 0x7ff   :  { %14358 = vmatpush3.bf16.msra.mxu1 %v14807_v49  ;;  %14373 = vmatprep.mubr.msk.bf16.mxu1 %vm14817_vm0, %v14816_v13 }
 0x800   :  { %14359 = vmatprep.subr.bf16.mxu1 %v14816_v13 }
 0x803   :  { %14360 = vmatpush3.bf16.msra.mxu1 %v14808_v27 }
 0x804   :  { %14361 = vmatprep.subr.bf16.mxu1 %v14816_v13 }
 0x807   :  { %14362 = vmatpush3.bf16.msra.mxu1 %v14809_v41 }
 0x808   :  { %14363 = vmatprep.subr.bf16.mxu1 %v14816_v13 }
 0x80b   :  { %14364 = vmatpush3.bf16.msra.mxu1 %v14810_v46 }
 0x80c   :  { %14365 = vmatprep.subr.bf16.mxu1 %v14816_v13 }
 0x80f   :  { %14366 = vmatpush3.bf16.msra.mxu1 %v14811_v55 }
 0x810   :  { %14367 = vmatprep.subr.bf16.mxu1 %v14816_v13 }
 0x813   :  { %14368 = vmatpush3.bf16.msra.mxu1 %v14812_v56 }
 0x814   :  { %14369 = vmatprep.subr.bf16.mxu1 %v14816_v13 }
 0x817   :  { %14370 = vmatpush3.bf16.msra.mxu1 %v14813_v60 }
 0x818   :  { %14371 = vmatprep.subr.bf16.mxu1 %v14816_v13 }
 0x81b   :  { %14372 = vmatpush3.bf16.msra.mxu1 %v14814_v12 }
 0x8d1   :  { %v14342_v59 = vpop.f32.mrb[12].mxu1 }
 0x8d2   :  { %v14343_v0 = vpop.f32.mrb[13].mxu1 }
 0x8d3   :  { %v14344_v33 = vadd.f32 %v14343_v0, %v14342_v59  ;;  %v14345_v1 = vpop.f32.mrb[14].mxu1 }
 0x8d4   :  { %v14346_v2 = vpop.f32.mrb[15].mxu1 }
 0x8d5   :  { %v12489_v34 = vadd.f32 %v14344_v33, %v14300_v63 }
 0x8d7   :  { %v12494_v36 = vmax.f32 %v12489_v34, 0.0 }
 0x8d9   :  { %v12495_v4 = vpack.c.bf16 %v12494_v36, %v12494_v36 }
 0x8db   :  { %14374 = vmatmul.mubr.bf16.vlgmr.msra.gmra.mrb[16].mxu1 %v12495_v4 }
 0x9ae   :  { %v12601_v5 = vpop.f32.mrb[16].mxu1 }
 0x9af   :  { %v12602_v6 = vadd.f32 %v14317_v26, %v12601_v5  ;;  %v14375_v8 = vpop.f32.mrb[17].mxu1 }
 0x9b0   :  { %v12604_v57 = vpop.f32.mrb[18].mxu1 }
 0x9b1   :  { %12607 = vst [vmem:[%s20255_s9] sm:$0xff] %v12602_v6  ;;  %v14376_v17 = vpop.f32.mrb[19].mxu1 }

</bundles_post_ra>
